<compile_context>
chip_gen: v7x
topology: tpu7x:2x2x1
jax: 0.10.0
libtpu: 0.0.40
codegen_flags: <defaults>
</compile_context>

<pallas_src>
import numpy as np

import jax
import jax.numpy as jnp
from jax import lax
from jax.experimental import pallas as pl
from jax.experimental.pallas import tpu as pltpu

# Set to jnp.bfloat16 on v6e/v7x for higher MXU throughput (then loosen the
# allclose tolerance to ~1e-2). fp32 keeps the correctness check tight and the
# compute here is negligible either way.
_MM_DTYPE = jnp.float32


def _build_gather_table(Hi, Wi, Ho, Wo, k=4, s=2, p=1):
    """int32 (k*k, Ho*Wo, 1): flat source row (si*Wi+sj) of the input image that
    feeds kernel tap t for each output pixel; -1 marks zero padding."""
    tbl = np.full((k * k, Ho * Wo, 1), -1, dtype=np.int32)
    for kh in range(k):
        for kw in range(k):
            t = kh * k + kw
            for i in range(Ho):
                for j in range(Wo):
                    si = s * i + kh - p
                    sj = s * j + kw - p
                    if 0 <= si < Hi and 0 <= sj < Wi:
                        tbl[t, i * Wo + j, 0] = si * Wi + sj
    return tbl


def _make_fused_kernel(shapes):
    """shapes: list of static (Hi, Wi, Ho, Wo, Cin, Cout) per layer."""

    def kernel(x_ref, *refs):
        o_ref = refs[-1]
        y = x_ref[...].astype(_MM_DTYPE)                       # (Hi*Wi, Cin) of layer 0
        for l, (Hi, Wi, Ho, Wo, Cin, Cout) in enumerate(shapes):
            tbl_ref = refs[3 * l + 0]                          # (16, M, 1) int32
            w_ref = refs[3 * l + 1]                            # (16, Cin, Cout)
            sh_ref = refs[3 * l + 2]                           # (1, Cout) folded shift
            M = Ho * Wo
            R = Hi * Wi
            # hoisted once per layer (not per tap)
            r_iota = lax.broadcasted_iota(jnp.int32, (M, R), 1)
            acc = jnp.zeros((M, Cout), jnp.float32)
            for t in range(16):                                # unrolled taps
                row_t = tbl_ref[t]                             # (M, 1)
                sel = jnp.where(r_iota == row_t,
                                jnp.float32(1.0), jnp.float32(0.0)).astype(_MM_DTYPE)
                g = jnp.dot(sel, y, preferred_element_type=jnp.float32)       # (M, Cin)
                acc = acc + jnp.dot(g.astype(_MM_DTYPE), w_ref[t],
                                    preferred_element_type=jnp.float32)       # (M, Cout)
            z = acc + sh_ref[...]                              # folded bias/BN shift
            y = jnp.where(z >= 0.0, z, 0.2 * z).astype(_MM_DTYPE)   # LeakyReLU(0.2)
        o_ref[...] = y.astype(o_ref.dtype)

    return kernel


def nlayer_frontend(x_nchw, layers):
    """x_nchw: (N, Cin, H, W) float32.  layers: list of dicts (w, b, scale, shift).
    Returns (N, Cout_last, H_out, W_out), matching the PyTorch module (eval BN)."""
    N, C0, H, W = x_nchw.shape
    k, s, p = 4, 2, 1

    # static per-layer geometry
    shapes = []
    Hi, Wi, Cin = H, W, C0
    for lyr in layers:
        Cout = lyr["w"].shape[0]
        Ho = (Hi + 2 * p - k) // s + 1
        Wo = (Wi + 2 * p - k) // s + 1
        shapes.append((Hi, Wi, Ho, Wo, Cin, Cout))
        Hi, Wi, Cin = Ho, Wo, Cout
    Ho_f, Wo_f, C_f = shapes[-1][2], shapes[-1][3], shapes[-1][5]

    # ---- model-boundary layout glue (once): NCHW -> (N, H*W, C) ------------
    x_rows = jnp.transpose(x_nchw, (0, 2, 3, 1)).reshape(N, H * W, C0).astype(_MM_DTYPE)

    # ---- fold bias + eval-mode BN into weights/shift, build index tables ---
    const_inputs, const_specs = [], []
    for (Li, Wi_, Ho, Wo, Ci, Co), lyr in zip(shapes, layers):
        tbl = jnp.asarray(_build_gather_table(Li, Wi_, Ho, Wo))          # (16, M, 1)
        w_eff = (jnp.transpose(lyr["w"], (2, 3, 1, 0)).reshape(k * k, Ci, Co)
                 * lyr["scale"][None, None, :]).astype(_MM_DTYPE)        # (16, Cin, Cout)
        shift2 = (lyr["b"] * lyr["scale"] + lyr["shift"]).reshape(1, Co).astype(jnp.float32)
        const_inputs += [tbl, w_eff, shift2]
        const_specs += [
            pl.BlockSpec(tbl.shape, lambda b: (0, 0, 0)),
            pl.BlockSpec(w_eff.shape, lambda b: (0, 0, 0)),
            pl.BlockSpec(shift2.shape, lambda b: (0, 0)),
        ]

    kernel = _make_fused_kernel(shapes)
    out_rows = pl.pallas_call(
        kernel,
        out_shape=jax.ShapeDtypeStruct((N, Ho_f * Wo_f, C_f), jnp.float32),
        grid_spec=pltpu.PrefetchScalarGridSpec(
            num_scalar_prefetch=0,
            grid=(N,),
            in_specs=[pl.BlockSpec((None, H * W, C0), lambda b: (b, 0, 0))] + const_specs,
            out_specs=pl.BlockSpec((None, Ho_f * Wo_f, C_f), lambda b: (b, 0, 0)),
        ),
        compiler_params=pltpu.CompilerParams(
            dimension_semantics=("parallel",)),
    )(x_rows, *const_inputs)

    # ---- model-boundary glue: rows -> NCHW ----------------------------------
    out = out_rows.reshape(N, Ho_f, Wo_f, C_f)
    return jnp.transpose(out, (0, 3, 1, 2))


def make_params(key, input_nc, ndf, n_layers):
    """Deterministic params mirroring NLayerFrontEnd.__init__ with
    norm_layer = nn.BatchNorm2d (=> use_bias=False for the inner convs)."""
    eps = 1e-5
    layers = []
    cfgs = [(input_nc, ndf, True, False)]      # (Cin, Cout, use_bias, use_norm)
    nf_mult = 1
    for n in range(1, n_layers):
        nf_mult_prev = nf_mult
        nf_mult = min(2 ** n, 8)
        cfgs.append((ndf * nf_mult_prev, ndf * nf_mult, False, True))

    for cin, cout, use_bias, use_norm in cfgs:
        key, kw_, kb_, kg_, kbt_, km_, kv_ = jax.random.split(key, 7)
        w = 0.1 * jax.random.normal(kw_, (cout, cin, 4, 4), jnp.float32)
        b = (0.1 * jax.random.normal(kb_, (cout,), jnp.float32)
             if use_bias else jnp.zeros((cout,), jnp.float32))
        if use_norm:
            gamma = 1.0 + 0.1 * jax.random.normal(kg_, (cout,), jnp.float32)
            beta = 0.1 * jax.random.normal(kbt_, (cout,), jnp.float32)
            rmean = 0.1 * jax.random.normal(km_, (cout,), jnp.float32)
            rvar = jnp.abs(1.0 + 0.1 * jax.random.normal(kv_, (cout,), jnp.float32))
            scale = gamma / jnp.sqrt(rvar + eps)        # fold eval-mode BN
            shift = beta - rmean * scale
        else:
            scale = jnp.ones((cout,), jnp.float32)
            shift = jnp.zeros((cout,), jnp.float32)
        layers.append(dict(w=w, b=b, scale=scale, shift=shift))
    return layers
    # TODO(synk): training-mode BatchNorm (batch statistics + running-stat
    # updates) is not modeled; only eval-mode BN (folded affine) is supported.


def _reference(x_nchw, layers):
    # Pure-JAX reference (XLA conv) used to validate the fused Pallas path.
    y = x_nchw
    for lyr in layers:
        c = lax.conv_general_dilated(
            y, lyr["w"], window_strides=(2, 2), padding=((1, 1), (1, 1)),
            dimension_numbers=("NCHW", "OIHW", "NCHW"))
        c = (c + lyr["b"][None, :, None, None]) * lyr["scale"][None, :, None, None] \
            + lyr["shift"][None, :, None, None]
        y = jnp.where(c >= 0.0, c, 0.2 * c)
    return y


if __name__ == "__main__":
    key = jax.random.PRNGKey(0)
    key, kx = jax.random.split(key)

    input_nc, ndf, n_layers = 4, 8, 3
    x = jax.random.normal(kx, (2, input_nc, 16, 16), jnp.float32)   # NCHW

    layers = make_params(key, input_nc, ndf, n_layers)

    fwd = jax.jit(nlayer_frontend)
    out = jax.block_until_ready(fwd(x, layers))

    ref = jax.block_until_ready(_reference(x, layers))
    assert out.shape == ref.shape == (2, ndf * 4, 2, 2), out.shape
    max_err = float(jnp.max(jnp.abs(out - ref)))
    assert jnp.allclose(out, ref, atol=1e-4, rtol=1e-4), max_err

    print("KERNEL_OK")
</pallas_src>

<mosaic_0001>
module attributes {stable_mosaic.version = 11 : i64} {
  func.func @kernel(%arg0: i32, %arg1: memref<1x256x4xf32, #tpu.memory_space<vmem>>, %arg2: memref<16x64x1xi32, #tpu.memory_space<vmem>>, %arg3: memref<16x4x8xf32, #tpu.memory_space<vmem>>, %arg4: memref<1x8xf32, #tpu.memory_space<vmem>>, %arg5: memref<16x16x1xi32, #tpu.memory_space<vmem>>, %arg6: memref<16x8x16xf32, #tpu.memory_space<vmem>>, %arg7: memref<1x16xf32, #tpu.memory_space<vmem>>, %arg8: memref<16x4x1xi32, #tpu.memory_space<vmem>>, %arg9: memref<16x16x32xf32, #tpu.memory_space<vmem>>, %arg10: memref<1x32xf32, #tpu.memory_space<vmem>>, %arg11: memref<1x4x32xf32, #tpu.memory_space<vmem>>) attributes {dimension_semantics = [#tpu.dimension_semantics<parallel>], iteration_bounds = array<i64: 2>, scalar_prefetch = 0 : i64, scratch_operands = 0 : i64, tpu.core_type = #tpu.core_type<tc>, window_params = [{transform_indices = @transform_0, window_bounds = array<i64: 1, 256, 4>}, {pipeline_mode = #tpu.pipeline_mode<synchronous>, transform_indices = @transform_1, window_bounds = array<i64: 16, 64, 1>}, {pipeline_mode = #tpu.pipeline_mode<synchronous>, transform_indices = @transform_2, window_bounds = array<i64: 16, 4, 8>}, {pipeline_mode = #tpu.pipeline_mode<synchronous>, transform_indices = @transform_3, window_bounds = array<i64: 1, 8>}, {pipeline_mode = #tpu.pipeline_mode<synchronous>, transform_indices = @transform_4, window_bounds = array<i64: 16, 16, 1>}, {pipeline_mode = #tpu.pipeline_mode<synchronous>, transform_indices = @transform_5, window_bounds = array<i64: 16, 8, 16>}, {pipeline_mode = #tpu.pipeline_mode<synchronous>, transform_indices = @transform_6, window_bounds = array<i64: 1, 16>}, {pipeline_mode = #tpu.pipeline_mode<synchronous>, transform_indices = @transform_7, window_bounds = array<i64: 16, 4, 1>}, {pipeline_mode = #tpu.pipeline_mode<synchronous>, transform_indices = @transform_8, window_bounds = array<i64: 16, 16, 32>}, {pipeline_mode = #tpu.pipeline_mode<synchronous>, transform_indices = @transform_9, window_bounds = array<i64: 1, 32>}, {transform_indices = @transform_10, window_bounds = array<i64: 1, 4, 32>}]} {
    %c0 = arith.constant 0 : index
    %c0_0 = arith.constant 0 : index
    %c0_1 = arith.constant 0 : index
    %0 = vector.load %arg1[%c0, %c0_0, %c0_1] : memref<1x256x4xf32, #tpu.memory_space<vmem>>, vector<1x256x4xf32>
    %1 = vector.shape_cast %0 : vector<1x256x4xf32> to vector<256x4xf32>
    %2 = tpu.iota {dimensions = array<i32: 1>} : vector<64x256xi32>
    %cst = arith.constant 0.000000e+00 : f32
    %3 = vector.broadcast %cst : f32 to vector<64x8xf32>
    %c0_2 = arith.constant 0 : index
    %c0_3 = arith.constant 0 : index
    %c0_4 = arith.constant 0 : index
    %4 = vector.load %arg2[%c0_2, %c0_3, %c0_4] : memref<16x64x1xi32, #tpu.memory_space<vmem>>, vector<1x64x1xi32>
    %5 = vector.shape_cast %4 : vector<1x64x1xi32> to vector<64x1xi32>
    %6 = vector.broadcast %5 : vector<64x1xi32> to vector<64x256xi32>
    %7 = arith.cmpi eq, %2, %6 : vector<64x256xi32>
    %cst_5 = arith.constant 1.000000e+00 : f32
    %cst_6 = arith.constant 0.000000e+00 : f32
    %8 = vector.broadcast %cst_5 : f32 to vector<64x256xf32>
    %9 = vector.broadcast %cst_6 : f32 to vector<64x256xf32>
    %10 = arith.select %7, %8, %9 : vector<64x256xi1>, vector<64x256xf32>
    %cst_7 = arith.constant dense<0.000000e+00> : vector<64x4xf32>
    %11 = tpu.matmul %10, %1, %cst_7 {dimension_numbers = #tpu.dot_dimension_numbers<[1], [0], [0], [1], [0, 0, 1, 1], [], []>} : vector<64x256xf32>, vector<256x4xf32>, vector<64x4xf32> -> vector<64x4xf32>
    %c0_8 = arith.constant 0 : index
    %c0_9 = arith.constant 0 : index
    %c0_10 = arith.constant 0 : index
    %12 = vector.load %arg3[%c0_8, %c0_9, %c0_10] : memref<16x4x8xf32, #tpu.memory_space<vmem>>, vector<1x4x8xf32>
    %13 = vector.shape_cast %12 : vector<1x4x8xf32> to vector<4x8xf32>
    %cst_11 = arith.constant dense<0.000000e+00> : vector<64x8xf32>
    %14 = tpu.matmul %11, %13, %cst_11 {dimension_numbers = #tpu.dot_dimension_numbers<[1], [0], [0], [1], [0, 0, 1, 1], [], []>} : vector<64x4xf32>, vector<4x8xf32>, vector<64x8xf32> -> vector<64x8xf32>
    %15 = arith.addf %3, %14 : vector<64x8xf32>
    %c1 = arith.constant 1 : index
    %c0_12 = arith.constant 0 : index
    %c0_13 = arith.constant 0 : index
    %16 = vector.load %arg2[%c1, %c0_12, %c0_13] : memref<16x64x1xi32, #tpu.memory_space<vmem>>, vector<1x64x1xi32>
    %17 = vector.shape_cast %16 : vector<1x64x1xi32> to vector<64x1xi32>
    %18 = vector.broadcast %17 : vector<64x1xi32> to vector<64x256xi32>
    %19 = arith.cmpi eq, %2, %18 : vector<64x256xi32>
    %cst_14 = arith.constant 1.000000e+00 : f32
    %cst_15 = arith.constant 0.000000e+00 : f32
    %20 = vector.broadcast %cst_14 : f32 to vector<64x256xf32>
    %21 = vector.broadcast %cst_15 : f32 to vector<64x256xf32>
    %22 = arith.select %19, %20, %21 : vector<64x256xi1>, vector<64x256xf32>
    %cst_16 = arith.constant dense<0.000000e+00> : vector<64x4xf32>
    %23 = tpu.matmul %22, %1, %cst_16 {dimension_numbers = #tpu.dot_dimension_numbers<[1], [0], [0], [1], [0, 0, 1, 1], [], []>} : vector<64x256xf32>, vector<256x4xf32>, vector<64x4xf32> -> vector<64x4xf32>
    %c1_17 = arith.constant 1 : index
    %c0_18 = arith.constant 0 : index
    %c0_19 = arith.constant 0 : index
    %24 = vector.load %arg3[%c1_17, %c0_18, %c0_19] : memref<16x4x8xf32, #tpu.memory_space<vmem>>, vector<1x4x8xf32>
    %25 = vector.shape_cast %24 : vector<1x4x8xf32> to vector<4x8xf32>
    %cst_20 = arith.constant dense<0.000000e+00> : vector<64x8xf32>
    %26 = tpu.matmul %23, %25, %cst_20 {dimension_numbers = #tpu.dot_dimension_numbers<[1], [0], [0], [1], [0, 0, 1, 1], [], []>} : vector<64x4xf32>, vector<4x8xf32>, vector<64x8xf32> -> vector<64x8xf32>
    %27 = arith.addf %15, %26 : vector<64x8xf32>
    %c2 = arith.constant 2 : index
    %c0_21 = arith.constant 0 : index
    %c0_22 = arith.constant 0 : index
    %28 = vector.load %arg2[%c2, %c0_21, %c0_22] : memref<16x64x1xi32, #tpu.memory_space<vmem>>, vector<1x64x1xi32>
    %29 = vector.shape_cast %28 : vector<1x64x1xi32> to vector<64x1xi32>
    %30 = vector.broadcast %29 : vector<64x1xi32> to vector<64x256xi32>
    %31 = arith.cmpi eq, %2, %30 : vector<64x256xi32>
    %cst_23 = arith.constant 1.000000e+00 : f32
    %cst_24 = arith.constant 0.000000e+00 : f32
    %32 = vector.broadcast %cst_23 : f32 to vector<64x256xf32>
    %33 = vector.broadcast %cst_24 : f32 to vector<64x256xf32>
    %34 = arith.select %31, %32, %33 : vector<64x256xi1>, vector<64x256xf32>
    %cst_25 = arith.constant dense<0.000000e+00> : vector<64x4xf32>
    %35 = tpu.matmul %34, %1, %cst_25 {dimension_numbers = #tpu.dot_dimension_numbers<[1], [0], [0], [1], [0, 0, 1, 1], [], []>} : vector<64x256xf32>, vector<256x4xf32>, vector<64x4xf32> -> vector<64x4xf32>
    %c2_26 = arith.constant 2 : index
    %c0_27 = arith.constant 0 : index
    %c0_28 = arith.constant 0 : index
    %36 = vector.load %arg3[%c2_26, %c0_27, %c0_28] : memref<16x4x8xf32, #tpu.memory_space<vmem>>, vector<1x4x8xf32>
    %37 = vector.shape_cast %36 : vector<1x4x8xf32> to vector<4x8xf32>
    %cst_29 = arith.constant dense<0.000000e+00> : vector<64x8xf32>
    %38 = tpu.matmul %35, %37, %cst_29 {dimension_numbers = #tpu.dot_dimension_numbers<[1], [0], [0], [1], [0, 0, 1, 1], [], []>} : vector<64x4xf32>, vector<4x8xf32>, vector<64x8xf32> -> vector<64x8xf32>
    %39 = arith.addf %27, %38 : vector<64x8xf32>
    %c3 = arith.constant 3 : index
    %c0_30 = arith.constant 0 : index
    %c0_31 = arith.constant 0 : index
    %40 = vector.load %arg2[%c3, %c0_30, %c0_31] : memref<16x64x1xi32, #tpu.memory_space<vmem>>, vector<1x64x1xi32>
    %41 = vector.shape_cast %40 : vector<1x64x1xi32> to vector<64x1xi32>
    %42 = vector.broadcast %41 : vector<64x1xi32> to vector<64x256xi32>
    %43 = arith.cmpi eq, %2, %42 : vector<64x256xi32>
    %cst_32 = arith.constant 1.000000e+00 : f32
    %cst_33 = arith.constant 0.000000e+00 : f32
    %44 = vector.broadcast %cst_32 : f32 to vector<64x256xf32>
    %45 = vector.broadcast %cst_33 : f32 to vector<64x256xf32>
    %46 = arith.select %43, %44, %45 : vector<64x256xi1>, vector<64x256xf32>
    %cst_34 = arith.constant dense<0.000000e+00> : vector<64x4xf32>
    %47 = tpu.matmul %46, %1, %cst_34 {dimension_numbers = #tpu.dot_dimension_numbers<[1], [0], [0], [1], [0, 0, 1, 1], [], []>} : vector<64x256xf32>, vector<256x4xf32>, vector<64x4xf32> -> vector<64x4xf32>
    %c3_35 = arith.constant 3 : index
    %c0_36 = arith.constant 0 : index
    %c0_37 = arith.constant 0 : index
    %48 = vector.load %arg3[%c3_35, %c0_36, %c0_37] : memref<16x4x8xf32, #tpu.memory_space<vmem>>, vector<1x4x8xf32>
    %49 = vector.shape_cast %48 : vector<1x4x8xf32> to vector<4x8xf32>
    %cst_38 = arith.constant dense<0.000000e+00> : vector<64x8xf32>
    %50 = tpu.matmul %47, %49, %cst_38 {dimension_numbers = #tpu.dot_dimension_numbers<[1], [0], [0], [1], [0, 0, 1, 1], [], []>} : vector<64x4xf32>, vector<4x8xf32>, vector<64x8xf32> -> vector<64x8xf32>
    %51 = arith.addf %39, %50 : vector<64x8xf32>
    %c4 = arith.constant 4 : index
    %c0_39 = arith.constant 0 : index
    %c0_40 = arith.constant 0 : index
    %52 = vector.load %arg2[%c4, %c0_39, %c0_40] : memref<16x64x1xi32, #tpu.memory_space<vmem>>, vector<1x64x1xi32>
    %53 = vector.shape_cast %52 : vector<1x64x1xi32> to vector<64x1xi32>
    %54 = vector.broadcast %53 : vector<64x1xi32> to vector<64x256xi32>
    %55 = arith.cmpi eq, %2, %54 : vector<64x256xi32>
    %cst_41 = arith.constant 1.000000e+00 : f32
    %cst_42 = arith.constant 0.000000e+00 : f32
    %56 = vector.broadcast %cst_41 : f32 to vector<64x256xf32>
    %57 = vector.broadcast %cst_42 : f32 to vector<64x256xf32>
    %58 = arith.select %55, %56, %57 : vector<64x256xi1>, vector<64x256xf32>
    %cst_43 = arith.constant dense<0.000000e+00> : vector<64x4xf32>
    %59 = tpu.matmul %58, %1, %cst_43 {dimension_numbers = #tpu.dot_dimension_numbers<[1], [0], [0], [1], [0, 0, 1, 1], [], []>} : vector<64x256xf32>, vector<256x4xf32>, vector<64x4xf32> -> vector<64x4xf32>
    %c4_44 = arith.constant 4 : index
    %c0_45 = arith.constant 0 : index
    %c0_46 = arith.constant 0 : index
    %60 = vector.load %arg3[%c4_44, %c0_45, %c0_46] : memref<16x4x8xf32, #tpu.memory_space<vmem>>, vector<1x4x8xf32>
    %61 = vector.shape_cast %60 : vector<1x4x8xf32> to vector<4x8xf32>
    %cst_47 = arith.constant dense<0.000000e+00> : vector<64x8xf32>
    %62 = tpu.matmul %59, %61, %cst_47 {dimension_numbers = #tpu.dot_dimension_numbers<[1], [0], [0], [1], [0, 0, 1, 1], [], []>} : vector<64x4xf32>, vector<4x8xf32>, vector<64x8xf32> -> vector<64x8xf32>
    %63 = arith.addf %51, %62 : vector<64x8xf32>
    %c5 = arith.constant 5 : index
    %c0_48 = arith.constant 0 : index
    %c0_49 = arith.constant 0 : index
    %64 = vector.load %arg2[%c5, %c0_48, %c0_49] : memref<16x64x1xi32, #tpu.memory_space<vmem>>, vector<1x64x1xi32>
    %65 = vector.shape_cast %64 : vector<1x64x1xi32> to vector<64x1xi32>
    %66 = vector.broadcast %65 : vector<64x1xi32> to vector<64x256xi32>
    %67 = arith.cmpi eq, %2, %66 : vector<64x256xi32>
    %cst_50 = arith.constant 1.000000e+00 : f32
    %cst_51 = arith.constant 0.000000e+00 : f32
    %68 = vector.broadcast %cst_50 : f32 to vector<64x256xf32>
    %69 = vector.broadcast %cst_51 : f32 to vector<64x256xf32>
    %70 = arith.select %67, %68, %69 : vector<64x256xi1>, vector<64x256xf32>
    %cst_52 = arith.constant dense<0.000000e+00> : vector<64x4xf32>
    %71 = tpu.matmul %70, %1, %cst_52 {dimension_numbers = #tpu.dot_dimension_numbers<[1], [0], [0], [1], [0, 0, 1, 1], [], []>} : vector<64x256xf32>, vector<256x4xf32>, vector<64x4xf32> -> vector<64x4xf32>
    %c5_53 = arith.constant 5 : index
    %c0_54 = arith.constant 0 : index
    %c0_55 = arith.constant 0 : index
    %72 = vector.load %arg3[%c5_53, %c0_54, %c0_55] : memref<16x4x8xf32, #tpu.memory_space<vmem>>, vector<1x4x8xf32>
    %73 = vector.shape_cast %72 : vector<1x4x8xf32> to vector<4x8xf32>
    %cst_56 = arith.constant dense<0.000000e+00> : vector<64x8xf32>
    %74 = tpu.matmul %71, %73, %cst_56 {dimension_numbers = #tpu.dot_dimension_numbers<[1], [0], [0], [1], [0, 0, 1, 1], [], []>} : vector<64x4xf32>, vector<4x8xf32>, vector<64x8xf32> -> vector<64x8xf32>
    %75 = arith.addf %63, %74 : vector<64x8xf32>
    %c6 = arith.constant 6 : index
    %c0_57 = arith.constant 0 : index
    %c0_58 = arith.constant 0 : index
    %76 = vector.load %arg2[%c6, %c0_57, %c0_58] : memref<16x64x1xi32, #tpu.memory_space<vmem>>, vector<1x64x1xi32>
    %77 = vector.shape_cast %76 : vector<1x64x1xi32> to vector<64x1xi32>
    %78 = vector.broadcast %77 : vector<64x1xi32> to vector<64x256xi32>
    %79 = arith.cmpi eq, %2, %78 : vector<64x256xi32>
    %cst_59 = arith.constant 1.000000e+00 : f32
    %cst_60 = arith.constant 0.000000e+00 : f32
    %80 = vector.broadcast %cst_59 : f32 to vector<64x256xf32>
    %81 = vector.broadcast %cst_60 : f32 to vector<64x256xf32>
    %82 = arith.select %79, %80, %81 : vector<64x256xi1>, vector<64x256xf32>
    %cst_61 = arith.constant dense<0.000000e+00> : vector<64x4xf32>
    %83 = tpu.matmul %82, %1, %cst_61 {dimension_numbers = #tpu.dot_dimension_numbers<[1], [0], [0], [1], [0, 0, 1, 1], [], []>} : vector<64x256xf32>, vector<256x4xf32>, vector<64x4xf32> -> vector<64x4xf32>
    %c6_62 = arith.constant 6 : index
    %c0_63 = arith.constant 0 : index
    %c0_64 = arith.constant 0 : index
    %84 = vector.load %arg3[%c6_62, %c0_63, %c0_64] : memref<16x4x8xf32, #tpu.memory_space<vmem>>, vector<1x4x8xf32>
    %85 = vector.shape_cast %84 : vector<1x4x8xf32> to vector<4x8xf32>
    %cst_65 = arith.constant dense<0.000000e+00> : vector<64x8xf32>
    %86 = tpu.matmul %83, %85, %cst_65 {dimension_numbers = #tpu.dot_dimension_numbers<[1], [0], [0], [1], [0, 0, 1, 1], [], []>} : vector<64x4xf32>, vector<4x8xf32>, vector<64x8xf32> -> vector<64x8xf32>
    %87 = arith.addf %75, %86 : vector<64x8xf32>
    %c7 = arith.constant 7 : index
    %c0_66 = arith.constant 0 : index
    %c0_67 = arith.constant 0 : index
    %88 = vector.load %arg2[%c7, %c0_66, %c0_67] : memref<16x64x1xi32, #tpu.memory_space<vmem>>, vector<1x64x1xi32>
    %89 = vector.shape_cast %88 : vector<1x64x1xi32> to vector<64x1xi32>
    %90 = vector.broadcast %89 : vector<64x1xi32> to vector<64x256xi32>
    %91 = arith.cmpi eq, %2, %90 : vector<64x256xi32>
    %cst_68 = arith.constant 1.000000e+00 : f32
    %cst_69 = arith.constant 0.000000e+00 : f32
    %92 = vector.broadcast %cst_68 : f32 to vector<64x256xf32>
    %93 = vector.broadcast %cst_69 : f32 to vector<64x256xf32>
    %94 = arith.select %91, %92, %93 : vector<64x256xi1>, vector<64x256xf32>
    %cst_70 = arith.constant dense<0.000000e+00> : vector<64x4xf32>
    %95 = tpu.matmul %94, %1, %cst_70 {dimension_numbers = #tpu.dot_dimension_numbers<[1], [0], [0], [1], [0, 0, 1, 1], [], []>} : vector<64x256xf32>, vector<256x4xf32>, vector<64x4xf32> -> vector<64x4xf32>
    %c7_71 = arith.constant 7 : index
    %c0_72 = arith.constant 0 : index
    %c0_73 = arith.constant 0 : index
    %96 = vector.load %arg3[%c7_71, %c0_72, %c0_73] : memref<16x4x8xf32, #tpu.memory_space<vmem>>, vector<1x4x8xf32>
    %97 = vector.shape_cast %96 : vector<1x4x8xf32> to vector<4x8xf32>
    %cst_74 = arith.constant dense<0.000000e+00> : vector<64x8xf32>
    %98 = tpu.matmul %95, %97, %cst_74 {dimension_numbers = #tpu.dot_dimension_numbers<[1], [0], [0], [1], [0, 0, 1, 1], [], []>} : vector<64x4xf32>, vector<4x8xf32>, vector<64x8xf32> -> vector<64x8xf32>
    %99 = arith.addf %87, %98 : vector<64x8xf32>
    %c8 = arith.constant 8 : index
    %c0_75 = arith.constant 0 : index
    %c0_76 = arith.constant 0 : index
    %100 = vector.load %arg2[%c8, %c0_75, %c0_76] : memref<16x64x1xi32, #tpu.memory_space<vmem>>, vector<1x64x1xi32>
    %101 = vector.shape_cast %100 : vector<1x64x1xi32> to vector<64x1xi32>
    %102 = vector.broadcast %101 : vector<64x1xi32> to vector<64x256xi32>
    %103 = arith.cmpi eq, %2, %102 : vector<64x256xi32>
    %cst_77 = arith.constant 1.000000e+00 : f32
    %cst_78 = arith.constant 0.000000e+00 : f32
    %104 = vector.broadcast %cst_77 : f32 to vector<64x256xf32>
    %105 = vector.broadcast %cst_78 : f32 to vector<64x256xf32>
    %106 = arith.select %103, %104, %105 : vector<64x256xi1>, vector<64x256xf32>
    %cst_79 = arith.constant dense<0.000000e+00> : vector<64x4xf32>
    %107 = tpu.matmul %106, %1, %cst_79 {dimension_numbers = #tpu.dot_dimension_numbers<[1], [0], [0], [1], [0, 0, 1, 1], [], []>} : vector<64x256xf32>, vector<256x4xf32>, vector<64x4xf32> -> vector<64x4xf32>
    %c8_80 = arith.constant 8 : index
    %c0_81 = arith.constant 0 : index
    %c0_82 = arith.constant 0 : index
    %108 = vector.load %arg3[%c8_80, %c0_81, %c0_82] : memref<16x4x8xf32, #tpu.memory_space<vmem>>, vector<1x4x8xf32>
    %109 = vector.shape_cast %108 : vector<1x4x8xf32> to vector<4x8xf32>
    %cst_83 = arith.constant dense<0.000000e+00> : vector<64x8xf32>
    %110 = tpu.matmul %107, %109, %cst_83 {dimension_numbers = #tpu.dot_dimension_numbers<[1], [0], [0], [1], [0, 0, 1, 1], [], []>} : vector<64x4xf32>, vector<4x8xf32>, vector<64x8xf32> -> vector<64x8xf32>
    %111 = arith.addf %99, %110 : vector<64x8xf32>
    %c9 = arith.constant 9 : index
    %c0_84 = arith.constant 0 : index
    %c0_85 = arith.constant 0 : index
    %112 = vector.load %arg2[%c9, %c0_84, %c0_85] : memref<16x64x1xi32, #tpu.memory_space<vmem>>, vector<1x64x1xi32>
    %113 = vector.shape_cast %112 : vector<1x64x1xi32> to vector<64x1xi32>
    %114 = vector.broadcast %113 : vector<64x1xi32> to vector<64x256xi32>
    %115 = arith.cmpi eq, %2, %114 : vector<64x256xi32>
    %cst_86 = arith.constant 1.000000e+00 : f32
    %cst_87 = arith.constant 0.000000e+00 : f32
    %116 = vector.broadcast %cst_86 : f32 to vector<64x256xf32>
    %117 = vector.broadcast %cst_87 : f32 to vector<64x256xf32>
    %118 = arith.select %115, %116, %117 : vector<64x256xi1>, vector<64x256xf32>
    %cst_88 = arith.constant dense<0.000000e+00> : vector<64x4xf32>
    %119 = tpu.matmul %118, %1, %cst_88 {dimension_numbers = #tpu.dot_dimension_numbers<[1], [0], [0], [1], [0, 0, 1, 1], [], []>} : vector<64x256xf32>, vector<256x4xf32>, vector<64x4xf32> -> vector<64x4xf32>
    %c9_89 = arith.constant 9 : index
    %c0_90 = arith.constant 0 : index
    %c0_91 = arith.constant 0 : index
    %120 = vector.load %arg3[%c9_89, %c0_90, %c0_91] : memref<16x4x8xf32, #tpu.memory_space<vmem>>, vector<1x4x8xf32>
    %121 = vector.shape_cast %120 : vector<1x4x8xf32> to vector<4x8xf32>
    %cst_92 = arith.constant dense<0.000000e+00> : vector<64x8xf32>
    %122 = tpu.matmul %119, %121, %cst_92 {dimension_numbers = #tpu.dot_dimension_numbers<[1], [0], [0], [1], [0, 0, 1, 1], [], []>} : vector<64x4xf32>, vector<4x8xf32>, vector<64x8xf32> -> vector<64x8xf32>
    %123 = arith.addf %111, %122 : vector<64x8xf32>
    %c10 = arith.constant 10 : index
    %c0_93 = arith.constant 0 : index
    %c0_94 = arith.constant 0 : index
    %124 = vector.load %arg2[%c10, %c0_93, %c0_94] : memref<16x64x1xi32, #tpu.memory_space<vmem>>, vector<1x64x1xi32>
    %125 = vector.shape_cast %124 : vector<1x64x1xi32> to vector<64x1xi32>
    %126 = vector.broadcast %125 : vector<64x1xi32> to vector<64x256xi32>
    %127 = arith.cmpi eq, %2, %126 : vector<64x256xi32>
    %cst_95 = arith.constant 1.000000e+00 : f32
    %cst_96 = arith.constant 0.000000e+00 : f32
    %128 = vector.broadcast %cst_95 : f32 to vector<64x256xf32>
    %129 = vector.broadcast %cst_96 : f32 to vector<64x256xf32>
    %130 = arith.select %127, %128, %129 : vector<64x256xi1>, vector<64x256xf32>
    %cst_97 = arith.constant dense<0.000000e+00> : vector<64x4xf32>
    %131 = tpu.matmul %130, %1, %cst_97 {dimension_numbers = #tpu.dot_dimension_numbers<[1], [0], [0], [1], [0, 0, 1, 1], [], []>} : vector<64x256xf32>, vector<256x4xf32>, vector<64x4xf32> -> vector<64x4xf32>
    %c10_98 = arith.constant 10 : index
    %c0_99 = arith.constant 0 : index
    %c0_100 = arith.constant 0 : index
    %132 = vector.load %arg3[%c10_98, %c0_99, %c0_100] : memref<16x4x8xf32, #tpu.memory_space<vmem>>, vector<1x4x8xf32>
    %133 = vector.shape_cast %132 : vector<1x4x8xf32> to vector<4x8xf32>
    %cst_101 = arith.constant dense<0.000000e+00> : vector<64x8xf32>
    %134 = tpu.matmul %131, %133, %cst_101 {dimension_numbers = #tpu.dot_dimension_numbers<[1], [0], [0], [1], [0, 0, 1, 1], [], []>} : vector<64x4xf32>, vector<4x8xf32>, vector<64x8xf32> -> vector<64x8xf32>
    %135 = arith.addf %123, %134 : vector<64x8xf32>
    %c11 = arith.constant 11 : index
    %c0_102 = arith.constant 0 : index
    %c0_103 = arith.constant 0 : index
    %136 = vector.load %arg2[%c11, %c0_102, %c0_103] : memref<16x64x1xi32, #tpu.memory_space<vmem>>, vector<1x64x1xi32>
    %137 = vector.shape_cast %136 : vector<1x64x1xi32> to vector<64x1xi32>
    %138 = vector.broadcast %137 : vector<64x1xi32> to vector<64x256xi32>
    %139 = arith.cmpi eq, %2, %138 : vector<64x256xi32>
    %cst_104 = arith.constant 1.000000e+00 : f32
    %cst_105 = arith.constant 0.000000e+00 : f32
    %140 = vector.broadcast %cst_104 : f32 to vector<64x256xf32>
    %141 = vector.broadcast %cst_105 : f32 to vector<64x256xf32>
    %142 = arith.select %139, %140, %141 : vector<64x256xi1>, vector<64x256xf32>
    %cst_106 = arith.constant dense<0.000000e+00> : vector<64x4xf32>
    %143 = tpu.matmul %142, %1, %cst_106 {dimension_numbers = #tpu.dot_dimension_numbers<[1], [0], [0], [1], [0, 0, 1, 1], [], []>} : vector<64x256xf32>, vector<256x4xf32>, vector<64x4xf32> -> vector<64x4xf32>
    %c11_107 = arith.constant 11 : index
    %c0_108 = arith.constant 0 : index
    %c0_109 = arith.constant 0 : index
    %144 = vector.load %arg3[%c11_107, %c0_108, %c0_109] : memref<16x4x8xf32, #tpu.memory_space<vmem>>, vector<1x4x8xf32>
    %145 = vector.shape_cast %144 : vector<1x4x8xf32> to vector<4x8xf32>
    %cst_110 = arith.constant dense<0.000000e+00> : vector<64x8xf32>
    %146 = tpu.matmul %143, %145, %cst_110 {dimension_numbers = #tpu.dot_dimension_numbers<[1], [0], [0], [1], [0, 0, 1, 1], [], []>} : vector<64x4xf32>, vector<4x8xf32>, vector<64x8xf32> -> vector<64x8xf32>
    %147 = arith.addf %135, %146 : vector<64x8xf32>
    %c12 = arith.constant 12 : index
    %c0_111 = arith.constant 0 : index
    %c0_112 = arith.constant 0 : index
    %148 = vector.load %arg2[%c12, %c0_111, %c0_112] : memref<16x64x1xi32, #tpu.memory_space<vmem>>, vector<1x64x1xi32>
    %149 = vector.shape_cast %148 : vector<1x64x1xi32> to vector<64x1xi32>
    %150 = vector.broadcast %149 : vector<64x1xi32> to vector<64x256xi32>
    %151 = arith.cmpi eq, %2, %150 : vector<64x256xi32>
    %cst_113 = arith.constant 1.000000e+00 : f32
    %cst_114 = arith.constant 0.000000e+00 : f32
    %152 = vector.broadcast %cst_113 : f32 to vector<64x256xf32>
    %153 = vector.broadcast %cst_114 : f32 to vector<64x256xf32>
    %154 = arith.select %151, %152, %153 : vector<64x256xi1>, vector<64x256xf32>
    %cst_115 = arith.constant dense<0.000000e+00> : vector<64x4xf32>
    %155 = tpu.matmul %154, %1, %cst_115 {dimension_numbers = #tpu.dot_dimension_numbers<[1], [0], [0], [1], [0, 0, 1, 1], [], []>} : vector<64x256xf32>, vector<256x4xf32>, vector<64x4xf32> -> vector<64x4xf32>
    %c12_116 = arith.constant 12 : index
    %c0_117 = arith.constant 0 : index
    %c0_118 = arith.constant 0 : index
    %156 = vector.load %arg3[%c12_116, %c0_117, %c0_118] : memref<16x4x8xf32, #tpu.memory_space<vmem>>, vector<1x4x8xf32>
    %157 = vector.shape_cast %156 : vector<1x4x8xf32> to vector<4x8xf32>
    %cst_119 = arith.constant dense<0.000000e+00> : vector<64x8xf32>
    %158 = tpu.matmul %155, %157, %cst_119 {dimension_numbers = #tpu.dot_dimension_numbers<[1], [0], [0], [1], [0, 0, 1, 1], [], []>} : vector<64x4xf32>, vector<4x8xf32>, vector<64x8xf32> -> vector<64x8xf32>
    %159 = arith.addf %147, %158 : vector<64x8xf32>
    %c13 = arith.constant 13 : index
    %c0_120 = arith.constant 0 : index
    %c0_121 = arith.constant 0 : index
    %160 = vector.load %arg2[%c13, %c0_120, %c0_121] : memref<16x64x1xi32, #tpu.memory_space<vmem>>, vector<1x64x1xi32>
    %161 = vector.shape_cast %160 : vector<1x64x1xi32> to vector<64x1xi32>
    %162 = vector.broadcast %161 : vector<64x1xi32> to vector<64x256xi32>
    %163 = arith.cmpi eq, %2, %162 : vector<64x256xi32>
    %cst_122 = arith.constant 1.000000e+00 : f32
    %cst_123 = arith.constant 0.000000e+00 : f32
    %164 = vector.broadcast %cst_122 : f32 to vector<64x256xf32>
    %165 = vector.broadcast %cst_123 : f32 to vector<64x256xf32>
    %166 = arith.select %163, %164, %165 : vector<64x256xi1>, vector<64x256xf32>
    %cst_124 = arith.constant dense<0.000000e+00> : vector<64x4xf32>
    %167 = tpu.matmul %166, %1, %cst_124 {dimension_numbers = #tpu.dot_dimension_numbers<[1], [0], [0], [1], [0, 0, 1, 1], [], []>} : vector<64x256xf32>, vector<256x4xf32>, vector<64x4xf32> -> vector<64x4xf32>
    %c13_125 = arith.constant 13 : index
    %c0_126 = arith.constant 0 : index
    %c0_127 = arith.constant 0 : index
    %168 = vector.load %arg3[%c13_125, %c0_126, %c0_127] : memref<16x4x8xf32, #tpu.memory_space<vmem>>, vector<1x4x8xf32>
    %169 = vector.shape_cast %168 : vector<1x4x8xf32> to vector<4x8xf32>
    %cst_128 = arith.constant dense<0.000000e+00> : vector<64x8xf32>
    %170 = tpu.matmul %167, %169, %cst_128 {dimension_numbers = #tpu.dot_dimension_numbers<[1], [0], [0], [1], [0, 0, 1, 1], [], []>} : vector<64x4xf32>, vector<4x8xf32>, vector<64x8xf32> -> vector<64x8xf32>
    %171 = arith.addf %159, %170 : vector<64x8xf32>
    %c14 = arith.constant 14 : index
    %c0_129 = arith.constant 0 : index
    %c0_130 = arith.constant 0 : index
    %172 = vector.load %arg2[%c14, %c0_129, %c0_130] : memref<16x64x1xi32, #tpu.memory_space<vmem>>, vector<1x64x1xi32>
    %173 = vector.shape_cast %172 : vector<1x64x1xi32> to vector<64x1xi32>
    %174 = vector.broadcast %173 : vector<64x1xi32> to vector<64x256xi32>
    %175 = arith.cmpi eq, %2, %174 : vector<64x256xi32>
    %cst_131 = arith.constant 1.000000e+00 : f32
    %cst_132 = arith.constant 0.000000e+00 : f32
    %176 = vector.broadcast %cst_131 : f32 to vector<64x256xf32>
    %177 = vector.broadcast %cst_132 : f32 to vector<64x256xf32>
    %178 = arith.select %175, %176, %177 : vector<64x256xi1>, vector<64x256xf32>
    %cst_133 = arith.constant dense<0.000000e+00> : vector<64x4xf32>
    %179 = tpu.matmul %178, %1, %cst_133 {dimension_numbers = #tpu.dot_dimension_numbers<[1], [0], [0], [1], [0, 0, 1, 1], [], []>} : vector<64x256xf32>, vector<256x4xf32>, vector<64x4xf32> -> vector<64x4xf32>
    %c14_134 = arith.constant 14 : index
    %c0_135 = arith.constant 0 : index
    %c0_136 = arith.constant 0 : index
    %180 = vector.load %arg3[%c14_134, %c0_135, %c0_136] : memref<16x4x8xf32, #tpu.memory_space<vmem>>, vector<1x4x8xf32>
    %181 = vector.shape_cast %180 : vector<1x4x8xf32> to vector<4x8xf32>
    %cst_137 = arith.constant dense<0.000000e+00> : vector<64x8xf32>
    %182 = tpu.matmul %179, %181, %cst_137 {dimension_numbers = #tpu.dot_dimension_numbers<[1], [0], [0], [1], [0, 0, 1, 1], [], []>} : vector<64x4xf32>, vector<4x8xf32>, vector<64x8xf32> -> vector<64x8xf32>
    %183 = arith.addf %171, %182 : vector<64x8xf32>
    %c15 = arith.constant 15 : index
    %c0_138 = arith.constant 0 : index
    %c0_139 = arith.constant 0 : index
    %184 = vector.load %arg2[%c15, %c0_138, %c0_139] : memref<16x64x1xi32, #tpu.memory_space<vmem>>, vector<1x64x1xi32>
    %185 = vector.shape_cast %184 : vector<1x64x1xi32> to vector<64x1xi32>
    %186 = vector.broadcast %185 : vector<64x1xi32> to vector<64x256xi32>
    %187 = arith.cmpi eq, %2, %186 : vector<64x256xi32>
    %cst_140 = arith.constant 1.000000e+00 : f32
    %cst_141 = arith.constant 0.000000e+00 : f32
    %188 = vector.broadcast %cst_140 : f32 to vector<64x256xf32>
    %189 = vector.broadcast %cst_141 : f32 to vector<64x256xf32>
    %190 = arith.select %187, %188, %189 : vector<64x256xi1>, vector<64x256xf32>
    %cst_142 = arith.constant dense<0.000000e+00> : vector<64x4xf32>
    %191 = tpu.matmul %190, %1, %cst_142 {dimension_numbers = #tpu.dot_dimension_numbers<[1], [0], [0], [1], [0, 0, 1, 1], [], []>} : vector<64x256xf32>, vector<256x4xf32>, vector<64x4xf32> -> vector<64x4xf32>
    %c15_143 = arith.constant 15 : index
    %c0_144 = arith.constant 0 : index
    %c0_145 = arith.constant 0 : index
    %192 = vector.load %arg3[%c15_143, %c0_144, %c0_145] : memref<16x4x8xf32, #tpu.memory_space<vmem>>, vector<1x4x8xf32>
    %193 = vector.shape_cast %192 : vector<1x4x8xf32> to vector<4x8xf32>
    %cst_146 = arith.constant dense<0.000000e+00> : vector<64x8xf32>
    %194 = tpu.matmul %191, %193, %cst_146 {dimension_numbers = #tpu.dot_dimension_numbers<[1], [0], [0], [1], [0, 0, 1, 1], [], []>} : vector<64x4xf32>, vector<4x8xf32>, vector<64x8xf32> -> vector<64x8xf32>
    %195 = arith.addf %183, %194 : vector<64x8xf32>
    %c0_147 = arith.constant 0 : index
    %c0_148 = arith.constant 0 : index
    %196 = vector.load %arg4[%c0_147, %c0_148] : memref<1x8xf32, #tpu.memory_space<vmem>>, vector<1x8xf32>
    %197 = vector.broadcast %196 : vector<1x8xf32> to vector<64x8xf32>
    %198 = arith.addf %195, %197 : vector<64x8xf32>
    %cst_149 = arith.constant 0.000000e+00 : f32
    %199 = vector.broadcast %cst_149 : f32 to vector<64x8xf32>
    %200 = arith.cmpf oge, %198, %199 : vector<64x8xf32>
    %cst_150 = arith.constant 2.000000e-01 : f32
    %201 = vector.broadcast %cst_150 : f32 to vector<64x8xf32>
    %202 = arith.mulf %201, %198 : vector<64x8xf32>
    %203 = arith.select %200, %198, %202 : vector<64x8xi1>, vector<64x8xf32>
    %204 = tpu.iota {dimensions = array<i32: 1>} : vector<16x64xi32>
    %cst_151 = arith.constant 0.000000e+00 : f32
    %205 = vector.broadcast %cst_151 : f32 to vector<16x16xf32>
    %c0_152 = arith.constant 0 : index
    %c0_153 = arith.constant 0 : index
    %c0_154 = arith.constant 0 : index
    %206 = vector.load %arg5[%c0_152, %c0_153, %c0_154] : memref<16x16x1xi32, #tpu.memory_space<vmem>>, vector<1x16x1xi32>
    %207 = vector.shape_cast %206 : vector<1x16x1xi32> to vector<16x1xi32>
    %208 = vector.broadcast %207 : vector<16x1xi32> to vector<16x64xi32>
    %209 = arith.cmpi eq, %204, %208 : vector<16x64xi32>
    %cst_155 = arith.constant 1.000000e+00 : f32
    %cst_156 = arith.constant 0.000000e+00 : f32
    %210 = vector.broadcast %cst_155 : f32 to vector<16x64xf32>
    %211 = vector.broadcast %cst_156 : f32 to vector<16x64xf32>
    %212 = arith.select %209, %210, %211 : vector<16x64xi1>, vector<16x64xf32>
    %cst_157 = arith.constant dense<0.000000e+00> : vector<16x8xf32>
    %213 = tpu.matmul %212, %203, %cst_157 {dimension_numbers = #tpu.dot_dimension_numbers<[1], [0], [0], [1], [0, 0, 1, 1], [], []>} : vector<16x64xf32>, vector<64x8xf32>, vector<16x8xf32> -> vector<16x8xf32>
    %c0_158 = arith.constant 0 : index
    %c0_159 = arith.constant 0 : index
    %c0_160 = arith.constant 0 : index
    %214 = vector.load %arg6[%c0_158, %c0_159, %c0_160] : memref<16x8x16xf32, #tpu.memory_space<vmem>>, vector<1x8x16xf32>
    %215 = vector.shape_cast %214 : vector<1x8x16xf32> to vector<8x16xf32>
    %cst_161 = arith.constant dense<0.000000e+00> : vector<16x16xf32>
    %216 = tpu.matmul %213, %215, %cst_161 {dimension_numbers = #tpu.dot_dimension_numbers<[1], [0], [0], [1], [0, 0, 1, 1], [], []>} : vector<16x8xf32>, vector<8x16xf32>, vector<16x16xf32> -> vector<16x16xf32>
    %217 = arith.addf %205, %216 : vector<16x16xf32>
    %c1_162 = arith.constant 1 : index
    %c0_163 = arith.constant 0 : index
    %c0_164 = arith.constant 0 : index
    %218 = vector.load %arg5[%c1_162, %c0_163, %c0_164] : memref<16x16x1xi32, #tpu.memory_space<vmem>>, vector<1x16x1xi32>
    %219 = vector.shape_cast %218 : vector<1x16x1xi32> to vector<16x1xi32>
    %220 = vector.broadcast %219 : vector<16x1xi32> to vector<16x64xi32>
    %221 = arith.cmpi eq, %204, %220 : vector<16x64xi32>
    %cst_165 = arith.constant 1.000000e+00 : f32
    %cst_166 = arith.constant 0.000000e+00 : f32
    %222 = vector.broadcast %cst_165 : f32 to vector<16x64xf32>
    %223 = vector.broadcast %cst_166 : f32 to vector<16x64xf32>
    %224 = arith.select %221, %222, %223 : vector<16x64xi1>, vector<16x64xf32>
    %cst_167 = arith.constant dense<0.000000e+00> : vector<16x8xf32>
    %225 = tpu.matmul %224, %203, %cst_167 {dimension_numbers = #tpu.dot_dimension_numbers<[1], [0], [0], [1], [0, 0, 1, 1], [], []>} : vector<16x64xf32>, vector<64x8xf32>, vector<16x8xf32> -> vector<16x8xf32>
    %c1_168 = arith.constant 1 : index
    %c0_169 = arith.constant 0 : index
    %c0_170 = arith.constant 0 : index
    %226 = vector.load %arg6[%c1_168, %c0_169, %c0_170] : memref<16x8x16xf32, #tpu.memory_space<vmem>>, vector<1x8x16xf32>
    %227 = vector.shape_cast %226 : vector<1x8x16xf32> to vector<8x16xf32>
    %cst_171 = arith.constant dense<0.000000e+00> : vector<16x16xf32>
    %228 = tpu.matmul %225, %227, %cst_171 {dimension_numbers = #tpu.dot_dimension_numbers<[1], [0], [0], [1], [0, 0, 1, 1], [], []>} : vector<16x8xf32>, vector<8x16xf32>, vector<16x16xf32> -> vector<16x16xf32>
    %229 = arith.addf %217, %228 : vector<16x16xf32>
    %c2_172 = arith.constant 2 : index
    %c0_173 = arith.constant 0 : index
    %c0_174 = arith.constant 0 : index
    %230 = vector.load %arg5[%c2_172, %c0_173, %c0_174] : memref<16x16x1xi32, #tpu.memory_space<vmem>>, vector<1x16x1xi32>
    %231 = vector.shape_cast %230 : vector<1x16x1xi32> to vector<16x1xi32>
    %232 = vector.broadcast %231 : vector<16x1xi32> to vector<16x64xi32>
    %233 = arith.cmpi eq, %204, %232 : vector<16x64xi32>
    %cst_175 = arith.constant 1.000000e+00 : f32
    %cst_176 = arith.constant 0.000000e+00 : f32
    %234 = vector.broadcast %cst_175 : f32 to vector<16x64xf32>
    %235 = vector.broadcast %cst_176 : f32 to vector<16x64xf32>
    %236 = arith.select %233, %234, %235 : vector<16x64xi1>, vector<16x64xf32>
    %cst_177 = arith.constant dense<0.000000e+00> : vector<16x8xf32>
    %237 = tpu.matmul %236, %203, %cst_177 {dimension_numbers = #tpu.dot_dimension_numbers<[1], [0], [0], [1], [0, 0, 1, 1], [], []>} : vector<16x64xf32>, vector<64x8xf32>, vector<16x8xf32> -> vector<16x8xf32>
    %c2_178 = arith.constant 2 : index
    %c0_179 = arith.constant 0 : index
    %c0_180 = arith.constant 0 : index
    %238 = vector.load %arg6[%c2_178, %c0_179, %c0_180] : memref<16x8x16xf32, #tpu.memory_space<vmem>>, vector<1x8x16xf32>
    %239 = vector.shape_cast %238 : vector<1x8x16xf32> to vector<8x16xf32>
    %cst_181 = arith.constant dense<0.000000e+00> : vector<16x16xf32>
    %240 = tpu.matmul %237, %239, %cst_181 {dimension_numbers = #tpu.dot_dimension_numbers<[1], [0], [0], [1], [0, 0, 1, 1], [], []>} : vector<16x8xf32>, vector<8x16xf32>, vector<16x16xf32> -> vector<16x16xf32>
    %241 = arith.addf %229, %240 : vector<16x16xf32>
    %c3_182 = arith.constant 3 : index
    %c0_183 = arith.constant 0 : index
    %c0_184 = arith.constant 0 : index
    %242 = vector.load %arg5[%c3_182, %c0_183, %c0_184] : memref<16x16x1xi32, #tpu.memory_space<vmem>>, vector<1x16x1xi32>
    %243 = vector.shape_cast %242 : vector<1x16x1xi32> to vector<16x1xi32>
    %244 = vector.broadcast %243 : vector<16x1xi32> to vector<16x64xi32>
    %245 = arith.cmpi eq, %204, %244 : vector<16x64xi32>
    %cst_185 = arith.constant 1.000000e+00 : f32
    %cst_186 = arith.constant 0.000000e+00 : f32
    %246 = vector.broadcast %cst_185 : f32 to vector<16x64xf32>
    %247 = vector.broadcast %cst_186 : f32 to vector<16x64xf32>
    %248 = arith.select %245, %246, %247 : vector<16x64xi1>, vector<16x64xf32>
    %cst_187 = arith.constant dense<0.000000e+00> : vector<16x8xf32>
    %249 = tpu.matmul %248, %203, %cst_187 {dimension_numbers = #tpu.dot_dimension_numbers<[1], [0], [0], [1], [0, 0, 1, 1], [], []>} : vector<16x64xf32>, vector<64x8xf32>, vector<16x8xf32> -> vector<16x8xf32>
    %c3_188 = arith.constant 3 : index
    %c0_189 = arith.constant 0 : index
    %c0_190 = arith.constant 0 : index
    %250 = vector.load %arg6[%c3_188, %c0_189, %c0_190] : memref<16x8x16xf32, #tpu.memory_space<vmem>>, vector<1x8x16xf32>
    %251 = vector.shape_cast %250 : vector<1x8x16xf32> to vector<8x16xf32>
    %cst_191 = arith.constant dense<0.000000e+00> : vector<16x16xf32>
    %252 = tpu.matmul %249, %251, %cst_191 {dimension_numbers = #tpu.dot_dimension_numbers<[1], [0], [0], [1], [0, 0, 1, 1], [], []>} : vector<16x8xf32>, vector<8x16xf32>, vector<16x16xf32> -> vector<16x16xf32>
    %253 = arith.addf %241, %252 : vector<16x16xf32>
    %c4_192 = arith.constant 4 : index
    %c0_193 = arith.constant 0 : index
    %c0_194 = arith.constant 0 : index
    %254 = vector.load %arg5[%c4_192, %c0_193, %c0_194] : memref<16x16x1xi32, #tpu.memory_space<vmem>>, vector<1x16x1xi32>
    %255 = vector.shape_cast %254 : vector<1x16x1xi32> to vector<16x1xi32>
    %256 = vector.broadcast %255 : vector<16x1xi32> to vector<16x64xi32>
    %257 = arith.cmpi eq, %204, %256 : vector<16x64xi32>
    %cst_195 = arith.constant 1.000000e+00 : f32
    %cst_196 = arith.constant 0.000000e+00 : f32
    %258 = vector.broadcast %cst_195 : f32 to vector<16x64xf32>
    %259 = vector.broadcast %cst_196 : f32 to vector<16x64xf32>
    %260 = arith.select %257, %258, %259 : vector<16x64xi1>, vector<16x64xf32>
    %cst_197 = arith.constant dense<0.000000e+00> : vector<16x8xf32>
    %261 = tpu.matmul %260, %203, %cst_197 {dimension_numbers = #tpu.dot_dimension_numbers<[1], [0], [0], [1], [0, 0, 1, 1], [], []>} : vector<16x64xf32>, vector<64x8xf32>, vector<16x8xf32> -> vector<16x8xf32>
    %c4_198 = arith.constant 4 : index
    %c0_199 = arith.constant 0 : index
    %c0_200 = arith.constant 0 : index
    %262 = vector.load %arg6[%c4_198, %c0_199, %c0_200] : memref<16x8x16xf32, #tpu.memory_space<vmem>>, vector<1x8x16xf32>
    %263 = vector.shape_cast %262 : vector<1x8x16xf32> to vector<8x16xf32>
    %cst_201 = arith.constant dense<0.000000e+00> : vector<16x16xf32>
    %264 = tpu.matmul %261, %263, %cst_201 {dimension_numbers = #tpu.dot_dimension_numbers<[1], [0], [0], [1], [0, 0, 1, 1], [], []>} : vector<16x8xf32>, vector<8x16xf32>, vector<16x16xf32> -> vector<16x16xf32>
    %265 = arith.addf %253, %264 : vector<16x16xf32>
    %c5_202 = arith.constant 5 : index
    %c0_203 = arith.constant 0 : index
    %c0_204 = arith.constant 0 : index
    %266 = vector.load %arg5[%c5_202, %c0_203, %c0_204] : memref<16x16x1xi32, #tpu.memory_space<vmem>>, vector<1x16x1xi32>
    %267 = vector.shape_cast %266 : vector<1x16x1xi32> to vector<16x1xi32>
    %268 = vector.broadcast %267 : vector<16x1xi32> to vector<16x64xi32>
    %269 = arith.cmpi eq, %204, %268 : vector<16x64xi32>
    %cst_205 = arith.constant 1.000000e+00 : f32
    %cst_206 = arith.constant 0.000000e+00 : f32
    %270 = vector.broadcast %cst_205 : f32 to vector<16x64xf32>
    %271 = vector.broadcast %cst_206 : f32 to vector<16x64xf32>
    %272 = arith.select %269, %270, %271 : vector<16x64xi1>, vector<16x64xf32>
    %cst_207 = arith.constant dense<0.000000e+00> : vector<16x8xf32>
    %273 = tpu.matmul %272, %203, %cst_207 {dimension_numbers = #tpu.dot_dimension_numbers<[1], [0], [0], [1], [0, 0, 1, 1], [], []>} : vector<16x64xf32>, vector<64x8xf32>, vector<16x8xf32> -> vector<16x8xf32>
    %c5_208 = arith.constant 5 : index
    %c0_209 = arith.constant 0 : index
    %c0_210 = arith.constant 0 : index
    %274 = vector.load %arg6[%c5_208, %c0_209, %c0_210] : memref<16x8x16xf32, #tpu.memory_space<vmem>>, vector<1x8x16xf32>
    %275 = vector.shape_cast %274 : vector<1x8x16xf32> to vector<8x16xf32>
    %cst_211 = arith.constant dense<0.000000e+00> : vector<16x16xf32>
    %276 = tpu.matmul %273, %275, %cst_211 {dimension_numbers = #tpu.dot_dimension_numbers<[1], [0], [0], [1], [0, 0, 1, 1], [], []>} : vector<16x8xf32>, vector<8x16xf32>, vector<16x16xf32> -> vector<16x16xf32>
    %277 = arith.addf %265, %276 : vector<16x16xf32>
    %c6_212 = arith.constant 6 : index
    %c0_213 = arith.constant 0 : index
    %c0_214 = arith.constant 0 : index
    %278 = vector.load %arg5[%c6_212, %c0_213, %c0_214] : memref<16x16x1xi32, #tpu.memory_space<vmem>>, vector<1x16x1xi32>
    %279 = vector.shape_cast %278 : vector<1x16x1xi32> to vector<16x1xi32>
    %280 = vector.broadcast %279 : vector<16x1xi32> to vector<16x64xi32>
    %281 = arith.cmpi eq, %204, %280 : vector<16x64xi32>
    %cst_215 = arith.constant 1.000000e+00 : f32
    %cst_216 = arith.constant 0.000000e+00 : f32
    %282 = vector.broadcast %cst_215 : f32 to vector<16x64xf32>
    %283 = vector.broadcast %cst_216 : f32 to vector<16x64xf32>
    %284 = arith.select %281, %282, %283 : vector<16x64xi1>, vector<16x64xf32>
    %cst_217 = arith.constant dense<0.000000e+00> : vector<16x8xf32>
    %285 = tpu.matmul %284, %203, %cst_217 {dimension_numbers = #tpu.dot_dimension_numbers<[1], [0], [0], [1], [0, 0, 1, 1], [], []>} : vector<16x64xf32>, vector<64x8xf32>, vector<16x8xf32> -> vector<16x8xf32>
    %c6_218 = arith.constant 6 : index
    %c0_219 = arith.constant 0 : index
    %c0_220 = arith.constant 0 : index
    %286 = vector.load %arg6[%c6_218, %c0_219, %c0_220] : memref<16x8x16xf32, #tpu.memory_space<vmem>>, vector<1x8x16xf32>
    %287 = vector.shape_cast %286 : vector<1x8x16xf32> to vector<8x16xf32>
    %cst_221 = arith.constant dense<0.000000e+00> : vector<16x16xf32>
    %288 = tpu.matmul %285, %287, %cst_221 {dimension_numbers = #tpu.dot_dimension_numbers<[1], [0], [0], [1], [0, 0, 1, 1], [], []>} : vector<16x8xf32>, vector<8x16xf32>, vector<16x16xf32> -> vector<16x16xf32>
    %289 = arith.addf %277, %288 : vector<16x16xf32>
    %c7_222 = arith.constant 7 : index
    %c0_223 = arith.constant 0 : index
    %c0_224 = arith.constant 0 : index
    %290 = vector.load %arg5[%c7_222, %c0_223, %c0_224] : memref<16x16x1xi32, #tpu.memory_space<vmem>>, vector<1x16x1xi32>
    %291 = vector.shape_cast %290 : vector<1x16x1xi32> to vector<16x1xi32>
    %292 = vector.broadcast %291 : vector<16x1xi32> to vector<16x64xi32>
    %293 = arith.cmpi eq, %204, %292 : vector<16x64xi32>
    %cst_225 = arith.constant 1.000000e+00 : f32
    %cst_226 = arith.constant 0.000000e+00 : f32
    %294 = vector.broadcast %cst_225 : f32 to vector<16x64xf32>
    %295 = vector.broadcast %cst_226 : f32 to vector<16x64xf32>
    %296 = arith.select %293, %294, %295 : vector<16x64xi1>, vector<16x64xf32>
    %cst_227 = arith.constant dense<0.000000e+00> : vector<16x8xf32>
    %297 = tpu.matmul %296, %203, %cst_227 {dimension_numbers = #tpu.dot_dimension_numbers<[1], [0], [0], [1], [0, 0, 1, 1], [], []>} : vector<16x64xf32>, vector<64x8xf32>, vector<16x8xf32> -> vector<16x8xf32>
    %c7_228 = arith.constant 7 : index
    %c0_229 = arith.constant 0 : index
    %c0_230 = arith.constant 0 : index
    %298 = vector.load %arg6[%c7_228, %c0_229, %c0_230] : memref<16x8x16xf32, #tpu.memory_space<vmem>>, vector<1x8x16xf32>
    %299 = vector.shape_cast %298 : vector<1x8x16xf32> to vector<8x16xf32>
    %cst_231 = arith.constant dense<0.000000e+00> : vector<16x16xf32>
    %300 = tpu.matmul %297, %299, %cst_231 {dimension_numbers = #tpu.dot_dimension_numbers<[1], [0], [0], [1], [0, 0, 1, 1], [], []>} : vector<16x8xf32>, vector<8x16xf32>, vector<16x16xf32> -> vector<16x16xf32>
    %301 = arith.addf %289, %300 : vector<16x16xf32>
    %c8_232 = arith.constant 8 : index
    %c0_233 = arith.constant 0 : index
    %c0_234 = arith.constant 0 : index
    %302 = vector.load %arg5[%c8_232, %c0_233, %c0_234] : memref<16x16x1xi32, #tpu.memory_space<vmem>>, vector<1x16x1xi32>
    %303 = vector.shape_cast %302 : vector<1x16x1xi32> to vector<16x1xi32>
    %304 = vector.broadcast %303 : vector<16x1xi32> to vector<16x64xi32>
    %305 = arith.cmpi eq, %204, %304 : vector<16x64xi32>
    %cst_235 = arith.constant 1.000000e+00 : f32
    %cst_236 = arith.constant 0.000000e+00 : f32
    %306 = vector.broadcast %cst_235 : f32 to vector<16x64xf32>
    %307 = vector.broadcast %cst_236 : f32 to vector<16x64xf32>
    %308 = arith.select %305, %306, %307 : vector<16x64xi1>, vector<16x64xf32>
    %cst_237 = arith.constant dense<0.000000e+00> : vector<16x8xf32>
    %309 = tpu.matmul %308, %203, %cst_237 {dimension_numbers = #tpu.dot_dimension_numbers<[1], [0], [0], [1], [0, 0, 1, 1], [], []>} : vector<16x64xf32>, vector<64x8xf32>, vector<16x8xf32> -> vector<16x8xf32>
    %c8_238 = arith.constant 8 : index
    %c0_239 = arith.constant 0 : index
    %c0_240 = arith.constant 0 : index
    %310 = vector.load %arg6[%c8_238, %c0_239, %c0_240] : memref<16x8x16xf32, #tpu.memory_space<vmem>>, vector<1x8x16xf32>
    %311 = vector.shape_cast %310 : vector<1x8x16xf32> to vector<8x16xf32>
    %cst_241 = arith.constant dense<0.000000e+00> : vector<16x16xf32>
    %312 = tpu.matmul %309, %311, %cst_241 {dimension_numbers = #tpu.dot_dimension_numbers<[1], [0], [0], [1], [0, 0, 1, 1], [], []>} : vector<16x8xf32>, vector<8x16xf32>, vector<16x16xf32> -> vector<16x16xf32>
    %313 = arith.addf %301, %312 : vector<16x16xf32>
    %c9_242 = arith.constant 9 : index
    %c0_243 = arith.constant 0 : index
    %c0_244 = arith.constant 0 : index
    %314 = vector.load %arg5[%c9_242, %c0_243, %c0_244] : memref<16x16x1xi32, #tpu.memory_space<vmem>>, vector<1x16x1xi32>
    %315 = vector.shape_cast %314 : vector<1x16x1xi32> to vector<16x1xi32>
    %316 = vector.broadcast %315 : vector<16x1xi32> to vector<16x64xi32>
    %317 = arith.cmpi eq, %204, %316 : vector<16x64xi32>
    %cst_245 = arith.constant 1.000000e+00 : f32
    %cst_246 = arith.constant 0.000000e+00 : f32
    %318 = vector.broadcast %cst_245 : f32 to vector<16x64xf32>
    %319 = vector.broadcast %cst_246 : f32 to vector<16x64xf32>
    %320 = arith.select %317, %318, %319 : vector<16x64xi1>, vector<16x64xf32>
    %cst_247 = arith.constant dense<0.000000e+00> : vector<16x8xf32>
    %321 = tpu.matmul %320, %203, %cst_247 {dimension_numbers = #tpu.dot_dimension_numbers<[1], [0], [0], [1], [0, 0, 1, 1], [], []>} : vector<16x64xf32>, vector<64x8xf32>, vector<16x8xf32> -> vector<16x8xf32>
    %c9_248 = arith.constant 9 : index
    %c0_249 = arith.constant 0 : index
    %c0_250 = arith.constant 0 : index
    %322 = vector.load %arg6[%c9_248, %c0_249, %c0_250] : memref<16x8x16xf32, #tpu.memory_space<vmem>>, vector<1x8x16xf32>
    %323 = vector.shape_cast %322 : vector<1x8x16xf32> to vector<8x16xf32>
    %cst_251 = arith.constant dense<0.000000e+00> : vector<16x16xf32>
    %324 = tpu.matmul %321, %323, %cst_251 {dimension_numbers = #tpu.dot_dimension_numbers<[1], [0], [0], [1], [0, 0, 1, 1], [], []>} : vector<16x8xf32>, vector<8x16xf32>, vector<16x16xf32> -> vector<16x16xf32>
    %325 = arith.addf %313, %324 : vector<16x16xf32>
    %c10_252 = arith.constant 10 : index
    %c0_253 = arith.constant 0 : index
    %c0_254 = arith.constant 0 : index
    %326 = vector.load %arg5[%c10_252, %c0_253, %c0_254] : memref<16x16x1xi32, #tpu.memory_space<vmem>>, vector<1x16x1xi32>
    %327 = vector.shape_cast %326 : vector<1x16x1xi32> to vector<16x1xi32>
    %328 = vector.broadcast %327 : vector<16x1xi32> to vector<16x64xi32>
    %329 = arith.cmpi eq, %204, %328 : vector<16x64xi32>
    %cst_255 = arith.constant 1.000000e+00 : f32
    %cst_256 = arith.constant 0.000000e+00 : f32
    %330 = vector.broadcast %cst_255 : f32 to vector<16x64xf32>
    %331 = vector.broadcast %cst_256 : f32 to vector<16x64xf32>
    %332 = arith.select %329, %330, %331 : vector<16x64xi1>, vector<16x64xf32>
    %cst_257 = arith.constant dense<0.000000e+00> : vector<16x8xf32>
    %333 = tpu.matmul %332, %203, %cst_257 {dimension_numbers = #tpu.dot_dimension_numbers<[1], [0], [0], [1], [0, 0, 1, 1], [], []>} : vector<16x64xf32>, vector<64x8xf32>, vector<16x8xf32> -> vector<16x8xf32>
    %c10_258 = arith.constant 10 : index
    %c0_259 = arith.constant 0 : index
    %c0_260 = arith.constant 0 : index
    %334 = vector.load %arg6[%c10_258, %c0_259, %c0_260] : memref<16x8x16xf32, #tpu.memory_space<vmem>>, vector<1x8x16xf32>
    %335 = vector.shape_cast %334 : vector<1x8x16xf32> to vector<8x16xf32>
    %cst_261 = arith.constant dense<0.000000e+00> : vector<16x16xf32>
    %336 = tpu.matmul %333, %335, %cst_261 {dimension_numbers = #tpu.dot_dimension_numbers<[1], [0], [0], [1], [0, 0, 1, 1], [], []>} : vector<16x8xf32>, vector<8x16xf32>, vector<16x16xf32> -> vector<16x16xf32>
    %337 = arith.addf %325, %336 : vector<16x16xf32>
    %c11_262 = arith.constant 11 : index
    %c0_263 = arith.constant 0 : index
    %c0_264 = arith.constant 0 : index
    %338 = vector.load %arg5[%c11_262, %c0_263, %c0_264] : memref<16x16x1xi32, #tpu.memory_space<vmem>>, vector<1x16x1xi32>
    %339 = vector.shape_cast %338 : vector<1x16x1xi32> to vector<16x1xi32>
    %340 = vector.broadcast %339 : vector<16x1xi32> to vector<16x64xi32>
    %341 = arith.cmpi eq, %204, %340 : vector<16x64xi32>
    %cst_265 = arith.constant 1.000000e+00 : f32
    %cst_266 = arith.constant 0.000000e+00 : f32
    %342 = vector.broadcast %cst_265 : f32 to vector<16x64xf32>
    %343 = vector.broadcast %cst_266 : f32 to vector<16x64xf32>
    %344 = arith.select %341, %342, %343 : vector<16x64xi1>, vector<16x64xf32>
    %cst_267 = arith.constant dense<0.000000e+00> : vector<16x8xf32>
    %345 = tpu.matmul %344, %203, %cst_267 {dimension_numbers = #tpu.dot_dimension_numbers<[1], [0], [0], [1], [0, 0, 1, 1], [], []>} : vector<16x64xf32>, vector<64x8xf32>, vector<16x8xf32> -> vector<16x8xf32>
    %c11_268 = arith.constant 11 : index
    %c0_269 = arith.constant 0 : index
    %c0_270 = arith.constant 0 : index
    %346 = vector.load %arg6[%c11_268, %c0_269, %c0_270] : memref<16x8x16xf32, #tpu.memory_space<vmem>>, vector<1x8x16xf32>
    %347 = vector.shape_cast %346 : vector<1x8x16xf32> to vector<8x16xf32>
    %cst_271 = arith.constant dense<0.000000e+00> : vector<16x16xf32>
    %348 = tpu.matmul %345, %347, %cst_271 {dimension_numbers = #tpu.dot_dimension_numbers<[1], [0], [0], [1], [0, 0, 1, 1], [], []>} : vector<16x8xf32>, vector<8x16xf32>, vector<16x16xf32> -> vector<16x16xf32>
    %349 = arith.addf %337, %348 : vector<16x16xf32>
    %c12_272 = arith.constant 12 : index
    %c0_273 = arith.constant 0 : index
    %c0_274 = arith.constant 0 : index
    %350 = vector.load %arg5[%c12_272, %c0_273, %c0_274] : memref<16x16x1xi32, #tpu.memory_space<vmem>>, vector<1x16x1xi32>
    %351 = vector.shape_cast %350 : vector<1x16x1xi32> to vector<16x1xi32>
    %352 = vector.broadcast %351 : vector<16x1xi32> to vector<16x64xi32>
    %353 = arith.cmpi eq, %204, %352 : vector<16x64xi32>
    %cst_275 = arith.constant 1.000000e+00 : f32
    %cst_276 = arith.constant 0.000000e+00 : f32
    %354 = vector.broadcast %cst_275 : f32 to vector<16x64xf32>
    %355 = vector.broadcast %cst_276 : f32 to vector<16x64xf32>
    %356 = arith.select %353, %354, %355 : vector<16x64xi1>, vector<16x64xf32>
    %cst_277 = arith.constant dense<0.000000e+00> : vector<16x8xf32>
    %357 = tpu.matmul %356, %203, %cst_277 {dimension_numbers = #tpu.dot_dimension_numbers<[1], [0], [0], [1], [0, 0, 1, 1], [], []>} : vector<16x64xf32>, vector<64x8xf32>, vector<16x8xf32> -> vector<16x8xf32>
    %c12_278 = arith.constant 12 : index
    %c0_279 = arith.constant 0 : index
    %c0_280 = arith.constant 0 : index
    %358 = vector.load %arg6[%c12_278, %c0_279, %c0_280] : memref<16x8x16xf32, #tpu.memory_space<vmem>>, vector<1x8x16xf32>
    %359 = vector.shape_cast %358 : vector<1x8x16xf32> to vector<8x16xf32>
    %cst_281 = arith.constant dense<0.000000e+00> : vector<16x16xf32>
    %360 = tpu.matmul %357, %359, %cst_281 {dimension_numbers = #tpu.dot_dimension_numbers<[1], [0], [0], [1], [0, 0, 1, 1], [], []>} : vector<16x8xf32>, vector<8x16xf32>, vector<16x16xf32> -> vector<16x16xf32>
    %361 = arith.addf %349, %360 : vector<16x16xf32>
    %c13_282 = arith.constant 13 : index
    %c0_283 = arith.constant 0 : index
    %c0_284 = arith.constant 0 : index
    %362 = vector.load %arg5[%c13_282, %c0_283, %c0_284] : memref<16x16x1xi32, #tpu.memory_space<vmem>>, vector<1x16x1xi32>
    %363 = vector.shape_cast %362 : vector<1x16x1xi32> to vector<16x1xi32>
    %364 = vector.broadcast %363 : vector<16x1xi32> to vector<16x64xi32>
    %365 = arith.cmpi eq, %204, %364 : vector<16x64xi32>
    %cst_285 = arith.constant 1.000000e+00 : f32
    %cst_286 = arith.constant 0.000000e+00 : f32
    %366 = vector.broadcast %cst_285 : f32 to vector<16x64xf32>
    %367 = vector.broadcast %cst_286 : f32 to vector<16x64xf32>
    %368 = arith.select %365, %366, %367 : vector<16x64xi1>, vector<16x64xf32>
    %cst_287 = arith.constant dense<0.000000e+00> : vector<16x8xf32>
    %369 = tpu.matmul %368, %203, %cst_287 {dimension_numbers = #tpu.dot_dimension_numbers<[1], [0], [0], [1], [0, 0, 1, 1], [], []>} : vector<16x64xf32>, vector<64x8xf32>, vector<16x8xf32> -> vector<16x8xf32>
    %c13_288 = arith.constant 13 : index
    %c0_289 = arith.constant 0 : index
    %c0_290 = arith.constant 0 : index
    %370 = vector.load %arg6[%c13_288, %c0_289, %c0_290] : memref<16x8x16xf32, #tpu.memory_space<vmem>>, vector<1x8x16xf32>
    %371 = vector.shape_cast %370 : vector<1x8x16xf32> to vector<8x16xf32>
    %cst_291 = arith.constant dense<0.000000e+00> : vector<16x16xf32>
    %372 = tpu.matmul %369, %371, %cst_291 {dimension_numbers = #tpu.dot_dimension_numbers<[1], [0], [0], [1], [0, 0, 1, 1], [], []>} : vector<16x8xf32>, vector<8x16xf32>, vector<16x16xf32> -> vector<16x16xf32>
    %373 = arith.addf %361, %372 : vector<16x16xf32>
    %c14_292 = arith.constant 14 : index
    %c0_293 = arith.constant 0 : index
    %c0_294 = arith.constant 0 : index
    %374 = vector.load %arg5[%c14_292, %c0_293, %c0_294] : memref<16x16x1xi32, #tpu.memory_space<vmem>>, vector<1x16x1xi32>
    %375 = vector.shape_cast %374 : vector<1x16x1xi32> to vector<16x1xi32>
    %376 = vector.broadcast %375 : vector<16x1xi32> to vector<16x64xi32>
    %377 = arith.cmpi eq, %204, %376 : vector<16x64xi32>
    %cst_295 = arith.constant 1.000000e+00 : f32
    %cst_296 = arith.constant 0.000000e+00 : f32
    %378 = vector.broadcast %cst_295 : f32 to vector<16x64xf32>
    %379 = vector.broadcast %cst_296 : f32 to vector<16x64xf32>
    %380 = arith.select %377, %378, %379 : vector<16x64xi1>, vector<16x64xf32>
    %cst_297 = arith.constant dense<0.000000e+00> : vector<16x8xf32>
    %381 = tpu.matmul %380, %203, %cst_297 {dimension_numbers = #tpu.dot_dimension_numbers<[1], [0], [0], [1], [0, 0, 1, 1], [], []>} : vector<16x64xf32>, vector<64x8xf32>, vector<16x8xf32> -> vector<16x8xf32>
    %c14_298 = arith.constant 14 : index
    %c0_299 = arith.constant 0 : index
    %c0_300 = arith.constant 0 : index
    %382 = vector.load %arg6[%c14_298, %c0_299, %c0_300] : memref<16x8x16xf32, #tpu.memory_space<vmem>>, vector<1x8x16xf32>
    %383 = vector.shape_cast %382 : vector<1x8x16xf32> to vector<8x16xf32>
    %cst_301 = arith.constant dense<0.000000e+00> : vector<16x16xf32>
    %384 = tpu.matmul %381, %383, %cst_301 {dimension_numbers = #tpu.dot_dimension_numbers<[1], [0], [0], [1], [0, 0, 1, 1], [], []>} : vector<16x8xf32>, vector<8x16xf32>, vector<16x16xf32> -> vector<16x16xf32>
    %385 = arith.addf %373, %384 : vector<16x16xf32>
    %c15_302 = arith.constant 15 : index
    %c0_303 = arith.constant 0 : index
    %c0_304 = arith.constant 0 : index
    %386 = vector.load %arg5[%c15_302, %c0_303, %c0_304] : memref<16x16x1xi32, #tpu.memory_space<vmem>>, vector<1x16x1xi32>
    %387 = vector.shape_cast %386 : vector<1x16x1xi32> to vector<16x1xi32>
    %388 = vector.broadcast %387 : vector<16x1xi32> to vector<16x64xi32>
    %389 = arith.cmpi eq, %204, %388 : vector<16x64xi32>
    %cst_305 = arith.constant 1.000000e+00 : f32
    %cst_306 = arith.constant 0.000000e+00 : f32
    %390 = vector.broadcast %cst_305 : f32 to vector<16x64xf32>
    %391 = vector.broadcast %cst_306 : f32 to vector<16x64xf32>
    %392 = arith.select %389, %390, %391 : vector<16x64xi1>, vector<16x64xf32>
    %cst_307 = arith.constant dense<0.000000e+00> : vector<16x8xf32>
    %393 = tpu.matmul %392, %203, %cst_307 {dimension_numbers = #tpu.dot_dimension_numbers<[1], [0], [0], [1], [0, 0, 1, 1], [], []>} : vector<16x64xf32>, vector<64x8xf32>, vector<16x8xf32> -> vector<16x8xf32>
    %c15_308 = arith.constant 15 : index
    %c0_309 = arith.constant 0 : index
    %c0_310 = arith.constant 0 : index
    %394 = vector.load %arg6[%c15_308, %c0_309, %c0_310] : memref<16x8x16xf32, #tpu.memory_space<vmem>>, vector<1x8x16xf32>
    %395 = vector.shape_cast %394 : vector<1x8x16xf32> to vector<8x16xf32>
    %cst_311 = arith.constant dense<0.000000e+00> : vector<16x16xf32>
    %396 = tpu.matmul %393, %395, %cst_311 {dimension_numbers = #tpu.dot_dimension_numbers<[1], [0], [0], [1], [0, 0, 1, 1], [], []>} : vector<16x8xf32>, vector<8x16xf32>, vector<16x16xf32> -> vector<16x16xf32>
    %397 = arith.addf %385, %396 : vector<16x16xf32>
    %c0_312 = arith.constant 0 : index
    %c0_313 = arith.constant 0 : index
    %398 = vector.load %arg7[%c0_312, %c0_313] : memref<1x16xf32, #tpu.memory_space<vmem>>, vector<1x16xf32>
    %399 = vector.broadcast %398 : vector<1x16xf32> to vector<16x16xf32>
    %400 = arith.addf %397, %399 : vector<16x16xf32>
    %cst_314 = arith.constant 0.000000e+00 : f32
    %401 = vector.broadcast %cst_314 : f32 to vector<16x16xf32>
    %402 = arith.cmpf oge, %400, %401 : vector<16x16xf32>
    %cst_315 = arith.constant 2.000000e-01 : f32
    %403 = vector.broadcast %cst_315 : f32 to vector<16x16xf32>
    %404 = arith.mulf %403, %400 : vector<16x16xf32>
    %405 = arith.select %402, %400, %404 : vector<16x16xi1>, vector<16x16xf32>
    %406 = tpu.iota {dimensions = array<i32: 1>} : vector<4x16xi32>
    %cst_316 = arith.constant 0.000000e+00 : f32
    %407 = vector.broadcast %cst_316 : f32 to vector<4x32xf32>
    %c0_317 = arith.constant 0 : index
    %c0_318 = arith.constant 0 : index
    %c0_319 = arith.constant 0 : index
    %408 = vector.load %arg8[%c0_317, %c0_318, %c0_319] : memref<16x4x1xi32, #tpu.memory_space<vmem>>, vector<1x4x1xi32>
    %409 = vector.shape_cast %408 : vector<1x4x1xi32> to vector<4x1xi32>
    %410 = vector.broadcast %409 : vector<4x1xi32> to vector<4x16xi32>
    %411 = arith.cmpi eq, %406, %410 : vector<4x16xi32>
    %cst_320 = arith.constant 1.000000e+00 : f32
    %cst_321 = arith.constant 0.000000e+00 : f32
    %412 = vector.broadcast %cst_320 : f32 to vector<4x16xf32>
    %413 = vector.broadcast %cst_321 : f32 to vector<4x16xf32>
    %414 = arith.select %411, %412, %413 : vector<4x16xi1>, vector<4x16xf32>
    %cst_322 = arith.constant dense<0.000000e+00> : vector<4x16xf32>
    %415 = tpu.matmul %414, %405, %cst_322 {dimension_numbers = #tpu.dot_dimension_numbers<[1], [0], [0], [1], [0, 0, 1, 1], [], []>} : vector<4x16xf32>, vector<16x16xf32>, vector<4x16xf32> -> vector<4x16xf32>
    %c0_323 = arith.constant 0 : index
    %c0_324 = arith.constant 0 : index
    %c0_325 = arith.constant 0 : index
    %416 = vector.load %arg9[%c0_323, %c0_324, %c0_325] : memref<16x16x32xf32, #tpu.memory_space<vmem>>, vector<1x16x32xf32>
    %417 = vector.shape_cast %416 : vector<1x16x32xf32> to vector<16x32xf32>
    %cst_326 = arith.constant dense<0.000000e+00> : vector<4x32xf32>
    %418 = tpu.matmul %415, %417, %cst_326 {dimension_numbers = #tpu.dot_dimension_numbers<[1], [0], [0], [1], [0, 0, 1, 1], [], []>} : vector<4x16xf32>, vector<16x32xf32>, vector<4x32xf32> -> vector<4x32xf32>
    %419 = arith.addf %407, %418 : vector<4x32xf32>
    %c1_327 = arith.constant 1 : index
    %c0_328 = arith.constant 0 : index
    %c0_329 = arith.constant 0 : index
    %420 = vector.load %arg8[%c1_327, %c0_328, %c0_329] : memref<16x4x1xi32, #tpu.memory_space<vmem>>, vector<1x4x1xi32>
    %421 = vector.shape_cast %420 : vector<1x4x1xi32> to vector<4x1xi32>
    %422 = vector.broadcast %421 : vector<4x1xi32> to vector<4x16xi32>
    %423 = arith.cmpi eq, %406, %422 : vector<4x16xi32>
    %cst_330 = arith.constant 1.000000e+00 : f32
    %cst_331 = arith.constant 0.000000e+00 : f32
    %424 = vector.broadcast %cst_330 : f32 to vector<4x16xf32>
    %425 = vector.broadcast %cst_331 : f32 to vector<4x16xf32>
    %426 = arith.select %423, %424, %425 : vector<4x16xi1>, vector<4x16xf32>
    %cst_332 = arith.constant dense<0.000000e+00> : vector<4x16xf32>
    %427 = tpu.matmul %426, %405, %cst_332 {dimension_numbers = #tpu.dot_dimension_numbers<[1], [0], [0], [1], [0, 0, 1, 1], [], []>} : vector<4x16xf32>, vector<16x16xf32>, vector<4x16xf32> -> vector<4x16xf32>
    %c1_333 = arith.constant 1 : index
    %c0_334 = arith.constant 0 : index
    %c0_335 = arith.constant 0 : index
    %428 = vector.load %arg9[%c1_333, %c0_334, %c0_335] : memref<16x16x32xf32, #tpu.memory_space<vmem>>, vector<1x16x32xf32>
    %429 = vector.shape_cast %428 : vector<1x16x32xf32> to vector<16x32xf32>
    %cst_336 = arith.constant dense<0.000000e+00> : vector<4x32xf32>
    %430 = tpu.matmul %427, %429, %cst_336 {dimension_numbers = #tpu.dot_dimension_numbers<[1], [0], [0], [1], [0, 0, 1, 1], [], []>} : vector<4x16xf32>, vector<16x32xf32>, vector<4x32xf32> -> vector<4x32xf32>
    %431 = arith.addf %419, %430 : vector<4x32xf32>
    %c2_337 = arith.constant 2 : index
    %c0_338 = arith.constant 0 : index
    %c0_339 = arith.constant 0 : index
    %432 = vector.load %arg8[%c2_337, %c0_338, %c0_339] : memref<16x4x1xi32, #tpu.memory_space<vmem>>, vector<1x4x1xi32>
    %433 = vector.shape_cast %432 : vector<1x4x1xi32> to vector<4x1xi32>
    %434 = vector.broadcast %433 : vector<4x1xi32> to vector<4x16xi32>
    %435 = arith.cmpi eq, %406, %434 : vector<4x16xi32>
    %cst_340 = arith.constant 1.000000e+00 : f32
    %cst_341 = arith.constant 0.000000e+00 : f32
    %436 = vector.broadcast %cst_340 : f32 to vector<4x16xf32>
    %437 = vector.broadcast %cst_341 : f32 to vector<4x16xf32>
    %438 = arith.select %435, %436, %437 : vector<4x16xi1>, vector<4x16xf32>
    %cst_342 = arith.constant dense<0.000000e+00> : vector<4x16xf32>
    %439 = tpu.matmul %438, %405, %cst_342 {dimension_numbers = #tpu.dot_dimension_numbers<[1], [0], [0], [1], [0, 0, 1, 1], [], []>} : vector<4x16xf32>, vector<16x16xf32>, vector<4x16xf32> -> vector<4x16xf32>
    %c2_343 = arith.constant 2 : index
    %c0_344 = arith.constant 0 : index
    %c0_345 = arith.constant 0 : index
    %440 = vector.load %arg9[%c2_343, %c0_344, %c0_345] : memref<16x16x32xf32, #tpu.memory_space<vmem>>, vector<1x16x32xf32>
    %441 = vector.shape_cast %440 : vector<1x16x32xf32> to vector<16x32xf32>
    %cst_346 = arith.constant dense<0.000000e+00> : vector<4x32xf32>
    %442 = tpu.matmul %439, %441, %cst_346 {dimension_numbers = #tpu.dot_dimension_numbers<[1], [0], [0], [1], [0, 0, 1, 1], [], []>} : vector<4x16xf32>, vector<16x32xf32>, vector<4x32xf32> -> vector<4x32xf32>
    %443 = arith.addf %431, %442 : vector<4x32xf32>
    %c3_347 = arith.constant 3 : index
    %c0_348 = arith.constant 0 : index
    %c0_349 = arith.constant 0 : index
    %444 = vector.load %arg8[%c3_347, %c0_348, %c0_349] : memref<16x4x1xi32, #tpu.memory_space<vmem>>, vector<1x4x1xi32>
    %445 = vector.shape_cast %444 : vector<1x4x1xi32> to vector<4x1xi32>
    %446 = vector.broadcast %445 : vector<4x1xi32> to vector<4x16xi32>
    %447 = arith.cmpi eq, %406, %446 : vector<4x16xi32>
    %cst_350 = arith.constant 1.000000e+00 : f32
    %cst_351 = arith.constant 0.000000e+00 : f32
    %448 = vector.broadcast %cst_350 : f32 to vector<4x16xf32>
    %449 = vector.broadcast %cst_351 : f32 to vector<4x16xf32>
    %450 = arith.select %447, %448, %449 : vector<4x16xi1>, vector<4x16xf32>
    %cst_352 = arith.constant dense<0.000000e+00> : vector<4x16xf32>
    %451 = tpu.matmul %450, %405, %cst_352 {dimension_numbers = #tpu.dot_dimension_numbers<[1], [0], [0], [1], [0, 0, 1, 1], [], []>} : vector<4x16xf32>, vector<16x16xf32>, vector<4x16xf32> -> vector<4x16xf32>
    %c3_353 = arith.constant 3 : index
    %c0_354 = arith.constant 0 : index
    %c0_355 = arith.constant 0 : index
    %452 = vector.load %arg9[%c3_353, %c0_354, %c0_355] : memref<16x16x32xf32, #tpu.memory_space<vmem>>, vector<1x16x32xf32>
    %453 = vector.shape_cast %452 : vector<1x16x32xf32> to vector<16x32xf32>
    %cst_356 = arith.constant dense<0.000000e+00> : vector<4x32xf32>
    %454 = tpu.matmul %451, %453, %cst_356 {dimension_numbers = #tpu.dot_dimension_numbers<[1], [0], [0], [1], [0, 0, 1, 1], [], []>} : vector<4x16xf32>, vector<16x32xf32>, vector<4x32xf32> -> vector<4x32xf32>
    %455 = arith.addf %443, %454 : vector<4x32xf32>
    %c4_357 = arith.constant 4 : index
    %c0_358 = arith.constant 0 : index
    %c0_359 = arith.constant 0 : index
    %456 = vector.load %arg8[%c4_357, %c0_358, %c0_359] : memref<16x4x1xi32, #tpu.memory_space<vmem>>, vector<1x4x1xi32>
    %457 = vector.shape_cast %456 : vector<1x4x1xi32> to vector<4x1xi32>
    %458 = vector.broadcast %457 : vector<4x1xi32> to vector<4x16xi32>
    %459 = arith.cmpi eq, %406, %458 : vector<4x16xi32>
    %cst_360 = arith.constant 1.000000e+00 : f32
    %cst_361 = arith.constant 0.000000e+00 : f32
    %460 = vector.broadcast %cst_360 : f32 to vector<4x16xf32>
    %461 = vector.broadcast %cst_361 : f32 to vector<4x16xf32>
    %462 = arith.select %459, %460, %461 : vector<4x16xi1>, vector<4x16xf32>
    %cst_362 = arith.constant dense<0.000000e+00> : vector<4x16xf32>
    %463 = tpu.matmul %462, %405, %cst_362 {dimension_numbers = #tpu.dot_dimension_numbers<[1], [0], [0], [1], [0, 0, 1, 1], [], []>} : vector<4x16xf32>, vector<16x16xf32>, vector<4x16xf32> -> vector<4x16xf32>
    %c4_363 = arith.constant 4 : index
    %c0_364 = arith.constant 0 : index
    %c0_365 = arith.constant 0 : index
    %464 = vector.load %arg9[%c4_363, %c0_364, %c0_365] : memref<16x16x32xf32, #tpu.memory_space<vmem>>, vector<1x16x32xf32>
    %465 = vector.shape_cast %464 : vector<1x16x32xf32> to vector<16x32xf32>
    %cst_366 = arith.constant dense<0.000000e+00> : vector<4x32xf32>
    %466 = tpu.matmul %463, %465, %cst_366 {dimension_numbers = #tpu.dot_dimension_numbers<[1], [0], [0], [1], [0, 0, 1, 1], [], []>} : vector<4x16xf32>, vector<16x32xf32>, vector<4x32xf32> -> vector<4x32xf32>
    %467 = arith.addf %455, %466 : vector<4x32xf32>
    %c5_367 = arith.constant 5 : index
    %c0_368 = arith.constant 0 : index
    %c0_369 = arith.constant 0 : index
    %468 = vector.load %arg8[%c5_367, %c0_368, %c0_369] : memref<16x4x1xi32, #tpu.memory_space<vmem>>, vector<1x4x1xi32>
    %469 = vector.shape_cast %468 : vector<1x4x1xi32> to vector<4x1xi32>
    %470 = vector.broadcast %469 : vector<4x1xi32> to vector<4x16xi32>
    %471 = arith.cmpi eq, %406, %470 : vector<4x16xi32>
    %cst_370 = arith.constant 1.000000e+00 : f32
    %cst_371 = arith.constant 0.000000e+00 : f32
    %472 = vector.broadcast %cst_370 : f32 to vector<4x16xf32>
    %473 = vector.broadcast %cst_371 : f32 to vector<4x16xf32>
    %474 = arith.select %471, %472, %473 : vector<4x16xi1>, vector<4x16xf32>
    %cst_372 = arith.constant dense<0.000000e+00> : vector<4x16xf32>
    %475 = tpu.matmul %474, %405, %cst_372 {dimension_numbers = #tpu.dot_dimension_numbers<[1], [0], [0], [1], [0, 0, 1, 1], [], []>} : vector<4x16xf32>, vector<16x16xf32>, vector<4x16xf32> -> vector<4x16xf32>
    %c5_373 = arith.constant 5 : index
    %c0_374 = arith.constant 0 : index
    %c0_375 = arith.constant 0 : index
    %476 = vector.load %arg9[%c5_373, %c0_374, %c0_375] : memref<16x16x32xf32, #tpu.memory_space<vmem>>, vector<1x16x32xf32>
    %477 = vector.shape_cast %476 : vector<1x16x32xf32> to vector<16x32xf32>
    %cst_376 = arith.constant dense<0.000000e+00> : vector<4x32xf32>
    %478 = tpu.matmul %475, %477, %cst_376 {dimension_numbers = #tpu.dot_dimension_numbers<[1], [0], [0], [1], [0, 0, 1, 1], [], []>} : vector<4x16xf32>, vector<16x32xf32>, vector<4x32xf32> -> vector<4x32xf32>
    %479 = arith.addf %467, %478 : vector<4x32xf32>
    %c6_377 = arith.constant 6 : index
    %c0_378 = arith.constant 0 : index
    %c0_379 = arith.constant 0 : index
    %480 = vector.load %arg8[%c6_377, %c0_378, %c0_379] : memref<16x4x1xi32, #tpu.memory_space<vmem>>, vector<1x4x1xi32>
    %481 = vector.shape_cast %480 : vector<1x4x1xi32> to vector<4x1xi32>
    %482 = vector.broadcast %481 : vector<4x1xi32> to vector<4x16xi32>
    %483 = arith.cmpi eq, %406, %482 : vector<4x16xi32>
    %cst_380 = arith.constant 1.000000e+00 : f32
    %cst_381 = arith.constant 0.000000e+00 : f32
    %484 = vector.broadcast %cst_380 : f32 to vector<4x16xf32>
    %485 = vector.broadcast %cst_381 : f32 to vector<4x16xf32>
    %486 = arith.select %483, %484, %485 : vector<4x16xi1>, vector<4x16xf32>
    %cst_382 = arith.constant dense<0.000000e+00> : vector<4x16xf32>
    %487 = tpu.matmul %486, %405, %cst_382 {dimension_numbers = #tpu.dot_dimension_numbers<[1], [0], [0], [1], [0, 0, 1, 1], [], []>} : vector<4x16xf32>, vector<16x16xf32>, vector<4x16xf32> -> vector<4x16xf32>
    %c6_383 = arith.constant 6 : index
    %c0_384 = arith.constant 0 : index
    %c0_385 = arith.constant 0 : index
    %488 = vector.load %arg9[%c6_383, %c0_384, %c0_385] : memref<16x16x32xf32, #tpu.memory_space<vmem>>, vector<1x16x32xf32>
    %489 = vector.shape_cast %488 : vector<1x16x32xf32> to vector<16x32xf32>
    %cst_386 = arith.constant dense<0.000000e+00> : vector<4x32xf32>
    %490 = tpu.matmul %487, %489, %cst_386 {dimension_numbers = #tpu.dot_dimension_numbers<[1], [0], [0], [1], [0, 0, 1, 1], [], []>} : vector<4x16xf32>, vector<16x32xf32>, vector<4x32xf32> -> vector<4x32xf32>
    %491 = arith.addf %479, %490 : vector<4x32xf32>
    %c7_387 = arith.constant 7 : index
    %c0_388 = arith.constant 0 : index
    %c0_389 = arith.constant 0 : index
    %492 = vector.load %arg8[%c7_387, %c0_388, %c0_389] : memref<16x4x1xi32, #tpu.memory_space<vmem>>, vector<1x4x1xi32>
    %493 = vector.shape_cast %492 : vector<1x4x1xi32> to vector<4x1xi32>
    %494 = vector.broadcast %493 : vector<4x1xi32> to vector<4x16xi32>
    %495 = arith.cmpi eq, %406, %494 : vector<4x16xi32>
    %cst_390 = arith.constant 1.000000e+00 : f32
    %cst_391 = arith.constant 0.000000e+00 : f32
    %496 = vector.broadcast %cst_390 : f32 to vector<4x16xf32>
    %497 = vector.broadcast %cst_391 : f32 to vector<4x16xf32>
    %498 = arith.select %495, %496, %497 : vector<4x16xi1>, vector<4x16xf32>
    %cst_392 = arith.constant dense<0.000000e+00> : vector<4x16xf32>
    %499 = tpu.matmul %498, %405, %cst_392 {dimension_numbers = #tpu.dot_dimension_numbers<[1], [0], [0], [1], [0, 0, 1, 1], [], []>} : vector<4x16xf32>, vector<16x16xf32>, vector<4x16xf32> -> vector<4x16xf32>
    %c7_393 = arith.constant 7 : index
    %c0_394 = arith.constant 0 : index
    %c0_395 = arith.constant 0 : index
    %500 = vector.load %arg9[%c7_393, %c0_394, %c0_395] : memref<16x16x32xf32, #tpu.memory_space<vmem>>, vector<1x16x32xf32>
    %501 = vector.shape_cast %500 : vector<1x16x32xf32> to vector<16x32xf32>
    %cst_396 = arith.constant dense<0.000000e+00> : vector<4x32xf32>
    %502 = tpu.matmul %499, %501, %cst_396 {dimension_numbers = #tpu.dot_dimension_numbers<[1], [0], [0], [1], [0, 0, 1, 1], [], []>} : vector<4x16xf32>, vector<16x32xf32>, vector<4x32xf32> -> vector<4x32xf32>
    %503 = arith.addf %491, %502 : vector<4x32xf32>
    %c8_397 = arith.constant 8 : index
    %c0_398 = arith.constant 0 : index
    %c0_399 = arith.constant 0 : index
    %504 = vector.load %arg8[%c8_397, %c0_398, %c0_399] : memref<16x4x1xi32, #tpu.memory_space<vmem>>, vector<1x4x1xi32>
    %505 = vector.shape_cast %504 : vector<1x4x1xi32> to vector<4x1xi32>
    %506 = vector.broadcast %505 : vector<4x1xi32> to vector<4x16xi32>
    %507 = arith.cmpi eq, %406, %506 : vector<4x16xi32>
    %cst_400 = arith.constant 1.000000e+00 : f32
    %cst_401 = arith.constant 0.000000e+00 : f32
    %508 = vector.broadcast %cst_400 : f32 to vector<4x16xf32>
    %509 = vector.broadcast %cst_401 : f32 to vector<4x16xf32>
    %510 = arith.select %507, %508, %509 : vector<4x16xi1>, vector<4x16xf32>
    %cst_402 = arith.constant dense<0.000000e+00> : vector<4x16xf32>
    %511 = tpu.matmul %510, %405, %cst_402 {dimension_numbers = #tpu.dot_dimension_numbers<[1], [0], [0], [1], [0, 0, 1, 1], [], []>} : vector<4x16xf32>, vector<16x16xf32>, vector<4x16xf32> -> vector<4x16xf32>
    %c8_403 = arith.constant 8 : index
    %c0_404 = arith.constant 0 : index
    %c0_405 = arith.constant 0 : index
    %512 = vector.load %arg9[%c8_403, %c0_404, %c0_405] : memref<16x16x32xf32, #tpu.memory_space<vmem>>, vector<1x16x32xf32>
    %513 = vector.shape_cast %512 : vector<1x16x32xf32> to vector<16x32xf32>
    %cst_406 = arith.constant dense<0.000000e+00> : vector<4x32xf32>
    %514 = tpu.matmul %511, %513, %cst_406 {dimension_numbers = #tpu.dot_dimension_numbers<[1], [0], [0], [1], [0, 0, 1, 1], [], []>} : vector<4x16xf32>, vector<16x32xf32>, vector<4x32xf32> -> vector<4x32xf32>
    %515 = arith.addf %503, %514 : vector<4x32xf32>
    %c9_407 = arith.constant 9 : index
    %c0_408 = arith.constant 0 : index
    %c0_409 = arith.constant 0 : index
    %516 = vector.load %arg8[%c9_407, %c0_408, %c0_409] : memref<16x4x1xi32, #tpu.memory_space<vmem>>, vector<1x4x1xi32>
    %517 = vector.shape_cast %516 : vector<1x4x1xi32> to vector<4x1xi32>
    %518 = vector.broadcast %517 : vector<4x1xi32> to vector<4x16xi32>
    %519 = arith.cmpi eq, %406, %518 : vector<4x16xi32>
    %cst_410 = arith.constant 1.000000e+00 : f32
    %cst_411 = arith.constant 0.000000e+00 : f32
    %520 = vector.broadcast %cst_410 : f32 to vector<4x16xf32>
    %521 = vector.broadcast %cst_411 : f32 to vector<4x16xf32>
    %522 = arith.select %519, %520, %521 : vector<4x16xi1>, vector<4x16xf32>
    %cst_412 = arith.constant dense<0.000000e+00> : vector<4x16xf32>
    %523 = tpu.matmul %522, %405, %cst_412 {dimension_numbers = #tpu.dot_dimension_numbers<[1], [0], [0], [1], [0, 0, 1, 1], [], []>} : vector<4x16xf32>, vector<16x16xf32>, vector<4x16xf32> -> vector<4x16xf32>
    %c9_413 = arith.constant 9 : index
    %c0_414 = arith.constant 0 : index
    %c0_415 = arith.constant 0 : index
    %524 = vector.load %arg9[%c9_413, %c0_414, %c0_415] : memref<16x16x32xf32, #tpu.memory_space<vmem>>, vector<1x16x32xf32>
    %525 = vector.shape_cast %524 : vector<1x16x32xf32> to vector<16x32xf32>
    %cst_416 = arith.constant dense<0.000000e+00> : vector<4x32xf32>
    %526 = tpu.matmul %523, %525, %cst_416 {dimension_numbers = #tpu.dot_dimension_numbers<[1], [0], [0], [1], [0, 0, 1, 1], [], []>} : vector<4x16xf32>, vector<16x32xf32>, vector<4x32xf32> -> vector<4x32xf32>
    %527 = arith.addf %515, %526 : vector<4x32xf32>
    %c10_417 = arith.constant 10 : index
    %c0_418 = arith.constant 0 : index
    %c0_419 = arith.constant 0 : index
    %528 = vector.load %arg8[%c10_417, %c0_418, %c0_419] : memref<16x4x1xi32, #tpu.memory_space<vmem>>, vector<1x4x1xi32>
    %529 = vector.shape_cast %528 : vector<1x4x1xi32> to vector<4x1xi32>
    %530 = vector.broadcast %529 : vector<4x1xi32> to vector<4x16xi32>
    %531 = arith.cmpi eq, %406, %530 : vector<4x16xi32>
    %cst_420 = arith.constant 1.000000e+00 : f32
    %cst_421 = arith.constant 0.000000e+00 : f32
    %532 = vector.broadcast %cst_420 : f32 to vector<4x16xf32>
    %533 = vector.broadcast %cst_421 : f32 to vector<4x16xf32>
    %534 = arith.select %531, %532, %533 : vector<4x16xi1>, vector<4x16xf32>
    %cst_422 = arith.constant dense<0.000000e+00> : vector<4x16xf32>
    %535 = tpu.matmul %534, %405, %cst_422 {dimension_numbers = #tpu.dot_dimension_numbers<[1], [0], [0], [1], [0, 0, 1, 1], [], []>} : vector<4x16xf32>, vector<16x16xf32>, vector<4x16xf32> -> vector<4x16xf32>
    %c10_423 = arith.constant 10 : index
    %c0_424 = arith.constant 0 : index
    %c0_425 = arith.constant 0 : index
    %536 = vector.load %arg9[%c10_423, %c0_424, %c0_425] : memref<16x16x32xf32, #tpu.memory_space<vmem>>, vector<1x16x32xf32>
    %537 = vector.shape_cast %536 : vector<1x16x32xf32> to vector<16x32xf32>
    %cst_426 = arith.constant dense<0.000000e+00> : vector<4x32xf32>
    %538 = tpu.matmul %535, %537, %cst_426 {dimension_numbers = #tpu.dot_dimension_numbers<[1], [0], [0], [1], [0, 0, 1, 1], [], []>} : vector<4x16xf32>, vector<16x32xf32>, vector<4x32xf32> -> vector<4x32xf32>
    %539 = arith.addf %527, %538 : vector<4x32xf32>
    %c11_427 = arith.constant 11 : index
    %c0_428 = arith.constant 0 : index
    %c0_429 = arith.constant 0 : index
    %540 = vector.load %arg8[%c11_427, %c0_428, %c0_429] : memref<16x4x1xi32, #tpu.memory_space<vmem>>, vector<1x4x1xi32>
    %541 = vector.shape_cast %540 : vector<1x4x1xi32> to vector<4x1xi32>
    %542 = vector.broadcast %541 : vector<4x1xi32> to vector<4x16xi32>
    %543 = arith.cmpi eq, %406, %542 : vector<4x16xi32>
    %cst_430 = arith.constant 1.000000e+00 : f32
    %cst_431 = arith.constant 0.000000e+00 : f32
    %544 = vector.broadcast %cst_430 : f32 to vector<4x16xf32>
    %545 = vector.broadcast %cst_431 : f32 to vector<4x16xf32>
    %546 = arith.select %543, %544, %545 : vector<4x16xi1>, vector<4x16xf32>
    %cst_432 = arith.constant dense<0.000000e+00> : vector<4x16xf32>
    %547 = tpu.matmul %546, %405, %cst_432 {dimension_numbers = #tpu.dot_dimension_numbers<[1], [0], [0], [1], [0, 0, 1, 1], [], []>} : vector<4x16xf32>, vector<16x16xf32>, vector<4x16xf32> -> vector<4x16xf32>
    %c11_433 = arith.constant 11 : index
    %c0_434 = arith.constant 0 : index
    %c0_435 = arith.constant 0 : index
    %548 = vector.load %arg9[%c11_433, %c0_434, %c0_435] : memref<16x16x32xf32, #tpu.memory_space<vmem>>, vector<1x16x32xf32>
    %549 = vector.shape_cast %548 : vector<1x16x32xf32> to vector<16x32xf32>
    %cst_436 = arith.constant dense<0.000000e+00> : vector<4x32xf32>
    %550 = tpu.matmul %547, %549, %cst_436 {dimension_numbers = #tpu.dot_dimension_numbers<[1], [0], [0], [1], [0, 0, 1, 1], [], []>} : vector<4x16xf32>, vector<16x32xf32>, vector<4x32xf32> -> vector<4x32xf32>
    %551 = arith.addf %539, %550 : vector<4x32xf32>
    %c12_437 = arith.constant 12 : index
    %c0_438 = arith.constant 0 : index
    %c0_439 = arith.constant 0 : index
    %552 = vector.load %arg8[%c12_437, %c0_438, %c0_439] : memref<16x4x1xi32, #tpu.memory_space<vmem>>, vector<1x4x1xi32>
    %553 = vector.shape_cast %552 : vector<1x4x1xi32> to vector<4x1xi32>
    %554 = vector.broadcast %553 : vector<4x1xi32> to vector<4x16xi32>
    %555 = arith.cmpi eq, %406, %554 : vector<4x16xi32>
    %cst_440 = arith.constant 1.000000e+00 : f32
    %cst_441 = arith.constant 0.000000e+00 : f32
    %556 = vector.broadcast %cst_440 : f32 to vector<4x16xf32>
    %557 = vector.broadcast %cst_441 : f32 to vector<4x16xf32>
    %558 = arith.select %555, %556, %557 : vector<4x16xi1>, vector<4x16xf32>
    %cst_442 = arith.constant dense<0.000000e+00> : vector<4x16xf32>
    %559 = tpu.matmul %558, %405, %cst_442 {dimension_numbers = #tpu.dot_dimension_numbers<[1], [0], [0], [1], [0, 0, 1, 1], [], []>} : vector<4x16xf32>, vector<16x16xf32>, vector<4x16xf32> -> vector<4x16xf32>
    %c12_443 = arith.constant 12 : index
    %c0_444 = arith.constant 0 : index
    %c0_445 = arith.constant 0 : index
    %560 = vector.load %arg9[%c12_443, %c0_444, %c0_445] : memref<16x16x32xf32, #tpu.memory_space<vmem>>, vector<1x16x32xf32>
    %561 = vector.shape_cast %560 : vector<1x16x32xf32> to vector<16x32xf32>
    %cst_446 = arith.constant dense<0.000000e+00> : vector<4x32xf32>
    %562 = tpu.matmul %559, %561, %cst_446 {dimension_numbers = #tpu.dot_dimension_numbers<[1], [0], [0], [1], [0, 0, 1, 1], [], []>} : vector<4x16xf32>, vector<16x32xf32>, vector<4x32xf32> -> vector<4x32xf32>
    %563 = arith.addf %551, %562 : vector<4x32xf32>
    %c13_447 = arith.constant 13 : index
    %c0_448 = arith.constant 0 : index
    %c0_449 = arith.constant 0 : index
    %564 = vector.load %arg8[%c13_447, %c0_448, %c0_449] : memref<16x4x1xi32, #tpu.memory_space<vmem>>, vector<1x4x1xi32>
    %565 = vector.shape_cast %564 : vector<1x4x1xi32> to vector<4x1xi32>
    %566 = vector.broadcast %565 : vector<4x1xi32> to vector<4x16xi32>
    %567 = arith.cmpi eq, %406, %566 : vector<4x16xi32>
    %cst_450 = arith.constant 1.000000e+00 : f32
    %cst_451 = arith.constant 0.000000e+00 : f32
    %568 = vector.broadcast %cst_450 : f32 to vector<4x16xf32>
    %569 = vector.broadcast %cst_451 : f32 to vector<4x16xf32>
    %570 = arith.select %567, %568, %569 : vector<4x16xi1>, vector<4x16xf32>
    %cst_452 = arith.constant dense<0.000000e+00> : vector<4x16xf32>
    %571 = tpu.matmul %570, %405, %cst_452 {dimension_numbers = #tpu.dot_dimension_numbers<[1], [0], [0], [1], [0, 0, 1, 1], [], []>} : vector<4x16xf32>, vector<16x16xf32>, vector<4x16xf32> -> vector<4x16xf32>
    %c13_453 = arith.constant 13 : index
    %c0_454 = arith.constant 0 : index
    %c0_455 = arith.constant 0 : index
    %572 = vector.load %arg9[%c13_453, %c0_454, %c0_455] : memref<16x16x32xf32, #tpu.memory_space<vmem>>, vector<1x16x32xf32>
    %573 = vector.shape_cast %572 : vector<1x16x32xf32> to vector<16x32xf32>
    %cst_456 = arith.constant dense<0.000000e+00> : vector<4x32xf32>
    %574 = tpu.matmul %571, %573, %cst_456 {dimension_numbers = #tpu.dot_dimension_numbers<[1], [0], [0], [1], [0, 0, 1, 1], [], []>} : vector<4x16xf32>, vector<16x32xf32>, vector<4x32xf32> -> vector<4x32xf32>
    %575 = arith.addf %563, %574 : vector<4x32xf32>
    %c14_457 = arith.constant 14 : index
    %c0_458 = arith.constant 0 : index
    %c0_459 = arith.constant 0 : index
    %576 = vector.load %arg8[%c14_457, %c0_458, %c0_459] : memref<16x4x1xi32, #tpu.memory_space<vmem>>, vector<1x4x1xi32>
    %577 = vector.shape_cast %576 : vector<1x4x1xi32> to vector<4x1xi32>
    %578 = vector.broadcast %577 : vector<4x1xi32> to vector<4x16xi32>
    %579 = arith.cmpi eq, %406, %578 : vector<4x16xi32>
    %cst_460 = arith.constant 1.000000e+00 : f32
    %cst_461 = arith.constant 0.000000e+00 : f32
    %580 = vector.broadcast %cst_460 : f32 to vector<4x16xf32>
    %581 = vector.broadcast %cst_461 : f32 to vector<4x16xf32>
    %582 = arith.select %579, %580, %581 : vector<4x16xi1>, vector<4x16xf32>
    %cst_462 = arith.constant dense<0.000000e+00> : vector<4x16xf32>
    %583 = tpu.matmul %582, %405, %cst_462 {dimension_numbers = #tpu.dot_dimension_numbers<[1], [0], [0], [1], [0, 0, 1, 1], [], []>} : vector<4x16xf32>, vector<16x16xf32>, vector<4x16xf32> -> vector<4x16xf32>
    %c14_463 = arith.constant 14 : index
    %c0_464 = arith.constant 0 : index
    %c0_465 = arith.constant 0 : index
    %584 = vector.load %arg9[%c14_463, %c0_464, %c0_465] : memref<16x16x32xf32, #tpu.memory_space<vmem>>, vector<1x16x32xf32>
    %585 = vector.shape_cast %584 : vector<1x16x32xf32> to vector<16x32xf32>
    %cst_466 = arith.constant dense<0.000000e+00> : vector<4x32xf32>
    %586 = tpu.matmul %583, %585, %cst_466 {dimension_numbers = #tpu.dot_dimension_numbers<[1], [0], [0], [1], [0, 0, 1, 1], [], []>} : vector<4x16xf32>, vector<16x32xf32>, vector<4x32xf32> -> vector<4x32xf32>
    %587 = arith.addf %575, %586 : vector<4x32xf32>
    %c15_467 = arith.constant 15 : index
    %c0_468 = arith.constant 0 : index
    %c0_469 = arith.constant 0 : index
    %588 = vector.load %arg8[%c15_467, %c0_468, %c0_469] : memref<16x4x1xi32, #tpu.memory_space<vmem>>, vector<1x4x1xi32>
    %589 = vector.shape_cast %588 : vector<1x4x1xi32> to vector<4x1xi32>
    %590 = vector.broadcast %589 : vector<4x1xi32> to vector<4x16xi32>
    %591 = arith.cmpi eq, %406, %590 : vector<4x16xi32>
    %cst_470 = arith.constant 1.000000e+00 : f32
    %cst_471 = arith.constant 0.000000e+00 : f32
    %592 = vector.broadcast %cst_470 : f32 to vector<4x16xf32>
    %593 = vector.broadcast %cst_471 : f32 to vector<4x16xf32>
    %594 = arith.select %591, %592, %593 : vector<4x16xi1>, vector<4x16xf32>
    %cst_472 = arith.constant dense<0.000000e+00> : vector<4x16xf32>
    %595 = tpu.matmul %594, %405, %cst_472 {dimension_numbers = #tpu.dot_dimension_numbers<[1], [0], [0], [1], [0, 0, 1, 1], [], []>} : vector<4x16xf32>, vector<16x16xf32>, vector<4x16xf32> -> vector<4x16xf32>
    %c15_473 = arith.constant 15 : index
    %c0_474 = arith.constant 0 : index
    %c0_475 = arith.constant 0 : index
    %596 = vector.load %arg9[%c15_473, %c0_474, %c0_475] : memref<16x16x32xf32, #tpu.memory_space<vmem>>, vector<1x16x32xf32>
    %597 = vector.shape_cast %596 : vector<1x16x32xf32> to vector<16x32xf32>
    %cst_476 = arith.constant dense<0.000000e+00> : vector<4x32xf32>
    %598 = tpu.matmul %595, %597, %cst_476 {dimension_numbers = #tpu.dot_dimension_numbers<[1], [0], [0], [1], [0, 0, 1, 1], [], []>} : vector<4x16xf32>, vector<16x32xf32>, vector<4x32xf32> -> vector<4x32xf32>
    %599 = arith.addf %587, %598 : vector<4x32xf32>
    %c0_477 = arith.constant 0 : index
    %c0_478 = arith.constant 0 : index
    %600 = vector.load %arg10[%c0_477, %c0_478] : memref<1x32xf32, #tpu.memory_space<vmem>>, vector<1x32xf32>
    %601 = vector.broadcast %600 : vector<1x32xf32> to vector<4x32xf32>
    %602 = arith.addf %599, %601 : vector<4x32xf32>
    %cst_479 = arith.constant 0.000000e+00 : f32
    %603 = vector.broadcast %cst_479 : f32 to vector<4x32xf32>
    %604 = arith.cmpf oge, %602, %603 : vector<4x32xf32>
    %cst_480 = arith.constant 2.000000e-01 : f32
    %605 = vector.broadcast %cst_480 : f32 to vector<4x32xf32>
    %606 = arith.mulf %605, %602 : vector<4x32xf32>
    %607 = arith.select %604, %602, %606 : vector<4x32xi1>, vector<4x32xf32>
    %c0_481 = arith.constant 0 : index
    %c0_482 = arith.constant 0 : index
    %c0_483 = arith.constant 0 : index
    %608 = vector.load %arg11[%c0_481, %c0_482, %c0_483] : memref<1x4x32xf32, #tpu.memory_space<vmem>>, vector<1x4x32xf32>
    %609 = vector.shape_cast %608 : vector<1x4x32xf32> to vector<4x32xf32>
    %610 = vector.shape_cast %607 : vector<4x32xf32> to vector<1x4x32xf32>
    tpu.vector_store %arg11[%c0_481, %c0_482, %c0_483], %610 {strides = array<i32>} : memref<1x4x32xf32, #tpu.memory_space<vmem>>, vector<1x4x32xf32>,
    return
  }
  func.func @transform_0(%arg0: i32) -> (i32, i32, i32) {
    %c0_i32 = arith.constant 0 : i32
    %c0_i32_0 = arith.constant 0 : i32
    %c0_i32_1 = arith.constant 0 : i32
    return %arg0, %c0_i32, %c0_i32_0 : i32, i32, i32
  }
  func.func @transform_1(%arg0: i32) -> (i32, i32, i32) {
    %c0_i32 = arith.constant 0 : i32
    %c0_i32_0 = arith.constant 0 : i32
    %c0_i32_1 = arith.constant 0 : i32
    %c0_i32_2 = arith.constant 0 : i32
    return %c0_i32, %c0_i32_0, %c0_i32_1 : i32, i32, i32
  }
  func.func @transform_2(%arg0: i32) -> (i32, i32, i32) {
    %c0_i32 = arith.constant 0 : i32
    %c0_i32_0 = arith.constant 0 : i32
    %c0_i32_1 = arith.constant 0 : i32
    %c0_i32_2 = arith.constant 0 : i32
    return %c0_i32, %c0_i32_0, %c0_i32_1 : i32, i32, i32
  }
  func.func @transform_3(%arg0: i32) -> (i32, i32) {
    %c0_i32 = arith.constant 0 : i32
    %c0_i32_0 = arith.constant 0 : i32
    %c0_i32_1 = arith.constant 0 : i32
    return %c0_i32, %c0_i32_0 : i32, i32
  }
  func.func @transform_4(%arg0: i32) -> (i32, i32, i32) {
    %c0_i32 = arith.constant 0 : i32
    %c0_i32_0 = arith.constant 0 : i32
    %c0_i32_1 = arith.constant 0 : i32
    %c0_i32_2 = arith.constant 0 : i32
    return %c0_i32, %c0_i32_0, %c0_i32_1 : i32, i32, i32
  }
  func.func @transform_5(%arg0: i32) -> (i32, i32, i32) {
    %c0_i32 = arith.constant 0 : i32
    %c0_i32_0 = arith.constant 0 : i32
    %c0_i32_1 = arith.constant 0 : i32
    %c0_i32_2 = arith.constant 0 : i32
    return %c0_i32, %c0_i32_0, %c0_i32_1 : i32, i32, i32
  }
  func.func @transform_6(%arg0: i32) -> (i32, i32) {
    %c0_i32 = arith.constant 0 : i32
    %c0_i32_0 = arith.constant 0 : i32
    %c0_i32_1 = arith.constant 0 : i32
    return %c0_i32, %c0_i32_0 : i32, i32
  }
  func.func @transform_7(%arg0: i32) -> (i32, i32, i32) {
    %c0_i32 = arith.constant 0 : i32
    %c0_i32_0 = arith.constant 0 : i32
    %c0_i32_1 = arith.constant 0 : i32
    %c0_i32_2 = arith.constant 0 : i32
    return %c0_i32, %c0_i32_0, %c0_i32_1 : i32, i32, i32
  }
  func.func @transform_8(%arg0: i32) -> (i32, i32, i32) {
    %c0_i32 = arith.constant 0 : i32
    %c0_i32_0 = arith.constant 0 : i32
    %c0_i32_1 = arith.constant 0 : i32
    %c0_i32_2 = arith.constant 0 : i32
    return %c0_i32, %c0_i32_0, %c0_i32_1 : i32, i32, i32
  }
  func.func @transform_9(%arg0: i32) -> (i32, i32) {
    %c0_i32 = arith.constant 0 : i32
    %c0_i32_0 = arith.constant 0 : i32
    %c0_i32_1 = arith.constant 0 : i32
    return %c0_i32, %c0_i32_0 : i32, i32
  }
  func.func @transform_10(%arg0: i32) -> (i32, i32, i32) {
    %c0_i32 = arith.constant 0 : i32
    %c0_i32_0 = arith.constant 0 : i32
    %c0_i32_1 = arith.constant 0 : i32
    return %arg0, %c0_i32, %c0_i32_0 : i32, i32, i32
  }
}

</mosaic_0001>

<bundles_post_ra>
// kernel: nlayer_frontend.1
= control target key start
LH: loop header
LB: loop body
LE: loop exit
PB: predicated region body
PF: predicated region fallthrough
CT: control target
= control target key end

     0   :  { %15 = vsyncpa [#allocation3], 0  ;;  %s17761_s0 = inlined_call_operand.vmem [shape: f32[2,256,4], index: 0, kind: input, shape index: {}]   ;;  %s17762_s1 = inlined_call_operand.vmem [shape: s32[16,64,1], index: 1, kind: input, shape index: {}]   ;;  %s17763_s2 = inlined_call_operand.vmem [shape: f32[16,4,8], index: 2, kind: input, shape index: {}]   ;;  %s17764_s3 = inlined_call_operand.vmem [shape: f32[1,8], index: 3, kind: input, shape index: {}]   ;;  %s17765_s4 = inlined_call_operand.vmem [shape: s32[16,16,1], index: 4, kind: input, shape index: {}]   ;;  %s17766_s5 = inlined_call_operand.vmem [shape: f32[16,8,16], index: 5, kind: input, shape index: {}]   ;;  %s17767_s6 = inlined_call_operand.vmem [shape: f32[1,16], index: 6, kind: input, shape index: {}]   ;;  %s17768_s7 = inlined_call_operand.vmem [shape: s32[16,4,1], index: 7, kind: input, shape index: {}]   ;;  %s17769_s8 = inlined_call_operand.vmem [shape: f32[16,16,32], index: 8, kind: input, shape index: {}]   ;;  %s17770_s9 = inlined_call_operand.vmem [shape: f32[1,32], index: 9, kind: input, shape index: {}]   ;;  %s17771_s10 = inlined_call_operand.hbm [shape: f32[2,4,32], index: 10, kind: output, shape index: {}]  }
   0x1   :  { %17 = vsyncpa [#allocation3 + $0x1], 0  ;;  %s14975_s13 = smov 0   ;;  %s14977_s14 = smov 0  }
   0x2   :  { %s14979_s15 = smov 0   ;;  %s14981_s16 = smov 0  }
   0x3 LB: > { %s14996_s17 = sadd.s32 4294967295, %s14912_s16   ;;  %s10878_s18 = sadd.s32 4294967294, %s14912_s16   ;;  %s14912_s16 = sphi %s14981_s16, %s17894_s16   ;;  %s14908_s15 = sphi %s14979_s15, %s17893_s15   ;;  %s14904_s14 = sphi %s14977_s14, %s17892_s14   ;;  %s14900_s13 = sphi %s14975_s13, %s17891_s13  }
   0x4   : > { %s15000_s19 = sadd.s32 1, %s14912_s16   ;;  %s245_s20 = sadd.s32 1, %s14908_s15 }
   0x5   : > { %s242_s21 = ssub.s32 %s14912_s16, %s15000_s19  ;;  %p255_p0 = scmp.ne.s32.totalorder %s14908_s15, %s14904_s14 }
   0x6   : > { %p243_p1 = scmp.eq.s32.totalorder %s242_s21, 0  ;;  %p256_p2 = scmp.eq.s32.totalorder %s14996_s17, 1 }
   0x7   : > { %p261_p3 = scmp.ne.s32.totalorder %s14904_s14, %s14900_s13  ;;  %p262_p4 = scmp.eq.s32.totalorder %s10878_s18, 1 }
   0x8   : > { %s15011_s22 = scalar_select %p243_p1, %s14908_s15, %s245_s20  }
   0x9   : > { %p15013_p5 = por %p256_p2, %p255_p0  ;;  %p15017_p6 = por %p262_p4, %p261_p3 }
   0xa   : > { %17799 = sst [smem:[#allocation5_spill]] %s15011_s22  ;;  %p10881_p7 = scmp.ge.s32.totalorder %s14912_s16, 1 }
   0xb   : > { %p315_p8 = scmp.lt.s32.totalorder %s14912_s16, 3 }
   0xd   : > { %p316_p9 = pnand %p10881_p7, %p315_p8 }
   0xf   : > { %319 = sbr.rel (%p316_p9) target bundleno = 4248 (0x1098), region = 60 }
  0x16   : > { %v10903_v0 = vld [vmem:[%s17762_s1 + $0x50] sm:$0xff]  ;;  %v10901_v1 = vld [vmem:[%s17762_s1 + $0x40] sm:$0xff]  ;;  %v14914_v2 = vmov 0   ;;  %p353_p10 = scmp.lt.s32.totalorder %s14996_s17, 1  ;;  %v10904_v3 = vld [vmem:[%s17762_s1 + $0x58] sm:$0xff]  ;;  %s350_s25 = sand.u32 1, %s14904_s14  }
  0x17   : > { %14849 = vset.pattern.permute.xlu1 %v14914_v2  ;;  %14848 = vset.pattern.permute.xlu0 %v14914_v2  ;;  %v10902_v4 = vld [vmem:[%s17762_s1 + $0x48] sm:$0xff]  ;;  %v10905_v6 = vld [vmem:[%s17762_s1 + $0x60] sm:$0xff]  ;;  %v10908_v7 = vld [vmem:[%s17762_s1 + $0x78] sm:$0xff]  ;;  %s10882_s26 = sshll.u32 %s350_s25, 2  ;;  %s11610_s28 = sshll.u32 %s14996_s17, 6 }
  0x18   : > { %579 = vperm.xlu1 %14849, %v10903_v0   ;;  %573 = vperm.xlu0 %14848, %v10901_v1   ;;  %s354_s18 = scalar_select %p353_p10, %s14996_s17, 1  ;;  %v10906_v5 = vld [vmem:[%s17762_s1 + $0x68] sm:$0xff]  ;;  %v10907_v8 = vld [vmem:[%s17762_s1 + $0x70] sm:$0xff]  ;;  %v10944_v9 = vld [vmem:[%s17762_s1 + $0x80] sm:$0xff] }
  0x19   : > { %v393_v10 = vld [vmem:[%s17762_s1] sm:$0xff]  ;;  %v10945_v15 = vld [vmem:[%s17762_s1 + $0x88] sm:$0xff]  ;;  %v10946_v29 = vld [vmem:[%s17762_s1 + $0x90] sm:$0xff]  ;;  %s352_s29 = scalar_lea.vmem [#allocation2], %s10882_s26  ;;  %s17719_s12 = scalar_lea.hbm %s17771_s10, %s11610_s28 }
  0x1a   : > { %s11613_s27 = sshll.u32 %s354_s18, 8  ;;  %v394_v16 = vld [vmem:[%s17762_s1 + $0x8] sm:$0xff]  ;;  %v395_v30 = vld [vmem:[%s17762_s1 + $0x10] sm:$0xff]  ;;  %v10947_v37 = vld [vmem:[%s17762_s1 + $0x98] sm:$0xff]  ;;  %s10819_s30 = sshll.u32 %s352_s29, 4  ;;  %s17721_s30 = int_to_ptr.vmem [resolvable:$true] %s10819_s30 }
  0x1b   : > { %s15052_s20 = scalar_lea.vmem %s17761_s0, %s11613_s27  ;;  %v396_v38 = vld [vmem:[%s17762_s1 + $0x18] sm:$0xff]  ;;  %v10948_v45 = vld [vmem:[%s17762_s1 + $0xa0] sm:$0xff]  ;;  %v10949_v53 = vld [vmem:[%s17762_s1 + $0xa8] sm:$0xff]  ;;  %s10806_s18 = scalar_lea.sflag [#allocation3], %s350_s25 }
  0x1c   : > { %582 = vperm.xlu1 %14849, %v10904_v3   ;;  %576 = vperm.xlu0 %14848, %v10902_v4   ;;  %v374_v11 = vld [vmem:[%s15052_s20 + $0x80] sm:$0xff]  ;;  %v375_v12 = vld [vmem:[%s15052_s20 + $0x88] sm:$0xff]  ;;  %v376_v19 = vld [vmem:[%s15052_s20 + $0x90] sm:$0xff]  ;;  %s14850_s21 = scalar_lea.vmem %s17721_s30, 64  ;;  %s14919_s17 = smov [#allocation2]  }
  0x1d   : > { %v358_v13 = vld [vmem:[%s15052_s20] sm:$0xff]  ;;  %v359_v14 = vld [vmem:[%s15052_s20 + $0x8] sm:$0xff]  ;;  %v15070_v17 = vpack.c.bf16 %v375_v12, %v374_v11  ;;  %v377_v20 = vld [vmem:[%s15052_s20 + $0x98] sm:$0xff]  ;;  %p14851_p11 = scmp.ne.s32.totalorder %s17721_s30, %s14850_s21  ;;  %s14854_s26 = sshll.u32 %s14919_s17, 4  ;;  %s14855_s26 = int_to_ptr.vmem [resolvable:$false] %s14854_s26 }
  0x1e   : > { %v15072_v18 = vpack.c.bf16 %v359_v14, %v358_v13  ;;  %v360_v21 = vld [vmem:[%s15052_s20 + $0x10] sm:$0xff]  ;;  %v361_v22 = vld [vmem:[%s15052_s20 + $0x18] sm:$0xff]  ;;  %v15079_v23 = vpack.c.bf16 %v377_v20, %v376_v19  ;;  %v378_v24 = vld [vmem:[%s15052_s20 + $0xa0] sm:$0xff]  ;;  %s14856_s22 = scalar_lea.vmem %s14855_s26, 128  ;;  %p14857_p0 = scmp.lt.s32.totalorder %s17721_s30, %s14855_s26 }
  0x1f   : > { %13823 = vmatprep.subr.bf16.mxu1 %v15070_v17  ;;  %13791 = vmatprep.subr.bf16.mxu0 %v15070_v17  ;;  %v15084_v25 = vpack.c.bf16 %v361_v22, %v360_v21  ;;  %v379_v26 = vld [vmem:[%s15052_s20 + $0xa8] sm:$0xff]  ;;  %v362_v27 = vld [vmem:[%s15052_s20 + $0x20] sm:$0xff]  ;;  %v380_v32 = vld [vmem:[%s15052_s20 + $0xb0] sm:$0xff]  ;;  %p14852_p12 = pnand %p14851_p11, %p15013_p5  ;;  %p14858_p1 = scmp.lt.s32.totalorder %s14856_s22, %s14850_s21 }
  0x20   : > { %588 = vperm.xlu1 %14849, %v10906_v5   ;;  %585 = vperm.xlu0 %14848, %v10905_v6   ;;  %v363_v28 = vld [vmem:[%s15052_s20 + $0x28] sm:$0xff]  ;;  %v15097_v31 = vpack.c.bf16 %v379_v26, %v378_v24  ;;  %v381_v33 = vld [vmem:[%s15052_s20 + $0xb8] sm:$0xff]  ;;  %v364_v35 = vld [vmem:[%s15052_s20 + $0x30] sm:$0xff] }
  0x21   : > { %13825 = vmatpush3.bf16.msra.mxu1 %v15072_v18  ;;  %13793 = vmatpush3.bf16.msra.mxu0 %v15072_v18  ;;  %v15103_v34 = vpack.c.bf16 %v363_v28, %v362_v27  ;;  %v365_v36 = vld [vmem:[%s15052_s20 + $0x38] sm:$0xff]  ;;  %v15115_v39 = vpack.c.bf16 %v381_v33, %v380_v32  ;;  %v382_v40 = vld [vmem:[%s15052_s20 + $0xc0] sm:$0xff]  ;;  %v383_v41 = vld [vmem:[%s15052_s20 + $0xc8] sm:$0xff]  ;;  %p14853_p13 = pneg %p14852_p12  ;;  %p14859_p2 = por %p14858_p1, %p14857_p0 }
  0x22   : > { %13827 = vmatprep.subr.bf16.mxu1 %v15079_v23  ;;  %13795 = vmatprep.subr.bf16.mxu0 %v15079_v23  ;;  %v15121_v42 = vpack.c.bf16 %v365_v36, %v364_v35  ;;  %v366_v43 = vld [vmem:[%s15052_s20 + $0x40] sm:$0xff]  ;;  %v367_v44 = vld [vmem:[%s15052_s20 + $0x48] sm:$0xff]  ;;  %v15133_v47 = vpack.c.bf16 %v383_v41, %v382_v40  ;;  %v384_v48 = vld [vmem:[%s15052_s20 + $0xd0] sm:$0xff] }
  0x23   : > { %v397_v46 = vld [vmem:[%s17762_s1 + $0x20] sm:$0xff]  ;;  %v385_v49 = vld [vmem:[%s15052_s20 + $0xd8] sm:$0xff]  ;;  %v15139_v50 = vpack.c.bf16 %v367_v44, %v366_v43  ;;  %v368_v51 = vld [vmem:[%s15052_s20 + $0x50] sm:$0xff]  ;;  %p14860_p3 = pnand %p14859_p2, %p14853_p13 }
  0x24   : > { %594 = vperm.xlu1 %14849, %v10908_v7   ;;  %591 = vperm.xlu0 %14848, %v10907_v8   ;;  %v369_v52 = vld [vmem:[%s15052_s20 + $0x58] sm:$0xff]  ;;  %v398_v54 = vld [vmem:[%s17762_s1 + $0x28] sm:$0xff]  ;;  %v15151_v55 = vpack.c.bf16 %v385_v49, %v384_v48  ;;  %v386_v56 = vld [vmem:[%s15052_s20 + $0xe0] sm:$0xff] }
  0x25   : > { %13829 = vmatpush3.bf16.msra.mxu1 %v15084_v25  ;;  %13797 = vmatpush3.bf16.msra.mxu0 %v15084_v25  ;;  %v387_v57 = vld [vmem:[%s15052_s20 + $0xe8] sm:$0xff]  ;;  %v15157_v58 = vpack.c.bf16 %v369_v52, %v368_v51  ;;  %v370_v59 = vld [vmem:[%s15052_s20 + $0x60] sm:$0xff]  ;;  %v10950_v61 = vld [vmem:[%s17762_s1 + $0xb0] sm:$0xff] }
  0x26   : > { %13831 = vmatprep.subr.bf16.mxu1 %v15097_v31  ;;  %13799 = vmatprep.subr.bf16.mxu0 %v15097_v31  ;;  %v371_v60 = vld [vmem:[%s15052_s20 + $0x68] sm:$0xff]  ;;  %v399_v62 = vld [vmem:[%s17762_s1 + $0x30] sm:$0xff]  ;;  %v15169_v63 = vpack.c.bf16 %v387_v57, %v386_v56  ;;  %v389_v1 = vld [vmem:[%s15052_s20 + $0xf8] sm:$0xff]  ;;  %v390_v56 = vlaneseq }
  0x27   : > { %17802 = vst [vmem:[#allocation6_spill] sm:$0xff] %v15157_v58  ;;  %v388_v0 = vld [vmem:[%s15052_s20 + $0xf0] sm:$0xff]  ;;  %v15175_v2 = vpack.c.bf16 %v371_v60, %v370_v59  ;;  %v373_v4 = vld [vmem:[%s15052_s20 + $0x78] sm:$0xff]  ;;  %v10982_v13 = vld [vmem:[%s17762_s1 + $0xe0] sm:$0xff] }
  0x28   : > { %1011 = vperm.xlu0 %14848, %v10944_v9   ;;  %402 = vperm.xlu1 %14849, %v393_v10   ;;  %17803 = vst [vmem:[#allocation7_spill] sm:$0xff] %v15169_v63  ;;  %v372_v3 = vld [vmem:[%s15052_s20 + $0x70] sm:$0xff]  ;;  %v10951_v5 = vld [vmem:[%s17762_s1 + $0xb8] sm:$0xff]  ;;  %v15187_v7 = vpack.c.bf16 %v389_v1, %v388_v0  ;;  %v10978_v9 = vld [vmem:[%s17762_s1 + $0xc0] sm:$0xff]  ;;  %v15313_v60 = vand.u32 127, %v390_v56 }
  0x29   : > { %13833 = vmatpush3.bf16.msra.mxu1 %v15103_v34  ;;  %13801 = vmatpush3.bf16.msra.mxu0 %v15103_v34  ;;  %17804 = vst [vmem:[#allocation8_spill] sm:$0xff] %v15175_v2  ;;  %v400_v6 = vld [vmem:[%s17762_s1 + $0x38] sm:$0xff]  ;;  %v15191_v8 = vpack.c.bf16 %v373_v4, %v372_v3  ;;  %v10979_v10 = vld [vmem:[%s17762_s1 + $0xc8] sm:$0xff]  ;;  %v10980_v11 = vld [vmem:[%s17762_s1 + $0xd0] sm:$0xff] }
  0x2a   : > { %13835 = vmatprep.subr.bf16.mxu1 %v15115_v39  ;;  %13803 = vmatprep.subr.bf16.mxu0 %v15115_v39  ;;  %17805 = vst [vmem:[#allocation9_spill] sm:$0xff] %v15187_v7  ;;  %v10981_v12 = vld [vmem:[%s17762_s1 + $0xd8] sm:$0xff]  ;;  %v10983_v14 = vld [vmem:[%s17762_s1 + $0xe8] sm:$0xff]  ;;  %v11012_v19 = vld [vmem:[%s17762_s1 + $0x100] sm:$0xff]  ;;  %v15322_v0 = vadd.s32 128, %v15313_v60 }
  0x2b   : > { %17806 = vst [vmem:[#allocation10_spill] sm:$0xff] %v15191_v8  ;;  %v11013_v20 = vld [vmem:[%s17762_s1 + $0x108] sm:$0xff]  ;;  %v11014_v21 = vld [vmem:[%s17762_s1 + $0x110] sm:$0xff]  ;;  %v11015_v22 = vld [vmem:[%s17762_s1 + $0x118] sm:$0xff] }
  0x2c   : > { %1014 = vperm.xlu0 %14848, %v10945_v15   ;;  %405 = vperm.xlu1 %14849, %v394_v16   ;;  %v10984_v15 = vld [vmem:[%s17762_s1 + $0xf0] sm:$0xff]  ;;  %v10985_v16 = vld [vmem:[%s17762_s1 + $0xf8] sm:$0xff]  ;;  %v11016_v24 = vld [vmem:[%s17762_s1 + $0x120] sm:$0xff]  ;;  %17807 = vst [vmem:[#allocation11_spill] sm:$0xff] %v15313_v60 }
  0x2d   : > { %13837 = vmatpush3.bf16.msra.mxu1 %v15121_v42  ;;  %13805 = vmatpush3.bf16.msra.mxu0 %v15121_v42  ;;  %v11017_v26 = vld [vmem:[%s17762_s1 + $0x128] sm:$0xff]  ;;  %v11018_v27 = vld [vmem:[%s17762_s1 + $0x130] sm:$0xff]  ;;  %v11019_v28 = vld [vmem:[%s17762_s1 + $0x138] sm:$0xff] }
  0x2e   : > { %13839 = vmatprep.subr.bf16.mxu1 %v15133_v47  ;;  %13807 = vmatprep.subr.bf16.mxu0 %v15133_v47  ;;  %v11082_v32 = vld [vmem:[%s17762_s1 + $0x190] sm:$0xff]  ;;  %v11083_v33 = vld [vmem:[%s17762_s1 + $0x198] sm:$0xff]  ;;  %v11084_v35 = vld [vmem:[%s17762_s1 + $0x1a0] sm:$0xff] }
  0x2f   : > { %v11046_v36 = vld [vmem:[%s17762_s1 + $0x140] sm:$0xff]  ;;  %v11086_v40 = vld [vmem:[%s17762_s1 + $0x1b0] sm:$0xff]  ;;  %v11087_v43 = vld [vmem:[%s17762_s1 + $0x1b8] sm:$0xff] }
  0x30   : > { %1017 = vperm.xlu0 %14848, %v10946_v29   ;;  %408 = vperm.xlu1 %14849, %v395_v30   ;;  %v11080_v29 = vld [vmem:[%s17762_s1 + $0x180] sm:$0xff]  ;;  %v11081_v30 = vld [vmem:[%s17762_s1 + $0x188] sm:$0xff]  ;;  %v11048_v41 = vld [vmem:[%s17762_s1 + $0x150] sm:$0xff] }
  0x31   : > { %13841 = vmatpush3.bf16.msra.mxu1 %v15139_v50  ;;  %13809 = vmatpush3.bf16.msra.mxu0 %v15139_v50  ;;  %v11049_v44 = vld [vmem:[%s17762_s1 + $0x158] sm:$0xff]  ;;  %v11115_v48 = vld [vmem:[%s17762_s1 + $0x1c8] sm:$0xff]  ;;  %v11116_v51 = vld [vmem:[%s17762_s1 + $0x1d0] sm:$0xff] }
  0x32   : > { %13843 = vmatprep.subr.bf16.mxu1 %v15151_v55  ;;  %13811 = vmatprep.subr.bf16.mxu0 %v15151_v55  ;;  %v11051_v49 = vld [vmem:[%s17762_s1 + $0x168] sm:$0xff]  ;;  %v11052_v52 = vld [vmem:[%s17762_s1 + $0x170] sm:$0xff]  ;;  %v11118_v57 = vld [vmem:[%s17762_s1 + $0x1e0] sm:$0xff] }
  0x33   : > { %v11119_v59 = vld [vmem:[%s17762_s1 + $0x1e8] sm:$0xff]  ;;  %v11148_v1 = vld [vmem:[%s17762_s1 + $0x200] sm:$0xff] }
  0x34   : > { %1020 = vperm.xlu0 %14848, %v10947_v37   ;;  %411 = vperm.xlu1 %14849, %v396_v38   ;;  %v11085_v37 = vld [vmem:[%s17762_s1 + $0x1a8] sm:$0xff]  ;;  %v11216_v56 = vld [vmem:[%s17762_s1 + $0x280] sm:$0xff] }
  0x35   : > { %13845 = vmatpush3.bf16.msra.mxu1 %v15157_v58  ;;  %13813 = vmatpush3.bf16.msra.mxu0 %v15157_v58  ;;  %v11047_v38 = vld [vmem:[%s17762_s1 + $0x148] sm:$0xff] }
  0x36   : > { %13847 = vmatprep.subr.bf16.mxu1 %v15169_v63  ;;  %13815 = vmatprep.subr.bf16.mxu0 %v15169_v63  ;;  %v11149_v3 = vld [vmem:[%s17762_s1 + $0x208] sm:$0xff] }
  0x38   : > { %1023 = vperm.xlu0 %14848, %v10948_v45   ;;  %414 = vperm.xlu1 %14849, %v397_v46   ;;  %v11114_v45 = vld [vmem:[%s17762_s1 + $0x1c0] sm:$0xff] }
  0x39   : > { %13849 = vmatpush3.bf16.msra.mxu1 %v15175_v2  ;;  %13817 = vmatpush3.bf16.msra.mxu0 %v15175_v2  ;;  %v11050_v46 = vld [vmem:[%s17762_s1 + $0x160] sm:$0xff] }
  0x3a   : > { %13851 = vmatprep.subr.bf16.mxu1 %v15187_v7  ;;  %13819 = vmatprep.subr.bf16.mxu0 %v15187_v7 }
  0x3c   : > { %1026 = vperm.xlu0 %14848, %v10949_v53   ;;  %417 = vperm.xlu1 %14849, %v398_v54   ;;  %v11117_v53 = vld [vmem:[%s17762_s1 + $0x1d8] sm:$0xff] }
  0x3d   : > { %13853 = vmatpush3.bf16.msra.mxu1 %v15191_v8  ;;  %13821 = vmatpush3.bf16.msra.mxu0 %v15191_v8  ;;  %v11053_v54 = vld [vmem:[%s17762_s1 + $0x178] sm:$0xff] }
  0x3e   : > { %13855 = vmatprep.subr.bf16.mxu1 %v15070_v17 }
  0x40   : > { %1029 = vperm.xlu0 %14848, %v10950_v61   ;;  %420 = vperm.xlu1 %14849, %v399_v62   ;;  %v11120_v61 = vld [vmem:[%s17762_s1 + $0x1f0] sm:$0xff]  ;;  %v11121_v62 = vld [vmem:[%s17762_s1 + $0x1f8] sm:$0xff] }
  0x44   : > { %1032 = vperm.xlu0 %14848, %v10951_v5   ;;  %423 = vperm.xlu1 %14849, %v400_v6   ;;  %v17774_v6 = vmov 1.0  }
  0x48   : > { %1323 = vperm.xlu0 %14848, %v10978_v9   ;;  %1326 = vperm.xlu1 %14849, %v10979_v10   ;;  %v11150_v9 = vld [vmem:[%s17762_s1 + $0x210] sm:$0xff]  ;;  %v11151_v10 = vld [vmem:[%s17762_s1 + $0x218] sm:$0xff] }
  0x4c   : > { %1329 = vperm.xlu0 %14848, %v10980_v11   ;;  %1332 = vperm.xlu1 %14849, %v10981_v12  }
  0x50   : > { %1335 = vperm.xlu0 %14848, %v10982_v13   ;;  %1338 = vperm.xlu1 %14849, %v10983_v14   ;;  %v11152_v13 = vld [vmem:[%s17762_s1 + $0x220] sm:$0xff]  ;;  %v11153_v14 = vld [vmem:[%s17762_s1 + $0x228] sm:$0xff] }
  0x54   : > { %1341 = vperm.xlu0 %14848, %v10984_v15   ;;  %1344 = vperm.xlu1 %14849, %v10985_v16  }
  0x58   : > { %1635 = vperm.xlu0 %14848, %v11012_v19   ;;  %1638 = vperm.xlu1 %14849, %v11013_v20   ;;  %v11154_v19 = vld [vmem:[%s17762_s1 + $0x230] sm:$0xff]  ;;  %v11155_v20 = vld [vmem:[%s17762_s1 + $0x238] sm:$0xff] }
  0x5c   : > { %1641 = vperm.xlu0 %14848, %v11014_v21   ;;  %1644 = vperm.xlu1 %14849, %v11015_v22  }
  0x60   : > { %1647 = vperm.xlu0 %14848, %v11016_v24   ;;  %1650 = vperm.xlu1 %14849, %v11017_v26   ;;  %v11182_v24 = vld [vmem:[%s17762_s1 + $0x240] sm:$0xff]  ;;  %v11183_v26 = vld [vmem:[%s17762_s1 + $0x248] sm:$0xff] }
  0x64   : > { %1653 = vperm.xlu0 %14848, %v11018_v27   ;;  %1656 = vperm.xlu1 %14849, %v11019_v28  }
  0x68   : > { %2259 = vperm.xlu0 %14848, %v11080_v29   ;;  %2262 = vperm.xlu1 %14849, %v11081_v30   ;;  %v11184_v29 = vld [vmem:[%s17762_s1 + $0x250] sm:$0xff]  ;;  %v11185_v30 = vld [vmem:[%s17762_s1 + $0x258] sm:$0xff] }
  0x6c   : > { %2265 = vperm.xlu0 %14848, %v11082_v32   ;;  %2268 = vperm.xlu1 %14849, %v11083_v33  }
  0x70   : > { %2271 = vperm.xlu0 %14848, %v11084_v35   ;;  %1947 = vperm.xlu1 %14849, %v11046_v36   ;;  %v11186_v35 = vld [vmem:[%s17762_s1 + $0x260] sm:$0xff]  ;;  %v11187_v36 = vld [vmem:[%s17762_s1 + $0x268] sm:$0xff] }
  0x74   : > { %2274 = vperm.xlu0 %14848, %v11085_v37   ;;  %1950 = vperm.xlu1 %14849, %v11047_v38  }
  0x78   : > { %2277 = vperm.xlu0 %14848, %v11086_v40   ;;  %1953 = vperm.xlu1 %14849, %v11048_v41   ;;  %v11188_v40 = vld [vmem:[%s17762_s1 + $0x270] sm:$0xff]  ;;  %v11189_v41 = vld [vmem:[%s17762_s1 + $0x278] sm:$0xff] }
  0x7c   : > { %2280 = vperm.xlu0 %14848, %v11087_v43   ;;  %1956 = vperm.xlu1 %14849, %v11049_v44  }
  0x80   : > { %2571 = vperm.xlu0 %14848, %v11114_v45   ;;  %1959 = vperm.xlu1 %14849, %v11050_v46   ;;  %v11250_v45 = vld [vmem:[%s17762_s1 + $0x2c0] sm:$0xff]  ;;  %v11251_v46 = vld [vmem:[%s17762_s1 + $0x2c8] sm:$0xff] }
  0x84   : > { %2574 = vperm.xlu0 %14848, %v11115_v48   ;;  %1962 = vperm.xlu1 %14849, %v11051_v49   ;;  %v11252_v49 = vld [vmem:[%s17762_s1 + $0x2d0] sm:$0xff] }
  0x88   : > { %2577 = vperm.xlu0 %14848, %v11116_v51   ;;  %1965 = vperm.xlu1 %14849, %v11052_v52   ;;  %v11253_v51 = vld [vmem:[%s17762_s1 + $0x2d8] sm:$0xff] }
  0x8c   : > { %2580 = vperm.xlu0 %14848, %v11117_v53   ;;  %1968 = vperm.xlu1 %14849, %v11053_v54   ;;  %v11254_v54 = vld [vmem:[%s17762_s1 + $0x2e0] sm:$0xff] }
  0x90   : > { %2583 = vperm.xlu0 %14848, %v11118_v57   ;;  %2586 = vperm.xlu1 %14849, %v11119_v59  }
  0x94   : > { %2589 = vperm.xlu0 %14848, %v11120_v61   ;;  %2592 = vperm.xlu1 %14849, %v11121_v62   ;;  %v11255_v61 = vld [vmem:[%s17762_s1 + $0x2e8] sm:$0xff] }
  0x95   : > { %v11217_v62 = vld [vmem:[%s17762_s1 + $0x288] sm:$0xff] }
  0x97   : > { %v580_v4 = vpop.permute.xlu1 %579  ;;  %v574_v5 = vpop.permute.xlu0 %573 }
  0x98   : > { %2883 = vperm.xlu0 %14848, %v11148_v1   ;;  %2886 = vperm.xlu1 %14849, %v11149_v3   ;;  %vm597_vm0 = vcmp.eq.s32.totalorder %v15322_v0, %v574_v5  ;;  %vm596_vm1 = vcmp.eq.s32.totalorder %v15313_v60, %v574_v5  ;;  %vm601_vm4 = vcmp.eq.s32.totalorder %v15322_v0, %v580_v4  ;;  %v11256_v3 = vld [vmem:[%s17762_s1 + $0x2f0] sm:$0xff] }
  0x99   : > { %10909 = vmatprep.mubr.msk.f32.mxu1 %vm597_vm0, %v17774_v6  ;;  %vm600_vm5 = vcmp.eq.s32.totalorder %v15313_v60, %v580_v4  ;;  %v11218_v4 = vld [vmem:[%s17762_s1 + $0x290] sm:$0xff] }
  0x9a   : > { %10910 = vmatmul.mubr.msk.f32.vlgmr.msra.gmra.mrb[0].mxu1 %vm596_vm1, %v17774_v6 }
  0x9b   : > { %v583_v11 = vpop.permute.xlu1 %582  ;;  %v577_v12 = vpop.permute.xlu0 %576  ;;  %13857 = vmatpush3.bf16.msra.mxu1 %v15072_v18 }
  0x9c   : > { %2889 = vperm.xlu0 %14848, %v11150_v9   ;;  %2892 = vperm.xlu1 %14849, %v11151_v10   ;;  %vm599_vm2 = vcmp.eq.s32.totalorder %v15322_v0, %v577_v12  ;;  %vm598_vm3 = vcmp.eq.s32.totalorder %v15313_v60, %v577_v12  ;;  %vm603_vm6 = vcmp.eq.s32.totalorder %v15322_v0, %v583_v11  ;;  %v11257_v9 = vld [vmem:[%s17762_s1 + $0x2f8] sm:$0xff]  ;;  %v11284_v12 = vld [vmem:[%s17762_s1 + $0x300] sm:$0xff] }
  0x9d   : > { %10911 = vmatprep.mubr.msk.f32.mxu1 %vm599_vm2, %v17774_v6  ;;  %13859 = vmatprep.subr.bf16.mxu1 %v15079_v23  ;;  %vm602_vm7 = vcmp.eq.s32.totalorder %v15313_v60, %v583_v11  ;;  %v11219_v10 = vld [vmem:[%s17762_s1 + $0x298] sm:$0xff] }
  0x9e   : > { %10912 = vmatmul.mubr.msk.f32.gmra.mrb[2].mxu1 %vm598_vm3, %v17774_v6 }
  0x9f   : > { %v589_v15 = vpop.permute.xlu1 %588  ;;  %v586_v16 = vpop.permute.xlu0 %585  ;;  %13861 = vmatpush3.bf16.msra.mxu1 %v15084_v25  ;;  %10913 = vmatprep.mubr.msk.f32.mxu1 %vm601_vm4, %v17774_v6 }
  0xa0   : > { %2895 = vperm.xlu0 %14848, %v11152_v13   ;;  %2898 = vperm.xlu1 %14849, %v11153_v14   ;;  %vm605_vm8 = vcmp.eq.s32.totalorder %v15322_v0, %v586_v16  ;;  %vm604_vm11 = vcmp.eq.s32.totalorder %v15313_v60, %v586_v16  ;;  %vm607_vm12 = vcmp.eq.s32.totalorder %v15322_v0, %v589_v15  ;;  %v11220_v13 = vld [vmem:[%s17762_s1 + $0x2a0] sm:$0xff]  ;;  %v11285_v14 = vld [vmem:[%s17762_s1 + $0x308] sm:$0xff] }
  0xa1   : > { %13863 = vmatprep.subr.bf16.mxu1 %v15097_v31  ;;  %vm606_vm15 = vcmp.eq.s32.totalorder %v15313_v60, %v589_v15  ;;  %v11221_v15 = vld [vmem:[%s17762_s1 + $0x2a8] sm:$0xff] }
  0xa2   : > { %10914 = vmatmul.mubr.msk.f32.gmra.mrb[4].mxu1 %vm600_vm5, %v17774_v6 }
  0xa3   : > { %v15365_v21 = vpop.permute.xlu1 %594  ;;  %v592_v22 = vpop.permute.xlu0 %591  ;;  %10915 = vmatprep.mubr.msk.f32.mxu1 %vm603_vm6, %v17774_v6  ;;  %13865 = vmatpush3.bf16.msra.mxu1 %v15103_v34 }
  0xa4   : > { %2901 = vperm.xlu0 %14848, %v11154_v19   ;;  %2904 = vperm.xlu1 %14849, %v11155_v20   ;;  %vm609_vm0 = vcmp.eq.s32.totalorder %v15322_v0, %v592_v22  ;;  %vm608_vm3 = vcmp.eq.s32.totalorder %v15313_v60, %v592_v22  ;;  %vm611_vm4 = vcmp.eq.s32.totalorder %v15322_v0, %v15365_v21  ;;  %v11286_v19 = vld [vmem:[%s17762_s1 + $0x310] sm:$0xff] }
  0xa5   : > { %13867 = vmatprep.subr.bf16.mxu1 %v15115_v39  ;;  %v11222_v20 = vld [vmem:[%s17762_s1 + $0x2b0] sm:$0xff] }
  0xa6   : > { %10916 = vmatmul.mubr.msk.f32.gmra.mrb[6].mxu1 %vm602_vm7, %v17774_v6  ;;  %vm610_vm7 = vcmp.eq.s32.totalorder %v15313_v60, %v15365_v21 }
  0xa7   : > { %v15379_v27 = vpop.permute.xlu0 %1011  ;;  %v403_v28 = vpop.permute.xlu1 %402  ;;  %10917 = vmatprep.mubr.msk.f32.mxu1 %vm605_vm8, %v17774_v6  ;;  %13869 = vmatpush3.bf16.msra.mxu1 %v15121_v42 }
  0xa8   : > { %3195 = vperm.xlu0 %14848, %v11182_v24   ;;  %3198 = vperm.xlu1 %14849, %v11183_v26   ;;  %vm426_vm9 = vcmp.eq.s32.totalorder %v15322_v0, %v403_v28  ;;  %vm425_vm10 = vcmp.eq.s32.totalorder %v15313_v60, %v403_v28  ;;  %vm1035_vm8 = vcmp.eq.s32.totalorder %v15322_v0, %v15379_v27  ;;  %v11287_v24 = vld [vmem:[%s17762_s1 + $0x318] sm:$0xff]  ;;  %v11289_v28 = vld [vmem:[%s17762_s1 + $0x328] sm:$0xff] }
  0xa9   : > { %10885 = vmatprep.mubr.msk.f32.mxu0 %vm426_vm9, %v17774_v6  ;;  %13871 = vmatprep.subr.bf16.mxu1 %v15133_v47  ;;  %v11223_v26 = vld [vmem:[%s17762_s1 + $0x2b8] sm:$0xff] }
  0xaa   : > { %10886 = vmatmul.mubr.msk.f32.vlgmr.msra.gmra.mrb[0].mxu0 %vm425_vm10, %v17774_v6  ;;  %10918 = vmatmul.mubr.msk.f32.gmra.mrb[8].mxu1 %vm604_vm11, %v17774_v6  ;;  %vm1034_vm11 = vcmp.eq.s32.totalorder %v15313_v60, %v15379_v27  ;;  %v11288_v27 = vld [vmem:[%s17762_s1 + $0x320] sm:$0xff] }
  0xab   : > { %v15397_v32 = vpop.permute.xlu0 %1014  ;;  %v406_v33 = vpop.permute.xlu1 %405  ;;  %10919 = vmatprep.mubr.msk.f32.mxu1 %vm607_vm12, %v17774_v6  ;;  %13873 = vmatpush3.bf16.msra.mxu1 %v15139_v50 }
  0xac   : > { %3201 = vperm.xlu0 %14848, %v11184_v29   ;;  %3204 = vperm.xlu1 %14849, %v11185_v30   ;;  %vm428_vm13 = vcmp.eq.s32.totalorder %v15322_v0, %v406_v33  ;;  %vm427_vm14 = vcmp.eq.s32.totalorder %v15313_v60, %v406_v33  ;;  %vm1037_vm12 = vcmp.eq.s32.totalorder %v15322_v0, %v15397_v32  ;;  %v11291_v33 = vld [vmem:[%s17762_s1 + $0x338] sm:$0xff] }
  0xad   : > { %10887 = vmatprep.mubr.msk.f32.mxu0 %vm428_vm13, %v17774_v6  ;;  %13875 = vmatprep.subr.bf16.mxu1 %v15151_v55 }
  0xae   : > { %10888 = vmatmul.mubr.msk.f32.gmra.mrb[2].mxu0 %vm427_vm14, %v17774_v6  ;;  %10920 = vmatmul.mubr.msk.f32.gmra.mrb[10].mxu1 %vm606_vm15, %v17774_v6  ;;  %vm1036_vm15 = vcmp.eq.s32.totalorder %v15313_v60, %v15397_v32  ;;  %v11290_v32 = vld [vmem:[%s17762_s1 + $0x330] sm:$0xff] }
  0xaf   : > { %v15415_v37 = vpop.permute.xlu0 %1017  ;;  %v409_v38 = vpop.permute.xlu1 %408  ;;  %10921 = vmatprep.mubr.msk.f32.mxu1 %vm609_vm0, %v17774_v6  ;;  %13877 = vmatpush3.bf16.msra.mxu1 %v15157_v58 }
  0xb0   : > { %3207 = vperm.xlu0 %14848, %v11186_v35   ;;  %3210 = vperm.xlu1 %14849, %v11187_v36   ;;  %vm430_vm1 = vcmp.eq.s32.totalorder %v15322_v0, %v409_v38  ;;  %vm429_vm2 = vcmp.eq.s32.totalorder %v15313_v60, %v409_v38  ;;  %vm1039_vm0 = vcmp.eq.s32.totalorder %v15322_v0, %v15415_v37  ;;  %v11319_v38 = vld [vmem:[%s17762_s1 + $0x348] sm:$0xff] }
  0xb1   : > { %10889 = vmatprep.mubr.msk.f32.mxu0 %vm430_vm1, %v17774_v6  ;;  %13879 = vmatprep.subr.bf16.mxu1 %v15169_v63 }
  0xb2   : > { %10890 = vmatmul.mubr.msk.f32.gmra.mrb[4].mxu0 %vm429_vm2, %v17774_v6  ;;  %10922 = vmatmul.mubr.msk.f32.gmra.mrb[12].mxu1 %vm608_vm3, %v17774_v6  ;;  %vm1038_vm3 = vcmp.eq.s32.totalorder %v15313_v60, %v15415_v37  ;;  %v11318_v37 = vld [vmem:[%s17762_s1 + $0x340] sm:$0xff] }
  0xb3   : > { %v412_v43 = vpop.permute.xlu1 %411  ;;  %10923 = vmatprep.mubr.msk.f32.mxu1 %vm611_vm4, %v17774_v6  ;;  %13881 = vmatpush3.bf16.msra.mxu1 %v15175_v2  ;;  %v15436_v44 = vpop.permute.xlu0 %1020 }
  0xb4   : > { %3213 = vperm.xlu0 %14848, %v11188_v40   ;;  %3216 = vperm.xlu1 %14849, %v11189_v41   ;;  %vm432_vm5 = vcmp.eq.s32.totalorder %v15322_v0, %v412_v43  ;;  %vm431_vm6 = vcmp.eq.s32.totalorder %v15313_v60, %v412_v43  ;;  %vm1041_vm4 = vcmp.eq.s32.totalorder %v15322_v0, %v15436_v44  ;;  %v11320_v40 = vld [vmem:[%s17762_s1 + $0x350] sm:$0xff]  ;;  %v11321_v41 = vld [vmem:[%s17762_s1 + $0x358] sm:$0xff] }
  0xb5   : > { %10891 = vmatprep.mubr.msk.f32.mxu0 %vm432_vm5, %v17774_v6  ;;  %13883 = vmatprep.subr.bf16.mxu1 %v15187_v7 }
  0xb6   : > { %10892 = vmatmul.mubr.msk.f32.gmra.mrb[6].mxu0 %vm431_vm6, %v17774_v6  ;;  %10924 = vmatmul.mubr.msk.f32.gmra.mrb[14].mxu1 %vm610_vm7, %v17774_v6  ;;  %vm1040_vm7 = vcmp.eq.s32.totalorder %v15313_v60, %v15436_v44 }
  0xb7   : > { %v415_v48 = vpop.permute.xlu1 %414  ;;  %13885 = vmatpush3.bf16.msra.mxu1 %v15191_v8  ;;  %10952 = vmatprep.mubr.msk.f32.mxu1 %vm1035_vm8, %v17774_v6  ;;  %v1024_v52 = vpop.permute.xlu0 %1023 }
  0xb8   : > { %3819 = vperm.xlu0 %14848, %v11250_v45   ;;  %3822 = vperm.xlu1 %14849, %v11251_v46   ;;  %vm434_vm9 = vcmp.eq.s32.totalorder %v15322_v0, %v415_v48  ;;  %vm433_vm10 = vcmp.eq.s32.totalorder %v15313_v60, %v415_v48  ;;  %vm1043_vm8 = vcmp.eq.s32.totalorder %v15322_v0, %v1024_v52  ;;  %v11322_v45 = vld [vmem:[%s17762_s1 + $0x360] sm:$0xff]  ;;  %v11323_v46 = vld [vmem:[%s17762_s1 + $0x368] sm:$0xff] }
  0xb9   : > { %10893 = vmatprep.mubr.msk.f32.mxu0 %vm434_vm9, %v17774_v6  ;;  %13887 = vmatprep.subr.bf16.mxu1 %v15070_v17  ;;  %vm1042_vm9 = vcmp.eq.s32.totalorder %v15313_v60, %v1024_v52  ;;  %v11325_v52 = vld [vmem:[%s17762_s1 + $0x378] sm:$0xff] }
  0xba   : > { %10894 = vmatmul.mubr.msk.f32.gmra.mrb[8].mxu0 %vm433_vm10, %v17774_v6  ;;  %10953 = vmatmul.mubr.msk.f32.vlgmr.msra.gmra.mrb[16].mxu1 %vm1034_vm11, %v17774_v6 }
  0xbb   : > { %v418_v53 = vpop.permute.xlu1 %417  ;;  %10954 = vmatprep.mubr.msk.f32.mxu1 %vm1037_vm12, %v17774_v6  ;;  %13889 = vmatpush3.bf16.msra.mxu1 %v15072_v18  ;;  %v1027_v59 = vpop.permute.xlu0 %1026 }
  0xbc   : > { %3825 = vperm.xlu0 %14848, %v11252_v49   ;;  %3828 = vperm.xlu1 %14849, %v11253_v51   ;;  %vm436_vm13 = vcmp.eq.s32.totalorder %v15322_v0, %v418_v53  ;;  %vm435_vm14 = vcmp.eq.s32.totalorder %v15313_v60, %v418_v53  ;;  %vm1045_vm10 = vcmp.eq.s32.totalorder %v15322_v0, %v1027_v59  ;;  %v11324_v51 = vld [vmem:[%s17762_s1 + $0x370] sm:$0xff]  ;;  %v10925_v53 = vld [vmem:[%s17763_s2 + $0x4] sm:$0xf] }
  0xbd   : > { %10895 = vmatprep.mubr.msk.f32.mxu0 %vm436_vm13, %v17774_v6  ;;  %13891 = vmatprep.subr.bf16.mxu1 %v15079_v23  ;;  %vm1044_vm11 = vcmp.eq.s32.totalorder %v15313_v60, %v1027_v59 }
  0xbe   : > { %10896 = vmatmul.mubr.msk.f32.gmra.mrb[10].mxu0 %vm435_vm14, %v17774_v6  ;;  %10955 = vmatmul.mubr.msk.f32.gmra.mrb[18].mxu1 %vm1036_vm15, %v17774_v6 }
  0xbf   : > { %v421_v57 = vpop.permute.xlu1 %420  ;;  %10956 = vmatprep.mubr.msk.f32.mxu1 %vm1039_vm0, %v17774_v6  ;;  %13893 = vmatpush3.bf16.msra.mxu1 %v15084_v25  ;;  %v1030_v5 = vpop.permute.xlu0 %1029 }
  0xc0   : > { %3831 = vperm.xlu0 %14848, %v11254_v54   ;;  %3507 = vperm.xlu1 %14849, %v11216_v56   ;;  %vm438_vm1 = vcmp.eq.s32.totalorder %v15322_v0, %v421_v57  ;;  %vm437_vm2 = vcmp.eq.s32.totalorder %v15313_v60, %v421_v57  ;;  %vm1047_vm12 = vcmp.eq.s32.totalorder %v15322_v0, %v1030_v5  ;;  %v11352_v54 = vld [vmem:[%s17762_s1 + $0x380] sm:$0xff]  ;;  %v11353_v56 = vld [vmem:[%s17762_s1 + $0x388] sm:$0xff] }
  0xc1   : > { %10897 = vmatprep.mubr.msk.f32.mxu0 %vm438_vm1, %v17774_v6  ;;  %13895 = vmatprep.subr.bf16.mxu1 %v15097_v31  ;;  %vm1046_vm13 = vcmp.eq.s32.totalorder %v15313_v60, %v1030_v5  ;;  %v11357_v5 = vld [vmem:[%s17762_s1 + $0x3a8] sm:$0xff] }
  0xc2   : > { %10898 = vmatmul.mubr.msk.f32.gmra.mrb[12].mxu0 %vm437_vm2, %v17774_v6  ;;  %10957 = vmatmul.mubr.msk.f32.gmra.mrb[20].mxu1 %vm1038_vm3, %v17774_v6 }
  0xc3   : > { %v424_v1 = vpop.permute.xlu1 %423  ;;  %10958 = vmatprep.mubr.msk.f32.mxu1 %vm1041_vm4, %v17774_v6  ;;  %13897 = vmatpush3.bf16.msra.mxu1 %v15103_v34  ;;  %v1033_v11 = vpop.permute.xlu0 %1032 }
  0xc4   : > { %3834 = vperm.xlu0 %14848, %v11255_v61   ;;  %3510 = vperm.xlu1 %14849, %v11217_v62   ;;  %vm440_vm5 = vcmp.eq.s32.totalorder %v15322_v0, %v424_v1  ;;  %vm439_vm6 = vcmp.eq.s32.totalorder %v15313_v60, %v424_v1  ;;  %vm1049_vm14 = vcmp.eq.s32.totalorder %v15322_v0, %v1033_v11  ;;  %v11354_v61 = vld [vmem:[%s17762_s1 + $0x390] sm:$0xff]  ;;  %v11355_v62 = vld [vmem:[%s17762_s1 + $0x398] sm:$0xff] }
  0xc5   : > { %10899 = vmatprep.mubr.msk.f32.mxu0 %vm440_vm5, %v17774_v6  ;;  %13899 = vmatprep.subr.bf16.mxu1 %v15115_v39  ;;  %vm1048_vm15 = vcmp.eq.s32.totalorder %v15313_v60, %v1033_v11 }
  0xc6   : > { %10900 = vmatmul.mubr.msk.f32.gmra.mrb[14].mxu0 %vm439_vm6, %v17774_v6  ;;  %10959 = vmatmul.mubr.msk.f32.gmra.mrb[22].mxu1 %vm1040_vm7, %v17774_v6 }
  0xc7   : > { %10960 = vmatprep.mubr.msk.f32.mxu1 %vm1043_vm8, %v17774_v6  ;;  %13901 = vmatpush3.bf16.msra.mxu1 %v15121_v42  ;;  %v1324_v16 = vpop.permute.xlu0 %1323  ;;  %v1327_v21 = vpop.permute.xlu1 %1326 }
  0xc8   : > { %3837 = vperm.xlu0 %14848, %v11256_v3   ;;  %3513 = vperm.xlu1 %14849, %v11218_v4   ;;  %vm1347_vm0 = vcmp.eq.s32.totalorder %v15322_v0, %v1324_v16  ;;  %vm1346_vm1 = vcmp.eq.s32.totalorder %v15313_v60, %v1324_v16  ;;  %vm1349_vm2 = vcmp.eq.s32.totalorder %v15322_v0, %v1327_v21  ;;  %v11356_v4 = vld [vmem:[%s17762_s1 + $0x3a0] sm:$0xff] }
  0xc9   : > { %13903 = vmatprep.subr.bf16.mxu1 %v15133_v47  ;;  %vm1348_vm3 = vcmp.eq.s32.totalorder %v15313_v60, %v1327_v21  ;;  %v11390_v21 = vld [vmem:[%s17762_s1 + $0x3e0] sm:$0xff] }
  0xca   : > { %10961 = vmatmul.mubr.msk.f32.gmra.mrb[24].mxu1 %vm1042_vm9, %v17774_v6 }
  0xcb   : > { %10962 = vmatprep.mubr.msk.f32.mxu1 %vm1045_vm10, %v17774_v6  ;;  %13905 = vmatpush3.bf16.msra.mxu1 %v15139_v50  ;;  %v1330_v22 = vpop.permute.xlu0 %1329  ;;  %v1333_v30 = vpop.permute.xlu1 %1332 }
  0xcc   : > { %3840 = vperm.xlu0 %14848, %v11257_v9   ;;  %3516 = vperm.xlu1 %14849, %v11219_v10   ;;  %vm1351_vm4 = vcmp.eq.s32.totalorder %v15322_v0, %v1330_v22  ;;  %vm1350_vm5 = vcmp.eq.s32.totalorder %v15313_v60, %v1330_v22  ;;  %vm1353_vm6 = vcmp.eq.s32.totalorder %v15322_v0, %v1333_v30  ;;  %v11358_v9 = vld [vmem:[%s17762_s1 + $0x3b0] sm:$0xff]  ;;  %v11359_v10 = vld [vmem:[%s17762_s1 + $0x3b8] sm:$0xff]  ;;  %v11391_v22 = vld [vmem:[%s17762_s1 + $0x3e8] sm:$0xff] }
  0xcd   : > { %13907 = vmatprep.subr.bf16.mxu1 %v15151_v55  ;;  %vm1352_vm7 = vcmp.eq.s32.totalorder %v15313_v60, %v1333_v30 }
  0xce   : > { %10963 = vmatmul.mubr.msk.f32.gmra.mrb[26].mxu1 %vm1044_vm11, %v17774_v6 }
  0xcf   : > { %10964 = vmatprep.mubr.msk.f32.mxu1 %vm1047_vm12, %v17774_v6  ;;  %13909 = vmatpush3.bf16.msra.mxu1 %v15157_v58  ;;  %v1336_v29 = vpop.permute.xlu0 %1335  ;;  %v1339_v36 = vpop.permute.xlu1 %1338 }
  0xd0   : > { %4131 = vperm.xlu0 %14848, %v11284_v12   ;;  %3519 = vperm.xlu1 %14849, %v11220_v13   ;;  %vm1355_vm8 = vcmp.eq.s32.totalorder %v15322_v0, %v1336_v29  ;;  %vm1354_vm9 = vcmp.eq.s32.totalorder %v15313_v60, %v1336_v29  ;;  %vm1357_vm10 = vcmp.eq.s32.totalorder %v15322_v0, %v1339_v36  ;;  %v11386_v13 = vld [vmem:[%s17762_s1 + $0x3c0] sm:$0xff]  ;;  %v11393_v29 = vld [vmem:[%s17762_s1 + $0x3f8] sm:$0xff] }
  0xd1   : > { %13911 = vmatprep.subr.bf16.mxu1 %v15169_v63  ;;  %vm1356_vm11 = vcmp.eq.s32.totalorder %v15313_v60, %v1339_v36  ;;  %v11423_v36 = vld [vmem:[%s17765_s4 + $0x10] sm:$0xff] }
  0xd2   : > { %10965 = vmatmul.mubr.msk.f32.gmra.mrb[28].mxu1 %vm1046_vm13, %v17774_v6 }
  0xd3   : > { %10966 = vmatprep.mubr.msk.f32.mxu1 %vm1049_vm14, %v17774_v6  ;;  %13913 = vmatpush3.bf16.msra.mxu1 %v15175_v2  ;;  %v1342_v35 = vpop.permute.xlu0 %1341  ;;  %v1345_v44 = vpop.permute.xlu1 %1344 }
  0xd4   : > { %4134 = vperm.xlu0 %14848, %v11285_v14   ;;  %3522 = vperm.xlu1 %14849, %v11221_v15   ;;  %vm1359_vm12 = vcmp.eq.s32.totalorder %v15322_v0, %v1342_v35  ;;  %vm1358_vm13 = vcmp.eq.s32.totalorder %v15313_v60, %v1342_v35  ;;  %vm1361_vm14 = vcmp.eq.s32.totalorder %v15322_v0, %v1345_v44  ;;  %v11387_v14 = vld [vmem:[%s17762_s1 + $0x3c8] sm:$0xff] }
  0xd5   : > { %13915 = vmatprep.subr.bf16.mxu1 %v15187_v7  ;;  %v5409_v35 = vld [vmem:[%s17765_s4 + $0x8] sm:$0xff] }
  0xd6   : > { %10967 = vmatmul.mubr.msk.f32.gmra.mrb[30].mxu1 %vm1048_vm15, %v17774_v6  ;;  %vm760_vm15 = vcmask 1043456  }
  0xd7   : > { %13917 = vmatpush3.bf16.msra.mxu1 %v15191_v8  ;;  %10986 = vmatprep.mubr.msk.f32.mxu1 %vm1347_vm0, %v17774_v6  ;;  %v1636_v43 = vpop.permute.xlu0 %1635  ;;  %v1639_v49 = vpop.permute.xlu1 %1638  ;;  %vm1360_vm0 = vcmp.eq.s32.totalorder %v15313_v60, %v1345_v44 }
  0xd8   : > { %4137 = vperm.xlu0 %14848, %v11286_v19   ;;  %3525 = vperm.xlu1 %14849, %v11222_v20   ;;  %v11388_v19 = vld [vmem:[%s17762_s1 + $0x3d0] sm:$0xff]  ;;  %v11389_v20 = vld [vmem:[%s17762_s1 + $0x3d8] sm:$0xff] }
  0xd9   : > { %13919 = vmatprep.subr.bf16.mxu1 %v15070_v17  ;;  %12958 = vmatprep.subr.msk.mxu0 %vm760_vm15, %v10925_v53 }
  0xda   : > { %10987 = vmatmul.mubr.msk.f32.vlgmr.msra.gmra.mrb[32].mxu1 %vm1346_vm1, %v17774_v6  ;;  %vm1659_vm1 = vcmp.eq.s32.totalorder %v15322_v0, %v1636_v43  ;;  %12959 = vmatpush3.msk.msra.mxu0 %vm760_vm15, %v10925_v53 }
  0xdb   : > { %10988 = vmatprep.mubr.msk.f32.mxu1 %vm1349_vm2, %v17774_v6  ;;  %13921 = vmatpush3.bf16.msra.mxu1 %v15072_v18  ;;  %v1642_v48 = vpop.permute.xlu0 %1641  ;;  %v1645_v59 = vpop.permute.xlu1 %1644  ;;  %vm1658_vm2 = vcmp.eq.s32.totalorder %v15313_v60, %v1636_v43  ;;  %v11433_v43 = vld [vmem:[%s17765_s4 + $0x28] sm:$0xff] }
  0xdc   : > { %4140 = vperm.xlu0 %14848, %v11287_v24   ;;  %3528 = vperm.xlu1 %14849, %v11223_v26  }
  0xdd   : > { %13923 = vmatprep.subr.bf16.mxu1 %v15079_v23 }
  0xde   : > { %10989 = vmatmul.mubr.msk.f32.gmra.mrb[34].mxu1 %vm1348_vm3, %v17774_v6  ;;  %vm1661_vm3 = vcmp.eq.s32.totalorder %v15322_v0, %v1639_v49 }
  0xdf   : > { %10990 = vmatprep.mubr.msk.f32.mxu1 %vm1351_vm4, %v17774_v6  ;;  %13925 = vmatpush3.bf16.msra.mxu1 %v15084_v25  ;;  %v1648_v57 = vpop.permute.xlu0 %1647  ;;  %v1651_v3 = vpop.permute.xlu1 %1650  ;;  %vm1660_vm4 = vcmp.eq.s32.totalorder %v15313_v60, %v1639_v49  ;;  %v11446_v49 = vld [vmem:[%s17765_s4 + $0x40] sm:$0xff] }
  0xe0   : > { %4143 = vperm.xlu0 %14848, %v11288_v27   ;;  %4146 = vperm.xlu1 %14849, %v11289_v28   ;;  %v15764_v27 = vld [vmem:[%s17763_s2] sm:$0xf]  ;;  %v11392_v28 = vld [vmem:[%s17762_s1 + $0x3f0] sm:$0xff] }
  0xe1   : > { %13927 = vmatprep.subr.bf16.mxu1 %v15097_v31  ;;  %12972 = vmatprep.subr.msk.mxu0 %vm760_vm15, %v15764_v27 }
  0xe2   : > { %10991 = vmatmul.mubr.msk.f32.gmra.mrb[36].mxu1 %vm1350_vm5, %v17774_v6  ;;  %vm1663_vm5 = vcmp.eq.s32.totalorder %v15322_v0, %v1642_v48 }
  0xe3   : > { %10992 = vmatprep.mubr.msk.f32.mxu1 %vm1353_vm6, %v17774_v6  ;;  %13929 = vmatpush3.bf16.msra.mxu1 %v15103_v34  ;;  %v15688_v1 = vpop.permute.xlu0 %1653  ;;  %vm1662_vm6 = vcmp.eq.s32.totalorder %v15313_v60, %v1642_v48  ;;  %v1657_v12 = vpop.permute.xlu1 %1656  ;;  %v11440_v48 = vld [vmem:[%s17765_s4 + $0x38] sm:$0xff] }
  0xe4   : > { %4149 = vperm.xlu0 %14848, %v11290_v32   ;;  %4152 = vperm.xlu1 %14849, %v11291_v33   ;;  %v5408_v33 = vld [vmem:[%s17765_s4] sm:$0xff] }
  0xe5   : > { %13931 = vmatprep.subr.bf16.mxu1 %v15115_v39 }
  0xe6   : > { %10993 = vmatmul.mubr.msk.f32.gmra.mrb[38].mxu1 %vm1352_vm7, %v17774_v6  ;;  %vm1665_vm7 = vcmp.eq.s32.totalorder %v15322_v0, %v1645_v59 }
  0xe7   : > { %10994 = vmatprep.mubr.msk.f32.mxu1 %vm1355_vm8, %v17774_v6  ;;  %13933 = vmatpush3.bf16.msra.mxu1 %v15121_v42  ;;  %v15710_v11 = vpop.permute.xlu0 %2259  ;;  %vm1664_vm8 = vcmp.eq.s32.totalorder %v15313_v60, %v1645_v59  ;;  %v15730_v16 = vpop.permute.xlu1 %2262 }
  0xe8   : > { %4443 = vperm.xlu0 %14848, %v11318_v37   ;;  %4446 = vperm.xlu1 %14849, %v11319_v38   ;;  %v11424_v37 = vld [vmem:[%s17765_s4 + $0x18] sm:$0xff] }
  0xe9   : > { %13935 = vmatprep.subr.bf16.mxu1 %v15133_v47 }
  0xea   : > { %10995 = vmatmul.mubr.msk.f32.gmra.mrb[40].mxu1 %vm1354_vm9, %v17774_v6  ;;  %vm1667_vm9 = vcmp.eq.s32.totalorder %v15322_v0, %v1648_v57 }
  0xeb   : > { %10996 = vmatprep.mubr.msk.f32.mxu1 %vm1357_vm10, %v17774_v6  ;;  %13937 = vmatpush3.bf16.msra.mxu1 %v15139_v50  ;;  %v15728_v15 = vpop.permute.xlu0 %2265  ;;  %vm1666_vm10 = vcmp.eq.s32.totalorder %v15313_v60, %v1648_v57  ;;  %v15757_v26 = vpop.permute.xlu1 %2268 }
  0xec   : > { %4449 = vperm.xlu0 %14848, %v11320_v40   ;;  %4452 = vperm.xlu1 %14849, %v11321_v41   ;;  %v11432_v41 = vld [vmem:[%s17765_s4 + $0x20] sm:$0xff] }
  0xed   : > { %13939 = vmatprep.subr.bf16.mxu1 %v15151_v55 }
  0xee   : > { %10997 = vmatmul.mubr.msk.f32.gmra.mrb[42].mxu1 %vm1356_vm11, %v17774_v6  ;;  %vm1669_vm11 = vcmp.eq.s32.totalorder %v15322_v0, %v1651_v3 }
  0xef   : > { %10998 = vmatprep.mubr.msk.f32.mxu1 %vm1359_vm12, %v17774_v6  ;;  %13941 = vmatpush3.bf16.msra.mxu1 %v15157_v58  ;;  %vm1668_vm12 = vcmp.eq.s32.totalorder %v15313_v60, %v1651_v3  ;;  %v15752_v24 = vpop.permute.xlu0 %2271  ;;  %v15783_v32 = vpop.permute.xlu1 %1947 }
  0xf0   : > { %4455 = vperm.xlu0 %14848, %v11322_v45   ;;  %4458 = vperm.xlu1 %14849, %v11323_v46   ;;  %v11439_v46 = vld [vmem:[%s17765_s4 + $0x30] sm:$0xff] }
  0xf1   : > { %13943 = vmatprep.subr.bf16.mxu1 %v15169_v63 }
  0xf2   : > { %10999 = vmatmul.mubr.msk.f32.gmra.mrb[44].mxu1 %vm1358_vm13, %v17774_v6  ;;  %vm1671_vm13 = vcmp.eq.s32.totalorder %v15322_v0, %v15688_v1 }
  0xf3   : > { %11000 = vmatprep.mubr.msk.f32.mxu1 %vm1361_vm14, %v17774_v6  ;;  %13945 = vmatpush3.bf16.msra.mxu1 %v15175_v2  ;;  %vm1670_vm14 = vcmp.eq.s32.totalorder %v15313_v60, %v15688_v1  ;;  %v15781_v30 = vpop.permute.xlu0 %2274  ;;  %v15812_v40 = vpop.permute.xlu1 %1950  ;;  %v11467_v1 = vld [vmem:[%s17765_s4 + $0x70] sm:$0xff] }
  0xf4   : > { %4461 = vperm.xlu0 %14848, %v11324_v51   ;;  %4464 = vperm.xlu1 %14849, %v11325_v52   ;;  %v11447_v51 = vld [vmem:[%s17765_s4 + $0x48] sm:$0xff] }
  0xf5   : > { %13947 = vmatprep.subr.bf16.mxu1 %v15187_v7 }
  0xf6   : > { %11001 = vmatmul.mubr.msk.f32.gmra.mrb[46].mxu1 %vm1360_vm0, %v17774_v6  ;;  %vm1673_vm0 = vcmp.eq.s32.totalorder %v15322_v0, %v1657_v12 }
  0xf7   : > { %13949 = vmatpush3.bf16.msra.mxu1 %v15191_v8  ;;  %11020 = vmatprep.mubr.msk.f32.mxu1 %vm1659_vm1, %v17774_v6  ;;  %vm1672_vm1 = vcmp.eq.s32.totalorder %v15313_v60, %v1657_v12  ;;  %v15807_v38 = vpop.permute.xlu0 %2277  ;;  %v15832_v45 = vpop.permute.xlu1 %1953 }
  0xf8   : > { %4755 = vperm.xlu0 %14848, %v11352_v54   ;;  %4758 = vperm.xlu1 %14849, %v11353_v56   ;;  %v11453_v54 = vld [vmem:[%s17765_s4 + $0x50] sm:$0xff]  ;;  %v11454_v56 = vld [vmem:[%s17765_s4 + $0x58] sm:$0xff] }
  0xf9   : > { %13983 = vmatprep.subr.bf16.mxu1 %v15070_v17 }
  0xfa   : > { %11021 = vmatmul.mubr.msk.f32.vlgmr.msra.gmra.mrb[48].mxu1 %vm1658_vm2, %v17774_v6  ;;  %vm2283_vm2 = vcmp.eq.s32.totalorder %v15322_v0, %v15710_v11 }
  0xfb   : > { %11022 = vmatprep.mubr.msk.f32.mxu1 %vm1661_vm3, %v17774_v6  ;;  %13985 = vmatpush3.bf16.msra.mxu1 %v15072_v18  ;;  %vm2282_vm3 = vcmp.eq.s32.totalorder %v15313_v60, %v15710_v11  ;;  %v15830_v44 = vpop.permute.xlu0 %2280  ;;  %v15860_v53 = vpop.permute.xlu1 %1956 }
  0xfc   : > { %4761 = vperm.xlu0 %14848, %v11354_v61   ;;  %4764 = vperm.xlu1 %14849, %v11355_v62   ;;  %v11460_v61 = vld [vmem:[%s17765_s4 + $0x60] sm:$0xff]  ;;  %v11461_v62 = vld [vmem:[%s17765_s4 + $0x68] sm:$0xff] }
  0xfd   : > { %13987 = vmatprep.subr.bf16.mxu1 %v15079_v23 }
  0xfe   : > { %11023 = vmatmul.mubr.msk.f32.gmra.mrb[50].mxu1 %vm1660_vm4, %v17774_v6  ;;  %vm2285_vm4 = vcmp.eq.s32.totalorder %v15322_v0, %v15730_v16 }
  0xff   : > { %11024 = vmatprep.mubr.msk.f32.mxu1 %vm1663_vm5, %v17774_v6  ;;  %13989 = vmatpush3.bf16.msra.mxu1 %v15084_v25  ;;  %vm2284_vm5 = vcmp.eq.s32.totalorder %v15313_v60, %v15730_v16  ;;  %v2572_v52 = vpop.permute.xlu0 %2571  ;;  %v15878_v59 = vpop.permute.xlu1 %1959 }
 0x100   : > { %4767 = vperm.xlu0 %14848, %v11356_v4   ;;  %4770 = vperm.xlu1 %14849, %v11357_v5   ;;  %v11468_v4 = vld [vmem:[%s17765_s4 + $0x78] sm:$0xff] }
 0x101   : > { %13991 = vmatprep.subr.bf16.mxu1 %v15097_v31 }
 0x102   : > { %11025 = vmatmul.mubr.msk.f32.gmra.mrb[52].mxu1 %vm1662_vm6, %v17774_v6  ;;  %vm2287_vm6 = vcmp.eq.s32.totalorder %v15322_v0, %v15728_v15 }
 0x103   : > { %11026 = vmatprep.mubr.msk.f32.mxu1 %vm1665_vm7, %v17774_v6  ;;  %13993 = vmatpush3.bf16.msra.mxu1 %v15103_v34  ;;  %vm2286_vm7 = vcmp.eq.s32.totalorder %v15313_v60, %v15728_v15  ;;  %v2575_v57 = vpop.permute.xlu0 %2574  ;;  %v15906_v5 = vpop.permute.xlu1 %1962  ;;  %v11488_v15 = vld [vmem:[%s17765_s4 + $0xa0] sm:$0xff] }
 0x104   : > { %4773 = vperm.xlu0 %14848, %v11358_v9   ;;  %4776 = vperm.xlu1 %14849, %v11359_v10   ;;  %v11474_v9 = vld [vmem:[%s17765_s4 + $0x80] sm:$0xff]  ;;  %v11475_v10 = vld [vmem:[%s17765_s4 + $0x88] sm:$0xff] }
 0x105   : > { %13995 = vmatprep.subr.bf16.mxu1 %v15115_v39 }
 0x106   : > { %11027 = vmatmul.mubr.msk.f32.gmra.mrb[54].mxu1 %vm1664_vm8, %v17774_v6  ;;  %vm2289_vm8 = vcmp.eq.s32.totalorder %v15322_v0, %v15757_v26 }
 0x107   : > { %11028 = vmatprep.mubr.msk.f32.mxu1 %vm1667_vm9, %v17774_v6  ;;  %13997 = vmatpush3.bf16.msra.mxu1 %v15121_v42  ;;  %vm2288_vm9 = vcmp.eq.s32.totalorder %v15313_v60, %v15757_v26  ;;  %v2578_v3 = vpop.permute.xlu0 %2577  ;;  %v15924_v12 = vpop.permute.xlu1 %1965 }
 0x108   : > { %5067 = vperm.xlu0 %14848, %v11386_v13   ;;  %5070 = vperm.xlu1 %14849, %v11387_v14   ;;  %v11481_v13 = vld [vmem:[%s17765_s4 + $0x90] sm:$0xff]  ;;  %v11482_v14 = vld [vmem:[%s17765_s4 + $0x98] sm:$0xff] }
 0x109   : > { %13999 = vmatprep.subr.bf16.mxu1 %v15133_v47 }
 0x10a   : > { %11029 = vmatmul.mubr.msk.f32.gmra.mrb[56].mxu1 %vm1666_vm10, %v17774_v6  ;;  %vm2291_vm10 = vcmp.eq.s32.totalorder %v15322_v0, %v15752_v24 }
 0x10b   : > { %11030 = vmatprep.mubr.msk.f32.mxu1 %vm1669_vm11, %v17774_v6  ;;  %14001 = vmatpush3.bf16.msra.mxu1 %v15139_v50  ;;  %vm2290_vm11 = vcmp.eq.s32.totalorder %v15313_v60, %v15752_v24  ;;  %v2581_v11 = vpop.permute.xlu0 %2580 }
 0x10c   : > { %5073 = vperm.xlu0 %14848, %v11388_v19   ;;  %5076 = vperm.xlu1 %14849, %v11389_v20   ;;  %v11489_v19 = vld [vmem:[%s17765_s4 + $0xa8] sm:$0xff]  ;;  %v15947_v20 = vpop.permute.xlu1 %1968 }
 0x10d   : > { %14003 = vmatprep.subr.bf16.mxu1 %v15151_v55 }
 0x10e   : > { %11031 = vmatmul.mubr.msk.f32.gmra.mrb[58].mxu1 %vm1668_vm12, %v17774_v6  ;;  %vm2293_vm12 = vcmp.eq.s32.totalorder %v15322_v0, %v15781_v30 }
 0x10f   : > { %11032 = vmatprep.mubr.msk.f32.mxu1 %vm1671_vm13, %v17774_v6  ;;  %14005 = vmatpush3.bf16.msra.mxu1 %v15157_v58  ;;  %vm2292_vm13 = vcmp.eq.s32.totalorder %v15313_v60, %v15781_v30  ;;  %v2584_v16 = vpop.permute.xlu0 %2583  ;;  %v11509_v30 = vld [vmem:[%s17765_s4 + $0xd0] sm:$0xff] }
 0x110   : > { %5079 = vperm.xlu0 %14848, %v11390_v21   ;;  %5082 = vperm.xlu1 %14849, %v11391_v22   ;;  %v11495_v21 = vld [vmem:[%s17765_s4 + $0xb0] sm:$0xff]  ;;  %v11496_v22 = vld [vmem:[%s17765_s4 + $0xb8] sm:$0xff]  ;;  %v2587_v26 = vpop.permute.xlu1 %2586 }
 0x111   : > { %14007 = vmatprep.subr.bf16.mxu1 %v15169_v63 }
 0x112   : > { %11033 = vmatmul.mubr.msk.f32.gmra.mrb[60].mxu1 %vm1670_vm14, %v17774_v6  ;;  %vm2295_vm14 = vcmp.eq.s32.totalorder %v15322_v0, %v15807_v38 }
 0x113   : > { %11034 = vmatprep.mubr.msk.f32.mxu1 %vm1673_vm0, %v17774_v6  ;;  %14009 = vmatpush3.bf16.msra.mxu1 %v15175_v2  ;;  %vm2294_vm0 = vcmp.eq.s32.totalorder %v15313_v60, %v15807_v38  ;;  %v2590_v24 = vpop.permute.xlu0 %2589  ;;  %v11517_v38 = vld [vmem:[%s17765_s4 + $0xe8] sm:$0xff] }
 0x114   : > { %5085 = vperm.xlu0 %14848, %v11392_v28   ;;  %5088 = vperm.xlu1 %14849, %v11393_v29   ;;  %v11502_v28 = vld [vmem:[%s17765_s4 + $0xc0] sm:$0xff]  ;;  %v11503_v29 = vld [vmem:[%s17765_s4 + $0xc8] sm:$0xff] }
 0x115   : > { %14011 = vmatprep.subr.bf16.mxu1 %v15187_v7 }
 0x116   : > { %11035 = vmatmul.mubr.msk.f32.gmra.mrb[62].mxu1 %vm1672_vm1, %v17774_v6  ;;  %vm2297_vm1 = vcmp.eq.s32.totalorder %v15322_v0, %v15830_v44 }
 0x117   : > { %14013 = vmatpush3.bf16.msra.mxu1 %v15191_v8  ;;  %11088 = vmatprep.mubr.msk.f32.mxu1 %vm2283_vm2, %v17774_v6  ;;  %vm2296_vm2 = vcmp.eq.s32.totalorder %v15313_v60, %v15830_v44  ;;  %v11523_v44 = vld [vmem:[%s17765_s4 + $0xf0] sm:$0xff] }
 0x118   : > { %5411 = vperm.xlu0 %14848, %v5408_v33   ;;  %5414 = vperm.xlu1 %14849, %v5409_v35   ;;  %v2884_v33 = vpop.permute.xlu0 %2883  ;;  %v11510_v35 = vld [vmem:[%s17765_s4 + $0xd8] sm:$0xff] }
 0x119   : > { %14015 = vmatprep.subr.bf16.mxu1 %v15070_v17 }
 0x11a   : > { %11089 = vmatmul.mubr.msk.f32.vlgmr.msra.gmra.mrb[64].mxu1 %vm2282_vm3, %v17774_v6  ;;  %vm2595_vm3 = vcmp.eq.s32.totalorder %v15322_v0, %v2572_v52 }
 0x11b   : > { %11090 = vmatprep.mubr.msk.f32.mxu1 %vm2285_vm4, %v17774_v6  ;;  %14017 = vmatpush3.bf16.msra.mxu1 %v15072_v18  ;;  %vm2594_vm4 = vcmp.eq.s32.totalorder %v15313_v60, %v2572_v52 }
 0x11c   : > { %5507 = vperm.xlu0 %14848, %v11423_v36   ;;  %5510 = vperm.xlu1 %14849, %v11424_v37   ;;  %v2593_v36 = vpop.permute.xlu1 %2592  ;;  %v11516_v37 = vld [vmem:[%s17765_s4 + $0xe0] sm:$0xff] }
 0x11d   : > { %14019 = vmatprep.subr.bf16.mxu1 %v15079_v23 }
 0x11e   : > { %11091 = vmatmul.mubr.msk.f32.gmra.mrb[66].mxu1 %vm2284_vm5, %v17774_v6  ;;  %vm2597_vm5 = vcmp.eq.s32.totalorder %v15322_v0, %v2575_v57 }
 0x11f   : > { %11092 = vmatprep.mubr.msk.f32.mxu1 %vm2287_vm6, %v17774_v6  ;;  %14021 = vmatpush3.bf16.msra.mxu1 %v15084_v25  ;;  %vm2596_vm6 = vcmp.eq.s32.totalorder %v15313_v60, %v2575_v57 }
 0x120   : > { %5766 = vperm.xlu0 %14848, %v11432_v41   ;;  %5769 = vperm.xlu1 %14849, %v11433_v43   ;;  %v2890_v41 = vpop.permute.xlu0 %2889  ;;  %v2887_v43 = vpop.permute.xlu1 %2886 }
 0x121   : > { %14023 = vmatprep.subr.bf16.mxu1 %v15097_v31 }
 0x122   : > { %11093 = vmatmul.mubr.msk.f32.gmra.mrb[68].mxu1 %vm2286_vm7, %v17774_v6  ;;  %vm2599_vm7 = vcmp.eq.s32.totalorder %v15322_v0, %v2578_v3 }
 0x123   : > { %11094 = vmatprep.mubr.msk.f32.mxu1 %vm2289_vm8, %v17774_v6  ;;  %14025 = vmatpush3.bf16.msra.mxu1 %v15103_v34  ;;  %vm2598_vm8 = vcmp.eq.s32.totalorder %v15313_v60, %v2578_v3  ;;  %v11558_v3 = vld [vmem:[%s17768_s7 + $0x18] sm:$0xf] }
 0x124   : > { %5945 = vperm.xlu0 %14848, %v11439_v46   ;;  %5948 = vperm.xlu1 %14849, %v11440_v48   ;;  %v11524_v46 = vld [vmem:[%s17765_s4 + $0xf8] sm:$0xff]  ;;  %v8283_v48 = vld [vmem:[%s17768_s7] sm:$0xf]  ;;  %v2893_v52 = vpop.permute.xlu1 %2892 }
 0x125   : > { %14027 = vmatprep.subr.bf16.mxu1 %v15115_v39 }
 0x126   : > { %11095 = vmatmul.mubr.msk.f32.gmra.mrb[70].mxu1 %vm2288_vm9, %v17774_v6  ;;  %vm2601_vm9 = vcmp.eq.s32.totalorder %v15322_v0, %v2581_v11 }
 0x127   : > { %11096 = vmatprep.mubr.msk.f32.mxu1 %vm2291_vm10, %v17774_v6  ;;  %14029 = vmatpush3.bf16.msra.mxu1 %v15121_v42  ;;  %vm2600_vm10 = vcmp.eq.s32.totalorder %v15313_v60, %v2581_v11  ;;  %v11568_v11 = vld [vmem:[%s17768_s7 + $0x20] sm:$0xf] }
 0x128   : > { %6124 = vperm.xlu0 %14848, %v11446_v49   ;;  %6127 = vperm.xlu1 %14849, %v11447_v51   ;;  %v2896_v49 = vpop.permute.xlu0 %2895  ;;  %v11532_v51 = vld [vmem:[%s17768_s7 + $0x4] sm:$0xf] }
 0x129   : > { %14031 = vmatprep.subr.bf16.mxu1 %v15133_v47 }
 0x12a   : > { %11097 = vmatmul.mubr.msk.f32.gmra.mrb[72].mxu1 %vm2290_vm11, %v17774_v6  ;;  %vm2603_vm11 = vcmp.eq.s32.totalorder %v15322_v0, %v2584_v16 }
 0x12b   : > { %11098 = vmatprep.mubr.msk.f32.mxu1 %vm2293_vm12, %v17774_v6  ;;  %14033 = vmatpush3.bf16.msra.mxu1 %v15139_v50  ;;  %vm2602_vm12 = vcmp.eq.s32.totalorder %v15313_v60, %v2584_v16  ;;  %v11578_v16 = vld [vmem:[%s17768_s7 + $0x28] sm:$0xf] }
 0x12c   : > { %6303 = vperm.xlu0 %14848, %v11453_v54   ;;  %6306 = vperm.xlu1 %14849, %v11454_v56   ;;  %v11538_v54 = vld [vmem:[%s17768_s7 + $0x8] sm:$0xf]  ;;  %v11543_v56 = vld [vmem:[%s17768_s7 + $0xc] sm:$0xf]  ;;  %v16035_v57 = vpop.permute.xlu0 %2901 }
 0x12d   : > { %14035 = vmatprep.subr.bf16.mxu1 %v15151_v55 }
 0x12e   : > { %11099 = vmatmul.mubr.msk.f32.gmra.mrb[74].mxu1 %vm2292_vm13, %v17774_v6  ;;  %vm2605_vm13 = vcmp.eq.s32.totalorder %v15322_v0, %v2587_v26 }
 0x12f   : > { %11100 = vmatprep.mubr.msk.f32.mxu1 %vm2295_vm14, %v17774_v6  ;;  %14037 = vmatpush3.bf16.msra.mxu1 %v15157_v58  ;;  %vm2604_vm14 = vcmp.eq.s32.totalorder %v15313_v60, %v2587_v26 }
 0x130   : > { %6482 = vperm.xlu0 %14848, %v11460_v61   ;;  %6485 = vperm.xlu1 %14849, %v11461_v62   ;;  %v2899_v61 = vpop.permute.xlu1 %2898  ;;  %v11548_v62 = vld [vmem:[%s17768_s7 + $0x10] sm:$0xf] }
 0x131   : > { %14039 = vmatprep.subr.bf16.mxu1 %v15169_v63 }
 0x132   : > { %11101 = vmatmul.mubr.msk.f32.gmra.mrb[76].mxu1 %vm2294_vm0, %v17774_v6  ;;  %vm2607_vm0 = vcmp.eq.s32.totalorder %v15322_v0, %v2590_v24 }
 0x133   : > { %11102 = vmatprep.mubr.msk.f32.mxu1 %vm2297_vm1, %v17774_v6  ;;  %14041 = vmatpush3.bf16.msra.mxu1 %v15175_v2  ;;  %vm2606_vm1 = vcmp.eq.s32.totalorder %v15313_v60, %v2590_v24 }
 0x134   : > { %6661 = vperm.xlu0 %14848, %v11467_v1   ;;  %6664 = vperm.xlu1 %14849, %v11468_v4   ;;  %v11553_v1 = vld [vmem:[%s17768_s7 + $0x14] sm:$0xf]  ;;  %v16054_v4 = vpop.permute.xlu0 %3195 }
 0x135   : > { %14043 = vmatprep.subr.bf16.mxu1 %v15187_v7 }
 0x136   : > { %11103 = vmatmul.mubr.msk.f32.gmra.mrb[78].mxu1 %vm2296_vm2, %v17774_v6  ;;  %vm2609_vm2 = vcmp.eq.s32.totalorder %v15322_v0, %v2593_v36 }
 0x137   : > { %14045 = vmatpush3.bf16.msra.mxu1 %v15191_v8  ;;  %11122 = vmatprep.mubr.msk.f32.mxu1 %vm2595_vm3, %v17774_v6  ;;  %vm2608_vm3 = vcmp.eq.s32.totalorder %v15313_v60, %v2593_v36 }
 0x138   : > { %6840 = vperm.xlu0 %14848, %v11474_v9   ;;  %6843 = vperm.xlu1 %14849, %v11475_v10   ;;  %v11563_v9 = vld [vmem:[%s17768_s7 + $0x1c] sm:$0xf]  ;;  %v16061_v10 = vpop.permute.xlu1 %2904 }
 0x139   : > { %14047 = vmatprep.subr.bf16.mxu1 %v15070_v17 }
 0x13a   : > { %11123 = vmatmul.mubr.msk.f32.vlgmr.msra.gmra.mrb[80].mxu1 %vm2594_vm4, %v17774_v6  ;;  %vm2907_vm4 = vcmp.eq.s32.totalorder %v15322_v0, %v2884_v33 }
 0x13b   : > { %11124 = vmatprep.mubr.msk.f32.mxu1 %vm2597_vm5, %v17774_v6  ;;  %14049 = vmatpush3.bf16.msra.mxu1 %v15072_v18  ;;  %vm2906_vm5 = vcmp.eq.s32.totalorder %v15313_v60, %v2884_v33 }
 0x13c   : > { %7019 = vperm.xlu0 %14848, %v11481_v13   ;;  %7022 = vperm.xlu1 %14849, %v11482_v14   ;;  %v11573_v13 = vld [vmem:[%s17768_s7 + $0x24] sm:$0xf]  ;;  %v16077_v14 = vpop.permute.xlu0 %3201 }
 0x13d   : > { %14051 = vmatprep.subr.bf16.mxu1 %v15079_v23 }
 0x13e   : > { %11125 = vmatmul.mubr.msk.f32.gmra.mrb[82].mxu1 %vm2596_vm6, %v17774_v6  ;;  %vm2909_vm6 = vcmp.eq.s32.totalorder %v15322_v0, %v2887_v43 }
 0x13f   : > { %11126 = vmatprep.mubr.msk.f32.mxu1 %vm2599_vm7, %v17774_v6  ;;  %14053 = vmatpush3.bf16.msra.mxu1 %v15084_v25  ;;  %vm2908_vm7 = vcmp.eq.s32.totalorder %v15313_v60, %v2887_v43 }
 0x140   : > { %7198 = vperm.xlu0 %14848, %v11488_v15   ;;  %7201 = vperm.xlu1 %14849, %v11489_v19   ;;  %v16079_v15 = vpop.permute.xlu1 %3198  ;;  %v11583_v19 = vld [vmem:[%s17768_s7 + $0x2c] sm:$0xf]  ;;  %v16098_v24 = vpop.permute.xlu0 %3207 }
 0x141   : > { %14055 = vmatprep.subr.bf16.mxu1 %v15097_v31 }
 0x142   : > { %11127 = vmatmul.mubr.msk.f32.gmra.mrb[84].mxu1 %vm2598_vm8, %v17774_v6  ;;  %vm2911_vm8 = vcmp.eq.s32.totalorder %v15322_v0, %v2890_v41 }
 0x143   : > { %11128 = vmatprep.mubr.msk.f32.mxu1 %vm2601_vm9, %v17774_v6  ;;  %14057 = vmatpush3.bf16.msra.mxu1 %v15103_v34  ;;  %vm2910_vm9 = vcmp.eq.s32.totalorder %v15313_v60, %v2890_v41 }
 0x144   : > { %7377 = vperm.xlu0 %14848, %v11495_v21   ;;  %7380 = vperm.xlu1 %14849, %v11496_v22   ;;  %v11588_v22 = vld [vmem:[%s17768_s7 + $0x30] sm:$0xf]  ;;  %v16125_v41 = vpop.permute.xlu0 %3213 }
 0x145   : > { %14059 = vmatprep.subr.bf16.mxu1 %v15115_v39 }
 0x146   : > { %11129 = vmatmul.mubr.msk.f32.gmra.mrb[86].mxu1 %vm2600_vm10, %v17774_v6  ;;  %vm2913_vm10 = vcmp.eq.s32.totalorder %v15322_v0, %v2893_v52 }
 0x147   : > { %11130 = vmatprep.mubr.msk.f32.mxu1 %vm2603_vm11, %v17774_v6  ;;  %14061 = vmatpush3.bf16.msra.mxu1 %v15121_v42  ;;  %vm2912_vm11 = vcmp.eq.s32.totalorder %v15313_v60, %v2893_v52 }
 0x148   : > { %7556 = vperm.xlu0 %14848, %v11502_v28   ;;  %7559 = vperm.xlu1 %14849, %v11503_v29   ;;  %v11593_v28 = vld [vmem:[%s17768_s7 + $0x34] sm:$0xf]  ;;  %v16106_v29 = vpop.permute.xlu1 %3204  ;;  %v16149_v52 = vpop.permute.xlu0 %3819 }
 0x149   : > { %14063 = vmatprep.subr.bf16.mxu1 %v15133_v47 }
 0x14a   : > { %11131 = vmatmul.mubr.msk.f32.gmra.mrb[88].mxu1 %vm2602_vm12, %v17774_v6  ;;  %vm2915_vm12 = vcmp.eq.s32.totalorder %v15322_v0, %v2896_v49 }
 0x14b   : > { %11132 = vmatprep.mubr.msk.f32.mxu1 %vm2605_vm13, %v17774_v6  ;;  %14065 = vmatpush3.bf16.msra.mxu1 %v15139_v50  ;;  %vm2914_vm13 = vcmp.eq.s32.totalorder %v15313_v60, %v2896_v49  ;;  %v16141_v49 = vld [vmem:[%s17763_s2 + $0x8] sm:$0xf] }
 0x14c   : > { %7735 = vperm.xlu0 %14848, %v11509_v30   ;;  %7738 = vperm.xlu1 %14849, %v11510_v35   ;;  %v11598_v35 = vld [vmem:[%s17768_s7 + $0x38] sm:$0xf]  ;;  %v16127_v43 = vpop.permute.xlu1 %3210 }
 0x14d   : > { %14067 = vmatprep.subr.bf16.mxu1 %v15151_v55 }
 0x14e   : > { %11133 = vmatmul.mubr.msk.f32.gmra.mrb[90].mxu1 %vm2604_vm14, %v17774_v6  ;;  %vm2917_vm14 = vcmp.eq.s32.totalorder %v15322_v0, %v2899_v61 }
 0x14f   : > { %11134 = vmatprep.mubr.msk.f32.mxu1 %vm2607_vm0, %v17774_v6  ;;  %14069 = vmatpush3.bf16.msra.mxu1 %v15157_v58  ;;  %vm2916_vm0 = vcmp.eq.s32.totalorder %v15313_v60, %v2899_v61 }
 0x150   : > { %7914 = vperm.xlu0 %14848, %v11516_v37   ;;  %7917 = vperm.xlu1 %14849, %v11517_v38   ;;  %v11603_v37 = vld [vmem:[%s17768_s7 + $0x3c] sm:$0xf] }
 0x151   : > { %14071 = vmatprep.subr.bf16.mxu1 %v15169_v63 }
 0x152   : > { %11135 = vmatmul.mubr.msk.f32.gmra.mrb[92].mxu1 %vm2606_vm1, %v17774_v6  ;;  %vm2919_vm1 = vcmp.eq.s32.totalorder %v15322_v0, %v16035_v57 }
 0x153   : > { %11136 = vmatprep.mubr.msk.f32.mxu1 %vm2609_vm2, %v17774_v6  ;;  %14073 = vmatpush3.bf16.msra.mxu1 %v15175_v2  ;;  %vm735_vm2 = vcmask 31744  }
 0x154   : > { %8093 = vperm.xlu0 %14848, %v11523_v44   ;;  %8096 = vperm.xlu1 %14849, %v11524_v46  }
 0x155   : > { %14075 = vmatprep.subr.bf16.mxu1 %v15187_v7 }
 0x156   : > { %11137 = vmatmul.mubr.msk.f32.gmra.mrb[94].mxu1 %vm2608_vm3, %v17774_v6  ;;  %vm2918_vm3 = vcmp.eq.s32.totalorder %v15313_v60, %v16035_v57 }
 0x157   : > { %14077 = vmatpush3.bf16.msra.mxu1 %v15191_v8  ;;  %11156 = vmatprep.mubr.msk.f32.mxu1 %vm2907_vm4, %v17774_v6  ;;  %vm2921_vm4 = vcmp.eq.s32.totalorder %v15322_v0, %v16061_v10 }
 0x158   : > { %8285 = vperm.xlu0 %14848, %v8283_v48   ;;  %8368 = vperm.xlu1 %14849, %v11532_v51  }
 0x159   : > { %14079 = vmatprep.subr.bf16.mxu1 %v15070_v17 }
 0x15a   : > { %11157 = vmatmul.mubr.msk.f32.vlgmr.msra.gmra.mrb[96].mxu1 %vm2906_vm5, %v17774_v6  ;;  %vm2920_vm5 = vcmp.eq.s32.totalorder %v15313_v60, %v16061_v10 }
 0x15b   : > { %11158 = vmatprep.mubr.msk.f32.mxu1 %vm2909_vm6, %v17774_v6  ;;  %14081 = vmatpush3.bf16.msra.mxu1 %v15072_v18  ;;  %vm3219_vm6 = vcmp.eq.s32.totalorder %v15322_v0, %v16054_v4 }
 0x15c   : > { %8597 = vperm.xlu0 %14848, %v11538_v54   ;;  %8754 = vperm.xlu1 %14849, %v11543_v56  }
 0x15d   : > { %14083 = vmatprep.subr.bf16.mxu1 %v15079_v23 }
 0x15e   : > { %11159 = vmatmul.mubr.msk.f32.gmra.mrb[98].mxu1 %vm2908_vm7, %v17774_v6  ;;  %vm3218_vm7 = vcmp.eq.s32.totalorder %v15313_v60, %v16054_v4  ;;  %v16167_v4 = vpop.permute.xlu1 %3216 }
 0x15f   : > { %11160 = vmatprep.mubr.msk.f32.mxu1 %vm2911_vm8, %v17774_v6  ;;  %14085 = vmatpush3.bf16.msra.mxu1 %v15084_v25  ;;  %vm3221_vm8 = vcmp.eq.s32.totalorder %v15322_v0, %v16079_v15 }
 0x160   : > { %8911 = vperm.xlu0 %14848, %v11548_v62   ;;  %9068 = vperm.xlu1 %14849, %v11553_v1  }
 0x161   : > { %14087 = vmatprep.subr.bf16.mxu1 %v15097_v31 }
 0x162   : > { %11161 = vmatmul.mubr.msk.f32.gmra.mrb[100].mxu1 %vm2910_vm9, %v17774_v6  ;;  %vm3220_vm9 = vcmp.eq.s32.totalorder %v15313_v60, %v16079_v15 }
 0x163   : > { %11162 = vmatprep.mubr.msk.f32.mxu1 %vm2913_vm10, %v17774_v6  ;;  %14089 = vmatpush3.bf16.msra.mxu1 %v15103_v34  ;;  %vm3223_vm10 = vcmp.eq.s32.totalorder %v15322_v0, %v16077_v14 }
 0x164   : > { %9225 = vperm.xlu0 %14848, %v11558_v3   ;;  %9382 = vperm.xlu1 %14849, %v11563_v9   ;;  %v16169_v9 = vpop.permute.xlu0 %3825 }
 0x165   : > { %14091 = vmatprep.subr.bf16.mxu1 %v15115_v39 }
 0x166   : > { %11163 = vmatmul.mubr.msk.f32.gmra.mrb[102].mxu1 %vm2912_vm11, %v17774_v6  ;;  %vm3222_vm11 = vcmp.eq.s32.totalorder %v15313_v60, %v16077_v14 }
 0x167   : > { %11164 = vmatprep.mubr.msk.f32.mxu1 %vm2915_vm12, %v17774_v6  ;;  %14093 = vmatpush3.bf16.msra.mxu1 %v15121_v42  ;;  %vm3225_vm12 = vcmp.eq.s32.totalorder %v15322_v0, %v16106_v29 }
 0x168   : > { %9539 = vperm.xlu0 %14848, %v11568_v11   ;;  %9696 = vperm.xlu1 %14849, %v11573_v13  }
 0x169   : > { %14095 = vmatprep.subr.bf16.mxu1 %v15133_v47 }
 0x16a   : > { %11165 = vmatmul.mubr.msk.f32.gmra.mrb[104].mxu1 %vm2914_vm13, %v17774_v6  ;;  %vm3224_vm13 = vcmp.eq.s32.totalorder %v15313_v60, %v16106_v29 }
 0x16b   : > { %11166 = vmatprep.mubr.msk.f32.mxu1 %vm2917_vm14, %v17774_v6  ;;  %14097 = vmatpush3.bf16.msra.mxu1 %v15139_v50  ;;  %vm3227_vm14 = vcmp.eq.s32.totalorder %v15322_v0, %v16098_v24 }
 0x16c   : > { %9853 = vperm.xlu0 %14848, %v11578_v16   ;;  %10010 = vperm.xlu1 %14849, %v11583_v19  }
 0x16d   : > { %v11702_v21 = vpop.f32.mrb[0].mxu1  ;;  %14099 = vmatprep.subr.bf16.mxu1 %v15151_v55 }
 0x16e   : > { %v11703_v26 = vpop.f32.mrb[1].mxu1  ;;  %11167 = vmatmul.mubr.msk.f32.gmra.mrb[106].mxu1 %vm2916_vm0, %v17774_v6  ;;  %vm3226_vm0 = vcmp.eq.s32.totalorder %v15313_v60, %v16098_v24 }
 0x16f   : > { %v11704_v30 = vadd.f32 %v11703_v26, %v11702_v21  ;;  %11168 = vmatprep.mubr.msk.f32.mxu1 %vm2919_vm1, %v17774_v6  ;;  %14101 = vmatpush3.bf16.msra.mxu1 %v15157_v58  ;;  %vm3229_vm1 = vcmp.eq.s32.totalorder %v15322_v0, %v16127_v43 }
 0x170   : > { %10167 = vperm.xlu0 %14848, %v11588_v22   ;;  %10324 = vperm.xlu1 %14849, %v11593_v28  }
 0x171   : > { %v11705_v33 = vpop.f32.mrb[2].mxu1  ;;  %12960 = vmatprep.mubr.msk.f32.mxu0 %vm735_vm2, %v11704_v30  ;;  %14103 = vmatprep.subr.bf16.mxu1 %v15169_v63 }
 0x172   : > { %v11706_v36 = vpop.f32.mrb[3].mxu1  ;;  %11169 = vmatmul.mubr.msk.f32.gmra.mrb[108].mxu1 %vm2918_vm3, %v17774_v6  ;;  %vm3228_vm3 = vcmp.eq.s32.totalorder %v15313_v60, %v16127_v43 }
 0x173   : > { %v11707_v38 = vadd.f32 %v11706_v36, %v11705_v33  ;;  %11170 = vmatprep.mubr.msk.f32.mxu1 %vm2921_vm4, %v17774_v6  ;;  %14105 = vmatpush3.bf16.msra.mxu1 %v15175_v2  ;;  %v16189_v33 = vpop.permute.xlu1 %3822  ;;  %vm3231_vm4 = vcmp.eq.s32.totalorder %v15322_v0, %v16125_v41 }
 0x174   : > { %10481 = vperm.xlu0 %14848, %v11598_v35   ;;  %10638 = vperm.xlu1 %14849, %v11603_v37   ;;  %v16191_v35 = vpop.permute.xlu0 %3831 }
 0x175   : > { %v11708_v44 = vpop.f32.mrb[4].mxu1  ;;  %12961 = vmatmul.mubr.msk.f32.vlgmr.msra.gmra.mrb[16].mxu0 %vm735_vm2, %v11707_v38  ;;  %14107 = vmatprep.subr.bf16.mxu1 %v15187_v7 }
 0x176   : > { %v11709_v46 = vpop.f32.mrb[5].mxu1  ;;  %11171 = vmatmul.mubr.msk.f32.gmra.mrb[110].mxu1 %vm2920_vm5, %v17774_v6  ;;  %12973 = vmatpush3.msk.msra.mxu0 %vm760_vm15, %v15764_v27  ;;  %vm3230_vm5 = vcmp.eq.s32.totalorder %v15313_v60, %v16125_v41 }
 0x177   : > { %v11710_v48 = vadd.f32 %v11709_v46, %v11708_v44  ;;  %14109 = vmatpush3.bf16.msra.mxu1 %v15191_v8  ;;  %11190 = vmatprep.mubr.msk.f32.mxu1 %vm3219_vm6, %v17774_v6  ;;  %vm3233_vm6 = vcmp.eq.s32.totalorder %v15322_v0, %v16167_v4 }
 0x178   : > { %14143 = vmatprep.subr.bf16.mxu1 %v15070_v17  ;;  %12986 = vmatprep.subr.msk.mxu0 %vm760_vm15, %v16141_v49 }
 0x179   : > { %v11711_v51 = vpop.f32.mrb[6].mxu1  ;;  %12963 = vmatprep.mubr.msk.f32.mxu0 %vm735_vm2, %v11710_v48 }
 0x17a   : > { %v11712_v54 = vpop.f32.mrb[7].mxu1  ;;  %11191 = vmatmul.mubr.msk.f32.vlgmr.msra.gmra.mrb[112].mxu1 %vm3218_vm7, %v17774_v6  ;;  %vm3232_vm7 = vcmp.eq.s32.totalorder %v15313_v60, %v16167_v4 }
 0x17b   : > { %v11713_v56 = vadd.f32 %v11712_v54, %v11711_v51  ;;  %11192 = vmatprep.mubr.msk.f32.mxu1 %vm3221_vm8, %v17774_v6  ;;  %14145 = vmatpush3.bf16.msra.mxu1 %v15072_v18  ;;  %vm3843_vm8 = vcmp.eq.s32.totalorder %v15322_v0, %v16149_v52 }
 0x17c   : > { %14147 = vmatprep.subr.bf16.mxu1 %v15079_v23 }
 0x17d   : > { %v11646_v57 = vpop.f32.mrb[0].mxu0  ;;  %v11714_v27 = vpop.f32.mrb[8].mxu1  ;;  %12964 = vmatmul.mubr.msk.f32.gmra.mrb[18].mxu0 %vm735_vm2, %v11713_v56 }
 0x17e   : > { %v11647_v61 = vpop.f32.mrb[1].mxu0  ;;  %v11715_v62 = vpop.f32.mrb[9].mxu1  ;;  %11193 = vmatmul.mubr.msk.f32.gmra.mrb[114].mxu1 %vm3220_vm9, %v17774_v6  ;;  %vm3842_vm9 = vcmp.eq.s32.totalorder %v15313_v60, %v16149_v52 }
 0x17f   : > { %v11648_v1 = vadd.f32 %v11647_v61, %v11646_v57  ;;  %v11716_v3 = vadd.f32 %v11715_v62, %v11714_v27  ;;  %11194 = vmatprep.mubr.msk.f32.mxu1 %vm3223_vm10, %v17774_v6  ;;  %14149 = vmatpush3.bf16.msra.mxu1 %v15084_v25  ;;  %v16212_v27 = vpop.permute.xlu1 %3828  ;;  %v16214_v61 = vpop.permute.xlu0 %3834  ;;  %vm3845_vm10 = vcmp.eq.s32.totalorder %v15322_v0, %v16189_v33 }
 0x180   : > { %14151 = vmatprep.subr.bf16.mxu1 %v15097_v31 }
 0x181   : > { %v11649_v10 = vpop.f32.mrb[2].mxu0  ;;  %v11717_v11 = vpop.f32.mrb[10].mxu1  ;;  %12966 = vmatprep.mubr.msk.f32.mxu0 %vm735_vm2, %v11716_v3 }
 0x182   : > { %v11650_v13 = vpop.f32.mrb[3].mxu0  ;;  %v11718_v15 = vpop.f32.mrb[11].mxu1  ;;  %11195 = vmatmul.mubr.msk.f32.gmra.mrb[116].mxu1 %vm3222_vm11, %v17774_v6  ;;  %vm3844_vm11 = vcmp.eq.s32.totalorder %v15313_v60, %v16189_v33 }
 0x183   : > { %v11651_v16 = vadd.f32 %v11650_v13, %v11649_v10  ;;  %v11719_v19 = vadd.f32 %v11718_v15, %v11717_v11  ;;  %11196 = vmatprep.mubr.msk.f32.mxu1 %vm3225_vm12, %v17774_v6  ;;  %14153 = vmatpush3.bf16.msra.mxu1 %v15103_v34  ;;  %vm3847_vm12 = vcmp.eq.s32.totalorder %v15322_v0, %v16169_v9 }
 0x184   : > { %14155 = vmatprep.subr.bf16.mxu1 %v15115_v39 }
 0x185   : > { %v11652_v21 = vpop.f32.mrb[4].mxu0  ;;  %v11720_v22 = vpop.f32.mrb[12].mxu1  ;;  %12967 = vmatmul.mubr.msk.f32.gmra.mrb[20].mxu0 %vm735_vm2, %v11719_v19  ;;  %v11002_v19 = vld [vmem:[%s17763_s2 + $0xc] sm:$0xf] }
 0x186   : > { %v11653_v14 = vpop.f32.mrb[5].mxu0  ;;  %v11721_v26 = vpop.f32.mrb[13].mxu1  ;;  %11197 = vmatmul.mubr.msk.f32.gmra.mrb[118].mxu1 %vm3224_vm13, %v17774_v6  ;;  %vm3846_vm13 = vcmp.eq.s32.totalorder %v15313_v60, %v16169_v9 }
 0x187   : > { %v11654_v28 = vadd.f32 %v11653_v14, %v11652_v21  ;;  %v11722_v30 = vadd.f32 %v11721_v26, %v11720_v22  ;;  %11198 = vmatprep.mubr.msk.f32.mxu1 %vm3227_vm14, %v17774_v6  ;;  %14157 = vmatpush3.bf16.msra.mxu1 %v15121_v42  ;;  %v16237_v21 = vpop.permute.xlu1 %3507  ;;  %v16241_v14 = vpop.permute.xlu0 %3837  ;;  %vm3849_vm14 = vcmp.eq.s32.totalorder %v15322_v0, %v16212_v27 }
 0x188   : > { %14159 = vmatprep.subr.bf16.mxu1 %v15133_v47 }
 0x189   : > { %v11655_v29 = vpop.f32.mrb[6].mxu0  ;;  %v11723_v36 = vpop.f32.mrb[14].mxu1  ;;  %12969 = vmatprep.mubr.msk.f32.mxu0 %vm735_vm2, %v11722_v30 }
 0x18a   : > { %v11656_v37 = vpop.f32.mrb[7].mxu0  ;;  %v11724_v38 = vpop.f32.mrb[15].mxu1  ;;  %11199 = vmatmul.mubr.msk.f32.gmra.mrb[120].mxu1 %vm3226_vm0, %v17774_v6  ;;  %vm3848_vm0 = vcmp.eq.s32.totalorder %v15313_v60, %v16212_v27 }
 0x18b   : > { %v11657_v44 = vadd.f32 %v11656_v37, %v11655_v29  ;;  %v11725_v46 = vadd.f32 %v11724_v38, %v11723_v36  ;;  %11200 = vmatprep.mubr.msk.f32.mxu1 %vm3229_vm1, %v17774_v6  ;;  %14161 = vmatpush3.bf16.msra.mxu1 %v15139_v50  ;;  %v16259_v52 = vpop.permute.xlu1 %3510  ;;  %vm3851_vm1 = vcmp.eq.s32.totalorder %v15322_v0, %v16191_v35 }
 0x18c   : > { %14163 = vmatprep.subr.bf16.mxu1 %v15151_v55  ;;  %17808 = vst [vmem:[#allocation12_spill] sm:$0xff] %v16259_v52 }
 0x18d   : > { %v11658_v48 = vpop.f32.mrb[8].mxu0  ;;  %12970 = vmatmul.mubr.msk.f32.gmra.mrb[22].mxu0 %vm735_vm2, %v11725_v46  ;;  %v11776_v51 = vpop.f32.mrb[16].mxu1 }
 0x18e   : > { %v11659_v24 = vpop.f32.mrb[9].mxu0  ;;  %12974 = vmatprep.mubr.msk.f32.mxu0 %vm735_vm2, %v11648_v1  ;;  %v11777_v54 = vpop.f32.mrb[17].mxu1  ;;  %11201 = vmatmul.mubr.msk.f32.gmra.mrb[122].mxu1 %vm3228_vm3, %v17774_v6  ;;  %vm3850_vm3 = vcmp.eq.s32.totalorder %v15313_v60, %v16191_v35 }
 0x18f   : > { %v11660_v56 = vadd.f32 %v11659_v24, %v11658_v48  ;;  %v11778_v57 = vadd.f32 %v11777_v54, %v11776_v51  ;;  %11202 = vmatprep.mubr.msk.f32.mxu1 %vm3231_vm4, %v17774_v6  ;;  %14165 = vmatpush3.bf16.msra.mxu1 %v15157_v58  ;;  %v11036_v51 = vld [vmem:[%s17763_s2 + $0x10] sm:$0xf]  ;;  %v16281_v24 = vpop.permute.xlu1 %3513  ;;  %vm3853_vm4 = vcmp.eq.s32.totalorder %v15322_v0, %v16214_v61 }
 0x190   : > { %14167 = vmatprep.subr.bf16.mxu1 %v15169_v63  ;;  %17809 = vst [vmem:[#allocation13_spill] sm:$0xff] %v16281_v24 }
 0x191   : > { %v11661_v43 = vpop.f32.mrb[10].mxu0  ;;  %12975 = vmatmul.mubr.msk.f32.vlgmr.msra.gmra.mrb[16].mxu0 %vm735_vm2, %v11651_v16  ;;  %v11779_v62 = vpop.f32.mrb[18].mxu1 }
 0x192   : > { %v11662_v1 = vpop.f32.mrb[11].mxu0  ;;  %12977 = vmatprep.mubr.msk.f32.mxu0 %vm735_vm2, %v11654_v28  ;;  %v11780_v3 = vpop.f32.mrb[19].mxu1  ;;  %11203 = vmatmul.mubr.msk.f32.gmra.mrb[124].mxu1 %vm3230_vm5, %v17774_v6  ;;  %vm3852_vm5 = vcmp.eq.s32.totalorder %v15313_v60, %v16214_v61 }
 0x193   : > { %v11663_v10 = vadd.f32 %v11662_v1, %v11661_v43  ;;  %v11781_v11 = vadd.f32 %v11780_v3, %v11779_v62  ;;  %11204 = vmatprep.mubr.msk.f32.mxu1 %vm3233_vm6, %v17774_v6  ;;  %14169 = vmatpush3.bf16.msra.mxu1 %v15175_v2  ;;  %v16302_v27 = vpop.permute.xlu1 %3516  ;;  %vm3855_vm6 = vcmp.eq.s32.totalorder %v15322_v0, %v16241_v14 }
 0x194   : > { %14171 = vmatprep.subr.bf16.mxu1 %v15187_v7  ;;  %12987 = vmatpush3.msk.msra.mxu0 %vm760_vm15, %v16141_v49  ;;  %17810 = vst [vmem:[#allocation14_spill] sm:$0xff] %v16302_v27 }
 0x195   : > { %v11664_v41 = vpop.f32.mrb[12].mxu0  ;;  %12978 = vmatmul.mubr.msk.f32.gmra.mrb[18].mxu0 %vm735_vm2, %v11657_v44  ;;  %v11782_v13 = vpop.f32.mrb[20].mxu1  ;;  %13000 = vmatprep.subr.msk.mxu0 %vm760_vm15, %v11002_v19 }
 0x196   : > { %v11665_v15 = vpop.f32.mrb[13].mxu0  ;;  %12980 = vmatprep.mubr.msk.f32.mxu0 %vm735_vm2, %v11660_v56  ;;  %v11783_v16 = vpop.f32.mrb[21].mxu1  ;;  %11205 = vmatmul.mubr.msk.f32.gmra.mrb[126].mxu1 %vm3232_vm7, %v17774_v6  ;;  %vm3854_vm7 = vcmp.eq.s32.totalorder %v15313_v60, %v16241_v14 }
 0x197   : > { %v11666_v4 = vadd.f32 %v11665_v15, %v11664_v41  ;;  %v11784_v22 = vadd.f32 %v11783_v16, %v11782_v13  ;;  %14173 = vmatpush3.bf16.msra.mxu1 %v15191_v8  ;;  %11258 = vmatprep.mubr.msk.f32.mxu1 %vm3843_vm8, %v17774_v6  ;;  %v16266_v44 = vpop.permute.xlu0 %3840  ;;  %v16318_v41 = vpop.permute.xlu1 %3519 }
 0x198   : > { %14175 = vmatprep.subr.bf16.mxu1 %v15070_v17  ;;  %17811 = vst [vmem:[#allocation15_spill] sm:$0xff] %v16318_v41  ;;  %vm3857_vm8 = vcmp.eq.s32.totalorder %v15322_v0, %v16266_v44 }
 0x199   : > { %v11667_v26 = vpop.f32.mrb[14].mxu0  ;;  %12981 = vmatmul.mubr.msk.f32.gmra.mrb[20].mxu0 %vm735_vm2, %v11663_v10  ;;  %v11785_v28 = vpop.f32.mrb[22].mxu1 }
 0x19a   : > { %v11668_v30 = vpop.f32.mrb[15].mxu0  ;;  %12983 = vmatprep.mubr.msk.f32.mxu0 %vm735_vm2, %v11666_v4  ;;  %v11786_v29 = vpop.f32.mrb[23].mxu1  ;;  %11259 = vmatmul.mubr.msk.f32.vlgmr.msra.gmra.mrb[128].mxu1 %vm3842_vm9, %v17774_v6  ;;  %vm3856_vm9 = vcmp.eq.s32.totalorder %v15313_v60, %v16266_v44 }
 0x19b   : > { %v11669_v36 = vadd.f32 %v11668_v30, %v11667_v26  ;;  %v11787_v49 = vadd.f32 %v11786_v29, %v11785_v28  ;;  %11260 = vmatprep.mubr.msk.f32.mxu1 %vm3845_vm10, %v17774_v6  ;;  %14177 = vmatpush3.bf16.msra.mxu1 %v15072_v18  ;;  %v16289_v9 = vpop.permute.xlu0 %4131  ;;  %v16334_v4 = vpop.permute.xlu1 %3522 }
 0x19c   : > { %14179 = vmatprep.subr.bf16.mxu1 %v15079_v23  ;;  %17812 = vst [vmem:[#allocation16_spill] sm:$0xff] %v16334_v4  ;;  %vm4155_vm10 = vcmp.eq.s32.totalorder %v15322_v0, %v16289_v9 }
 0x19d   : > { %12984 = vmatmul.mubr.msk.f32.gmra.mrb[22].mxu0 %vm735_vm2, %v11669_v36  ;;  %v11788_v37 = vpop.f32.mrb[24].mxu1 }
 0x19e   : > { %v11789_v38 = vpop.f32.mrb[25].mxu1  ;;  %12988 = vmatprep.mubr.msk.f32.mxu0 %vm735_vm2, %v11778_v57  ;;  %11261 = vmatmul.mubr.msk.f32.gmra.mrb[130].mxu1 %vm3844_vm11, %v17774_v6  ;;  %vm4154_vm11 = vcmp.eq.s32.totalorder %v15313_v60, %v16289_v9 }
 0x19f   : > { %v11790_v46 = vadd.f32 %v11789_v38, %v11788_v37  ;;  %11262 = vmatprep.mubr.msk.f32.mxu1 %vm3847_vm12, %v17774_v6  ;;  %14181 = vmatpush3.bf16.msra.mxu1 %v15084_v25  ;;  %v4135_v3 = vpop.permute.xlu0 %4134  ;;  %v16350_v36 = vpop.permute.xlu1 %3525 }
 0x1a0   : > { %14183 = vmatprep.subr.bf16.mxu1 %v15097_v31  ;;  %vm4157_vm12 = vcmp.eq.s32.totalorder %v15322_v0, %v4135_v3  ;;  %17813 = vst [vmem:[#allocation17_spill] sm:$0xff] %v16350_v36 }
 0x1a1   : > { %v11791_v33 = vpop.f32.mrb[26].mxu1  ;;  %12989 = vmatmul.mubr.msk.f32.vlgmr.msra.gmra.mrb[16].mxu0 %vm735_vm2, %v11781_v11 }
 0x1a2   : > { %v11792_v48 = vpop.f32.mrb[27].mxu1  ;;  %12991 = vmatprep.mubr.msk.f32.mxu0 %vm735_vm2, %v11784_v22  ;;  %11263 = vmatmul.mubr.msk.f32.gmra.mrb[132].mxu1 %vm3846_vm13, %v17774_v6  ;;  %vm4156_vm13 = vcmp.eq.s32.totalorder %v15313_v60, %v4135_v3 }
 0x1a3   : > { %v11793_v54 = vadd.f32 %v11792_v48, %v11791_v33  ;;  %11264 = vmatprep.mubr.msk.f32.mxu1 %vm3849_vm14, %v17774_v6  ;;  %14185 = vmatpush3.bf16.msra.mxu1 %v15103_v34  ;;  %v4138_v61 = vpop.permute.xlu0 %4137  ;;  %v16363_v33 = vpop.permute.xlu1 %3528 }
 0x1a4   : > { %14187 = vmatprep.subr.bf16.mxu1 %v15115_v39  ;;  %13001 = vmatpush3.msk.msra.mxu0 %vm760_vm15, %v11002_v19  ;;  %vm4159_vm14 = vcmp.eq.s32.totalorder %v15322_v0, %v4138_v61  ;;  %17814 = vst [vmem:[#allocation18_spill] sm:$0xff] %v16363_v33 }
 0x1a5   : > { %v11794_v56 = vpop.f32.mrb[28].mxu1  ;;  %12992 = vmatmul.mubr.msk.f32.gmra.mrb[18].mxu0 %vm735_vm2, %v11787_v49  ;;  %13014 = vmatprep.subr.msk.mxu0 %vm760_vm15, %v11036_v51 }
 0x1a6   : > { %v11795_v57 = vpop.f32.mrb[29].mxu1  ;;  %12994 = vmatprep.mubr.msk.f32.mxu0 %vm735_vm2, %v11790_v46  ;;  %11265 = vmatmul.mubr.msk.f32.gmra.mrb[134].mxu1 %vm3848_vm0, %v17774_v6  ;;  %vm4158_vm0 = vcmp.eq.s32.totalorder %v15313_v60, %v4138_v61 }
 0x1a7   : > { %v11796_v43 = vadd.f32 %v11795_v57, %v11794_v56  ;;  %11266 = vmatprep.mubr.msk.f32.mxu1 %vm3851_vm1, %v17774_v6  ;;  %14189 = vmatpush3.bf16.msra.mxu1 %v15121_v42  ;;  %v4141_v26 = vpop.permute.xlu0 %4140 }
 0x1a8   : > { %14191 = vmatprep.subr.bf16.mxu1 %v15133_v47  ;;  %vm4161_vm1 = vcmp.eq.s32.totalorder %v15322_v0, %v4141_v26 }
 0x1a9   : > { %v11797_v62 = vpop.f32.mrb[30].mxu1  ;;  %12995 = vmatmul.mubr.msk.f32.gmra.mrb[20].mxu0 %vm735_vm2, %v11793_v54 }
 0x1aa   : > { %v11798_v1 = vpop.f32.mrb[31].mxu1  ;;  %12997 = vmatprep.mubr.msk.f32.mxu0 %vm735_vm2, %v11796_v43  ;;  %11267 = vmatmul.mubr.msk.f32.gmra.mrb[136].mxu1 %vm3850_vm3, %v17774_v6  ;;  %vm4160_vm3 = vcmp.eq.s32.totalorder %v15313_v60, %v4141_v26  ;;  %v4147_v43 = vpop.permute.xlu1 %4146 }
 0x1ab   : > { %v11799_v10 = vadd.f32 %v11798_v1, %v11797_v62  ;;  %11268 = vmatprep.mubr.msk.f32.mxu1 %vm3853_vm4, %v17774_v6  ;;  %14193 = vmatpush3.bf16.msra.mxu1 %v15139_v50  ;;  %v4144_v37 = vpop.permute.xlu0 %4143 }
 0x1ac   : > { %14195 = vmatprep.subr.bf16.mxu1 %v15151_v55  ;;  %vm4163_vm4 = vcmp.eq.s32.totalorder %v15322_v0, %v4144_v37 }
 0x1ad   : > { %12998 = vmatmul.mubr.msk.f32.gmra.mrb[22].mxu0 %vm735_vm2, %v11799_v10  ;;  %v11841_v35 = vpop.f32.mrb[32].mxu1 }
 0x1ae   : > { %v11842_v11 = vpop.f32.mrb[33].mxu1  ;;  %11269 = vmatmul.mubr.msk.f32.gmra.mrb[138].mxu1 %vm3852_vm5, %v17774_v6  ;;  %vm4162_vm5 = vcmp.eq.s32.totalorder %v15313_v60, %v4144_v37  ;;  %v4153_v61 = vpop.permute.xlu1 %4152 }
 0x1af   : > { %v11843_v13 = vadd.f32 %v11842_v11, %v11841_v35  ;;  %11270 = vmatprep.mubr.msk.f32.mxu1 %vm3855_vm6, %v17774_v6  ;;  %14197 = vmatpush3.bf16.msra.mxu1 %v15157_v58  ;;  %v4150_v54 = vpop.permute.xlu0 %4149  ;;  %vm4165_vm6 = vcmp.eq.s32.totalorder %v15322_v0, %v4147_v43 }
 0x1b0   : > { %14199 = vmatprep.subr.bf16.mxu1 %v15169_v63 }
 0x1b1   : > { %v11844_v15 = vpop.f32.mrb[34].mxu1  ;;  %13002 = vmatprep.mubr.msk.f32.mxu0 %vm735_vm2, %v11843_v13 }
 0x1b2   : > { %v11845_v16 = vpop.f32.mrb[35].mxu1  ;;  %11271 = vmatmul.mubr.msk.f32.gmra.mrb[140].mxu1 %vm3854_vm7, %v17774_v6  ;;  %vm4164_vm7 = vcmp.eq.s32.totalorder %v15313_v60, %v4147_v43 }
 0x1b3   : > { %v11846_v19 = vadd.f32 %v11845_v16, %v11844_v15  ;;  %11272 = vmatprep.mubr.msk.f32.mxu1 %vm3857_vm8, %v17774_v6  ;;  %14201 = vmatpush3.bf16.msra.mxu1 %v15175_v2  ;;  %v4444_v1 = vpop.permute.xlu0 %4443  ;;  %vm4167_vm8 = vcmp.eq.s32.totalorder %v15322_v0, %v4150_v54 }
 0x1b4   : > { %14203 = vmatprep.subr.bf16.mxu1 %v15187_v7 }
 0x1b5   : > { %v11847_v22 = vpop.f32.mrb[36].mxu1  ;;  %13003 = vmatmul.mubr.msk.f32.vlgmr.msra.gmra.mrb[16].mxu0 %vm735_vm2, %v11846_v19 }
 0x1b6   : > { %v11848_v14 = vpop.f32.mrb[37].mxu1  ;;  %11273 = vmatmul.mubr.msk.f32.gmra.mrb[142].mxu1 %vm3856_vm9, %v17774_v6  ;;  %13015 = vmatpush3.msk.msra.mxu0 %vm760_vm15, %v11036_v51  ;;  %vm4166_vm9 = vcmp.eq.s32.totalorder %v15313_v60, %v4150_v54 }
 0x1b7   : > { %v11849_v28 = vadd.f32 %v11848_v14, %v11847_v22  ;;  %14205 = vmatpush3.bf16.msra.mxu1 %v15191_v8  ;;  %11292 = vmatprep.mubr.msk.f32.mxu1 %vm4155_vm10, %v17774_v6  ;;  %v16389_v15 = vpop.permute.xlu0 %4449  ;;  %vm4169_vm10 = vcmp.eq.s32.totalorder %v15322_v0, %v4153_v61 }
 0x1b8   : > { %14207 = vmatprep.subr.bf16.mxu1 %v15070_v17  ;;  %13951 = vmatprep.subr.bf16.mxu0 %v15070_v17 }
 0x1b9   : > { %v11850_v30 = vpop.f32.mrb[38].mxu1  ;;  %13005 = vmatprep.mubr.msk.f32.mxu0 %vm735_vm2, %v11849_v28 }
 0x1ba   : > { %v11851_v29 = vpop.f32.mrb[39].mxu1  ;;  %11293 = vmatmul.mubr.msk.f32.vlgmr.msra.gmra.mrb[144].mxu1 %vm4154_vm11, %v17774_v6  ;;  %vm4168_vm11 = vcmp.eq.s32.totalorder %v15313_v60, %v4153_v61 }
 0x1bb   : > { %v11852_v49 = vadd.f32 %v11851_v29, %v11850_v30  ;;  %11294 = vmatprep.mubr.msk.f32.mxu1 %vm4157_vm12, %v17774_v6  ;;  %14209 = vmatpush3.bf16.msra.mxu1 %v15072_v18  ;;  %v16402_v26 = vpop.permute.xlu0 %4455  ;;  %vm4467_vm12 = vcmp.eq.s32.totalorder %v15322_v0, %v4444_v1  ;;  %v4447_v29 = vpop.permute.xlu1 %4446 }
 0x1bc   : > { %14211 = vmatprep.subr.bf16.mxu1 %v15079_v23 }
 0x1bd   : > { %v11853_v38 = vpop.f32.mrb[40].mxu1  ;;  %13006 = vmatmul.mubr.msk.f32.gmra.mrb[18].mxu0 %vm735_vm2, %v11852_v49 }
 0x1be   : > { %v11854_v44 = vpop.f32.mrb[41].mxu1  ;;  %11295 = vmatmul.mubr.msk.f32.gmra.mrb[146].mxu1 %vm4156_vm13, %v17774_v6  ;;  %vm4466_vm13 = vcmp.eq.s32.totalorder %v15313_v60, %v4444_v1 }
 0x1bf   : > { %v11855_v46 = vadd.f32 %v11854_v44, %v11853_v38  ;;  %11296 = vmatprep.mubr.msk.f32.mxu1 %vm4159_vm14, %v17774_v6  ;;  %14213 = vmatpush3.bf16.msra.mxu1 %v15084_v25  ;;  %vm4469_vm14 = vcmp.eq.s32.totalorder %v15322_v0, %v4447_v29  ;;  %v16417_v44 = vpop.permute.xlu0 %4461  ;;  %v4453_v54 = vpop.permute.xlu1 %4452 }
 0x1c0   : > { %14215 = vmatprep.subr.bf16.mxu1 %v15097_v31 }
 0x1c1   : > { %v11856_v48 = vpop.f32.mrb[42].mxu1  ;;  %13008 = vmatprep.mubr.msk.f32.mxu0 %vm735_vm2, %v11855_v46 }
 0x1c2   : > { %v11857_v51 = vpop.f32.mrb[43].mxu1  ;;  %11297 = vmatmul.mubr.msk.f32.gmra.mrb[148].mxu1 %vm4158_vm0, %v17774_v6  ;;  %vm4468_vm0 = vcmp.eq.s32.totalorder %v15313_v60, %v4447_v29 }
 0x1c3   : > { %v11858_v9 = vadd.f32 %v11857_v51, %v11856_v48  ;;  %11298 = vmatprep.mubr.msk.f32.mxu1 %vm4161_vm1, %v17774_v6  ;;  %14217 = vmatpush3.bf16.msra.mxu1 %v15103_v34  ;;  %vm4471_vm1 = vcmp.eq.s32.totalorder %v15322_v0, %v16389_v15 }
 0x1c4   : > { %14219 = vmatprep.subr.bf16.mxu1 %v15115_v39 }
 0x1c5   : > { %v11859_v56 = vpop.f32.mrb[44].mxu1  ;;  %13009 = vmatmul.mubr.msk.f32.gmra.mrb[20].mxu0 %vm735_vm2, %v11858_v9 }
 0x1c6   : > { %v11860_v57 = vpop.f32.mrb[45].mxu1  ;;  %11299 = vmatmul.mubr.msk.f32.gmra.mrb[150].mxu1 %vm4160_vm3, %v17774_v6  ;;  %vm4470_vm3 = vcmp.eq.s32.totalorder %v15313_v60, %v16389_v15 }
 0x1c7   : > { %v11861_v62 = vadd.f32 %v11860_v57, %v11859_v56  ;;  %11300 = vmatprep.mubr.msk.f32.mxu1 %vm4163_vm4, %v17774_v6  ;;  %14221 = vmatpush3.bf16.msra.mxu1 %v15121_v42  ;;  %v16435_v56 = vpop.permute.xlu0 %4755  ;;  %vm4473_vm4 = vcmp.eq.s32.totalorder %v15322_v0, %v4453_v54 }
 0x1c8   : > { %14223 = vmatprep.subr.bf16.mxu1 %v15133_v47 }
 0x1c9   : > { %v11862_v3 = vpop.f32.mrb[46].mxu1  ;;  %13011 = vmatprep.mubr.msk.f32.mxu0 %vm735_vm2, %v11861_v62 }
 0x1ca   : > { %v11863_v10 = vpop.f32.mrb[47].mxu1  ;;  %11301 = vmatmul.mubr.msk.f32.gmra.mrb[152].mxu1 %vm4162_vm5, %v17774_v6  ;;  %vm4472_vm5 = vcmp.eq.s32.totalorder %v15313_v60, %v4453_v54 }
 0x1cb   : > { %v11864_v35 = vadd.f32 %v11863_v10, %v11862_v3  ;;  %11302 = vmatprep.mubr.msk.f32.mxu1 %vm4165_vm6, %v17774_v6  ;;  %14225 = vmatpush3.bf16.msra.mxu1 %v15139_v50  ;;  %vm4475_vm6 = vcmp.eq.s32.totalorder %v15322_v0, %v16402_v26  ;;  %v4459_v10 = vpop.permute.xlu1 %4458 }
 0x1cc   : > { %14227 = vmatprep.subr.bf16.mxu1 %v15151_v55 }
 0x1cd   : > { %13012 = vmatmul.mubr.msk.f32.gmra.mrb[22].mxu0 %vm735_vm2, %v11864_v35  ;;  %v11906_v11 = vpop.f32.mrb[48].mxu1  ;;  %v16451_v35 = vpop.permute.xlu0 %4761 }
 0x1ce   : > { %v11907_v13 = vpop.f32.mrb[49].mxu1  ;;  %11303 = vmatmul.mubr.msk.f32.gmra.mrb[154].mxu1 %vm4164_vm7, %v17774_v6  ;;  %vm4474_vm7 = vcmp.eq.s32.totalorder %v15313_v60, %v16402_v26 }
 0x1cf   : > { %v11908_v16 = vadd.f32 %v11907_v13, %v11906_v11  ;;  %11304 = vmatprep.mubr.msk.f32.mxu1 %vm4167_vm8, %v17774_v6  ;;  %14229 = vmatpush3.bf16.msra.mxu1 %v15157_v58  ;;  %vm4477_vm8 = vcmp.eq.s32.totalorder %v15322_v0, %v4459_v10  ;;  %v4465_v26 = vpop.permute.xlu1 %4464 }
 0x1d0   : > { %14231 = vmatprep.subr.bf16.mxu1 %v15169_v63 }
 0x1d1   : > { %v11909_v19 = vpop.f32.mrb[50].mxu1  ;;  %13016 = vmatprep.mubr.msk.f32.mxu0 %vm735_vm2, %v11908_v16  ;;  %v16467_v16 = vpop.permute.xlu0 %4767 }
 0x1d2   : > { %v11910_v22 = vpop.f32.mrb[51].mxu1  ;;  %11305 = vmatmul.mubr.msk.f32.gmra.mrb[156].mxu1 %vm4166_vm9, %v17774_v6  ;;  %vm1971_vm9 = vcmp.eq.s32.totalorder %v15322_v0, %v15783_v32 }
 0x1d3   : > { %v11911_v14 = vadd.f32 %v11910_v22, %v11909_v19  ;;  %11306 = vmatprep.mubr.msk.f32.mxu1 %vm4169_vm10, %v17774_v6  ;;  %14233 = vmatpush3.bf16.msra.mxu1 %v15175_v2  ;;  %vm4476_vm10 = vcmp.eq.s32.totalorder %v15313_v60, %v4459_v10 }
 0x1d4   : > { %14235 = vmatprep.subr.bf16.mxu1 %v15187_v7 }
 0x1d5   : > { %v11912_v28 = vpop.f32.mrb[52].mxu1  ;;  %13017 = vmatmul.mubr.msk.f32.vlgmr.msra.gmra.mrb[16].mxu0 %vm735_vm2, %v11911_v14  ;;  %v16488_v29 = vpop.permute.xlu0 %4773 }
 0x1d6   : > { %13953 = vmatpush3.bf16.msra.mxu0 %v15072_v18  ;;  %v11913_v30 = vpop.f32.mrb[53].mxu1  ;;  %11307 = vmatmul.mubr.msk.f32.gmra.mrb[158].mxu1 %vm4168_vm11, %v17774_v6  ;;  %vm4479_vm11 = vcmp.eq.s32.totalorder %v15322_v0, %v16417_v44 }
 0x1d7   : > { %v11914_v49 = vadd.f32 %v11913_v30, %v11912_v28  ;;  %14237 = vmatpush3.bf16.msra.mxu1 %v15191_v8  ;;  %11326 = vmatprep.mubr.msk.f32.mxu1 %vm4467_vm12, %v17774_v6  ;;  %vm4478_vm12 = vcmp.eq.s32.totalorder %v15313_v60, %v16417_v44  ;;  %v4759_v44 = vpop.permute.xlu1 %4758 }
 0x1d8   : > { %13955 = vmatprep.subr.bf16.mxu0 %v15079_v23  ;;  %14239 = vmatprep.subr.bf16.mxu1 %v15070_v17 }
 0x1d9   : > { %v11915_v37 = vpop.f32.mrb[54].mxu1  ;;  %13019 = vmatprep.mubr.msk.f32.mxu0 %vm735_vm2, %v11914_v49 }
 0x1da   : > { %13957 = vmatpush3.bf16.msra.mxu0 %v15084_v25  ;;  %v11916_v38 = vpop.f32.mrb[55].mxu1  ;;  %11327 = vmatmul.mubr.msk.f32.vlgmr.msra.gmra.mrb[160].mxu1 %vm4466_vm13, %v17774_v6  ;;  %vm4481_vm13 = vcmp.eq.s32.totalorder %v15322_v0, %v4465_v26 }
 0x1db   : > { %v11917_v46 = vadd.f32 %v11916_v38, %v11915_v37  ;;  %11328 = vmatprep.mubr.msk.f32.mxu1 %vm4469_vm14, %v17774_v6  ;;  %14241 = vmatpush3.bf16.msra.mxu1 %v15072_v18  ;;  %vm1970_vm14 = vcmp.eq.s32.totalorder %v15313_v60, %v15783_v32 }
 0x1dc   : > { %13959 = vmatprep.subr.bf16.mxu0 %v15097_v31  ;;  %14243 = vmatprep.subr.bf16.mxu1 %v15079_v23 }
 0x1dd   : > { %v11918_v48 = vpop.f32.mrb[56].mxu1  ;;  %13020 = vmatmul.mubr.msk.f32.gmra.mrb[18].mxu0 %vm735_vm2, %v11917_v46  ;;  %v16512_v46 = vpop.permute.xlu0 %5067 }
 0x1de   : > { %13961 = vmatpush3.bf16.msra.mxu0 %v15103_v34  ;;  %v11919_v51 = vpop.f32.mrb[57].mxu1  ;;  %11329 = vmatmul.mubr.msk.f32.gmra.mrb[162].mxu1 %vm4468_vm0, %v17774_v6  ;;  %vm1973_vm0 = vcmp.eq.s32.totalorder %v15322_v0, %v15812_v40  ;;  %17815 = vst [vmem:[#allocation19_spill] sm:$0xff] %v16512_v46 }
 0x1df   : > { %v11920_v9 = vadd.f32 %v11919_v51, %v11918_v48  ;;  %11330 = vmatprep.mubr.msk.f32.mxu1 %vm4471_vm1, %v17774_v6  ;;  %14245 = vmatpush3.bf16.msra.mxu1 %v15084_v25  ;;  %vm4480_vm1 = vcmp.eq.s32.totalorder %v15313_v60, %v4465_v26 }
 0x1e0   : > { %13963 = vmatprep.subr.bf16.mxu0 %v15115_v39  ;;  %14247 = vmatprep.subr.bf16.mxu1 %v15097_v31 }
 0x1e1   : > { %v11921_v57 = vpop.f32.mrb[58].mxu1  ;;  %13022 = vmatprep.mubr.msk.f32.mxu0 %vm735_vm2, %v11920_v9 }
 0x1e2   : > { %13965 = vmatpush3.bf16.msra.mxu0 %v15121_v42  ;;  %v11922_v43 = vpop.f32.mrb[59].mxu1  ;;  %11331 = vmatmul.mubr.msk.f32.gmra.mrb[164].mxu1 %vm4470_vm3, %v17774_v6  ;;  %vm4779_vm3 = vcmp.eq.s32.totalorder %v15322_v0, %v16435_v56 }
 0x1e3   : > { %v11923_v62 = vadd.f32 %v11922_v43, %v11921_v57  ;;  %11332 = vmatprep.mubr.msk.f32.mxu1 %vm4473_vm4, %v17774_v6  ;;  %14249 = vmatpush3.bf16.msra.mxu1 %v15103_v34  ;;  %vm1972_vm4 = vcmp.eq.s32.totalorder %v15313_v60, %v15812_v40 }
 0x1e4   : > { %13967 = vmatprep.subr.bf16.mxu0 %v15133_v47  ;;  %14251 = vmatprep.subr.bf16.mxu1 %v15115_v39 }
 0x1e5   : > { %v11924_v1 = vpop.f32.mrb[60].mxu1  ;;  %13023 = vmatmul.mubr.msk.f32.gmra.mrb[20].mxu0 %vm735_vm2, %v11923_v62 }
 0x1e6   : > { %13969 = vmatpush3.bf16.msra.mxu0 %v15139_v50  ;;  %v11925_v3 = vpop.f32.mrb[61].mxu1  ;;  %11333 = vmatmul.mubr.msk.f32.gmra.mrb[166].mxu1 %vm4472_vm5, %v17774_v6  ;;  %vm1975_vm5 = vcmp.eq.s32.totalorder %v15322_v0, %v15832_v45 }
 0x1e7   : > { %v11926_v11 = vadd.f32 %v11925_v3, %v11924_v1  ;;  %11334 = vmatprep.mubr.msk.f32.mxu1 %vm4475_vm6, %v17774_v6  ;;  %14253 = vmatpush3.bf16.msra.mxu1 %v15121_v42  ;;  %vm4778_vm6 = vcmp.eq.s32.totalorder %v15313_v60, %v16435_v56  ;;  %v16534_v56 = vpop.permute.xlu0 %5073 }
 0x1e8   : > { %13971 = vmatprep.subr.bf16.mxu0 %v15151_v55  ;;  %14255 = vmatprep.subr.bf16.mxu1 %v15133_v47  ;;  %17816 = vst [vmem:[#allocation20_spill] sm:$0xff] %v16534_v56 }
 0x1e9   : > { %v11927_v13 = vpop.f32.mrb[62].mxu1  ;;  %13025 = vmatprep.mubr.msk.f32.mxu0 %vm735_vm2, %v11926_v11 }
 0x1ea   : > { %13973 = vmatpush3.bf16.msra.mxu0 %v15157_v58  ;;  %v11928_v61 = vpop.f32.mrb[63].mxu1  ;;  %11335 = vmatmul.mubr.msk.f32.gmra.mrb[168].mxu1 %vm4474_vm7, %v17774_v6  ;;  %vm4781_vm7 = vcmp.eq.s32.totalorder %v15322_v0, %v4759_v44 }
 0x1eb   : > { %v11929_v15 = vadd.f32 %v11928_v61, %v11927_v13  ;;  %11336 = vmatprep.mubr.msk.f32.mxu1 %vm4477_vm8, %v17774_v6  ;;  %14257 = vmatpush3.bf16.msra.mxu1 %v15139_v50  ;;  %vm1974_vm8 = vcmp.eq.s32.totalorder %v15313_v60, %v15832_v45  ;;  %v4765_v45 = vpop.permute.xlu1 %4764 }
 0x1ec   : > { %13975 = vmatprep.subr.bf16.mxu0 %v15169_v63  ;;  %14259 = vmatprep.subr.bf16.mxu1 %v15151_v55 }
 0x1ed   : > { %13026 = vmatmul.mubr.msk.f32.gmra.mrb[22].mxu0 %vm735_vm2, %v11929_v15  ;;  %v12036_v19 = vpop.f32.mrb[64].mxu1 }
 0x1ee   : > { %13977 = vmatpush3.bf16.msra.mxu0 %v15175_v2  ;;  %11054 = vmatprep.mubr.msk.f32.mxu0 %vm1971_vm9, %v17774_v6  ;;  %v12037_v22 = vpop.f32.mrb[65].mxu1  ;;  %vm1977_vm9 = vcmp.eq.s32.totalorder %v15322_v0, %v15860_v53 }
 0x1ef   : > { %v16477_v14 = vadd.f32 %v12037_v22, %v12036_v19  ;;  %11337 = vmatmul.mubr.msk.f32.gmra.mrb[170].mxu1 %vm4476_vm10, %v17774_v6  ;;  %13979 = vmatprep.subr.bf16.mxu0 %v15187_v7  ;;  %vm4780_vm10 = vcmp.eq.s32.totalorder %v15313_v60, %v4759_v44 }
 0x1f0   : > { %11338 = vmatprep.mubr.msk.f32.mxu1 %vm4479_vm11, %v17774_v6  ;;  %14261 = vmatpush3.bf16.msra.mxu1 %v15157_v58  ;;  %vm4783_vm11 = vcmp.eq.s32.totalorder %v15322_v0, %v16451_v35 }
 0x1f1   : > { %v12039_v28 = vpop.f32.mrb[66].mxu1  ;;  %14263 = vmatprep.subr.bf16.mxu1 %v15169_v63 }
 0x1f2   : > { %13981 = vmatpush3.bf16.msra.mxu0 %v15191_v8  ;;  %v12040_v30 = vpop.f32.mrb[67].mxu1 }
 0x1f3   : > { %v16490_v49 = vadd.f32 %v12040_v30, %v12039_v28  ;;  %11339 = vmatmul.mubr.msk.f32.gmra.mrb[172].mxu1 %vm4478_vm12, %v17774_v6  ;;  %vm1976_vm12 = vcmp.eq.s32.totalorder %v15313_v60, %v15860_v53  ;;  %v16555_v53 = vpop.permute.xlu0 %5079 }
 0x1f4   : > { %11340 = vmatprep.mubr.msk.f32.mxu1 %vm4481_vm13, %v17774_v6  ;;  %14265 = vmatpush3.bf16.msra.mxu1 %v15175_v2  ;;  %vm1979_vm13 = vcmp.eq.s32.totalorder %v15322_v0, %v15878_v59  ;;  %17817 = vst [vmem:[#allocation21_spill] sm:$0xff] %v16555_v53 }
 0x1f5   : > { %11055 = vmatmul.mubr.msk.f32.vlgmr.msra.gmra.mrb[24].mxu0 %vm1970_vm14, %v17774_v6  ;;  %v12042_v37 = vpop.f32.mrb[68].mxu1  ;;  %14267 = vmatprep.subr.bf16.mxu1 %v15187_v7  ;;  %vm4782_vm14 = vcmp.eq.s32.totalorder %v15313_v60, %v16451_v35 }
 0x1f6   : > { %11056 = vmatprep.mubr.msk.f32.mxu0 %vm1973_vm0, %v17774_v6  ;;  %v12043_v38 = vpop.f32.mrb[69].mxu1  ;;  %vm4785_vm0 = vcmp.eq.s32.totalorder %v15322_v0, %v4765_v45 }
 0x1f7   : > { %v16505_v32 = vadd.f32 %v12043_v38, %v12042_v37  ;;  %11341 = vmatmul.mubr.msk.f32.gmra.mrb[174].mxu1 %vm4480_vm1, %v17774_v6  ;;  %vm1978_vm1 = vcmp.eq.s32.totalorder %v15313_v60, %v15878_v59  ;;  %v4771_v59 = vpop.permute.xlu1 %4770  ;;  %v16577_v61 = vpop.permute.xlu0 %5085  ;;  %v17772_v38 = vmov 0.0  }
 0x1f8   : > { %14269 = vmatpush3.bf16.msra.mxu1 %v15191_v8  ;;  %11360 = vmatprep.mubr.msk.f32.mxu1 %vm4779_vm3, %v17774_v6  ;;  %vm1981_vm3 = vcmp.eq.s32.totalorder %v15322_v0, %v15906_v5  ;;  %17818 = vst [vmem:[#allocation22_spill] sm:$0xff] %v16577_v61 }
 0x1f9   : > { %11057 = vmatmul.mubr.msk.f32.gmra.mrb[26].mxu0 %vm1972_vm4, %v17774_v6  ;;  %v12045_v48 = vpop.f32.mrb[70].mxu1  ;;  %vm4784_vm4 = vcmp.eq.s32.totalorder %v15313_v60, %v4765_v45 }
 0x1fa   : > { %11058 = vmatprep.mubr.msk.f32.mxu0 %vm1975_vm5, %v17774_v6  ;;  %v12046_v51 = vpop.f32.mrb[71].mxu1  ;;  %vm4787_vm5 = vcmp.eq.s32.totalorder %v15322_v0, %v16467_v16 }
 0x1fb   : > { %v16521_v54 = vadd.f32 %v12046_v51, %v12045_v48  ;;  %11361 = vmatmul.mubr.msk.f32.vlgmr.msra.gmra.mrb[176].mxu1 %vm4778_vm6, %v17774_v6  ;;  %vm1980_vm6 = vcmp.eq.s32.totalorder %v15313_v60, %v15906_v5  ;;  %v4777_v22 = vpop.permute.xlu1 %4776 }
 0x1fc   : > { %11362 = vmatprep.mubr.msk.f32.mxu1 %vm4781_vm7, %v17774_v6  ;;  %vm1983_vm7 = vcmp.eq.s32.totalorder %v15322_v0, %v15924_v12 }
 0x1fd   : > { %11059 = vmatmul.mubr.msk.f32.gmra.mrb[28].mxu0 %vm1974_vm8, %v17774_v6  ;;  %v12048_v40 = vpop.f32.mrb[72].mxu1  ;;  %vm4786_vm8 = vcmp.eq.s32.totalorder %v15313_v60, %v16467_v16 }
 0x1fe   : > { %11060 = vmatprep.mubr.msk.f32.mxu0 %vm1977_vm9, %v17774_v6  ;;  %v12049_v9 = vpop.f32.mrb[73].mxu1  ;;  %vm4789_vm9 = vcmp.eq.s32.totalorder %v15322_v0, %v4771_v59 }
 0x1ff   : > { %v16536_v57 = vadd.f32 %v12049_v9, %v12048_v40  ;;  %11363 = vmatmul.mubr.msk.f32.gmra.mrb[178].mxu1 %vm4780_vm10, %v17774_v6  ;;  %vm1982_vm10 = vcmp.eq.s32.totalorder %v15313_v60, %v15924_v12  ;;  %v5412_v12 = vpop.permute.xlu0 %5411 }
 0x200   : > { %11364 = vmatprep.mubr.msk.f32.mxu1 %vm4783_vm11, %v17774_v6  ;;  %vm1985_vm11 = vcmp.eq.s32.totalorder %v15322_v0, %v15947_v20 }
 0x201   : > { %11061 = vmatmul.mubr.msk.f32.gmra.mrb[30].mxu0 %vm1976_vm12, %v17774_v6  ;;  %v12051_v43 = vpop.f32.mrb[74].mxu1  ;;  %vm4788_vm12 = vcmp.eq.s32.totalorder %v15313_v60, %v4771_v59 }
 0x202   : > { %11062 = vmatprep.mubr.msk.f32.mxu0 %vm1979_vm13, %v17774_v6  ;;  %v12052_v62 = vpop.f32.mrb[75].mxu1  ;;  %vm4791_vm13 = vcmp.eq.s32.totalorder %v15322_v0, %v16488_v29 }
 0x203   : > { %v16549_v1 = vadd.f32 %v12052_v62, %v12051_v43  ;;  %11365 = vmatmul.mubr.msk.f32.gmra.mrb[180].mxu1 %vm4782_vm14, %v17774_v6  ;;  %vm1984_vm14 = vcmp.eq.s32.totalorder %v15313_v60, %v15947_v20 }
 0x204   : > { %11366 = vmatprep.mubr.msk.f32.mxu1 %vm4785_vm0, %v17774_v6  ;;  %vm4790_vm0 = vcmp.eq.s32.totalorder %v15313_v60, %v16488_v29 }
 0x205   : > { %11063 = vmatmul.mubr.msk.f32.gmra.mrb[32].mxu0 %vm1978_vm1, %v17774_v6  ;;  %v12054_v3 = vpop.f32.mrb[76].mxu1  ;;  %vm4793_vm1 = vcmp.eq.s32.totalorder %v15322_v0, %v4777_v22 }
 0x206   : > { %11064 = vmatprep.mubr.msk.f32.mxu0 %vm1981_vm3, %v17774_v6  ;;  %v12055_v10 = vpop.f32.mrb[77].mxu1  ;;  %vm5416_vm3 = vcmp.eq.s32.totalorder %v15313_v60, %v5412_v12 }
 0x207   : > { %v16564_v35 = vadd.f32 %v12055_v10, %v12054_v3  ;;  %11367 = vmatmul.mubr.msk.f32.gmra.mrb[182].mxu1 %vm4784_vm4, %v17774_v6  ;;  %vm5420_vm4 = vcmask 523264   ;;  %v5418_v44 = vsel %vm5416_vm3, 1.0, %v17772_v38 }
 0x208   : > { %11368 = vmatprep.mubr.msk.f32.mxu1 %vm4787_vm5, %v17774_v6  ;;  %vm4792_vm5 = vcmp.eq.s32.totalorder %v15313_v60, %v4777_v22 }
 0x209   : > { %11065 = vmatmul.mubr.msk.f32.gmra.mrb[34].mxu0 %vm1980_vm6, %v17774_v6  ;;  %v12057_v11 = vpop.f32.mrb[78].mxu1  ;;  %vm3531_vm6 = vcmp.eq.s32.totalorder %v15322_v0, %v16237_v21 }
 0x20a   : > { %11066 = vmatprep.mubr.msk.f32.mxu0 %vm1983_vm7, %v17774_v6  ;;  %v12058_v13 = vpop.f32.mrb[79].mxu1 }
 0x20b   : > { %v16579_v15 = vadd.f32 %v12058_v13, %v12057_v11  ;;  %11369 = vmatmul.mubr.msk.f32.gmra.mrb[184].mxu1 %vm4786_vm8, %v17774_v6 }
 0x20c   : > { %11370 = vmatprep.mubr.msk.f32.mxu1 %vm4789_vm9, %v17774_v6 }
 0x20d   : > { %11067 = vmatmul.mubr.msk.f32.gmra.mrb[36].mxu0 %vm1982_vm10, %v17774_v6  ;;  %v12101_v5 = vpop.f32.mrb[80].mxu1 }
 0x20e   : > { %11068 = vmatprep.mubr.msk.f32.mxu0 %vm1985_vm11, %v17774_v6  ;;  %v12102_v16 = vpop.f32.mrb[81].mxu1 }
 0x20f   : > { %v16592_v19 = vadd.f32 %v12102_v16, %v12101_v5  ;;  %11371 = vmatmul.mubr.msk.f32.gmra.mrb[186].mxu1 %vm4788_vm12, %v17774_v6 }
 0x210   : > { %11372 = vmatprep.mubr.msk.f32.mxu1 %vm4791_vm13, %v17774_v6 }
 0x211   : > { %11069 = vmatmul.mubr.msk.f32.gmra.mrb[38].mxu0 %vm1984_vm14, %v17774_v6  ;;  %v12104_v26 = vpop.f32.mrb[82].mxu1 }
 0x212   : > { %v12105_v28 = vpop.f32.mrb[83].mxu1 }
 0x213   : > { %v16602_v30 = vadd.f32 %v12105_v28, %v12104_v26  ;;  %11373 = vmatmul.mubr.msk.f32.gmra.mrb[188].mxu1 %vm4790_vm0, %v17774_v6 }
 0x214   : > { %11374 = vmatprep.mubr.msk.f32.mxu1 %vm4793_vm1, %v17774_v6 }
 0x215   : > { %v12107_v37 = vpop.f32.mrb[84].mxu1 }
 0x216   : > { %v12108_v20 = vpop.f32.mrb[85].mxu1 }
 0x217   : > { %v16609_v29 = vadd.f32 %v12108_v20, %v12107_v37  ;;  %11375 = vmatmul.mubr.msk.f32.gmra.mrb[190].mxu1 %vm4792_vm5, %v17774_v6 }
 0x218   : > { %13198 = vmatprep.mubr.msk.f32.mxu1 %vm5420_vm4, %v5418_v44 }
 0x219   : > { %v12110_v48 = vpop.f32.mrb[86].mxu1 }
 0x21a   : > { %v12111_v51 = vpop.f32.mrb[87].mxu1 }
 0x21b   : > { %v16613_v40 = vadd.f32 %v12111_v51, %v12110_v48 }
 0x21d   : > { %v12113_v9 = vpop.f32.mrb[88].mxu1 }
 0x21e   : > { %v12114_v45 = vpop.f32.mrb[89].mxu1 }
 0x21f   : > { %v16615_v43 = vadd.f32 %v12114_v45, %v12113_v9 }
 0x221   : > { %v12116_v62 = vpop.f32.mrb[90].mxu1 }
 0x222   : > { %v12117_v3 = vpop.f32.mrb[91].mxu1 }
 0x223   : > { %v16617_v10 = vadd.f32 %v12117_v3, %v12116_v62 }
 0x225   : > { %v12119_v59 = vpop.f32.mrb[92].mxu1 }
 0x226   : > { %v12120_v11 = vpop.f32.mrb[93].mxu1 }
 0x227   : > { %v16619_v13 = vadd.f32 %v12120_v11, %v12119_v59  ;;  %v11070_v11 = vld [vmem:[%s17763_s2 + $0x14] sm:$0xf] }
 0x228   : > { %13028 = vmatprep.subr.msk.mxu0 %vm760_vm15, %v11070_v11 }
 0x229   : > { %v12122_v5 = vpop.f32.mrb[94].mxu1  ;;  %13029 = vmatpush3.msk.msra.mxu0 %vm760_vm15, %v11070_v11 }
 0x22a   : > { %v12123_v16 = vpop.f32.mrb[95].mxu1 }
 0x22b   : > { %v16621_v22 = vadd.f32 %v12123_v16, %v12122_v5 }
 0x22d   : > { %v12166_v12 = vpop.f32.mrb[96].mxu1 }
 0x22e   : > { %v12167_v26 = vpop.f32.mrb[97].mxu1 }
 0x22f   : > { %v16623_v28 = vadd.f32 %v12167_v26, %v12166_v12 }
 0x231   : > { %v12169_v37 = vpop.f32.mrb[98].mxu1 }
 0x232   : > { %v12170_v20 = vpop.f32.mrb[99].mxu1 }
 0x233   : > { %v16625_v44 = vadd.f32 %v12170_v20, %v12169_v37 }
 0x235   : > { %v12172_v48 = vpop.f32.mrb[100].mxu1 }
 0x236   : > { %v12173_v51 = vpop.f32.mrb[101].mxu1 }
 0x237   : > { %v16627_v9 = vadd.f32 %v12173_v51, %v12172_v48 }
 0x239   : > { %v12175_v45 = vpop.f32.mrb[102].mxu1 }
 0x23a   : > { %v12176_v62 = vpop.f32.mrb[103].mxu1 }
 0x23b   : > { %v16629_v3 = vadd.f32 %v12176_v62, %v12175_v45 }
 0x23d   : > { %v12178_v59 = vpop.f32.mrb[104].mxu1 }
 0x23e   : > { %v12179_v5 = vpop.f32.mrb[105].mxu1 }
 0x23f   : > { %v16635_v16 = vadd.f32 %v12179_v5, %v12178_v59 }
 0x241   : > { %v12181_v12 = vpop.f32.mrb[106].mxu1 }
 0x242   : > { %v12182_v26 = vpop.f32.mrb[107].mxu1 }
 0x243   : > { %v16638_v37 = vadd.f32 %v12182_v26, %v12181_v12 }
 0x245   : > { %v12184_v20 = vpop.f32.mrb[108].mxu1 }
 0x246   : > { %v12185_v48 = vpop.f32.mrb[109].mxu1 }
 0x247   : > { %v16640_v51 = vadd.f32 %v12185_v48, %v12184_v20 }
 0x249   : > { %v12187_v45 = vpop.f32.mrb[110].mxu1 }
 0x24a   : > { %v12188_v62 = vpop.f32.mrb[111].mxu1 }
 0x24b   : > { %v16642_v38 = vadd.f32 %v12188_v62, %v12187_v45  ;;  %v16655_v45 = vld [vmem:[%s17763_s2 + $0x18] sm:$0xf] }
 0x24c   : > { %13042 = vmatprep.subr.msk.mxu0 %vm760_vm15, %v16655_v45 }
 0x24d   : > { %v12231_v6 = vpop.f32.mrb[112].mxu1 }
 0x24e   : > { %v12232_v61 = vpop.f32.mrb[113].mxu1 }
 0x24f   : > { %v16644_v53 = vadd.f32 %v12232_v61, %v12231_v6 }
 0x251   : > { %v12234_v59 = vpop.f32.mrb[114].mxu1 }
 0x252   : > { %v12235_v5 = vpop.f32.mrb[115].mxu1 }
 0x253   : > { %v16646_v56 = vadd.f32 %v12235_v5, %v12234_v59 }
 0x255   : > { %v12237_v11 = vpop.f32.mrb[116].mxu1 }
 0x256   : > { %v12238_v46 = vpop.f32.mrb[117].mxu1 }
 0x257   : > { %v16648_v12 = vadd.f32 %v12238_v46, %v12237_v11 }
 0x259   : > { %v12240_v26 = vpop.f32.mrb[118].mxu1 }
 0x25a   : > { %v12241_v33 = vpop.f32.mrb[119].mxu1 }
 0x25b   : > { %v16650_v20 = vadd.f32 %v12241_v33, %v12240_v26 }
 0x25d   : > { %v12243_v48 = vpop.f32.mrb[120].mxu1 }
 0x25e   : > { %v12244_v36 = vpop.f32.mrb[121].mxu1 }
 0x25f   : > { %v16657_v6 = vadd.f32 %v12244_v36, %v12243_v48 }
 0x261   : > { %v12246_v61 = vpop.f32.mrb[122].mxu1 }
 0x262   : > { %v12247_v62 = vpop.f32.mrb[123].mxu1 }
 0x263   : > { %v16661_v46 = vadd.f32 %v12247_v62, %v12246_v61 }
 0x265   : > { %v12249_v59 = vpop.f32.mrb[124].mxu1 }
 0x266   : > { %v12250_v5 = vpop.f32.mrb[125].mxu1 }
 0x267   : > { %v16663_v33 = vadd.f32 %v12250_v5, %v12249_v59 }
 0x269   : > { %v12252_v11 = vpop.f32.mrb[126].mxu1 }
 0x26a   : > { %v12253_v26 = vpop.f32.mrb[127].mxu1 }
 0x26b   : > { %v16665_v4 = vadd.f32 %v12253_v26, %v12252_v11 }
 0x26d   : > { %v12361_v41 = vpop.f32.mrb[128].mxu1 }
 0x26e   : > { %v12362_v27 = vpop.f32.mrb[129].mxu1 }
 0x26f   : > { %v16667_v24 = vadd.f32 %v12362_v27, %v12361_v41 }
 0x271   : > { %17819 = vst [vmem:[#allocation23_spill] sm:$0xff] %v16667_v24  ;;  %v12364_v36 = vpop.f32.mrb[130].mxu1 }
 0x272   : > { %v12365_v48 = vpop.f32.mrb[131].mxu1 }
 0x273   : > { %v16669_v52 = vadd.f32 %v12365_v48, %v12364_v36 }
 0x275   : > { %17820 = vst [vmem:[#allocation24_spill] sm:$0xff] %v16669_v52  ;;  %v12367_v60 = vpop.f32.mrb[132].mxu1 }
 0x276   : > { %v12368_v8 = vpop.f32.mrb[133].mxu1 }
 0x277   : > { %v16671_v61 = vadd.f32 %v12368_v8, %v12367_v60 }
 0x279   : > { %17821 = vst [vmem:[#allocation25_spill] sm:$0xff] %v16671_v61  ;;  %v12370_v62 = vpop.f32.mrb[134].mxu1 }
 0x27a   : > { %v12371_v7 = vpop.f32.mrb[135].mxu1 }
 0x27b   : > { %v16673_v59 = vadd.f32 %v12371_v7, %v12370_v62 }
 0x27d   : > { %17822 = vst [vmem:[#allocation26_spill] sm:$0xff] %v16673_v59  ;;  %v12373_v5 = vpop.f32.mrb[136].mxu1 }
 0x27e   : > { %v12374_v2 = vpop.f32.mrb[137].mxu1 }
 0x27f   : > { %v16675_v11 = vadd.f32 %v12374_v2, %v12373_v5 }
 0x281   : > { %17823 = vst [vmem:[#allocation27_spill] sm:$0xff] %v16675_v11  ;;  %v12376_v26 = vpop.f32.mrb[138].mxu1 }
 0x282   : > { %v12377_v63 = vpop.f32.mrb[139].mxu1 }
 0x283   : > { %v16677_v27 = vadd.f32 %v12377_v63, %v12376_v26 }
 0x285   : > { %17824 = vst [vmem:[#allocation28_spill] sm:$0xff] %v16677_v27  ;;  %v12379_v41 = vpop.f32.mrb[140].mxu1 }
 0x286   : > { %v12380_v24 = vpop.f32.mrb[141].mxu1 }
 0x287   : > { %v16679_v36 = vadd.f32 %v12380_v24, %v12379_v41 }
 0x289   : > { %17825 = vst [vmem:[#allocation29_spill] sm:$0xff] %v16679_v36  ;;  %v12382_v48 = vpop.f32.mrb[142].mxu1 }
 0x28a   : > { %v12383_v52 = vpop.f32.mrb[143].mxu1 }
 0x28b   : > { %v16681_v8 = vadd.f32 %v12383_v52, %v12382_v48 }
 0x28d   : > { %17826 = vst [vmem:[#allocation30_spill] sm:$0xff] %v16681_v8  ;;  %v12426_v60 = vpop.f32.mrb[144].mxu1 }
 0x28e   : > { %v12427_v61 = vpop.f32.mrb[145].mxu1 }
 0x28f   : > { %v16683_v7 = vadd.f32 %v12427_v61, %v12426_v60 }
 0x291   : > { %17827 = vst [vmem:[#allocation31_spill] sm:$0xff] %v16683_v7  ;;  %v12429_v62 = vpop.f32.mrb[146].mxu1 }
 0x292   : > { %v12430_v59 = vpop.f32.mrb[147].mxu1 }
 0x293   : > { %v16685_v2 = vadd.f32 %v12430_v59, %v12429_v62 }
 0x295   : > { %17828 = vst [vmem:[#allocation32_spill] sm:$0xff] %v16685_v2  ;;  %v12432_v5 = vpop.f32.mrb[148].mxu1 }
 0x296   : > { %v12433_v11 = vpop.f32.mrb[149].mxu1 }
 0x297   : > { %v16687_v63 = vadd.f32 %v12433_v11, %v12432_v5 }
 0x299   : > { %17829 = vst [vmem:[#allocation33_spill] sm:$0xff] %v16687_v63  ;;  %v12435_v26 = vpop.f32.mrb[150].mxu1 }
 0x29a   : > { %v12436_v27 = vpop.f32.mrb[151].mxu1 }
 0x29b   : > { %v16689_v24 = vadd.f32 %v12436_v27, %v12435_v26 }
 0x29d   : > { %17830 = vst [vmem:[#allocation34_spill] sm:$0xff] %v16689_v24  ;;  %v12438_v41 = vpop.f32.mrb[152].mxu1 }
 0x29e   : > { %v12439_v36 = vpop.f32.mrb[153].mxu1 }
 0x29f   : > { %v16691_v52 = vadd.f32 %v12439_v36, %v12438_v41 }
 0x2a1   : > { %17831 = vst [vmem:[#allocation35_spill] sm:$0xff] %v16691_v52  ;;  %v12441_v48 = vpop.f32.mrb[154].mxu1 }
 0x2a2   : > { %v12442_v8 = vpop.f32.mrb[155].mxu1 }
 0x2a3   : > { %v16693_v61 = vadd.f32 %v12442_v8, %v12441_v48 }
 0x2a5   : > { %17832 = vst [vmem:[#allocation36_spill] sm:$0xff] %v16693_v61  ;;  %v12444_v60 = vpop.f32.mrb[156].mxu1 }
 0x2a6   : > { %v12445_v7 = vpop.f32.mrb[157].mxu1 }
 0x2a7   : > { %v16695_v59 = vadd.f32 %v12445_v7, %v12444_v60 }
 0x2a9   : > { %17833 = vst [vmem:[#allocation37_spill] sm:$0xff] %v16695_v59  ;;  %v12447_v62 = vpop.f32.mrb[158].mxu1 }
 0x2aa   : > { %v12448_v2 = vpop.f32.mrb[159].mxu1 }
 0x2ab   : > { %v16697_v11 = vadd.f32 %v12448_v2, %v12447_v62 }
 0x2ad   : > { %17834 = vst [vmem:[#allocation38_spill] sm:$0xff] %v16697_v11  ;;  %v12491_v5 = vpop.f32.mrb[160].mxu1 }
 0x2ae   : > { %v12492_v63 = vpop.f32.mrb[161].mxu1 }
 0x2af   : > { %v16699_v27 = vadd.f32 %v12492_v63, %v12491_v5 }
 0x2b1   : > { %17835 = vst [vmem:[#allocation39_spill] sm:$0xff] %v16699_v27  ;;  %v12494_v26 = vpop.f32.mrb[162].mxu1 }
 0x2b2   : > { %v12495_v24 = vpop.f32.mrb[163].mxu1 }
 0x2b3   : > { %v16701_v36 = vadd.f32 %v12495_v24, %v12494_v26 }
 0x2b5   : > { %17836 = vst [vmem:[#allocation40_spill] sm:$0xff] %v16701_v36  ;;  %v12497_v41 = vpop.f32.mrb[164].mxu1 }
 0x2b6   : > { %v12498_v52 = vpop.f32.mrb[165].mxu1 }
 0x2b7   : > { %v16703_v8 = vadd.f32 %v12498_v52, %v12497_v41 }
 0x2b9   : > { %17837 = vst [vmem:[#allocation41_spill] sm:$0xff] %v16703_v8  ;;  %v12500_v48 = vpop.f32.mrb[166].mxu1 }
 0x2ba   : > { %v12501_v61 = vpop.f32.mrb[167].mxu1 }
 0x2bb   : > { %v16705_v7 = vadd.f32 %v12501_v61, %v12500_v48 }
 0x2bd   : > { %v12503_v60 = vpop.f32.mrb[168].mxu1 }
 0x2be   : > { %v12504_v59 = vpop.f32.mrb[169].mxu1 }
 0x2bf   : > { %v16707_v2 = vadd.f32 %v12504_v59, %v12503_v60 }
 0x2c1   : > { %17838 = vst [vmem:[#allocation42_spill] sm:$0xff] %v16707_v2 }
 0x2c2   : > { %v12506_v62 = vpop.f32.mrb[170].mxu1 }
 0x2c3   : > { %v12507_v11 = vpop.f32.mrb[171].mxu1 }
 0x2c4   : > { %v16709_v63 = vadd.f32 %v12507_v11, %v12506_v62  ;;  %v11138_v11 = vld [vmem:[%s17763_s2 + $0x1c] sm:$0xf] }
 0x2c6   : > { %v12509_v5 = vpop.f32.mrb[172].mxu1 }
 0x2c7   : > { %v12510_v27 = vpop.f32.mrb[173].mxu1 }
 0x2c8   : > { %v16711_v24 = vadd.f32 %v12510_v27, %v12509_v5  ;;  %v11971_v26 = vpop.f32.mrb[24].mxu0 }
 0x2c9   : > { %v11972_v36 = vpop.f32.mrb[25].mxu0 }
 0x2ca   : > { %17839 = vst [vmem:[#allocation43_spill] sm:$0xff] %v16711_v24  ;;  %v11973_v52 = vadd.f32 %v11972_v36, %v11971_v26  ;;  %v12512_v41 = vpop.f32.mrb[174].mxu1 }
 0x2cb   : > { %v12513_v8 = vpop.f32.mrb[175].mxu1 }
 0x2cc   : > { %v16713_v58 = vadd.f32 %v12513_v8, %v12512_v41  ;;  %v11974_v61 = vpop.f32.mrb[26].mxu0  ;;  %13030 = vmatprep.mubr.msk.f32.mxu0 %vm735_vm2, %v11973_v52 }
 0x2cd   : > { %v11975_v59 = vpop.f32.mrb[27].mxu0 }
 0x2ce   : > { %17840 = vst [vmem:[#allocation44_spill] sm:$0xff] %v16713_v58  ;;  %v11976_v48 = vadd.f32 %v11975_v59, %v11974_v61  ;;  %v12556_v60 = vpop.f32.mrb[176].mxu1 }
 0x2cf   : > { %v12557_v2 = vpop.f32.mrb[177].mxu1 }
 0x2d0   : > { %v16719_v27 = vadd.f32 %v12557_v2, %v12556_v60  ;;  %v11977_v62 = vpop.f32.mrb[28].mxu0  ;;  %13031 = vmatmul.mubr.msk.f32.vlgmr.msra.gmra.mrb[16].mxu0 %vm735_vm2, %v11976_v48 }
 0x2d1   : > { %v11978_v36 = vpop.f32.mrb[29].mxu0  ;;  %13043 = vmatpush3.msk.msra.mxu0 %vm760_vm15, %v16655_v45 }
 0x2d2   : > { %17841 = vst [vmem:[#allocation45_spill] sm:$0xff] %v16719_v27  ;;  %v11979_v8 = vadd.f32 %v11978_v36, %v11977_v62  ;;  %v12559_v5 = vpop.f32.mrb[178].mxu1  ;;  %13056 = vmatprep.subr.msk.mxu0 %vm760_vm15, %v11138_v11 }
 0x2d3   : > { %v12560_v26 = vpop.f32.mrb[179].mxu1 }
 0x2d4   : > { %v16725_v52 = vadd.f32 %v12560_v26, %v12559_v5  ;;  %v11980_v41 = vpop.f32.mrb[30].mxu0  ;;  %13033 = vmatprep.mubr.msk.f32.mxu0 %vm735_vm2, %v11979_v8 }
 0x2d5   : > { %v11981_v61 = vpop.f32.mrb[31].mxu0 }
 0x2d6   : > { %17842 = vst [vmem:[#allocation46_spill] sm:$0xff] %v16725_v52  ;;  %v11982_v2 = vadd.f32 %v11981_v61, %v11980_v41  ;;  %v12562_v59 = vpop.f32.mrb[180].mxu1 }
 0x2d7   : > { %v12563_v60 = vpop.f32.mrb[181].mxu1 }
 0x2d8   : > { %v16728_v27 = vadd.f32 %v12563_v60, %v12562_v59  ;;  %v11983_v48 = vpop.f32.mrb[32].mxu0  ;;  %13034 = vmatmul.mubr.msk.f32.gmra.mrb[18].mxu0 %vm735_vm2, %v11982_v2 }
 0x2d9   : > { %v11984_v45 = vpop.f32.mrb[33].mxu0 }
 0x2da   : > { %17843 = vst [vmem:[#allocation47_spill] sm:$0xff] %v16728_v27  ;;  %v11985_v62 = vadd.f32 %v11984_v45, %v11983_v48  ;;  %v12565_v36 = vpop.f32.mrb[182].mxu1 }
 0x2db   : > { %v12566_v58 = vpop.f32.mrb[183].mxu1 }
 0x2dc   : > { %v16731_v24 = vadd.f32 %v12566_v58, %v12565_v36  ;;  %v11986_v5 = vpop.f32.mrb[34].mxu0  ;;  %13036 = vmatprep.mubr.msk.f32.mxu0 %vm735_vm2, %v11985_v62 }
 0x2dd   : > { %v11987_v26 = vpop.f32.mrb[35].mxu0 }
 0x2de   : > { %17844 = vst [vmem:[#allocation48_spill] sm:$0xff] %v16731_v24  ;;  %v11988_v8 = vadd.f32 %v11987_v26, %v11986_v5  ;;  %v12568_v52 = vpop.f32.mrb[184].mxu1 }
 0x2df   : > { %v12569_v41 = vpop.f32.mrb[185].mxu1 }
 0x2e0   : > { %v16734_v61 = vadd.f32 %v12569_v41, %v12568_v52  ;;  %v11989_v59 = vpop.f32.mrb[36].mxu0  ;;  %13037 = vmatmul.mubr.msk.f32.gmra.mrb[20].mxu0 %vm735_vm2, %v11988_v8 }
 0x2e1   : > { %v11990_v60 = vpop.f32.mrb[37].mxu0 }
 0x2e2   : > { %v11991_v2 = vadd.f32 %v11990_v60, %v11989_v59  ;;  %v12571_v27 = vpop.f32.mrb[186].mxu1 }
 0x2e3   : > { %v12572_v48 = vpop.f32.mrb[187].mxu1 }
 0x2e4   : > { %v16737_v45 = vadd.f32 %v12572_v48, %v12571_v27  ;;  %v11992_v58 = vpop.f32.mrb[38].mxu0  ;;  %13039 = vmatprep.mubr.msk.f32.mxu0 %vm735_vm2, %v11991_v2  ;;  %v11172_v27 = vld [vmem:[%s17763_s2 + $0x20] sm:$0xf] }
 0x2e5   : > { %v11993_v36 = vpop.f32.mrb[39].mxu0 }
 0x2e6   : > { %v11994_v62 = vadd.f32 %v11993_v36, %v11992_v58  ;;  %v12574_v24 = vpop.f32.mrb[188].mxu1 }
 0x2e7   : > { %v12575_v5 = vpop.f32.mrb[189].mxu1 }
 0x2e8   : > { %v16740_v26 = vadd.f32 %v12575_v5, %v12574_v24  ;;  %13040 = vmatmul.mubr.msk.f32.gmra.mrb[22].mxu0 %vm735_vm2, %v11994_v62  ;;  %v17859_v5 = vld [vmem:[#allocation23_spill] sm:$0xff] }
 0x2e9   : > { %13044 = vmatprep.mubr.msk.f32.mxu0 %vm735_vm2, %v16477_v14  ;;  %v11206_v14 = vld [vmem:[%s17763_s2 + $0x24] sm:$0xf] }
 0x2ea   : > { %v12577_v52 = vpop.f32.mrb[190].mxu1 }
 0x2eb   : > { %v12578_v8 = vpop.f32.mrb[191].mxu1 }
 0x2ec   : > { %v16748_v41 = vadd.f32 %v12578_v8, %v12577_v52  ;;  %13045 = vmatmul.mubr.msk.f32.vlgmr.msra.gmra.mrb[16].mxu0 %vm735_vm2, %v16490_v49  ;;  %v17845_v49 = vmov 1.0   ;;  %v11342_v52 = vld [vmem:[%s17763_s2 + $0x34] sm:$0xf]  ;;  %v17860_v8 = vld [vmem:[#allocation24_spill] sm:$0xff] }
 0x2ed   : > { %13047 = vmatprep.mubr.msk.f32.mxu0 %vm735_vm2, %v16505_v32  ;;  %13057 = vmatpush3.msk.msra.mxu0 %vm760_vm15, %v11138_v11  ;;  %v17846_v32 = vld [vmem:[#allocation6_spill] sm:$0xff] }
 0x2ee   : > { %13070 = vmatprep.subr.msk.mxu0 %vm760_vm15, %v11172_v27 }
 0x2f0   : > { %13048 = vmatmul.mubr.msk.f32.gmra.mrb[18].mxu0 %vm735_vm2, %v16521_v54  ;;  %v17847_v54 = vld [vmem:[#allocation7_spill] sm:$0xff] }
 0x2f1   : > { %13050 = vmatprep.mubr.msk.f32.mxu0 %vm735_vm2, %v16536_v57  ;;  %v17849_v57 = vld [vmem:[#allocation9_spill] sm:$0xff] }
 0x2f4   : > { %13051 = vmatmul.mubr.msk.f32.gmra.mrb[20].mxu0 %vm735_vm2, %v16549_v1  ;;  %v17850_v1 = vld [vmem:[#allocation10_spill] sm:$0xff] }
 0x2f5   : > { %13053 = vmatprep.mubr.msk.f32.mxu0 %vm735_vm2, %v16564_v35  ;;  %v17852_v35 = vld [vmem:[#allocation12_spill] sm:$0xff] }
 0x2f6   : > { %vm3533_vm8 = vcmp.eq.s32.totalorder %v15322_v0, %v17852_v35 }
 0x2f8   : > { %13054 = vmatmul.mubr.msk.f32.gmra.mrb[22].mxu0 %vm735_vm2, %v16579_v15  ;;  %v17853_v15 = vld [vmem:[#allocation13_spill] sm:$0xff] }
 0x2f9   : > { %13058 = vmatprep.mubr.msk.f32.mxu0 %vm735_vm2, %v16592_v19  ;;  %vm3535_vm10 = vcmp.eq.s32.totalorder %v15322_v0, %v17853_v15  ;;  %v17855_v19 = vld [vmem:[#allocation15_spill] sm:$0xff] }
 0x2fa   : > { %vm3539_vm14 = vcmp.eq.s32.totalorder %v15322_v0, %v17855_v19 }
 0x2fc   : > { %13059 = vmatmul.mubr.msk.f32.vlgmr.msra.gmra.mrb[16].mxu0 %vm735_vm2, %v16602_v30  ;;  %v17856_v30 = vld [vmem:[#allocation16_spill] sm:$0xff] }
 0x2fd   : > { %13061 = vmatprep.mubr.msk.f32.mxu0 %vm735_vm2, %v16609_v29  ;;  %13071 = vmatpush3.msk.msra.mxu0 %vm760_vm15, %v11172_v27  ;;  %vm3541_vm1 = vcmp.eq.s32.totalorder %v15322_v0, %v17856_v30  ;;  %v17858_v29 = vld [vmem:[#allocation18_spill] sm:$0xff]  ;;  %v17861_v27 = vld [vmem:[#allocation25_spill] sm:$0xff] }
 0x2fe   : > { %13084 = vmatprep.subr.msk.mxu0 %vm760_vm15, %v11206_v14 }
 0x300   : > { %13062 = vmatmul.mubr.msk.f32.gmra.mrb[18].mxu0 %vm735_vm2, %v16613_v40  ;;  %v11274_v40 = vld [vmem:[%s17763_s2 + $0x2c] sm:$0xf] }
 0x301   : > { %13064 = vmatprep.mubr.msk.f32.mxu0 %vm735_vm2, %v16615_v43 }
 0x304   : > { %13065 = vmatmul.mubr.msk.f32.gmra.mrb[20].mxu0 %vm735_vm2, %v16617_v10 }
 0x305   : > { %13067 = vmatprep.mubr.msk.f32.mxu0 %vm735_vm2, %v16619_v13 }
 0x308   : > { %13068 = vmatmul.mubr.msk.f32.gmra.mrb[22].mxu0 %vm735_vm2, %v16621_v22 }
 0x309   : > { %13072 = vmatprep.mubr.msk.f32.mxu0 %vm735_vm2, %v16623_v28 }
 0x30c   : > { %13073 = vmatmul.mubr.msk.f32.vlgmr.msra.gmra.mrb[16].mxu0 %vm735_vm2, %v16625_v44 }
 0x30d   : > { %13075 = vmatprep.mubr.msk.f32.mxu0 %vm735_vm2, %v16627_v9  ;;  %13085 = vmatpush3.msk.msra.mxu0 %vm760_vm15, %v11206_v14  ;;  %v11308_v9 = vld [vmem:[%s17763_s2 + $0x30] sm:$0xf]  ;;  %v17862_v14 = vld [vmem:[#allocation26_spill] sm:$0xff] }
 0x30e   : > { %14111 = vmatprep.subr.bf16.mxu0 %v15070_v17 }
 0x310   : > { %13076 = vmatmul.mubr.msk.f32.gmra.mrb[18].mxu0 %vm735_vm2, %v16629_v3 }
 0x311   : > { %13078 = vmatprep.mubr.msk.f32.mxu0 %vm735_vm2, %v16635_v16 }
 0x314   : > { %13079 = vmatmul.mubr.msk.f32.gmra.mrb[20].mxu0 %vm735_vm2, %v16638_v37 }
 0x315   : > { %13081 = vmatprep.mubr.msk.f32.mxu0 %vm735_vm2, %v16640_v51 }
 0x318   : > { %13082 = vmatmul.mubr.msk.f32.gmra.mrb[22].mxu0 %vm735_vm2, %v16642_v38  ;;  %v17857_v38 = vld [vmem:[#allocation17_spill] sm:$0xff] }
 0x319   : > { %13086 = vmatprep.mubr.msk.f32.mxu0 %vm735_vm2, %v16644_v53  ;;  %v17851_v53 = vld [vmem:[#allocation11_spill] sm:$0xff]  ;;  %vm3543_vm5 = vcmp.eq.s32.totalorder %v15322_v0, %v17857_v38 }
 0x31a   : > { %vm3530_vm7 = vcmp.eq.s32.totalorder %v17851_v53, %v16237_v21  ;;  %vm3532_vm9 = vcmp.eq.s32.totalorder %v17851_v53, %v17852_v35  ;;  %vm3534_vm11 = vcmp.eq.s32.totalorder %v17851_v53, %v17853_v15  ;;  %v17854_v21 = vld [vmem:[#allocation14_spill] sm:$0xff]  ;;  %vm3538_vm0 = vcmp.eq.s32.totalorder %v17851_v53, %v17855_v19  ;;  %v17864_v35 = vld [vmem:[#allocation28_spill] sm:$0xff]  ;;  %v17865_v15 = vld [vmem:[#allocation29_spill] sm:$0xff] }
 0x31b   : > { %vm3537_vm12 = vcmp.eq.s32.totalorder %v15322_v0, %v17854_v21  ;;  %vm3536_vm13 = vcmp.eq.s32.totalorder %v17851_v53, %v17854_v21  ;;  %vm3540_vm3 = vcmp.eq.s32.totalorder %v17851_v53, %v17856_v30  ;;  %v17866_v21 = vld [vmem:[#allocation30_spill] sm:$0xff]  ;;  %v17867_v19 = vld [vmem:[#allocation31_spill] sm:$0xff]  ;;  %v11376_v30 = vld [vmem:[%s17763_s2 + $0x38] sm:$0xf] }
 0x31c   : > { %13087 = vmatmul.mubr.msk.f32.vlgmr.msra.gmra.mrb[16].mxu0 %vm735_vm2, %v16646_v56  ;;  %v17848_v56 = vld [vmem:[#allocation8_spill] sm:$0xff] }
 0x31d   : > { %14113 = vmatpush3.bf16.msra.mxu0 %v15072_v18  ;;  %13089 = vmatprep.mubr.msk.f32.mxu0 %vm735_vm2, %v16648_v12 }
 0x31e   : > { %14115 = vmatprep.subr.bf16.mxu0 %v15079_v23 }
 0x320   : > { %13090 = vmatmul.mubr.msk.f32.gmra.mrb[18].mxu0 %vm735_vm2, %v16650_v20 }
 0x321   : > { %14117 = vmatpush3.bf16.msra.mxu0 %v15084_v25  ;;  %13092 = vmatprep.mubr.msk.f32.mxu0 %vm735_vm2, %v16657_v6 }
 0x322   : > { %14119 = vmatprep.subr.bf16.mxu0 %v15097_v31 }
 0x324   : > { %13093 = vmatmul.mubr.msk.f32.gmra.mrb[20].mxu0 %vm735_vm2, %v16661_v46 }
 0x325   : > { %14121 = vmatpush3.bf16.msra.mxu0 %v15103_v34  ;;  %13095 = vmatprep.mubr.msk.f32.mxu0 %vm735_vm2, %v16663_v33 }
 0x326   : > { %14123 = vmatprep.subr.bf16.mxu0 %v15115_v39 }
 0x328   : > { %13096 = vmatmul.mubr.msk.f32.gmra.mrb[22].mxu0 %vm735_vm2, %v16665_v4  ;;  %v11240_v4 = vld [vmem:[%s17763_s2 + $0x28] sm:$0xf] }
 0x329   : > { %14125 = vmatpush3.bf16.msra.mxu0 %v15121_v42  ;;  %11224 = vmatprep.mubr.msk.f32.mxu0 %vm3531_vm6, %v17845_v49  ;;  %vm3542_vm6 = vcmp.eq.s32.totalorder %v17851_v53, %v17857_v38  ;;  %v17868_v38 = vld [vmem:[#allocation32_spill] sm:$0xff] }
 0x32a   : > { %14127 = vmatprep.subr.bf16.mxu0 %v15133_v47 }
 0x32d   : > { %14129 = vmatpush3.bf16.msra.mxu0 %v15139_v50 }
 0x32e   : > { %14131 = vmatprep.subr.bf16.mxu0 %v15151_v55 }
 0x331   : > { %14133 = vmatpush3.bf16.msra.mxu0 %v17846_v32 }
 0x332   : > { %14135 = vmatprep.subr.bf16.mxu0 %v17847_v54 }
 0x335   : > { %14137 = vmatpush3.bf16.msra.mxu0 %v17848_v56 }
 0x336   : > { %14139 = vmatprep.subr.bf16.mxu0 %v17849_v57 }
 0x339   : > { %14141 = vmatpush3.bf16.msra.mxu0 %v17850_v1 }
 0x33a   : > { %13098 = vmatprep.subr.msk.mxu0 %vm760_vm15, %v11240_v4 }
 0x33c   : > { %11225 = vmatmul.mubr.msk.f32.vlgmr.msra.gmra.mrb[40].mxu0 %vm3530_vm7, %v17845_v49  ;;  %vm3545_vm7 = vcmp.eq.s32.totalorder %v15322_v0, %v17858_v29 }
 0x33d   : > { %11226 = vmatprep.mubr.msk.f32.mxu0 %vm3533_vm8, %v17845_v49  ;;  %13099 = vmatpush3.msk.msra.mxu0 %vm760_vm15, %v11240_v4  ;;  %vm3544_vm8 = vcmp.eq.s32.totalorder %v17851_v53, %v17858_v29  ;;  %v17863_v4 = vld [vmem:[#allocation27_spill] sm:$0xff]  ;;  %v17869_v29 = vld [vmem:[#allocation33_spill] sm:$0xff] }
 0x33e   : > { %13112 = vmatprep.subr.msk.mxu0 %vm760_vm15, %v11274_v40 }
 0x340   : > { %11227 = vmatmul.mubr.msk.f32.gmra.mrb[42].mxu0 %vm3532_vm9, %v17845_v49 }
 0x341   : > { %11228 = vmatprep.mubr.msk.f32.mxu0 %vm3535_vm10, %v17845_v49 }
 0x344   : > { %11229 = vmatmul.mubr.msk.f32.gmra.mrb[44].mxu0 %vm3534_vm11, %v17845_v49 }
 0x345   : > { %11230 = vmatprep.mubr.msk.f32.mxu0 %vm3537_vm12, %v17845_v49 }
 0x348   : > { %11231 = vmatmul.mubr.msk.f32.gmra.mrb[46].mxu0 %vm3536_vm13, %v17845_v49 }
 0x349   : > { %11232 = vmatprep.mubr.msk.f32.mxu0 %vm3539_vm14, %v17845_v49 }
 0x34c   : > { %11233 = vmatmul.mubr.msk.f32.gmra.mrb[48].mxu0 %vm3538_vm0, %v17845_v49 }
 0x34d   : > { %11234 = vmatprep.mubr.msk.f32.mxu0 %vm3541_vm1, %v17845_v49 }
 0x350   : > { %11235 = vmatmul.mubr.msk.f32.gmra.mrb[50].mxu0 %vm3540_vm3, %v17845_v49 }
 0x351   : > { %11236 = vmatprep.mubr.msk.f32.mxu0 %vm3543_vm5, %v17845_v49 }
 0x354   : > { %11237 = vmatmul.mubr.msk.f32.gmra.mrb[52].mxu0 %vm3542_vm6, %v17845_v49 }
 0x355   : > { %11238 = vmatprep.mubr.msk.f32.mxu0 %vm3545_vm7, %v17845_v49 }
 0x358   : > { %11239 = vmatmul.mubr.msk.f32.gmra.mrb[54].mxu0 %vm3544_vm8, %v17845_v49 }
 0x40f   : > { %v12296_v43 = vpop.f32.mrb[40].mxu0 }
 0x410   : > { %v12297_v10 = vpop.f32.mrb[41].mxu0 }
 0x411   : > { %v12298_v13 = vadd.f32 %v12297_v10, %v12296_v43  ;;  %v17871_v43 = vld [vmem:[#allocation35_spill] sm:$0xff]  ;;  %v17872_v10 = vld [vmem:[#allocation36_spill] sm:$0xff] }
 0x413   : > { %v12299_v22 = vpop.f32.mrb[42].mxu0  ;;  %13100 = vmatprep.mubr.msk.f32.mxu0 %vm735_vm2, %v12298_v13  ;;  %v17873_v13 = vld [vmem:[#allocation37_spill] sm:$0xff] }
 0x414   : > { %v12300_v28 = vpop.f32.mrb[43].mxu0 }
 0x415   : > { %v12301_v44 = vadd.f32 %v12300_v28, %v12299_v22  ;;  %v17874_v22 = vld [vmem:[#allocation38_spill] sm:$0xff]  ;;  %v17875_v28 = vld [vmem:[#allocation39_spill] sm:$0xff] }
 0x417   : > { %v12302_v3 = vpop.f32.mrb[44].mxu0  ;;  %13101 = vmatmul.mubr.msk.f32.vlgmr.msra.gmra.mrb[16].mxu0 %vm735_vm2, %v12301_v44  ;;  %v17876_v44 = vld [vmem:[#allocation40_spill] sm:$0xff] }
 0x418   : > { %v12303_v16 = vpop.f32.mrb[45].mxu0  ;;  %13113 = vmatpush3.msk.msra.mxu0 %vm760_vm15, %v11274_v40  ;;  %v17870_v40 = vld [vmem:[#allocation34_spill] sm:$0xff] }
 0x419   : > { %v12304_v37 = vadd.f32 %v12303_v16, %v12302_v3  ;;  %13126 = vmatprep.subr.msk.mxu0 %vm760_vm15, %v11308_v9  ;;  %v17878_v3 = vld [vmem:[#allocation42_spill] sm:$0xff]  ;;  %v17879_v16 = vld [vmem:[#allocation43_spill] sm:$0xff] }
 0x41b   : > { %v12305_v51 = vpop.f32.mrb[46].mxu0  ;;  %13103 = vmatprep.mubr.msk.f32.mxu0 %vm735_vm2, %v12304_v37  ;;  %v17880_v37 = vld [vmem:[#allocation44_spill] sm:$0xff] }
 0x41c   : > { %v12306_v12 = vpop.f32.mrb[47].mxu0 }
 0x41d   : > { %v12307_v20 = vadd.f32 %v12306_v12, %v12305_v51  ;;  %v17881_v51 = vld [vmem:[#allocation45_spill] sm:$0xff]  ;;  %v17882_v12 = vld [vmem:[#allocation46_spill] sm:$0xff] }
 0x41f   : > { %v12308_v6 = vpop.f32.mrb[48].mxu0  ;;  %13104 = vmatmul.mubr.msk.f32.gmra.mrb[18].mxu0 %vm735_vm2, %v12307_v20 }
 0x420   : > { %v12309_v46 = vpop.f32.mrb[49].mxu0 }
 0x421   : > { %v12310_v33 = vadd.f32 %v12309_v46, %v12308_v6 }
 0x423   : > { %v12311_v24 = vpop.f32.mrb[50].mxu0  ;;  %13106 = vmatprep.mubr.msk.f32.mxu0 %vm735_vm2, %v12310_v33 }
 0x424   : > { %v12312_v11 = vpop.f32.mrb[51].mxu0 }
 0x425   : > { %v12313_v59 = vadd.f32 %v12312_v11, %v12311_v24 }
 0x427   : > { %v12314_v60 = vpop.f32.mrb[52].mxu0  ;;  %13107 = vmatmul.mubr.msk.f32.gmra.mrb[20].mxu0 %vm735_vm2, %v12313_v59 }
 0x428   : > { %v12315_v2 = vpop.f32.mrb[53].mxu0 }
 0x429   : > { %v12316_v48 = vadd.f32 %v12315_v2, %v12314_v60 }
 0x42b   : > { %v12317_v58 = vpop.f32.mrb[54].mxu0  ;;  %13109 = vmatprep.mubr.msk.f32.mxu0 %vm735_vm2, %v12316_v48 }
 0x42c   : > { %v12318_v36 = vpop.f32.mrb[55].mxu0 }
 0x42d   : > { %v12319_v62 = vadd.f32 %v12318_v36, %v12317_v58 }
 0x42f   : > { %13110 = vmatmul.mubr.msk.f32.gmra.mrb[22].mxu0 %vm735_vm2, %v12319_v62 }
 0x430   : > { %13114 = vmatprep.mubr.msk.f32.mxu0 %vm735_vm2, %v17859_v5 }
 0x433   : > { %13115 = vmatmul.mubr.msk.f32.vlgmr.msra.gmra.mrb[16].mxu0 %vm735_vm2, %v17860_v8 }
 0x434   : > { %13117 = vmatprep.mubr.msk.f32.mxu0 %vm735_vm2, %v17861_v27  ;;  %13127 = vmatpush3.msk.msra.mxu0 %vm760_vm15, %v11308_v9  ;;  %v17877_v9 = vld [vmem:[#allocation41_spill] sm:$0xff] }
 0x435   : > { %13140 = vmatprep.subr.msk.mxu0 %vm760_vm15, %v11342_v52  ;;  %v11420_v27 = vld [vmem:[%s17764_s3] ss:$0 sm:$0xff] }
 0x437   : > { %13118 = vmatmul.mubr.msk.f32.gmra.mrb[18].mxu0 %vm735_vm2, %v17862_v14 }
 0x438   : > { %13120 = vmatprep.mubr.msk.f32.mxu0 %vm735_vm2, %v17863_v4 }
 0x43b   : > { %13121 = vmatmul.mubr.msk.f32.gmra.mrb[20].mxu0 %vm735_vm2, %v17864_v35 }
 0x43c   : > { %13123 = vmatprep.mubr.msk.f32.mxu0 %vm735_vm2, %v17865_v15 }
 0x43f   : > { %13124 = vmatmul.mubr.msk.f32.gmra.mrb[22].mxu0 %vm735_vm2, %v17866_v21 }
 0x440   : > { %13128 = vmatprep.mubr.msk.f32.mxu0 %vm735_vm2, %v17867_v19 }
 0x443   : > { %13129 = vmatmul.mubr.msk.f32.vlgmr.msra.gmra.mrb[16].mxu0 %vm735_vm2, %v17868_v38 }
 0x444   : > { %13131 = vmatprep.mubr.msk.f32.mxu0 %vm735_vm2, %v17869_v29  ;;  %13141 = vmatpush3.msk.msra.mxu0 %vm760_vm15, %v11342_v52  ;;  %v17889_v52 = vmov 0.0  }
 0x445   : > { %13154 = vmatprep.subr.msk.mxu0 %vm760_vm15, %v11376_v30 }
 0x447   : > { %13132 = vmatmul.mubr.msk.f32.gmra.mrb[18].mxu0 %vm735_vm2, %v17870_v40 }
 0x448   : > { %13134 = vmatprep.mubr.msk.f32.mxu0 %vm735_vm2, %v17871_v43 }
 0x44b   : > { %13135 = vmatmul.mubr.msk.f32.gmra.mrb[20].mxu0 %vm735_vm2, %v17872_v10 }
 0x44c   : > { %13137 = vmatprep.mubr.msk.f32.mxu0 %vm735_vm2, %v17873_v13 }
 0x44f   : > { %13138 = vmatmul.mubr.msk.f32.gmra.mrb[22].mxu0 %vm735_vm2, %v17874_v22 }
 0x450   : > { %13142 = vmatprep.mubr.msk.f32.mxu0 %vm735_vm2, %v17875_v28 }
 0x453   : > { %13143 = vmatmul.mubr.msk.f32.vlgmr.msra.gmra.mrb[16].mxu0 %vm735_vm2, %v17876_v44 }
 0x454   : > { %13145 = vmatprep.mubr.msk.f32.mxu0 %vm735_vm2, %v17877_v9  ;;  %13155 = vmatpush3.msk.msra.mxu0 %vm760_vm15, %v11376_v30 }
 0x455   : > { %14271 = vmatprep.subr.bf16.mxu0 %v15070_v17  ;;  %v17883_v17 = vld [vmem:[#allocation47_spill] sm:$0xff] }
 0x457   : > { %13146 = vmatmul.mubr.msk.f32.gmra.mrb[18].mxu0 %vm735_vm2, %v16705_v7  ;;  %v17884_v7 = vld [vmem:[#allocation48_spill] sm:$0xff] }
 0x458   : > { %13148 = vmatprep.mubr.msk.f32.mxu0 %vm735_vm2, %v17878_v3 }
 0x45b   : > { %13149 = vmatmul.mubr.msk.f32.gmra.mrb[20].mxu0 %vm735_vm2, %v16709_v63 }
 0x45c   : > { %13151 = vmatprep.mubr.msk.f32.mxu0 %vm735_vm2, %v17879_v16 }
 0x45f   : > { %13152 = vmatmul.mubr.msk.f32.gmra.mrb[22].mxu0 %vm735_vm2, %v17880_v37 }
 0x460   : > { %13156 = vmatprep.mubr.msk.f32.mxu0 %vm735_vm2, %v17881_v51 }
 0x463   : > { %13157 = vmatmul.mubr.msk.f32.vlgmr.msra.gmra.mrb[16].mxu0 %vm735_vm2, %v17882_v12 }
 0x464   : > { %14273 = vmatpush3.bf16.msra.mxu0 %v15072_v18  ;;  %13159 = vmatprep.mubr.msk.f32.mxu0 %vm735_vm2, %v17883_v17  ;;  %v17885_v18 = vld [vmem:[#allocation19_spill] sm:$0xff] }
 0x465   : > { %14275 = vmatprep.subr.bf16.mxu0 %v15079_v23  ;;  %vm5091_vm9 = vcmp.eq.s32.totalorder %v15322_v0, %v17885_v18  ;;  %v11410_v23 = vld [vmem:[%s17763_s2 + $0x3c] sm:$0xf]  ;;  %vm5090_vm10 = vcmp.eq.s32.totalorder %v17851_v53, %v17885_v18 }
 0x467   : > { %13160 = vmatmul.mubr.msk.f32.gmra.mrb[18].mxu0 %vm735_vm2, %v17884_v7 }
 0x468   : > { %14277 = vmatpush3.bf16.msra.mxu0 %v15084_v25  ;;  %13162 = vmatprep.mubr.msk.f32.mxu0 %vm735_vm2, %v16734_v61  ;;  %v5071_v25 = vpop.permute.xlu1 %5070 }
 0x469   : > { %14279 = vmatprep.subr.bf16.mxu0 %v15097_v31  ;;  %vm5093_vm11 = vcmp.eq.s32.totalorder %v15322_v0, %v5071_v25  ;;  %vm5092_vm12 = vcmp.eq.s32.totalorder %v17851_v53, %v5071_v25  ;;  %v17886_v31 = vld [vmem:[#allocation20_spill] sm:$0xff] }
 0x46a   : > { %vm5095_vm13 = vcmp.eq.s32.totalorder %v15322_v0, %v17886_v31  ;;  %vm5094_vm14 = vcmp.eq.s32.totalorder %v17851_v53, %v17886_v31 }
 0x46b   : > { %13163 = vmatmul.mubr.msk.f32.gmra.mrb[20].mxu0 %vm735_vm2, %v16737_v45 }
 0x46c   : > { %14281 = vmatpush3.bf16.msra.mxu0 %v15103_v34  ;;  %13165 = vmatprep.mubr.msk.f32.mxu0 %vm735_vm2, %v16740_v26  ;;  %v5077_v34 = vpop.permute.xlu1 %5076 }
 0x46d   : > { %14283 = vmatprep.subr.bf16.mxu0 %v15115_v39  ;;  %vm5097_vm0 = vcmp.eq.s32.totalorder %v15322_v0, %v5077_v34  ;;  %v17887_v39 = vld [vmem:[#allocation21_spill] sm:$0xff] }
 0x46e   : > { %vm5099_vm1 = vcmp.eq.s32.totalorder %v15322_v0, %v17887_v39  ;;  %vm5098_vm3 = vcmp.eq.s32.totalorder %v17851_v53, %v17887_v39 }
 0x46f   : > { %13166 = vmatmul.mubr.msk.f32.gmra.mrb[22].mxu0 %vm735_vm2, %v16748_v41 }
 0x470   : > { %14285 = vmatpush3.bf16.msra.mxu0 %v15121_v42  ;;  %11394 = vmatprep.mubr.msk.f32.mxu0 %vm5091_vm9, %v17845_v49  ;;  %v5083_v42 = vpop.permute.xlu1 %5082 }
 0x471   : > { %14287 = vmatprep.subr.bf16.mxu0 %v15133_v47  ;;  %vm5101_vm5 = vcmp.eq.s32.totalorder %v15322_v0, %v5083_v42  ;;  %vm5100_vm6 = vcmp.eq.s32.totalorder %v17851_v53, %v5083_v42  ;;  %v17888_v47 = vld [vmem:[#allocation22_spill] sm:$0xff] }
 0x472   : > { %vm5103_vm7 = vcmp.eq.s32.totalorder %v15322_v0, %v17888_v47  ;;  %vm5102_vm8 = vcmp.eq.s32.totalorder %v17851_v53, %v17888_v47 }
 0x474   : > { %14289 = vmatpush3.bf16.msra.mxu0 %v15139_v50  ;;  %v5089_v50 = vpop.permute.xlu1 %5088 }
 0x475   : > { %14291 = vmatprep.subr.bf16.mxu0 %v15151_v55  ;;  %vm5105_vm9 = vcmp.eq.s32.totalorder %v15322_v0, %v5089_v50 }
 0x478   : > { %14293 = vmatpush3.bf16.msra.mxu0 %v17846_v32  ;;  %v5415_v28 = vpop.permute.xlu1 %5414 }
 0x479   : > { %14295 = vmatprep.subr.bf16.mxu0 %v17847_v54 }
 0x47c   : > { %14297 = vmatpush3.bf16.msra.mxu0 %v17848_v56  ;;  %v17070_v17 = vpop.permute.xlu1 %5510 }
 0x47d   : > { %14299 = vmatprep.subr.bf16.mxu0 %v17849_v57 }
 0x480   : > { %14301 = vmatpush3.bf16.msra.mxu0 %v17850_v1  ;;  %v17045_v1 = vpop.permute.xlu0 %5507  ;;  %v17076_v39 = vpop.permute.xlu1 %5769 }
 0x481   : > { %13168 = vmatprep.subr.msk.mxu0 %vm760_vm15, %v11410_v23 }
 0x483   : > { %11395 = vmatmul.mubr.msk.f32.vlgmr.msra.gmra.mrb[56].mxu0 %vm5090_vm10, %v17845_v49  ;;  %vm5104_vm10 = vcmp.eq.s32.totalorder %v17851_v53, %v5089_v50 }
 0x484   : > { %11396 = vmatprep.mubr.msk.f32.mxu0 %vm5093_vm11, %v17845_v49  ;;  %13169 = vmatpush3.msk.msra.mxu0 %vm760_vm15, %v11410_v23  ;;  %vm5096_vm15 = vcmp.eq.s32.totalorder %v17851_v53, %v5077_v34  ;;  %v17048_v33 = vpop.permute.xlu0 %5766 }
 0x487   : > { %11397 = vmatmul.mubr.msk.f32.gmra.mrb[58].mxu0 %vm5092_vm12, %v17845_v49 }
 0x488   : > { %11398 = vmatprep.mubr.msk.f32.mxu0 %vm5095_vm13, %v17845_v49  ;;  %v5946_v48 = vpop.permute.xlu0 %5945 }
 0x489   : > { %vm5950_vm11 = vcmp.eq.s32.totalorder %v17851_v53, %v5946_v48 }
 0x48a   : > { %v5952_v8 = vsel %vm5950_vm11, 1.0, %v17889_v52 }
 0x48b   : > { %11399 = vmatmul.mubr.msk.f32.gmra.mrb[60].mxu0 %vm5094_vm14, %v17845_v49 }
 0x48c   : > { %11400 = vmatprep.mubr.msk.f32.mxu0 %vm5097_vm0, %v17845_v49 }
 0x48f   : > { %11401 = vmatmul.mubr.msk.f32.gmra.mrb[62].mxu0 %vm5096_vm15, %v17845_v49 }
 0x490   : > { %11402 = vmatprep.mubr.msk.f32.mxu0 %vm5099_vm1, %v17845_v49 }
 0x493   : > { %11403 = vmatmul.mubr.msk.f32.gmra.mrb[64].mxu0 %vm5098_vm3, %v17845_v49 }
 0x494   : > { %11404 = vmatprep.mubr.msk.f32.mxu0 %vm5101_vm5, %v17845_v49  ;;  %vm5417_vm5 = vcmp.eq.s32.totalorder %v17851_v53, %v5415_v28 }
 0x497   : > { %11405 = vmatmul.mubr.msk.f32.gmra.mrb[66].mxu0 %vm5100_vm6, %v17845_v49 }
 0x498   : > { %11406 = vmatprep.mubr.msk.f32.mxu0 %vm5103_vm7, %v17845_v49  ;;  %vm5512_vm7 = vcmp.eq.s32.totalorder %v17851_v53, %v17045_v1 }
 0x49b   : > { %11407 = vmatmul.mubr.msk.f32.gmra.mrb[68].mxu0 %vm5102_vm8, %v17845_v49 }
 0x49c   : > { %11408 = vmatprep.mubr.msk.f32.mxu0 %vm5105_vm9, %v17845_v49  ;;  %vm5513_vm9 = vcmp.eq.s32.totalorder %v17851_v53, %v17070_v17 }
 0x49f   : > { %11409 = vmatmul.mubr.msk.f32.gmra.mrb[70].mxu0 %vm5104_vm10, %v17845_v49 }
 0x556   : > { %v12621_v55 = vpop.f32.mrb[56].mxu0 }
 0x557   : > { %v12622_v63 = vpop.f32.mrb[57].mxu0 }
 0x558   : > { %v12623_v61 = vadd.f32 %v12622_v63, %v12621_v55 }
 0x55a   : > { %v12624_v45 = vpop.f32.mrb[58].mxu0  ;;  %13170 = vmatprep.mubr.msk.f32.mxu0 %vm735_vm2, %v12623_v61 }
 0x55b   : > { %v12625_v26 = vpop.f32.mrb[59].mxu0 }
 0x55c   : > { %v12626_v41 = vadd.f32 %v12625_v26, %v12624_v45  ;;  %v5949_v26 = vpop.permute.xlu1 %5948 }
 0x55d   : > { %vm5951_vm6 = vcmp.eq.s32.totalorder %v17851_v53, %v5949_v26 }
 0x55e   : > { %v12627_v32 = vpop.f32.mrb[60].mxu0  ;;  %13171 = vmatmul.mubr.msk.f32.vlgmr.msra.gmra.mrb[16].mxu0 %vm735_vm2, %v12626_v41 }
 0x55f   : > { %v12628_v0 = vpop.f32.mrb[61].mxu0 }
 0x560   : > { %v12629_v54 = vadd.f32 %v12628_v0, %v12627_v32  ;;  %v6125_v0 = vpop.permute.xlu0 %6124 }
 0x561   : > { %vm6129_vm8 = vcmp.eq.s32.totalorder %v17851_v53, %v6125_v0 }
 0x562   : > { %v12630_v56 = vpop.f32.mrb[62].mxu0  ;;  %13173 = vmatprep.mubr.msk.f32.mxu0 %vm735_vm2, %v12629_v54  ;;  %v5419_v54 = vsel %vm5417_vm5, 1.0, %v17889_v52  ;;  %v6131_v1 = vsel %vm6129_vm8, 1.0, %v17889_v52  ;;  %vm5599_vm8 = vcmask 64512  }
 0x563   : > { %v12631_v57 = vpop.f32.mrb[63].mxu0 }
 0x564   : > { %v12632_v49 = vadd.f32 %v12631_v57, %v12630_v56  ;;  %v5953_v56 = vsel %vm5951_vm6, 1.0, %v17889_v52  ;;  %v5514_v57 = vsel %vm5512_vm7, 1.0, %v17889_v52 }
 0x566   : > { %v12633_v20 = vpop.f32.mrb[64].mxu0  ;;  %13174 = vmatmul.mubr.msk.f32.gmra.mrb[18].mxu0 %vm735_vm2, %v12632_v49  ;;  %v17107_v49 = vpop.permute.xlu0 %6303 }
 0x567   : > { %v12634_v6 = vpop.f32.mrb[65].mxu0 }
 0x568   : > { %v12635_v46 = vadd.f32 %v12634_v6, %v12633_v20  ;;  %v6128_v20 = vpop.permute.xlu1 %6127 }
 0x569   : > { %vm6130_vm10 = vcmp.eq.s32.totalorder %v17851_v53, %v6128_v20 }
 0x56a   : > { %v12636_v24 = vpop.f32.mrb[66].mxu0  ;;  %13176 = vmatprep.mubr.msk.f32.mxu0 %vm735_vm2, %v12635_v46  ;;  %v6483_v6 = vpop.permute.xlu0 %6482  ;;  %v5515_v46 = vsel %vm5513_vm9, 1.0, %v17889_v52  ;;  %vm5771_vm9 = vcmp.eq.s32.totalorder %v17851_v53, %v17048_v33 }
 0x56b   : > { %v12637_v11 = vpop.f32.mrb[67].mxu0  ;;  %vm6487_vm11 = vcmp.eq.s32.totalorder %v17851_v53, %v6483_v6  ;;  %v11436_v6 = vld [vmem:[%s17766_s5 + $0x10] sm:$0xff] }
 0x56c   : > { %v12638_v59 = vadd.f32 %v12637_v11, %v12636_v24  ;;  %v6132_v24 = vsel %vm6130_vm10, 1.0, %v17889_v52  ;;  %v6489_v11 = vsel %vm6487_vm11, 1.0, %v17889_v52  ;;  %vm5772_vm10 = vcmp.eq.s32.totalorder %v17851_v53, %v17076_v39 }
 0x56d   : > { %v5774_v33 = vsel %vm5772_vm10, 1.0, %v17889_v52  ;;  %vm6308_vm11 = vcmp.eq.s32.totalorder %v17851_v53, %v17107_v49 }
 0x56e   : > { %v12639_v60 = vpop.f32.mrb[68].mxu0  ;;  %13177 = vmatmul.mubr.msk.f32.gmra.mrb[20].mxu0 %vm735_vm2, %v12638_v59  ;;  %v17132_v59 = vpop.permute.xlu1 %6306 }
 0x56f   : > { %v12640_v2 = vpop.f32.mrb[69].mxu0 }
 0x570   : > { %v12641_v58 = vadd.f32 %v12640_v2, %v12639_v60  ;;  %v17134_v60 = vpop.permute.xlu0 %6661 }
 0x572   : > { %v12642_v36 = vpop.f32.mrb[70].mxu0  ;;  %13179 = vmatprep.mubr.msk.f32.mxu0 %vm735_vm2, %v12641_v58  ;;  %v6486_v2 = vpop.permute.xlu1 %6485 }
 0x573   : > { %v12643_v62 = vpop.f32.mrb[71].mxu0 }
 0x574   : > { %v12644_v5 = vadd.f32 %v12643_v62, %v12642_v36  ;;  %v6841_v48 = vpop.permute.xlu0 %6840 }
 0x576   : > { %13180 = vmatmul.mubr.msk.f32.gmra.mrb[22].mxu0 %vm735_vm2, %v12644_v5  ;;  %v17150_v62 = vpop.permute.xlu1 %6664 }
 0x577   : > { %13270 = vmatprep.mubr.msk.f32.mxu0 %vm5420_vm4, %v5952_v8 }
 0x578   : > { %v7020_v8 = vpop.permute.xlu0 %7019 }
 0x57a   : > { %v6844_v5 = vpop.permute.xlu1 %6843 }
 0x631   : > { %v13172_v14 = vpop.f32.mrb[16].mxu0 }
 0x632   : > { %v5377_v4 = vadd.f32 %v13172_v14, %v11420_v27  ;;  %v5322_v35 = vpop.f32.mrb[17].mxu0 }
 0x633   : > { %v5376_v15 = vadd.f32 %v11420_v27, %v5322_v35  ;;  %v7023_v35 = vpop.permute.xlu1 %7022 }
 0x634   : > { %vm5385_vm12 = vcmp.ge.f32.partialorder %v5377_v4, 0.0  ;;  %v5393_v21 = vmul.f32 0.2, %v5377_v4 }
 0x635   : > { %vm5384_vm13 = vcmp.ge.f32.partialorder %v5376_v15, 0.0  ;;  %v5392_v19 = vmul.f32 0.2, %v5376_v15 }
 0x636   : > { %v5401_v30 = vsel %vm5385_vm12, %v5377_v4, %v5393_v21  ;;  %vm6488_vm12 = vcmp.eq.s32.totalorder %v17851_v53, %v6486_v2  ;;  %v17166_v4 = vpop.permute.xlu0 %7198  ;;  %v11450_v2 = vld [vmem:[%s17766_s5 + $0x20] sm:$0xff] }
 0x637   : > { %v5400_v38 = vsel %vm5384_vm13, %v5376_v15, %v5392_v19  ;;  %vm6845_vm13 = vcmp.eq.s32.totalorder %v17851_v53, %v6841_v48  ;;  %v6490_v58 = vsel %vm6488_vm12, 1.0, %v17889_v52  ;;  %v6310_v48 = vsel %vm6308_vm11, 1.0, %v17889_v52 }
 0x638   : > { %v17060_v29 = vpack.c.bf16 %v5401_v30, %v5400_v38  ;;  %v6847_v36 = vsel %vm6845_vm13, 1.0, %v17889_v52  ;;  %v17182_v30 = vpop.permute.xlu1 %7201  ;;  %vm6309_vm12 = vcmp.eq.s32.totalorder %v17851_v53, %v17132_v59  ;;  %vm6666_vm13 = vcmp.eq.s32.totalorder %v17851_v53, %v17134_v60 }
 0x639   : > { %v13175_v40 = vpop.f32.mrb[18].mxu0  ;;  %v6311_v49 = vsel %vm6309_vm12, 1.0, %v17889_v52  ;;  %v6668_v59 = vsel %vm6666_vm13, 1.0, %v17889_v52 }
 0x63a   : > { %v5379_v43 = vadd.f32 %v13175_v40, %v11420_v27  ;;  %v5332_v10 = vpop.f32.mrb[19].mxu0  ;;  %14303 = vmatprep.subr.bf16.mxu1 %v17060_v29  ;;  %14351 = vmatprep.subr.bf16.mxu0 %v17060_v29  ;;  %v7378_v15 = vpop.permute.xlu0 %7377 }
 0x63b   : > { %v5378_v13 = vadd.f32 %v11420_v27, %v5332_v10  ;;  %14305 = vmatpush3.bf16.msra.mxu1 %v17060_v29  ;;  %14353 = vmatpush3.bf16.msra.mxu0 %v17060_v29 }
 0x63c   : > { %vm5387_vm2 = vcmp.ge.f32.partialorder %v5379_v43, 0.0  ;;  %v5395_v22 = vmul.f32 0.2, %v5379_v43  ;;  %v7381_v38 = vpop.permute.xlu1 %7380 }
 0x63d   : > { %vm5386_vm14 = vcmp.ge.f32.partialorder %v5378_v13, 0.0  ;;  %v5394_v44 = vmul.f32 0.2, %v5378_v13 }
 0x63e   : > { %v5403_v9 = vsel %vm5387_vm2, %v5379_v43, %v5395_v22  ;;  %vm6846_vm2 = vcmp.eq.s32.totalorder %v17851_v53, %v6844_v5  ;;  %v7557_v40 = vpop.permute.xlu0 %7556 }
 0x63f   : > { %v5402_v3 = vsel %vm5386_vm14, %v5378_v13, %v5394_v44  ;;  %vm7024_vm14 = vcmp.eq.s32.totalorder %v17851_v53, %v7020_v8 }
 0x640   : > { %v17066_v16 = vpack.c.bf16 %v5403_v9, %v5402_v3  ;;  %v7026_v14 = vsel %vm7024_vm14, 1.0, %v17889_v52  ;;  %v7560_v22 = vpop.permute.xlu1 %7559  ;;  %v11427_v3 = vld [vmem:[%s17766_s5 + $0x8] sm:$0xff]  ;;  %vm7203_vm14 = vcmp.eq.s32.totalorder %v17851_v53, %v17166_v4 }
 0x641   : > { %v13178_v37 = vpop.f32.mrb[20].mxu0  ;;  %vm7562_vm5 = vcmp.eq.s32.totalorder %v17851_v53, %v7560_v22  ;;  %v11513_v22 = vld [vmem:[%s17766_s5 + $0x68] sm:$0xff] }
 0x642   : > { %v5381_v51 = vadd.f32 %v13178_v37, %v11420_v27  ;;  %v5342_v12 = vpop.f32.mrb[21].mxu0  ;;  %14307 = vmatprep.subr.bf16.mxu1 %v17066_v16  ;;  %14355 = vmatprep.subr.bf16.mxu0 %v17066_v16  ;;  %v17198_v13 = vpop.permute.xlu0 %7735  ;;  %v7564_v44 = vsel %vm7562_vm5, 1.0, %v17889_v52 }
 0x643   : > { %v5380_v7 = vadd.f32 %v11420_v27, %v5342_v12  ;;  %14309 = vmatpush3.bf16.msra.mxu1 %v17066_v16  ;;  %14357 = vmatpush3.bf16.msra.mxu0 %v17066_v16 }
 0x644   : > { %vm5389_vm0 = vcmp.ge.f32.partialorder %v5381_v51, 0.0  ;;  %v5397_v18 = vmul.f32 0.2, %v5381_v51  ;;  %v17217_v37 = vpop.permute.xlu1 %7738 }
 0x645   : > { %vm5388_vm15 = vcmp.ge.f32.partialorder %v5380_v7, 0.0  ;;  %v5396_v23 = vmul.f32 0.2, %v5380_v7 }
 0x646   : > { %v5405_v25 = vsel %vm5389_vm0, %v5381_v51, %v5397_v18  ;;  %vm7025_vm0 = vcmp.eq.s32.totalorder %v17851_v53, %v7023_v35  ;;  %v7915_v28 = vpop.permute.xlu0 %7914  ;;  %v5502_v51 = vld [vmem:[%s17766_s5] sm:$0xff] }
 0x647   : > { %v5404_v31 = vsel %vm5388_vm15, %v5380_v7, %v5396_v23  ;;  %vm7382_vm15 = vcmp.eq.s32.totalorder %v17851_v53, %v7378_v15  ;;  %v7027_v21 = vsel %vm7025_vm0, 1.0, %v17889_v52  ;;  %vm7919_vm6 = vcmp.eq.s32.totalorder %v17851_v53, %v7915_v28  ;;  %v11520_v28 = vld [vmem:[%s17766_s5 + $0x70] sm:$0xff] }
 0x648   : > { %v17074_v34 = vpack.c.bf16 %v5405_v25, %v5404_v31  ;;  %v7384_v19 = vsel %vm7382_vm15, 1.0, %v17889_v52  ;;  %v7921_v9 = vsel %vm7919_vm6, 1.0, %v17889_v52  ;;  %v7918_v12 = vpop.permute.xlu1 %7917  ;;  %vm7204_vm0 = vcmp.eq.s32.totalorder %v17851_v53, %v17182_v30  ;;  %v11506_v30 = vld [vmem:[%s17766_s5 + $0x60] sm:$0xff] }
 0x649   : > { %v13181_v42 = vpop.f32.mrb[22].mxu0  ;;  %vm7920_vm7 = vcmp.eq.s32.totalorder %v17851_v53, %v7918_v12  ;;  %v7206_v4 = vsel %vm7204_vm0, 1.0, %v17889_v52  ;;  %vm7740_vm15 = vcmp.eq.s32.totalorder %v17851_v53, %v17198_v13  ;;  %vm14918_vm6 = vmmov 0  }
 0x64a   : > { %v5383_v47 = vadd.f32 %v13181_v42, %v11420_v27  ;;  %v5352_v50 = vpop.f32.mrb[23].mxu0  ;;  %14311 = vmatprep.subr.bf16.mxu1 %v17074_v34  ;;  %14359 = vmatprep.subr.bf16.mxu0 %v17074_v34  ;;  %v7922_v17 = vsel %vm7920_vm7, 1.0, %v17889_v52 }
 0x64b   : > { %v5382_v55 = vadd.f32 %v11420_v27, %v5352_v50  ;;  %14313 = vmatpush3.bf16.msra.mxu1 %v17074_v34  ;;  %14361 = vmatpush3.bf16.msra.mxu0 %v17074_v34  ;;  %v6848_v27 = vsel %vm6846_vm2, 1.0, %v17889_v52  ;;  %vm6667_vm2 = vcmp.eq.s32.totalorder %v17851_v53, %v17150_v62  ;;  %v11485_v62 = vld [vmem:[%s17766_s5 + $0x48] sm:$0xff] }
 0x64c   : > { %vm5391_vm1 = vcmp.ge.f32.partialorder %v5383_v47, 0.0  ;;  %v5399_v63 = vmul.f32 0.2, %v5383_v47  ;;  %v6669_v60 = vsel %vm6667_vm2, 1.0, %v17889_v52 }
 0x64d   : > { %vm5390_vm3 = vcmp.ge.f32.partialorder %v5382_v55, 0.0  ;;  %v5398_v61 = vmul.f32 0.2, %v5382_v55 }
 0x64e   : > { %v5407_v45 = vsel %vm5391_vm1, %v5383_v47, %v5399_v63  ;;  %vm7383_vm1 = vcmp.eq.s32.totalorder %v17851_v53, %v7381_v38  ;;  %v11499_v38 = vld [vmem:[%s17766_s5 + $0x58] sm:$0xff] }
 0x64f   : > { %v5406_v41 = vsel %vm5390_vm3, %v5382_v55, %v5398_v61  ;;  %vm7561_vm3 = vcmp.eq.s32.totalorder %v17851_v53, %v7557_v40  ;;  %v7385_v43 = vsel %vm7383_vm1, 1.0, %v17889_v52  ;;  %v5773_v55 = vsel %vm5771_vm9, 1.0, %v17889_v52 }
 0x650   : > { %v17082_v32 = vpack.c.bf16 %v5407_v45, %v5406_v41  ;;  %v7563_v10 = vsel %vm7561_vm3, 1.0, %v17889_v52  ;;  %vm7741_vm1 = vcmp.eq.s32.totalorder %v17851_v53, %v17217_v37  ;;  %vm8289_vm9 = vcmask 130048  }
 0x651   : > { %v7743_v13 = vsel %vm7741_vm1, 1.0, %v17889_v52 }
 0x652   : > { %14315 = vmatprep.subr.bf16.mxu1 %v17082_v32  ;;  %14363 = vmatprep.subr.bf16.mxu0 %v17082_v32 }
 0x653   : > { %14317 = vmatpush3.bf16.msra.mxu1 %v17082_v32  ;;  %14365 = vmatpush3.bf16.msra.mxu0 %v17082_v32 }
 0x654   : > { %14319 = vmatprep.subr.bf16.mxu1 %v17060_v29  ;;  %14367 = vmatprep.subr.bf16.mxu0 %v17060_v29 }
 0x656   : > { %13199 = vmatmul.mubr.msk.f32.vlgmr.msra.gmra.mrb[192].mxu1 %vm5420_vm4, %v5419_v54  ;;  %13271 = vmatmul.mubr.msk.f32.vlgmr.msra.gmra.mrb[72].mxu0 %vm5420_vm4, %v5953_v56 }
 0x657   : > { %14321 = vmatpush3.bf16.msra.mxu1 %v17060_v29  ;;  %13217 = vmatprep.mubr.msk.f32.mxu1 %vm5420_vm4, %v5514_v57 }
 0x658   : > { %14369 = vmatpush3.bf16.msra.mxu0 %v17060_v29  ;;  %13294 = vmatprep.mubr.msk.f32.mxu0 %vm5420_vm4, %v6131_v1 }
 0x659   : > { %14323 = vmatprep.subr.bf16.mxu1 %v17066_v16  ;;  %14371 = vmatprep.subr.bf16.mxu0 %v17066_v16 }
 0x65b   : > { %14325 = vmatpush3.bf16.msra.mxu1 %v17066_v16 }
 0x65c   : > { %14373 = vmatpush3.bf16.msra.mxu0 %v17066_v16  ;;  %14327 = vmatprep.subr.bf16.mxu1 %v17074_v34 }
 0x65d   : > { %14375 = vmatprep.subr.bf16.mxu0 %v17074_v34 }
 0x65f   : > { %14329 = vmatpush3.bf16.msra.mxu1 %v17074_v34 }
 0x660   : > { %14377 = vmatpush3.bf16.msra.mxu0 %v17074_v34  ;;  %14331 = vmatprep.subr.bf16.mxu1 %v17082_v32 }
 0x661   : > { %14379 = vmatprep.subr.bf16.mxu0 %v17082_v32 }
 0x663   : > { %14333 = vmatpush3.bf16.msra.mxu1 %v17082_v32 }
 0x664   : > { %14381 = vmatpush3.bf16.msra.mxu0 %v17082_v32  ;;  %13220 = vmatprep.subr.mxu1 %v11427_v3 }
 0x665   : > { %14399 = vmatprep.subr.bf16.mxu0 %v17060_v29 }
 0x666   : > { %13218 = vmatmul.mubr.msk.f32.vlgmr.msra.gmra.mrb[194].mxu1 %vm5420_vm4, %v5515_v46  ;;  %v11443_v46 = vld [vmem:[%s17766_s5 + $0x18] sm:$0xff] }
 0x667   : > { %13295 = vmatmul.mubr.msk.f32.vlgmr.msra.gmra.mrb[74].mxu0 %vm5420_vm4, %v6132_v24  ;;  %13221 = vmatpush3.msra.mxu1 %v11427_v3  ;;  %v8094_v3 = vpop.permute.xlu0 %8093 }
 0x668   : > { %14401 = vmatpush3.bf16.msra.mxu0 %v17060_v29  ;;  %13342 = vmatprep.mubr.msk.f32.mxu0 %vm5420_vm4, %v6489_v11  ;;  %vm8098_vm3 = vcmp.eq.s32.totalorder %v17851_v53, %v8094_v3 }
 0x669   : > { %14403 = vmatprep.subr.bf16.mxu0 %v17066_v16  ;;  %13225 = vmatprep.subr.mxu1 %v5502_v51  ;;  %v8100_v37 = vsel %vm8098_vm3, 1.0, %v17889_v52 }
 0x66c   : > { %14405 = vmatpush3.bf16.msra.mxu0 %v17066_v16 }
 0x66d   : > { %14407 = vmatprep.subr.bf16.mxu0 %v17074_v34 }
 0x670   : > { %14409 = vmatpush3.bf16.msra.mxu0 %v17074_v34 }
 0x671   : > { %14411 = vmatprep.subr.bf16.mxu0 %v17082_v32 }
 0x674   : > { %14413 = vmatpush3.bf16.msra.mxu0 %v17082_v32 }
 0x675   : > { %14431 = vmatprep.subr.bf16.mxu0 %v17060_v29 }
 0x677   : > { %13343 = vmatmul.mubr.msk.f32.vlgmr.msra.gmra.mrb[76].mxu0 %vm5420_vm4, %v6490_v58  ;;  %v11457_v58 = vld [vmem:[%s17766_s5 + $0x28] sm:$0xff] }
 0x678   : > { %14433 = vmatpush3.bf16.msra.mxu0 %v17060_v29  ;;  %13390 = vmatprep.mubr.msk.f32.mxu0 %vm5420_vm4, %v6847_v36  ;;  %v11464_v36 = vld [vmem:[%s17766_s5 + $0x30] sm:$0xff] }
 0x679   : > { %14435 = vmatprep.subr.bf16.mxu0 %v17066_v16 }
 0x67c   : > { %14437 = vmatpush3.bf16.msra.mxu0 %v17066_v16 }
 0x67d   : > { %14439 = vmatprep.subr.bf16.mxu0 %v17074_v34 }
 0x680   : > { %14441 = vmatpush3.bf16.msra.mxu0 %v17074_v34 }
 0x681   : > { %14443 = vmatprep.subr.bf16.mxu0 %v17082_v32 }
 0x684   : > { %14445 = vmatpush3.bf16.msra.mxu0 %v17082_v32 }
 0x685   : > { %14447 = vmatprep.subr.bf16.mxu0 %v17060_v29 }
 0x687   : > { %13391 = vmatmul.mubr.msk.f32.vlgmr.msra.gmra.mrb[78].mxu0 %vm5420_vm4, %v6848_v27  ;;  %v11471_v27 = vld [vmem:[%s17766_s5 + $0x38] sm:$0xff] }
 0x688   : > { %14449 = vmatpush3.bf16.msra.mxu0 %v17060_v29  ;;  %13414 = vmatprep.mubr.msk.f32.mxu0 %vm5420_vm4, %v7026_v14  ;;  %v11478_v14 = vld [vmem:[%s17766_s5 + $0x40] sm:$0xff] }
 0x689   : > { %14451 = vmatprep.subr.bf16.mxu0 %v17066_v16 }
 0x68c   : > { %14453 = vmatpush3.bf16.msra.mxu0 %v17066_v16 }
 0x68d   : > { %14455 = vmatprep.subr.bf16.mxu0 %v17074_v34 }
 0x690   : > { %14457 = vmatpush3.bf16.msra.mxu0 %v17074_v34 }
 0x691   : > { %14459 = vmatprep.subr.bf16.mxu0 %v17082_v32 }
 0x694   : > { %14461 = vmatpush3.bf16.msra.mxu0 %v17082_v32 }
 0x695   : > { %14479 = vmatprep.subr.bf16.mxu0 %v17060_v29 }
 0x697   : > { %13415 = vmatmul.mubr.msk.f32.vlgmr.msra.gmra.mrb[80].mxu0 %vm5420_vm4, %v7027_v21  ;;  %v7205_v21 = vsel %vm7203_vm14, 1.0, %v17889_v52 }
 0x698   : > { %14481 = vmatpush3.bf16.msra.mxu0 %v17060_v29  ;;  %13462 = vmatprep.mubr.msk.f32.mxu0 %vm5420_vm4, %v7384_v19  ;;  %v11492_v19 = vld [vmem:[%s17766_s5 + $0x50] sm:$0xff] }
 0x699   : > { %14483 = vmatprep.subr.bf16.mxu0 %v17066_v16 }
 0x69c   : > { %14485 = vmatpush3.bf16.msra.mxu0 %v17066_v16 }
 0x69d   : > { %14487 = vmatprep.subr.bf16.mxu0 %v17074_v34 }
 0x6a0   : > { %14489 = vmatpush3.bf16.msra.mxu0 %v17074_v34 }
 0x6a1   : > { %14491 = vmatprep.subr.bf16.mxu0 %v17082_v32 }
 0x6a4   : > { %14493 = vmatpush3.bf16.msra.mxu0 %v17082_v32 }
 0x6a5   : > { %14495 = vmatprep.subr.bf16.mxu0 %v17060_v29 }
 0x6a7   : > { %13463 = vmatmul.mubr.msk.f32.vlgmr.msra.gmra.mrb[82].mxu0 %vm5420_vm4, %v7385_v43 }
 0x6a8   : > { %14497 = vmatpush3.bf16.msra.mxu0 %v17060_v29  ;;  %13486 = vmatprep.mubr.msk.f32.mxu0 %vm5420_vm4, %v7563_v10  ;;  %v7742_v10 = vsel %vm7740_vm15, 1.0, %v17889_v52 }
 0x6a9   : > { %14499 = vmatprep.subr.bf16.mxu0 %v17066_v16 }
 0x6ac   : > { %14501 = vmatpush3.bf16.msra.mxu0 %v17066_v16 }
 0x6ad   : > { %14503 = vmatprep.subr.bf16.mxu0 %v17074_v34 }
 0x6b0   : > { %14505 = vmatpush3.bf16.msra.mxu0 %v17074_v34 }
 0x6b1   : > { %14507 = vmatprep.subr.bf16.mxu0 %v17082_v32 }
 0x6b4   : > { %14509 = vmatpush3.bf16.msra.mxu0 %v17082_v32 }
 0x6b5   : > { %14527 = vmatprep.subr.bf16.mxu0 %v17060_v29 }
 0x6b7   : > { %13487 = vmatmul.mubr.msk.f32.vlgmr.msra.gmra.mrb[84].mxu0 %vm5420_vm4, %v7564_v44 }
 0x6b8   : > { %14529 = vmatpush3.bf16.msra.mxu0 %v17060_v29  ;;  %13534 = vmatprep.mubr.msk.f32.mxu0 %vm5420_vm4, %v7921_v9 }
 0x6b9   : > { %14531 = vmatprep.subr.bf16.mxu0 %v17066_v16 }
 0x6bc   : > { %14533 = vmatpush3.bf16.msra.mxu0 %v17066_v16 }
 0x6bd   : > { %14535 = vmatprep.subr.bf16.mxu0 %v17074_v34 }
 0x6c0   : > { %14537 = vmatpush3.bf16.msra.mxu0 %v17074_v34 }
 0x6c1   : > { %14539 = vmatprep.subr.bf16.mxu0 %v17082_v32 }
 0x6c4   : > { %14541 = vmatpush3.bf16.msra.mxu0 %v17082_v32 }
 0x6c7   : > { %13535 = vmatmul.mubr.msk.f32.vlgmr.msra.gmra.mrb[86].mxu0 %vm5420_vm4, %v7922_v17 }
 0x6c8   : > { %13570 = vmatprep.mubr.msk.f32.mxu0 %vm14918_vm6, %v17889_v52 }
 0x729   : > { %v13200_v7 = vpop.f32.mrb[192].mxu1  ;;  %v13272_v18 = vpop.f32.mrb[72].mxu0 }
 0x72a   : > { %v5493_v23 = vpop.f32.mrb[193].mxu1  ;;  %v6026_v25 = vpop.f32.mrb[73].mxu0 }
 0x739   : > { %v13219_v31 = vpop.f32.mrb[194].mxu1 }
 0x73a   : > { %v13296_v42 = vpop.f32.mrb[74].mxu0  ;;  %v5588_v47 = vpop.f32.mrb[195].mxu1 }
 0x73b   : > { %v6205_v50 = vpop.f32.mrb[75].mxu0  ;;  %13222 = vmatprep.mubr.msk.f32.mxu1 %vm5599_vm8, %v5588_v47  ;;  %v8286_v47 = vpop.permute.xlu0 %8285 }
 0x73c   : > { %13223 = vmatmul.mubr.msk.f32.vlgmr.msra.gmra.mrb[196].mxu1 %vm5599_vm8, %v13219_v31 }
 0x73d   : > { %13226 = vmatpush3.msra.mxu1 %v5502_v51  ;;  %13227 = vmatprep.mubr.msk.f32.mxu1 %vm5599_vm8, %v5493_v23  ;;  %v8097_v51 = vpop.permute.xlu1 %8096 }
 0x73e   : > { %14335 = vmatprep.subr.bf16.mxu1 %v17060_v29  ;;  %vm8099_vm5 = vcmp.eq.s32.totalorder %v17851_v53, %v8097_v51  ;;  %v11545_v51 = vld [vmem:[%s17769_s8 + $0x30] sm:$0xff] }
 0x73f   : > { %v8101_v12 = vsel %vm8099_vm5, 1.0, %v17889_v52 }
 0x744   : > { %13228 = vmatmul.mubr.msk.f32.vlgmr.msra.gmra.mrb[196].mxu1 %vm5599_vm8, %v13200_v7 }
 0x745   : > { %14337 = vmatpush3.bf16.msra.mxu1 %v17060_v29  ;;  %13246 = vmatprep.mubr.msk.f32.mxu1 %vm5420_vm4, %v5773_v55 }
 0x746   : > { %14339 = vmatprep.subr.bf16.mxu1 %v17066_v16 }
 0x749   : > { %14341 = vmatpush3.bf16.msra.mxu1 %v17066_v16 }
 0x74a   : > { %14343 = vmatprep.subr.bf16.mxu1 %v17074_v34  ;;  %v17243_v63 = vpop.f32.mrb[76].mxu0 }
 0x74b   : > { %v6563_v61 = vpop.f32.mrb[77].mxu0 }
 0x74d   : > { %14345 = vmatpush3.bf16.msra.mxu1 %v17074_v34 }
 0x74e   : > { %14347 = vmatprep.subr.bf16.mxu1 %v17082_v32 }
 0x751   : > { %14349 = vmatpush3.bf16.msra.mxu1 %v17082_v32 }
 0x752   : > { %13249 = vmatprep.subr.mxu1 %v11436_v6 }
 0x754   : > { %13247 = vmatmul.mubr.msk.f32.vlgmr.msra.gmra.mrb[198].mxu1 %vm5420_vm4, %v5774_v33 }
 0x755   : > { %13250 = vmatpush3.msra.mxu1 %v11436_v6 }
 0x756   : > { %13273 = vmatprep.subr.mxu1 %v11443_v46 }
 0x75a   : > { %v17252_v45 = vpop.f32.mrb[78].mxu0 }
 0x75b   : > { %v17254_v26 = vpop.f32.mrb[79].mxu0 }
 0x76a   : > { %v17256_v41 = vpop.f32.mrb[80].mxu0 }
 0x76b   : > { %v17258_v0 = vpop.f32.mrb[81].mxu0 }
 0x77a   : > { %v17260_v54 = vpop.f32.mrb[82].mxu0 }
 0x77b   : > { %v17262_v56 = vpop.f32.mrb[83].mxu0 }
 0x78a   : > { %v17264_v57 = vpop.f32.mrb[84].mxu0 }
 0x78b   : > { %v17266_v39 = vpop.f32.mrb[85].mxu0 }
 0x79a   : > { %v17268_v1 = vpop.f32.mrb[86].mxu0 }
 0x79b   : > { %v17270_v20 = vpop.f32.mrb[87].mxu0 }
 0x827   : > { %v13248_v24 = vpop.f32.mrb[198].mxu1 }
 0x828   : > { %v5847_v11 = vpop.f32.mrb[199].mxu1 }
 0x829   : > { %13251 = vmatprep.mubr.msk.f32.mxu1 %vm5599_vm8, %v5847_v11 }
 0x82a   : > { %13252 = vmatmul.mubr.msk.f32.vlgmr.msra.gmra.mrb[196].mxu1 %vm5599_vm8, %v13248_v24 }
 0x82b   : > { %13275 = vmatprep.mubr.msk.f32.mxu1 %vm5599_vm8, %v6026_v25  ;;  %13274 = vmatpush3.msra.mxu1 %v11443_v46  ;;  %v8598_v46 = vpop.permute.xlu0 %8597 }
 0x82c   : > { %13297 = vmatprep.subr.mxu1 %v11450_v2  ;;  %vm8599_vm11 = vcmp.eq.s32.totalorder %v17851_v53, %v8598_v46 }
 0x82d   : > { %v8600_v11 = vsel %vm8599_vm11, 1.0, %v17889_v52 }
 0x832   : > { %13276 = vmatmul.mubr.msk.f32.vlgmr.msra.gmra.mrb[196].mxu1 %vm5599_vm8, %v13272_v18 }
 0x833   : > { %13298 = vmatpush3.msra.mxu1 %v11450_v2  ;;  %13299 = vmatprep.mubr.msk.f32.mxu1 %vm5599_vm8, %v6205_v50  ;;  %v8912_v2 = vpop.permute.xlu0 %8911 }
 0x834   : > { %14383 = vmatprep.subr.bf16.mxu1 %v17060_v29  ;;  %vm8913_vm13 = vcmp.eq.s32.totalorder %v17851_v53, %v8912_v2  ;;  %v11576_v2 = vld [vmem:[%s17769_s8 + $0x98] sm:$0xff] }
 0x83a   : > { %13300 = vmatmul.mubr.msk.f32.vlgmr.msra.gmra.mrb[196].mxu1 %vm5599_vm8, %v13296_v42 }
 0x83b   : > { %14385 = vmatpush3.bf16.msra.mxu1 %v17060_v29  ;;  %13318 = vmatprep.mubr.msk.f32.mxu1 %vm5420_vm4, %v6310_v48 }
 0x83c   : > { %14387 = vmatprep.subr.bf16.mxu1 %v17066_v16 }
 0x83f   : > { %14389 = vmatpush3.bf16.msra.mxu1 %v17066_v16 }
 0x840   : > { %14391 = vmatprep.subr.bf16.mxu1 %v17074_v34 }
 0x843   : > { %14393 = vmatpush3.bf16.msra.mxu1 %v17074_v34 }
 0x844   : > { %14395 = vmatprep.subr.bf16.mxu1 %v17082_v32 }
 0x847   : > { %14397 = vmatpush3.bf16.msra.mxu1 %v17082_v32 }
 0x848   : > { %13321 = vmatprep.subr.mxu1 %v11457_v58 }
 0x84a   : > { %13319 = vmatmul.mubr.msk.f32.vlgmr.msra.gmra.mrb[200].mxu1 %vm5420_vm4, %v6311_v49 }
 0x84b   : > { %13322 = vmatpush3.msra.mxu1 %v11457_v58  ;;  %v8914_v58 = vsel %vm8913_vm13, 1.0, %v17889_v52 }
 0x84c   : > { %13345 = vmatprep.subr.mxu1 %v11464_v36 }
 0x91d   : > { %v13320_v5 = vpop.f32.mrb[200].mxu1 }
 0x91e   : > { %v6384_v8 = vpop.f32.mrb[201].mxu1 }
 0x91f   : > { %13323 = vmatprep.mubr.msk.f32.mxu1 %vm5599_vm8, %v6384_v8 }
 0x920   : > { %13324 = vmatmul.mubr.msk.f32.vlgmr.msra.gmra.mrb[196].mxu1 %vm5599_vm8, %v13320_v5 }
 0x921   : > { %13346 = vmatpush3.msra.mxu1 %v11464_v36  ;;  %13347 = vmatprep.mubr.msk.f32.mxu1 %vm5599_vm8, %v6563_v61  ;;  %v8369_v61 = vpop.permute.xlu1 %8368  ;;  %v9226_v36 = vpop.permute.xlu0 %9225 }
 0x922   : > { %14415 = vmatprep.subr.bf16.mxu1 %v17060_v29  ;;  %vm8370_vm10 = vcmp.eq.s32.totalorder %v17851_v53, %v8369_v61  ;;  %vm9227_vm14 = vcmp.eq.s32.totalorder %v17851_v53, %v9226_v36  ;;  %v11560_v61 = vld [vmem:[%s17769_s8 + $0x60] sm:$0xff] }
 0x923   : > { %v11580_v36 = vld [vmem:[%s17769_s8 + $0xa0] sm:$0xff] }
 0x925   : > { %v8755_v24 = vpop.permute.xlu1 %8754 }
 0x926   : > { %vm8756_vm12 = vcmp.eq.s32.totalorder %v17851_v53, %v8755_v24 }
 0x927   : > { %v8757_v48 = vsel %vm8756_vm12, 1.0, %v17889_v52 }
 0x928   : > { %13348 = vmatmul.mubr.msk.f32.vlgmr.msra.gmra.mrb[196].mxu1 %vm5599_vm8, %v17243_v63 }
 0x929   : > { %14417 = vmatpush3.bf16.msra.mxu1 %v17060_v29  ;;  %13366 = vmatprep.mubr.msk.f32.mxu1 %vm5420_vm4, %v6668_v59  ;;  %v9069_v49 = vpop.permute.xlu1 %9068  ;;  %v9228_v59 = vsel %vm9227_vm14, 1.0, %v17889_v52 }
 0x92a   : > { %14419 = vmatprep.subr.bf16.mxu1 %v17066_v16  ;;  %vm9070_vm2 = vcmp.eq.s32.totalorder %v17851_v53, %v9069_v49 }
 0x92b   : > { %v9071_v5 = vsel %vm9070_vm2, 1.0, %v17889_v52 }
 0x92d   : > { %14421 = vmatpush3.bf16.msra.mxu1 %v17066_v16  ;;  %v9383_v8 = vpop.permute.xlu1 %9382 }
 0x92e   : > { %14423 = vmatprep.subr.bf16.mxu1 %v17074_v34  ;;  %vm9384_vm0 = vcmp.eq.s32.totalorder %v17851_v53, %v9383_v8 }
 0x931   : > { %14425 = vmatpush3.bf16.msra.mxu1 %v17074_v34 }
 0x932   : > { %14427 = vmatprep.subr.bf16.mxu1 %v17082_v32 }
 0x935   : > { %14429 = vmatpush3.bf16.msra.mxu1 %v17082_v32 }
 0x936   : > { %13369 = vmatprep.subr.mxu1 %v11471_v27 }
 0x938   : > { %13367 = vmatmul.mubr.msk.f32.vlgmr.msra.gmra.mrb[202].mxu1 %vm5420_vm4, %v6669_v60  ;;  %v9540_v60 = vpop.permute.xlu0 %9539 }
 0x939   : > { %13370 = vmatpush3.msra.mxu1 %v11471_v27  ;;  %v9385_v27 = vsel %vm9384_vm0, 1.0, %v17889_v52  ;;  %vm9541_vm15 = vcmp.eq.s32.totalorder %v17851_v53, %v9540_v60 }
 0x93a   : > { %13393 = vmatprep.subr.mxu1 %v11478_v14 }
 0xa0b   : > { %v13368_v35 = vpop.f32.mrb[202].mxu1 }
 0xa0c   : > { %v6742_v15 = vpop.f32.mrb[203].mxu1 }
 0xa0d   : > { %13371 = vmatprep.mubr.msk.f32.mxu1 %vm5599_vm8, %v6742_v15  ;;  %v9854_v15 = vpop.permute.xlu0 %9853 }
 0xa0e   : > { %13372 = vmatmul.mubr.msk.f32.vlgmr.msra.gmra.mrb[196].mxu1 %vm5599_vm8, %v13368_v35  ;;  %v9542_v35 = vsel %vm9541_vm15, 1.0, %v17889_v52  ;;  %vm9855_vm3 = vcmp.eq.s32.totalorder %v17851_v53, %v9854_v15 }
 0xa0f   : > { %13395 = vmatprep.mubr.msk.f32.mxu1 %vm5599_vm8, %v17254_v26  ;;  %13394 = vmatpush3.msra.mxu1 %v11478_v14  ;;  %v11534_v26 = vld [vmem:[%s17769_s8 + $0x10] sm:$0xff]  ;;  %v9697_v14 = vpop.permute.xlu1 %9696 }
 0xa10   : > { %13417 = vmatprep.subr.mxu1 %v11485_v62  ;;  %vm9698_vm1 = vcmp.eq.s32.totalorder %v17851_v53, %v9697_v14  ;;  %v11586_v14 = vld [vmem:[%s17769_s8 + $0xb8] sm:$0xff] }
 0xa16   : > { %13396 = vmatmul.mubr.msk.f32.vlgmr.msra.gmra.mrb[196].mxu1 %vm5599_vm8, %v17252_v45  ;;  %v8371_v45 = vsel %vm8370_vm10, 1.0, %v17889_v52 }
 0xa17   : > { %13418 = vmatpush3.msra.mxu1 %v11485_v62  ;;  %13419 = vmatprep.mubr.msk.f32.mxu1 %vm5599_vm8, %v17258_v0  ;;  %v9699_v62 = vsel %vm9698_vm1, 1.0, %v17889_v52 }
 0xa18   : > { %14463 = vmatprep.subr.bf16.mxu1 %v17060_v29 }
 0xa1e   : > { %13420 = vmatmul.mubr.msk.f32.vlgmr.msra.gmra.mrb[196].mxu1 %vm5599_vm8, %v17256_v41  ;;  %v11535_v41 = vld [vmem:[%s17769_s8 + $0x18] sm:$0xff] }
 0xa1f   : > { %14465 = vmatpush3.bf16.msra.mxu1 %v17060_v29  ;;  %13438 = vmatprep.mubr.msk.f32.mxu1 %vm5420_vm4, %v7205_v21  ;;  %v14565_v0 = vpack.c.bf16 %v11535_v41, %v11534_v26  ;;  %v10011_v21 = vpop.permute.xlu1 %10010 }
 0xa20   : > { %14467 = vmatprep.subr.bf16.mxu1 %v17066_v16  ;;  %vm10012_vm5 = vcmp.eq.s32.totalorder %v17851_v53, %v10011_v21  ;;  %v11590_v21 = vld [vmem:[%s17769_s8 + $0xc0] sm:$0xff] }
 0xa23   : > { %14469 = vmatpush3.bf16.msra.mxu1 %v17066_v16 }
 0xa24   : > { %14471 = vmatprep.subr.bf16.mxu1 %v17074_v34 }
 0xa27   : > { %14473 = vmatpush3.bf16.msra.mxu1 %v17074_v34 }
 0xa28   : > { %14475 = vmatprep.subr.bf16.mxu1 %v17082_v32 }
 0xa2b   : > { %14477 = vmatpush3.bf16.msra.mxu1 %v17082_v32 }
 0xa2c   : > { %13441 = vmatprep.subr.mxu1 %v11492_v19 }
 0xa2e   : > { %13439 = vmatmul.mubr.msk.f32.vlgmr.msra.gmra.mrb[204].mxu1 %vm5420_vm4, %v7206_v4  ;;  %v9856_v4 = vsel %vm9855_vm3, 1.0, %v17889_v52 }
 0xa2f   : > { %13442 = vmatpush3.msra.mxu1 %v11492_v19  ;;  %v10168_v19 = vpop.permute.xlu0 %10167 }
 0xa30   : > { %13465 = vmatprep.subr.mxu1 %v11499_v38 }
 0xb01   : > { %v13440_v40 = vpop.f32.mrb[204].mxu1 }
 0xb02   : > { %v7279_v43 = vpop.f32.mrb[205].mxu1 }
 0xb03   : > { %13443 = vmatprep.mubr.msk.f32.mxu1 %vm5599_vm8, %v7279_v43 }
 0xb04   : > { %13444 = vmatmul.mubr.msk.f32.vlgmr.msra.gmra.mrb[196].mxu1 %vm5599_vm8, %v13440_v40  ;;  %v10325_v40 = vpop.permute.xlu1 %10324 }
 0xb05   : > { %13467 = vmatprep.mubr.msk.f32.mxu1 %vm5599_vm8, %v17262_v56  ;;  %13466 = vmatpush3.msra.mxu1 %v11499_v38  ;;  %v8364_v56 = vld [vmem:[%s17769_s8 + $0x8] sm:$0xff]  ;;  %v10013_v38 = vsel %vm10012_vm5, 1.0, %v17889_v52 }
 0xb06   : > { %13489 = vmatprep.subr.mxu1 %v11506_v30 }
 0xb0c   : > { %13468 = vmatmul.mubr.msk.f32.vlgmr.msra.gmra.mrb[196].mxu1 %vm5599_vm8, %v17260_v54  ;;  %v8363_v54 = vld [vmem:[%s17769_s8] sm:$0xff] }
 0xb0d   : > { %13490 = vmatpush3.msra.mxu1 %v11506_v30  ;;  %13491 = vmatprep.mubr.msk.f32.mxu1 %vm5599_vm8, %v17266_v39  ;;  %v10482_v30 = vpop.permute.xlu0 %10481 }
 0xb0e   : > { %14511 = vmatprep.subr.bf16.mxu1 %v17060_v29 }
 0xb14   : > { %13492 = vmatmul.mubr.msk.f32.vlgmr.msra.gmra.mrb[196].mxu1 %vm5599_vm8, %v17264_v57 }
 0xb15   : > { %14513 = vmatpush3.bf16.msra.mxu1 %v17060_v29  ;;  %13510 = vmatprep.mubr.msk.f32.mxu1 %vm5420_vm4, %v7742_v10 }
 0xb16   : > { %14515 = vmatprep.subr.bf16.mxu1 %v17066_v16 }
 0xb19   : > { %14517 = vmatpush3.bf16.msra.mxu1 %v17066_v16 }
 0xb1a   : > { %14519 = vmatprep.subr.bf16.mxu1 %v17074_v34 }
 0xb1d   : > { %14521 = vmatpush3.bf16.msra.mxu1 %v17074_v34 }
 0xb1e   : > { %14523 = vmatprep.subr.bf16.mxu1 %v17082_v32 }
 0xb21   : > { %14525 = vmatpush3.bf16.msra.mxu1 %v17082_v32 }
 0xb22   : > { %13513 = vmatprep.subr.mxu1 %v11513_v22 }
 0xb24   : > { %13511 = vmatmul.mubr.msk.f32.vlgmr.msra.gmra.mrb[206].mxu1 %vm5420_vm4, %v7743_v13  ;;  %v10639_v13 = vpop.permute.xlu1 %10638 }
 0xb25   : > { %13514 = vmatpush3.msra.mxu1 %v11513_v22  ;;  %vm10640_vm10 = vcmp.eq.s32.totalorder %v17851_v53, %v10639_v13 }
 0xb26   : > { %13537 = vmatprep.subr.mxu1 %v11520_v28 }
 0xbf7   : > { %v13512_v44 = vpop.f32.mrb[206].mxu1 }
 0xbf8   : > { %v7816_v9 = vpop.f32.mrb[207].mxu1 }
 0xbf9   : > { %13515 = vmatprep.mubr.msk.f32.mxu1 %vm5599_vm8, %v7816_v9  ;;  %v11541_v9 = vld [vmem:[%s17769_s8 + $0x28] sm:$0xff] }
 0xbfa   : > { %13516 = vmatmul.mubr.msk.f32.vlgmr.msra.gmra.mrb[196].mxu1 %vm5599_vm8, %v13512_v44  ;;  %v11540_v44 = vld [vmem:[%s17769_s8 + $0x20] sm:$0xff] }
 0xbfb   : > { %13538 = vmatpush3.msra.mxu1 %v11520_v28  ;;  %13539 = vmatprep.mubr.msk.f32.mxu1 %vm5599_vm8, %v17270_v20  ;;  %v10641_v28 = vsel %vm10640_vm10, 1.0, %v17889_v52 }
 0xbfc   : > { %14543 = vmatprep.subr.bf16.mxu1 %v17060_v29 }
 0xc02   : > { %13540 = vmatmul.mubr.msk.f32.vlgmr.msra.gmra.mrb[196].mxu1 %vm5599_vm8, %v17268_v1  ;;  %v14568_v1 = vpack.c.bf16 %v8364_v56, %v8363_v54  ;;  %v11566_v54 = vld [vmem:[%s17769_s8 + $0x78] sm:$0xff] }
 0xc03   : > { %14545 = vmatpush3.bf16.msra.mxu1 %v17060_v29  ;;  %13558 = vmatprep.mubr.msk.f32.mxu1 %vm5420_vm4, %v8100_v37  ;;  %v11527_v29 = vld [vmem:[%s17766_s5 + $0x78] sm:$0xff] }
 0xc04   : > { %14547 = vmatprep.subr.bf16.mxu1 %v17066_v16 }
 0xc07   : > { %14549 = vmatpush3.bf16.msra.mxu1 %v17066_v16 }
 0xc08   : > { %14551 = vmatprep.subr.bf16.mxu1 %v17074_v34 }
 0xc0b   : > { %14553 = vmatpush3.bf16.msra.mxu1 %v17074_v34  ;;  %v14917_v34 = vmov 0.0|0.0  }
 0xc0c   : > { %14555 = vmatprep.subr.bf16.mxu1 %v17082_v32  ;;  %14558 = vmatprep.subr.bf16.mxu0 %v14917_v34 }
 0xc0f   : > { %14557 = vmatpush3.bf16.msra.mxu1 %v17082_v32  ;;  %v11530_v32 = vld [vmem:[%s17767_s6] ss:$0 sm:$0xff] }
 0xc10   : > { %13561 = vmatprep.subr.mxu1 %v11527_v29 }
 0xc12   : > { %13559 = vmatmul.mubr.msk.f32.vlgmr.msra.gmra.mrb[208].mxu1 %vm5420_vm4, %v8101_v12  ;;  %v11546_v12 = vld [vmem:[%s17769_s8 + $0x38] sm:$0xff] }
 0xc13   : > { %13562 = vmatpush3.msra.mxu1 %v11527_v29 }
 0xc14   : > { %14573 = vmatprep.subr.bf16.mxu1 %v14917_v34 }
 0xce5   : > { %v13560_v16 = vpop.f32.mrb[208].mxu1 }
 0xce6   : > { %v8174_v17 = vpop.f32.mrb[209].mxu1 }
 0xce7   : > { %13563 = vmatprep.mubr.msk.f32.mxu1 %vm5599_vm8, %v8174_v17 }
 0xce8   : > { %13564 = vmatmul.mubr.msk.f32.vlgmr.msra.gmra.mrb[196].mxu1 %vm5599_vm8, %v13560_v16  ;;  %vm8287_vm8 = vcmp.eq.s32.totalorder %v17851_v53, %v8286_v47  ;;  %v11556_v47 = vld [vmem:[%s17769_s8 + $0x58] sm:$0xff] }
 0xce9   : > { %13605 = vmatprep.mubr.msk.f32.mxu1 %vm14918_vm6, %v17889_v52  ;;  %v8288_v33 = vsel %vm8287_vm8, 1.0, %v17889_v52  ;;  %vm10483_vm8 = vcmp.eq.s32.totalorder %v17851_v53, %v10482_v30  ;;  %v11596_v30 = vld [vmem:[%s17769_s8 + $0xd8] sm:$0xff] }
 0xcea   : > { %v10484_v22 = vsel %vm10483_vm8, 1.0, %v17889_v52 }
 0xdbb   : > { %v13565_v7 = vpop.f32.mrb[196].mxu1 }
 0xdbc   : > { %v8276_v18 = vadd.f32 %v13565_v7, %v11530_v32  ;;  %v8257_v23 = vpop.f32.mrb[197].mxu1  ;;  %v11550_v7 = vld [vmem:[%s17769_s8 + $0x40] sm:$0xff] }
 0xdbd   : > { %v8275_v25 = vadd.f32 %v11530_v32, %v8257_v23  ;;  %v14580_v32 = vpack.c.bf16 %v11546_v12, %v11545_v51  ;;  %v11606_v51 = vld [vmem:[%s17769_s8 + $0xf8] sm:$0xff] }
 0xdbe   : > { %vm8278_vm4 = vcmp.ge.f32.partialorder %v8276_v18, 0.0  ;;  %v8280_v31 = vmul.f32 0.2, %v8276_v18 }
 0xdbf   : > { %vm8277_vm7 = vcmp.ge.f32.partialorder %v8275_v25, 0.0  ;;  %v8279_v42 = vmul.f32 0.2, %v8275_v25 }
 0xdc0   : > { %v8282_v50 = vsel %vm8278_vm4, %v8276_v18, %v8280_v31  ;;  %vm10169_vm4 = vcmp.eq.s32.totalorder %v17851_v53, %v10168_v19  ;;  %v11551_v18 = vld [vmem:[%s17769_s8 + $0x48] sm:$0xff] }
 0xdc1   : > { %v8281_v55 = vsel %vm8277_vm7, %v8275_v25, %v8279_v42  ;;  %v10170_v43 = vsel %vm10169_vm4, 1.0, %v17889_v52  ;;  %vm10326_vm7 = vcmp.eq.s32.totalorder %v17851_v53, %v10325_v40  ;;  %v14574_v53 = vpack.c.bf16 %v11541_v9, %v11540_v44  ;;  %v11555_v42 = vld [vmem:[%s17769_s8 + $0x50] sm:$0xff]  ;;  %v11601_v44 = vld [vmem:[%s17769_s8 + $0xe8] sm:$0xff] }
 0xdc2   : > { %v17440_v63 = vpack.c.bf16 %v8282_v50, %v8281_v55  ;;  %v10327_v10 = vsel %vm10326_vm7, 1.0, %v17889_v52  ;;  %v14586_v31 = vpack.c.bf16 %v11551_v18, %v11550_v7 }
 0xdc3   : > { %14575 = vmatpush3.bf16.msra.mxu1 %v14574_v53 }
 0xdc4   : > { %14560 = vmatpush3.bf16.msra.mxu0 %v17440_v63  ;;  %14579 = vmatprep.subr.bf16.mxu1 %v14917_v34 }
 0xdc5   : > { %14561 = vmatprep.subr.bf16.mxu0 %v14917_v34 }
 0xdc7   : > { %13571 = vmatmul.mubr.msk.f32.vlgmr.msra.gmra.mrb[88].mxu0 %vm8289_vm9, %v8288_v33  ;;  %v11561_v33 = vld [vmem:[%s17769_s8 + $0x68] sm:$0xff] }
 0xdc8   : > { %14563 = vmatpush3.bf16.msra.mxu0 %v17440_v63  ;;  %13577 = vmatprep.mubr.msk.f32.mxu0 %vm14918_vm6, %v17889_v52  ;;  %v14598_v41 = vpack.c.bf16 %v11561_v33, %v11560_v61 }
 0xdc9   : > { %14564 = vmatprep.subr.bf16.mxu0 %v14917_v34 }
 0xdcb   : > { %13578 = vmatmul.mubr.msk.f32.vlgmr.msra.gmra.mrb[90].mxu0 %vm8289_vm9, %v8371_v45 }
 0xdcc   : > { %13584 = vmatprep.mubr.msk.f32.mxu0 %vm14918_vm6, %v17889_v52  ;;  %14566 = vmatpush3.bf16.msra.mxu0 %v14565_v0  ;;  %v11565_v0 = vld [vmem:[%s17769_s8 + $0x70] sm:$0xff] }
 0xdcd   : > { %14567 = vmatprep.subr.bf16.mxu0 %v14917_v34 }
 0xe9a   : > { %v8359_v57 = vpop.f32.mrb[88].mxu0 }
 0xe9b   : > { %v13572_v39 = vpop.f32.mrb[89].mxu0 }
 0xe9c   : > { %v14604_v39 = vpack.c.bf16 %v11566_v54, %v11565_v0 }
 0xe9e   : > { %v8441_v20 = vpop.f32.mrb[90].mxu0 }
 0xe9f   : > { %v13579_v6 = vpop.f32.mrb[91].mxu0  ;;  %13585 = vmatmul.mubr.msk.f32.vlgmr.msra.gmra.mrb[92].mxu0 %vm8289_vm9, %v8441_v20  ;;  %v11571_v20 = vld [vmem:[%s17769_s8 + $0x88] sm:$0xff] }
 0xea0   : > { %14569 = vmatpush3.bf16.msra.mxu0 %v14568_v1  ;;  %13591 = vmatprep.mubr.msk.f32.mxu0 %vm14918_vm6, %v17889_v52  ;;  %v11570_v1 = vld [vmem:[%s17769_s8 + $0x80] sm:$0xff] }
 0xea1   : > { %14570 = vmatprep.subr.bf16.mxu0 %v14917_v34  ;;  %v14610_v24 = vpack.c.bf16 %v11571_v20, %v11570_v1 }
 0xea3   : > { %13592 = vmatmul.mubr.msk.f32.vlgmr.msra.gmra.mrb[94].mxu0 %vm8289_vm9, %v8359_v57 }
 0xea4   : > { %14572 = vmatpush3.bf16.msra.mxu0 %v17440_v63  ;;  %13598 = vmatprep.mubr.msk.f32.mxu0 %vm14918_vm6, %v17889_v52 }
 0xea5   : > { %14576 = vmatprep.subr.bf16.mxu0 %v14917_v34 }
 0xea7   : > { %13599 = vmatmul.mubr.msk.f32.vlgmr.msra.gmra.mrb[96].mxu0 %vm8289_vm9, %v8600_v11  ;;  %v11575_v11 = vld [vmem:[%s17769_s8 + $0x90] sm:$0xff] }
 0xea8   : > { %14578 = vmatpush3.bf16.msra.mxu0 %v17440_v63  ;;  %13612 = vmatprep.mubr.msk.f32.mxu0 %vm14918_vm6, %v17889_v52 }
 0xea9   : > { %14582 = vmatprep.subr.bf16.mxu0 %v14917_v34 }
 0xeab   : > { %13613 = vmatmul.mubr.msk.f32.vlgmr.msra.gmra.mrb[98].mxu0 %vm8289_vm9, %v8757_v48 }
 0xeac   : > { %14584 = vmatpush3.bf16.msra.mxu0 %v17440_v63  ;;  %13626 = vmatprep.mubr.msk.f32.mxu0 %vm14918_vm6, %v17889_v52 }
 0xead   : > { %14588 = vmatprep.subr.bf16.mxu0 %v14917_v34 }
 0xeaf   : > { %13627 = vmatmul.mubr.msk.f32.vlgmr.msra.gmra.mrb[100].mxu0 %vm8289_vm9, %v8914_v58  ;;  %v14616_v58 = vpack.c.bf16 %v11576_v2, %v11575_v11 }
 0xeb0   : > { %14590 = vmatpush3.bf16.msra.mxu0 %v17440_v63  ;;  %13640 = vmatprep.mubr.msk.f32.mxu0 %vm14918_vm6, %v17889_v52 }
 0xeb1   : > { %14594 = vmatprep.subr.bf16.mxu0 %v14917_v34 }
 0xeb3   : > { %13641 = vmatmul.mubr.msk.f32.vlgmr.msra.gmra.mrb[102].mxu0 %vm8289_vm9, %v9071_v5  ;;  %v11581_v5 = vld [vmem:[%s17769_s8 + $0xa8] sm:$0xff] }
 0xeb4   : > { %14596 = vmatpush3.bf16.msra.mxu0 %v17440_v63  ;;  %13654 = vmatprep.mubr.msk.f32.mxu0 %vm14918_vm6, %v17889_v52  ;;  %v14622_v60 = vpack.c.bf16 %v11581_v5, %v11580_v36 }
 0xeb5   : > { %14600 = vmatprep.subr.bf16.mxu0 %v14917_v34 }
 0xeb7   : > { %13655 = vmatmul.mubr.msk.f32.vlgmr.msra.gmra.mrb[104].mxu0 %vm8289_vm9, %v9228_v59 }
 0xeb8   : > { %14602 = vmatpush3.bf16.msra.mxu0 %v17440_v63  ;;  %13668 = vmatprep.mubr.msk.f32.mxu0 %vm14918_vm6, %v17889_v52 }
 0xeb9   : > { %14606 = vmatprep.subr.bf16.mxu0 %v14917_v34 }
 0xebb   : > { %13669 = vmatmul.mubr.msk.f32.vlgmr.msra.gmra.mrb[106].mxu0 %vm8289_vm9, %v9385_v27  ;;  %v11585_v27 = vld [vmem:[%s17769_s8 + $0xb0] sm:$0xff] }
 0xebc   : > { %14608 = vmatpush3.bf16.msra.mxu0 %v17440_v63  ;;  %13682 = vmatprep.mubr.msk.f32.mxu0 %vm14918_vm6, %v17889_v52 }
 0xebd   : > { %14612 = vmatprep.subr.bf16.mxu0 %v14917_v34 }
 0xebf   : > { %13683 = vmatmul.mubr.msk.f32.vlgmr.msra.gmra.mrb[108].mxu0 %vm8289_vm9, %v9542_v35 }
 0xec0   : > { %14614 = vmatpush3.bf16.msra.mxu0 %v17440_v63  ;;  %13696 = vmatprep.mubr.msk.f32.mxu0 %vm14918_vm6, %v17889_v52 }
 0xec1   : > { %14618 = vmatprep.subr.bf16.mxu0 %v14917_v34 }
 0xec3   : > { %13697 = vmatmul.mubr.msk.f32.vlgmr.msra.gmra.mrb[110].mxu0 %vm8289_vm9, %v9699_v62  ;;  %v14628_v62 = vpack.c.bf16 %v11586_v14, %v11585_v27 }
 0xec4   : > { %14620 = vmatpush3.bf16.msra.mxu0 %v17440_v63  ;;  %13710 = vmatprep.mubr.msk.f32.mxu0 %vm14918_vm6, %v17889_v52 }
 0xec5   : > { %14624 = vmatprep.subr.bf16.mxu0 %v14917_v34 }
 0xec7   : > { %13711 = vmatmul.mubr.msk.f32.vlgmr.msra.gmra.mrb[112].mxu0 %vm8289_vm9, %v9856_v4  ;;  %v11591_v4 = vld [vmem:[%s17769_s8 + $0xc8] sm:$0xff] }
 0xec8   : > { %14626 = vmatpush3.bf16.msra.mxu0 %v17440_v63  ;;  %13724 = vmatprep.mubr.msk.f32.mxu0 %vm14918_vm6, %v17889_v52  ;;  %v14634_v40 = vpack.c.bf16 %v11591_v4, %v11590_v21  ;;  %v11608_v21 = vld [vmem:[%s17770_s9] ss:$0 sm:$0xff] }
 0xec9   : > { %14630 = vmatprep.subr.bf16.mxu0 %v14917_v34 }
 0xecb   : > { %13725 = vmatmul.mubr.msk.f32.vlgmr.msra.gmra.mrb[114].mxu0 %vm8289_vm9, %v10013_v38 }
 0xecc   : > { %14632 = vmatpush3.bf16.msra.mxu0 %v17440_v63  ;;  %13738 = vmatprep.mubr.msk.f32.mxu0 %vm14918_vm6, %v17889_v52 }
 0xecd   : > { %14636 = vmatprep.subr.bf16.mxu0 %v14917_v34 }
 0xecf   : > { %13739 = vmatmul.mubr.msk.f32.vlgmr.msra.gmra.mrb[116].mxu0 %vm8289_vm9, %v10170_v43  ;;  %v11595_v43 = vld [vmem:[%s17769_s8 + $0xd0] sm:$0xff] }
 0xed0   : > { %14638 = vmatpush3.bf16.msra.mxu0 %v17440_v63  ;;  %13752 = vmatprep.mubr.msk.f32.mxu0 %vm14918_vm6, %v17889_v52 }
 0xed1   : > { %14642 = vmatprep.subr.bf16.mxu0 %v14917_v34 }
 0xed3   : > { %13753 = vmatmul.mubr.msk.f32.vlgmr.msra.gmra.mrb[118].mxu0 %vm8289_vm9, %v10327_v10 }
 0xed4   : > { %14644 = vmatpush3.bf16.msra.mxu0 %v17440_v63  ;;  %13766 = vmatprep.mubr.msk.f32.mxu0 %vm14918_vm6, %v17889_v52 }
 0xed5   : > { %14648 = vmatprep.subr.bf16.mxu0 %v14917_v34 }
 0xed7   : > { %13767 = vmatmul.mubr.msk.f32.vlgmr.msra.gmra.mrb[120].mxu0 %vm8289_vm9, %v10484_v22  ;;  %v14640_v22 = vpack.c.bf16 %v11596_v30, %v11595_v43 }
 0xed8   : > { %14650 = vmatpush3.bf16.msra.mxu0 %v17440_v63  ;;  %13780 = vmatprep.mubr.msk.f32.mxu0 %vm14918_vm6, %v17889_v52  ;;  %v14592_v63 = vpack.c.bf16 %v11556_v47, %v11555_v42 }
 0xedb   : > { %13781 = vmatmul.mubr.msk.f32.vlgmr.msra.gmra.mrb[122].mxu0 %vm8289_vm9, %v10641_v28  ;;  %v11600_v28 = vld [vmem:[%s17769_s8 + $0xe0] sm:$0xff] }
 0xf72   : > { %v8517_v3 = vpop.f32.mrb[92].mxu0 }
 0xf73   : > { %v13586_v37 = vpop.f32.mrb[93].mxu0 }
 0xf74   : > { %v11605_v37 = vld [vmem:[%s17769_s8 + $0xf0] sm:$0xff] }
 0xf76   : > { %v8590_v29 = vpop.f32.mrb[94].mxu0 }
 0xf77   : > { %v17584_v16 = vadd.f32 %v8590_v29, %v8517_v3  ;;  %v13593_v17 = vpop.f32.mrb[95].mxu0  ;;  %v14646_v3 = vpack.c.bf16 %v11601_v44, %v11600_v28 }
 0xf78   : > { %v14652_v17 = vpack.c.bf16 %v11606_v51, %v11605_v37 }
 0xf7a   : > { %v8670_v23 = vpop.f32.mrb[96].mxu0 }
 0xf7b   : > { %v13600_v25 = vpop.f32.mrb[97].mxu0  ;;  %13606 = vmatmul.mubr.msk.f32.vlgmr.msra.gmra.mrb[210].mxu1 %vm8289_vm9, %v8670_v23 }
 0xf7c   : > { %14581 = vmatpush3.bf16.msra.mxu1 %v14580_v32  ;;  %13619 = vmatprep.mubr.msk.f32.mxu1 %vm14918_vm6, %v17889_v52 }
 0xf7d   : > { %14585 = vmatprep.subr.bf16.mxu1 %v14917_v34 }
 0xf7e   : > { %v8827_v50 = vpop.f32.mrb[98].mxu0 }
 0xf7f   : > { %v13614_v55 = vpop.f32.mrb[99].mxu0  ;;  %13620 = vmatmul.mubr.msk.f32.vlgmr.msra.gmra.mrb[212].mxu1 %vm8289_vm9, %v8827_v50 }
 0xf80   : > { %14587 = vmatpush3.bf16.msra.mxu1 %v14586_v31  ;;  %13633 = vmatprep.mubr.msk.f32.mxu1 %vm14918_vm6, %v17889_v52 }
 0xf81   : > { %14591 = vmatprep.subr.bf16.mxu1 %v14917_v34 }
 0xf82   : > { %v8984_v45 = vpop.f32.mrb[100].mxu0 }
 0xf83   : > { %v13628_v26 = vpop.f32.mrb[101].mxu0  ;;  %13634 = vmatmul.mubr.msk.f32.vlgmr.msra.gmra.mrb[214].mxu1 %vm8289_vm9, %v8984_v45 }
 0xf84   : > { %14593 = vmatpush3.bf16.msra.mxu1 %v14592_v63  ;;  %13647 = vmatprep.mubr.msk.f32.mxu1 %vm14918_vm6, %v17889_v52 }
 0xf85   : > { %14597 = vmatprep.subr.bf16.mxu1 %v14917_v34 }
 0xf86   : > { %v9141_v56 = vpop.f32.mrb[102].mxu0 }
 0xf87   : > { %v13642_v57 = vpop.f32.mrb[103].mxu0  ;;  %13648 = vmatmul.mubr.msk.f32.vlgmr.msra.gmra.mrb[216].mxu1 %vm8289_vm9, %v9141_v56 }
 0xf88   : > { %14599 = vmatpush3.bf16.msra.mxu1 %v14598_v41  ;;  %13661 = vmatprep.mubr.msk.f32.mxu1 %vm14918_vm6, %v17889_v52 }
 0xf89   : > { %14603 = vmatprep.subr.bf16.mxu1 %v14917_v34 }
 0xf8a   : > { %v9298_v6 = vpop.f32.mrb[104].mxu0 }
 0xf8b   : > { %v13656_v46 = vpop.f32.mrb[105].mxu0  ;;  %13662 = vmatmul.mubr.msk.f32.vlgmr.msra.gmra.mrb[218].mxu1 %vm8289_vm9, %v9298_v6 }
 0xf8c   : > { %14605 = vmatpush3.bf16.msra.mxu1 %v14604_v39  ;;  %13675 = vmatprep.mubr.msk.f32.mxu1 %vm14918_vm6, %v17889_v52 }
 0xf8d   : > { %14609 = vmatprep.subr.bf16.mxu1 %v14917_v34 }
 0xf8e   : > { %v9455_v48 = vpop.f32.mrb[106].mxu0 }
 0xf8f   : > { %v13670_v49 = vpop.f32.mrb[107].mxu0  ;;  %13676 = vmatmul.mubr.msk.f32.vlgmr.msra.gmra.mrb[220].mxu1 %vm8289_vm9, %v9455_v48 }
 0xf90   : > { %14611 = vmatpush3.bf16.msra.mxu1 %v14610_v24  ;;  %13689 = vmatprep.mubr.msk.f32.mxu1 %vm14918_vm6, %v17889_v52 }
 0xf91   : > { %14615 = vmatprep.subr.bf16.mxu1 %v14917_v34 }
 0xf92   : > { %v9612_v8 = vpop.f32.mrb[108].mxu0 }
 0xf93   : > { %v13684_v59 = vpop.f32.mrb[109].mxu0  ;;  %13690 = vmatmul.mubr.msk.f32.vlgmr.msra.gmra.mrb[222].mxu1 %vm8289_vm9, %v9612_v8 }
 0xf94   : > { %14617 = vmatpush3.bf16.msra.mxu1 %v14616_v58  ;;  %13703 = vmatprep.mubr.msk.f32.mxu1 %vm14918_vm6, %v17889_v52 }
 0xf95   : > { %14621 = vmatprep.subr.bf16.mxu1 %v14917_v34 }
 0xf96   : > { %v9769_v35 = vpop.f32.mrb[110].mxu0 }
 0xf97   : > { %v13698_v15 = vpop.f32.mrb[111].mxu0  ;;  %13704 = vmatmul.mubr.msk.f32.vlgmr.msra.gmra.mrb[224].mxu1 %vm8289_vm9, %v9769_v35 }
 0xf98   : > { %14623 = vmatpush3.bf16.msra.mxu1 %v14622_v60  ;;  %13717 = vmatprep.mubr.msk.f32.mxu1 %vm14918_vm6, %v17889_v52 }
 0xf99   : > { %14627 = vmatprep.subr.bf16.mxu1 %v14917_v34 }
 0xf9a   : > { %v9926_v19 = vpop.f32.mrb[112].mxu0 }
 0xf9b   : > { %v13712_v38 = vpop.f32.mrb[113].mxu0  ;;  %13718 = vmatmul.mubr.msk.f32.vlgmr.msra.gmra.mrb[226].mxu1 %vm8289_vm9, %v9926_v19 }
 0xf9c   : > { %14629 = vmatpush3.bf16.msra.mxu1 %v14628_v62  ;;  %13731 = vmatprep.mubr.msk.f32.mxu1 %vm14918_vm6, %v17889_v52 }
 0xf9d   : > { %14633 = vmatprep.subr.bf16.mxu1 %v14917_v34 }
 0xf9e   : > { %v10083_v10 = vpop.f32.mrb[114].mxu0 }
 0xf9f   : > { %v13726_v13 = vpop.f32.mrb[115].mxu0  ;;  %13732 = vmatmul.mubr.msk.f32.vlgmr.msra.gmra.mrb[228].mxu1 %vm8289_vm9, %v10083_v10 }
 0xfa0   : > { %14635 = vmatpush3.bf16.msra.mxu1 %v14634_v40  ;;  %13745 = vmatprep.mubr.msk.f32.mxu1 %vm14918_vm6, %v17889_v52 }
 0xfa1   : > { %14639 = vmatprep.subr.bf16.mxu1 %v14917_v34 }
 0xfa2   : > { %v10240_v9 = vpop.f32.mrb[116].mxu0 }
 0xfa3   : > { %v13740_v53 = vpop.f32.mrb[117].mxu0  ;;  %13746 = vmatmul.mubr.msk.f32.vlgmr.msra.gmra.mrb[230].mxu1 %vm8289_vm9, %v10240_v9 }
 0xfa4   : > { %14641 = vmatpush3.bf16.msra.mxu1 %v14640_v22  ;;  %13759 = vmatprep.mubr.msk.f32.mxu1 %vm14918_vm6, %v17889_v52 }
 0xfa5   : > { %14645 = vmatprep.subr.bf16.mxu1 %v14917_v34 }
 0xfa6   : > { %v10397_v12 = vpop.f32.mrb[118].mxu0 }
 0xfa7   : > { %v13754_v29 = vpop.f32.mrb[119].mxu0  ;;  %13760 = vmatmul.mubr.msk.f32.vlgmr.msra.gmra.mrb[232].mxu1 %vm8289_vm9, %v10397_v12 }
 0xfa8   : > { %14647 = vmatpush3.bf16.msra.mxu1 %v14646_v3  ;;  %13773 = vmatprep.mubr.msk.f32.mxu1 %vm14918_vm6, %v17889_v52 }
 0xfa9   : > { %14651 = vmatprep.subr.bf16.mxu1 %v14917_v34 }
 0xfaa   : > { %v10554_v32 = vpop.f32.mrb[120].mxu0 }
 0xfab   : > { %v13768_v7 = vpop.f32.mrb[121].mxu0  ;;  %13774 = vmatmul.mubr.msk.f32.vlgmr.msra.gmra.mrb[234].mxu1 %vm8289_vm9, %v10554_v32 }
 0xfac   : > { %14653 = vmatpush3.bf16.msra.mxu1 %v14652_v17  ;;  %13787 = vmatprep.mubr.msk.f32.mxu1 %vm14918_vm6, %v17889_v52 }
 0xfae   : > { %v10711_v18 = vpop.f32.mrb[122].mxu0 }
 0xfaf   : > { %v13782_v23 = vpop.f32.mrb[123].mxu0  ;;  %13788 = vmatmul.mubr.msk.f32.vlgmr.msra.gmra.mrb[236].mxu1 %vm8289_vm9, %v10711_v18  ;;  %vm10803_vm9 = vcmask 257024  }
0x104e   : > { %v8746_v25 = vpop.f32.mrb[210].mxu1 }
0x104f   : > { %v8750_v31 = vadd.f32 %v8746_v25, %v17584_v16  ;;  %v13607_v42 = vpop.f32.mrb[211].mxu1 }
0x1052   : > { %v8903_v47 = vpop.f32.mrb[212].mxu1 }
0x1053   : > { %v8907_v50 = vadd.f32 %v8903_v47, %v8750_v31  ;;  %v13621_v55 = vpop.f32.mrb[213].mxu1 }
0x1056   : > { %v9060_v34 = vpop.f32.mrb[214].mxu1 }
0x1057   : > { %v9064_v63 = vadd.f32 %v9060_v34, %v8907_v50  ;;  %v13635_v61 = vpop.f32.mrb[215].mxu1 }
0x105a   : > { %v9217_v33 = vpop.f32.mrb[216].mxu1 }
0x105b   : > { %v9221_v45 = vadd.f32 %v9217_v33, %v9064_v63  ;;  %v13649_v26 = vpop.f32.mrb[217].mxu1 }
0x105e   : > { %v9374_v41 = vpop.f32.mrb[218].mxu1 }
0x105f   : > { %v9378_v0 = vadd.f32 %v9374_v41, %v9221_v45  ;;  %v13663_v52 = vpop.f32.mrb[219].mxu1 }
0x1062   : > { %v9531_v54 = vpop.f32.mrb[220].mxu1 }
0x1063   : > { %v9535_v56 = vadd.f32 %v9531_v54, %v9378_v0  ;;  %v13677_v57 = vpop.f32.mrb[221].mxu1 }
0x1066   : > { %v9688_v39 = vpop.f32.mrb[222].mxu1 }
0x1067   : > { %v9692_v1 = vadd.f32 %v9688_v39, %v9535_v56  ;;  %v13691_v20 = vpop.f32.mrb[223].mxu1 }
0x106a   : > { %v9845_v16 = vpop.f32.mrb[224].mxu1 }
0x106b   : > { %v9849_v6 = vadd.f32 %v9845_v16, %v9692_v1  ;;  %v13705_v46 = vpop.f32.mrb[225].mxu1 }
0x106e   : > { %v10002_v24 = vpop.f32.mrb[226].mxu1 }
0x106f   : > { %v10006_v11 = vadd.f32 %v10002_v24, %v9849_v6  ;;  %v13719_v2 = vpop.f32.mrb[227].mxu1 }
0x1072   : > { %v10159_v48 = vpop.f32.mrb[228].mxu1 }
0x1073   : > { %v10163_v49 = vadd.f32 %v10159_v48, %v10006_v11  ;;  %v13733_v58 = vpop.f32.mrb[229].mxu1 }
0x1076   : > { %v10316_v36 = vpop.f32.mrb[230].mxu1 }
0x1077   : > { %v10320_v5 = vadd.f32 %v10316_v36, %v10163_v49  ;;  %v13747_v8 = vpop.f32.mrb[231].mxu1 }
0x107a   : > { %v10473_v59 = vpop.f32.mrb[232].mxu1 }
0x107b   : > { %v10477_v60 = vadd.f32 %v10473_v59, %v10320_v5  ;;  %v13761_v27 = vpop.f32.mrb[233].mxu1 }
0x107e   : > { %v10630_v14 = vpop.f32.mrb[234].mxu1 }
0x107f   : > { %v10634_v35 = vadd.f32 %v10630_v14, %v10477_v60  ;;  %v13775_v15 = vpop.f32.mrb[235].mxu1 }
0x1082   : > { %v10787_v62 = vpop.f32.mrb[236].mxu1 }
0x1083   : > { %v10791_v4 = vadd.f32 %v10787_v62, %v10634_v35  ;;  %v13789_v19 = vpop.f32.mrb[237].mxu1 }
0x1085   : > { %v10799_v38 = vadd.f32 %v11608_v21, %v10791_v4 }
0x1087   : > { %vm10800_vm6 = vcmp.ge.f32.partialorder %v10799_v38, 0.0  ;;  %v10801_v40 = vmul.f32 0.2, %v10799_v38 }
0x1089   : > { %v10802_v43 = vsel %vm10800_vm6, %v10799_v38, %v10801_v40 }
0x108a   : > { %10804 = vst.msk [vmem:[%s352_s29] sm:$0xf] %vm10803_vm9, %v10802_v43 }
0x108b   : > { %14863 = shalt.err (!%p14860_p3)
}
0x108c   : > { %s14864_s25 = scalar_lea.hbm %s17719_s12, 64  ;;  %s14868_s29 = scalar_lea.hbm %s17771_s10, 128 }
0x108d   : > { %p14865_p4 = scmp.ne.s32.totalorder %s17719_s12, %s14864_s25  ;;  %p14869_p9 = scmp.lt.u32.totalorder %s17719_s12, %s17771_s10 }
0x108e   : > { %p14870_p10 = scmp.lt.u32.totalorder %s14868_s29, %s14864_s25  ;;  %p14872_p12 = scmp.lt.u32.totalorder %s14864_s25, %s17719_s12 }
0x108f   : > { %p14866_p7 = pnand %p14865_p4, %p15013_p5 }
0x1090   : > { %p14871_p11 = por %p14870_p10, %p14869_p9 }
0x1091   : > { %p14867_p8 = pneg %p14866_p7 }
0x1092   : > { %p14873_p13 = por %p14872_p12, %p14871_p11 }
0x1094   : > { %p14874_p0 = pnand %p14873_p13, %p14867_p8 }
0x1096   : > { %14877 = shalt.err (!%p14874_p0)
}
0x1097   : > { %14804 = dma.vmem_to_hbm [thread:$0]  (%p15013_p5), %s17721_s30, 64, %s17719_s12, %s10806_s18  }
0x1098 PF: > { %p14810_p1 = scmp.ge.s32.totalorder %s14912_s16, 2  ;;  %s10831_s21 = sand.u32 1, %s14900_s13  }
0x1099   : > { %s10832_s17 = scalar_lea.sflag [#allocation3], %s10831_s21 }
0x109a   : > { %p14807_p2 = pnand %p14810_p1, %p15017_p6 }
0x109c   : > { %14895 = dma.done.wait (!%p14807_p2), %s10832_s17, 64  }
0x109d   : > { %14897 = vsyncadd (!%p14807_p2), %s10832_s17, 4294967232  ;;  %s17890_s26 = sld [smem:[#allocation5_spill]]  ;;  %p20_p3 = scmp.ge.s32.totalorder %s15000_s19, 4  }
0x109e   : > { %s17891_s13 = smov %s14904_s14  ;;  %s17892_s14 = smov %s14908_s15 }
0x109f   : > { %s17894_s16 = smov %s15000_s19  ;;  %22 = sbr.rel (!%p20_p3) target bundleno = 3 (0x3), region = 185 }
0x10a3   : > { %s17893_s15 = smov %s17890_s26 }
0x10a6   :  { %10837 = vsyncpa [#allocation3], 1 }
0x10a7   :  { %10839 = vsyncpa [#allocation3 + $0x1], 1 }

</bundles_post_ra>
